<compile_context>
chip_gen: v6e
topology: v6e:2x2x1
jax: 0.10.0
libtpu: 0.0.40
codegen_flags: <defaults>
</compile_context>

<pallas_src>
import functools

import jax
import jax.numpy as jnp
from jax.experimental import pallas as pl
from jax.experimental.pallas import tpu as pltpu


_HALO = 128  # >= Wp + 1 for any CIFAR-like width (W <= 125)
_VMEM = pl.BlockSpec(memory_space=pltpu.MemorySpace.VMEM)


def _round_up(x, m):
    return -(-x // m) * m


# ----------------------------------------------------------------------------
# Geometry: "guarded padded-flat" layout for one spatial resolution
# ----------------------------------------------------------------------------
def _geom(n, h, w):
    hp, wp = h + 2, w + 2
    assert wp + 1 <= _HALO, "image width too large for the fixed 128-lane halo"
    img = hp * wp
    m = n * img
    tile = min(2048, max(128, _round_up(_round_up(m, 4) // 4, 128)))
    nt = _round_up(m, tile) // tile
    if nt % 2:
        nt += 1                      # even #tiles -> 2 'parallel' halves (v7x megacore)
    m_pad = nt * tile
    guard = tile                     # one (unwritten) guard block on each side
    return dict(
        h=h, w=w, hp=hp, wp=wp, img=img, m=m, tile=tile, nt=nt, nt_half=nt // 2,
        m_pad=m_pad, guard=guard, m_ext=m_pad + 2 * tile,
        offsets=tuple((kh - 1) * wp + (kw - 1) for kh in range(3) for kw in range(3)),
    )


def _valid_mask(g, n):
    """(1, m_pad) float mask: 1.0 on real (interior) output positions, 0.0 elsewhere."""
    idx = jnp.arange(g["m_pad"], dtype=jnp.int32)
    r = idx % g["img"]
    row = r // g["wp"]
    col = r % g["wp"]
    ok = ((idx < n * g["img"])
          & (row >= 1) & (row <= g["hp"] - 2)
          & (col >= 1) & (col <= g["wp"] - 2))
    return ok.astype(jnp.float32)[None, :]


def _embed(x_cnhw, g):
    """(C, N, H, W) -> guarded padded-flat (C, m_ext) bf16 (zero spatial borders)."""
    c = x_cnhw.shape[0]
    xp = jnp.pad(x_cnhw, ((0, 0), (0, 0), (1, 1), (1, 1)))
    flat = xp.reshape(c, -1).astype(jnp.bfloat16)
    return jnp.pad(flat, ((0, 0), (g["guard"], g["m_ext"] - g["guard"] - flat.shape[1])))


def _subsample2(y_guarded, g, n):
    """Pick the stride-2 outputs out of a stride-1 result -> dense (C, N, H//2, W//2)."""
    c = y_guarded.shape[0]
    data = jax.lax.slice(y_guarded, (0, g["guard"]), (c, g["guard"] + n * g["img"]))
    y4 = data.reshape(c, n, g["hp"], g["wp"])
    return y4[:, :, 1:g["hp"] - 1:2, 1:g["wp"] - 1:2]


# ----------------------------------------------------------------------------
# Fused conv(+folded BN)(+residual)(+ReLU) kernel, im2col built in VMEM
# ----------------------------------------------------------------------------
def _conv_kernel(*refs, offsets, relu, tile, nt_half, guard, cin_p, has_res):
    if has_res:
        x_hbm, w_ref, b_ref, m_ref, r_ref, o_ref, xwin, patch, sem = refs
    else:
        x_hbm, w_ref, b_ref, m_ref, o_ref, xwin, patch, sem = refs
        r_ref = None

    c = pl.program_id(0)             # 'parallel' half of the M range
    j = pl.program_id(1)             # sequential tile index within the half
    t = c * nt_half + j              # global data-tile index
    win = tile + 2 * _HALO

    def _start_dma(tt, slot):
        pltpu.make_async_copy(
            x_hbm.at[:, pl.ds(tt * tile + (guard - _HALO), win)],
            xwin.at[slot],
            sem.at[slot],
        ).start()

    @pl.when(j == 0)
    def _prime():
        _start_dma(t, 0)

    @pl.when(j + 1 < nt_half)
    def _prefetch():
        _start_dma(t + 1, (j + 1) % 2)

    slot = j % 2
    pltpu.make_async_copy(
        x_hbm.at[:, pl.ds(0, win)], xwin.at[slot], sem.at[slot]
    ).wait()

    # Build the im2col patch tile in VMEM from the haloed input window.
    for k, d in enumerate(offsets):
        s0 = _HALO + d
        patch[k * cin_p:(k + 1) * cin_p, :] = xwin[slot, :, s0:s0 + tile]

    # Single MXU matmul: (C_out, T*C_in) @ (T*C_in, TILE_M), f32 accumulation.
    y = jnp.dot(w_ref[...], patch[...], preferred_element_type=jnp.float32)
    y = y + b_ref[...]
    if has_res:
        y = y + r_ref[...].astype(jnp.float32)
    if relu:
        y = jnp.maximum(y, 0.0)
    # Select (not multiply) so garbage/NaN in guard regions can never propagate.
    y = jnp.where(m_ref[...] > 0.0, y, 0.0)
    o_ref[...] = y.astype(o_ref.dtype)


def conv_bn(xg, wmat, bias, mask, g, *, taps, relu, residual=None):
    """Conv (3x3 or 1x1 tap set) + folded BN (+residual)(+ReLU) in guarded-flat layout."""
    c_out = wmat.shape[0]
    cin_p = wmat.shape[1] // len(taps)
    tile = g["tile"]
    nt_half = g["nt_half"]
    win = tile + 2 * _HALO

    in_specs = [
        pl.BlockSpec(memory_space=pl.ANY),                          # x: raw HBM ref
        pl.BlockSpec(wmat.shape, lambda c, j: (0, 0)),              # weights: resident
        pl.BlockSpec((c_out, 1), lambda c, j: (0, 0)),              # bias: resident
        pl.BlockSpec((1, tile), lambda c, j: (0, c * nt_half + j)),  # validity mask
    ]
    args = [xg, wmat, bias, mask]
    if residual is not None:
        in_specs.append(
            pl.BlockSpec((c_out, tile), lambda c, j: (0, c * nt_half + j + 1)))
        args.append(residual)

    kern = functools.partial(
        _conv_kernel, offsets=tuple(taps), relu=relu, tile=tile, nt_half=nt_half,
        guard=g["guard"], cin_p=cin_p, has_res=residual is not None)

    return pl.pallas_call(
        kern,
        out_shape=jax.ShapeDtypeStruct((c_out, g["m_ext"]), jnp.bfloat16),
        grid=(2, nt_half),
        in_specs=in_specs,
        out_specs=pl.BlockSpec((c_out, tile), lambda c, j: (0, c * nt_half + j + 1)),
        scratch_shapes=[
            pltpu.VMEM((2, cin_p, win), jnp.bfloat16),               # haloed x windows
            pltpu.VMEM((len(taps) * cin_p, tile), jnp.bfloat16),     # im2col patch tile
            pltpu.SemaphoreType.DMA((2,)),
        ],
        compiler_params=pltpu.CompilerParams(
            dimension_semantics=("parallel", "arbitrary"),
            vmem_limit_bytes=32 * 1024 * 1024,
        ),
    )(*args)


# ----------------------------------------------------------------------------
# Fused global-average-pool (as matmul) + Linear
# ----------------------------------------------------------------------------
def _pool_fc_kernel(x_ref, a_ref, w_ref, b_ref, o_ref):
    pooled = jnp.dot(x_ref[...], a_ref[...], preferred_element_type=jnp.float32)  # (C, N)
    y = jnp.dot(w_ref[...], pooled, preferred_element_type=jnp.float32)           # (cls, N)
    o_ref[...] = y + b_ref[...]


def avgpool_fc(xg, g, n, fc_w, fc_b):
    c = xg.shape[0]
    data = jax.lax.slice(xg, (0, g["guard"]), (c, g["guard"] + n * g["img"]))
    pos = jnp.arange(n * g["img"], dtype=jnp.int32) // g["img"]
    pool_mat = ((pos[:, None] == jnp.arange(n, dtype=jnp.int32)[None, :])
                .astype(jnp.float32) / float(g["h"] * g["w"])).astype(jnp.bfloat16)
    ncls = fc_w.shape[0]
    logits_t = pl.pallas_call(
        _pool_fc_kernel,
        out_shape=jax.ShapeDtypeStruct((ncls, n), jnp.float32),
        in_specs=[_VMEM, _VMEM, _VMEM, _VMEM],
        out_specs=_VMEM,
    )(data, pool_mat, fc_w.astype(jnp.float32),
      fc_b.reshape(ncls, 1).astype(jnp.float32))
    return logits_t.T  # (N, num_classes)


# ----------------------------------------------------------------------------
# Static configuration (mirrors ResNet_cifar.__init__; BasicBlock, expansion = 1)
# ----------------------------------------------------------------------------
def make_resnet_cifar_config(stage_repeat=(3, 3, 3)):
    stage_channels = [16, 16, 32, 64]
    output_channels = [stage_channels[0]]
    for i in range(1, len(stage_channels)):
        output_channels += [stage_channels[i]] * stage_repeat[i - 1]
    mid_channels = []
    for i in range(1, len(stage_channels)):
        mid_channels += [stage_channels[i]] * stage_repeat[i - 1]  # expansion = 1

    blocks = []
    block_num = 1
    for stage in range(len(stage_repeat)):
        for i in range(stage_repeat[stage]):
            stride = 2 if (stage > 0 and i == 0) else 1
            c_in = output_channels[block_num - 1]
            c_mid = mid_channels[block_num - 1]
            c_out = output_channels[block_num]
            blocks.append(dict(stride=stride, c_in=c_in, c_mid=c_mid, c_out=c_out,
                               has_ds=(stride != 1 or c_in != c_out)))
            block_num += 1
    return dict(first_out=output_channels[0], feat_dim=stage_channels[-1],
                blocks=tuple(blocks))


# ----------------------------------------------------------------------------
# Parameters: raw (PyTorch-like) init + one-time prep (fold BN, pad, bf16-cast)
# ----------------------------------------------------------------------------
def _conv_w(key, c_out, c_in, k):
    fan_in = c_in * k * k
    return jax.random.normal(key, (c_out, c_in, k, k), jnp.float32) * jnp.sqrt(2.0 / fan_in)


def _bn_identity(c):
    return dict(gamma=jnp.ones((c,), jnp.float32), beta=jnp.zeros((c,), jnp.float32),
                mean=jnp.zeros((c,), jnp.float32), var=jnp.ones((c,), jnp.float32))


def init_resnet_cifar_params(key, config, num_classes=10, in_channels=3):
    nk = 3 * len(config["blocks"]) + 4
    keys = jax.random.split(key, nk)
    ki = iter(range(nk))
    params = {
        "first": dict(w=_conv_w(keys[next(ki)], config["first_out"], in_channels, 3),
                      bn=_bn_identity(config["first_out"])),
        "blocks": [],
    }
    for cfg in config["blocks"]:
        bp = dict(
            w1=_conv_w(keys[next(ki)], cfg["c_mid"], cfg["c_in"], 3),
            bn1=_bn_identity(cfg["c_mid"]),
            w2=_conv_w(keys[next(ki)], cfg["c_out"], cfg["c_mid"], 3),
            bn2=_bn_identity(cfg["c_out"]),
        )
        if cfg["has_ds"]:
            bp["wds"] = _conv_w(keys[next(ki)], cfg["c_out"], cfg["c_in"], 1)
            bp["bnds"] = _bn_identity(cfg["c_out"])
        params["blocks"].append(bp)
    bound = 1.0 / float(config["feat_dim"]) ** 0.5
    params["fc_w"] = jax.random.uniform(keys[next(ki)], (num_classes, config["feat_dim"]),
                                        jnp.float32, -bound, bound)
    params["fc_b"] = jax.random.uniform(keys[next(ki)], (num_classes,),
                                        jnp.float32, -bound, bound)
    return params


def _fold_conv_bn(w_oihw, bn, eps=1e-5):
    scale = bn["gamma"] / jnp.sqrt(bn["var"] + eps)
    bias = bn["beta"] - bn["mean"] * scale
    co, ci, kh, kw = w_oihw.shape
    cin_p = _round_up(max(ci, 16), 16)
    wf = (w_oihw * scale[:, None, None, None]).transpose(0, 2, 3, 1)  # (co, kh, kw, ci)
    wf = wf.reshape(co, kh * kw, ci)
    wf = jnp.pad(wf, ((0, 0), (0, 0), (0, cin_p - ci)))
    wf = wf.reshape(co, kh * kw * cin_p).astype(jnp.bfloat16)
    return wf, bias.reshape(co, 1).astype(jnp.float32)


def prepare_params(raw, config):
    fp = {"first": {}, "blocks": []}
    fp["first"]["w"], fp["first"]["b"] = _fold_conv_bn(raw["first"]["w"], raw["first"]["bn"])
    for cfg, bp in zip(config["blocks"], raw["blocks"]):
        e = {}
        e["w1"], e["b1"] = _fold_conv_bn(bp["w1"], bp["bn1"])
        e["w2"], e["b2"] = _fold_conv_bn(bp["w2"], bp["bn2"])
        if cfg["has_ds"]:
            e["wds"], e["bds"] = _fold_conv_bn(bp["wds"], bp["bnds"])
        fp["blocks"].append(e)
    fp["fc_w"] = raw["fc_w"].astype(jnp.float32)
    fp["fc_b"] = raw["fc_b"].astype(jnp.float32)
    return fp


# ----------------------------------------------------------------------------
# Forward pass (mirrors ResNet_cifar.forward, eval mode)
# ----------------------------------------------------------------------------
def resnet_cifar_forward(x_nchw, fp, *, config):
    n, c_in, h, w = x_nchw.shape
    g = _geom(n, h, w)
    mask = _valid_mask(g, n)

    cin_p = fp["first"]["w"].shape[1] // 9
    xt = jnp.transpose(x_nchw.astype(jnp.float32), (1, 0, 2, 3))     # (C, N, H, W)
    xt = jnp.pad(xt, ((0, cin_p - c_in), (0, 0), (0, 0), (0, 0)))
    xg = _embed(xt, g)

    xg = conv_bn(xg, fp["first"]["w"], fp["first"]["b"], mask, g,
                 taps=g["offsets"], relu=True)

    for cfg, bp in zip(config["blocks"], fp["blocks"]):
        if cfg["stride"] == 2:
            # stride-2 conv1 (+ 1x1 shortcut on its single center tap) run at stride 1,
            # then the stride-2 outputs are picked out and re-embedded (cheap XLA).
            y1 = conv_bn(xg, bp["w1"], bp["b1"], mask, g, taps=g["offsets"], relu=True)
            sc_full = (conv_bn(xg, bp["wds"], bp["bds"], mask, g, taps=(0,), relu=False)
                       if cfg["has_ds"] else xg)
            g2 = _geom(n, (g["h"] + 1) // 2, (g["w"] + 1) // 2)
            out1 = _embed(_subsample2(y1, g, n), g2)
            sc = _embed(_subsample2(sc_full, g, n), g2)
            g, mask = g2, _valid_mask(g2, n)
        else:
            out1 = conv_bn(xg, bp["w1"], bp["b1"], mask, g, taps=g["offsets"], relu=True)
            sc = (conv_bn(xg, bp["wds"], bp["bds"], mask, g, taps=(0,), relu=False)
                  if cfg["has_ds"] else xg)
        # conv2 + folded BN + residual add + ReLU, fused in one kernel
        xg = conv_bn(out1, bp["w2"], bp["b2"], mask, g, taps=g["offsets"], relu=True,
                     residual=sc)

    return avgpool_fc(xg, g, n, fp["fc_w"], fp["fc_b"])


# ----------------------------------------------------------------------------
if __name__ == "__main__":
    key = jax.random.PRNGKey(0)
    pkey, xkey = jax.random.split(key)

    num_classes = 10
    config = make_resnet_cifar_config((3, 3, 3))
    raw_params = init_resnet_cifar_params(pkey, config, num_classes=num_classes)
    fast_params = prepare_params(raw_params, config)   # one-time weight prep (BN folded)

    # small CIFAR-like input, NCHW: batch=2, channels=3, spatial=16
    x = jax.random.normal(xkey, (2, 3, 16, 16), jnp.float32)

    fwd = jax.jit(functools.partial(resnet_cifar_forward, config=config))
    logits = fwd(x, fast_params)
    jax.block_until_ready(logits)

    assert logits.shape == (2, num_classes), logits.shape
    assert bool(jnp.all(jnp.isfinite(logits)))
    print("KERNEL_OK")
</pallas_src>

<mosaic_0001>
module attributes {stable_mosaic.version = 11 : i64} {
  func.func @_conv_kernel(%arg0: i32, %arg1: i32, %arg2: memref<16x1536xbf16, #tpu.memory_space<any>>, %arg3: memref<16x144xbf16, #tpu.memory_space<vmem>>, %arg4: memref<16x1xf32, #tpu.memory_space<vmem>>, %arg5: memref<1x256xf32, #tpu.memory_space<vmem>>, %arg6: memref<16x256xbf16, #tpu.memory_space<vmem>>, %arg7: memref<16x256xbf16, #tpu.memory_space<vmem>>, %arg8: memref<2x16x512xbf16, #tpu.memory_space<vmem>>, %arg9: memref<144x256xbf16, #tpu.memory_space<vmem>>, %arg10: memref<2x!tpu.dma_semaphore, #tpu.memory_space<semaphore_mem>>) attributes {dimension_semantics = [#tpu.dimension_semantics<parallel>, #tpu.dimension_semantics<arbitrary>], iteration_bounds = array<i64: 2, 2>, scalar_prefetch = 0 : i64, scratch_operands = 3 : i64, tpu.core_type = #tpu.core_type<tc>, window_params = [{}, {pipeline_mode = #tpu.pipeline_mode<synchronous>, transform_indices = @transform_1, window_bounds = array<i64: 16, 144>}, {pipeline_mode = #tpu.pipeline_mode<synchronous>, transform_indices = @transform_2, window_bounds = array<i64: 16, 1>}, {transform_indices = @transform_3, window_bounds = array<i64: 1, 256>}, {transform_indices = @transform_4, window_bounds = array<i64: 16, 256>}, {transform_indices = @transform_5, window_bounds = array<i64: 16, 256>}]} {
    %c2_i32 = arith.constant 2 : i32
    %0 = arith.muli %arg0, %c2_i32 : i32
    %1 = arith.addi %0, %arg1 : i32
    %c0_i32 = arith.constant 0 : i32
    %2 = arith.cmpi eq, %arg1, %c0_i32 : i32
    %3 = arith.extui %2 : i1 to i32
    %c0_i32_0 = arith.constant 0 : i32
    %4 = arith.cmpi ne, %3, %c0_i32_0 : i32
    scf.if %4 {
      %c256_i32 = arith.constant 256 : i32
      %80 = arith.muli %1, %c256_i32 : i32
      %c128_i32 = arith.constant 128 : i32
      %81 = arith.addi %80, %c128_i32 : i32
      %c0_i32_47 = arith.constant 0 : i32
      %c0_i32_48 = arith.constant 0 : i32
      %c0_i32_49 = arith.constant 0 : i32
      %82 = tpu.memref_slice %arg2[%c0_i32_49, %81] : memref<16x1536xbf16, #tpu.memory_space<any>> -> memref<16x512xbf16, #tpu.memory_space<any>>
      %c0_i32_50 = arith.constant 0 : i32
      %c0_i32_51 = arith.constant 0 : i32
      %83 = tpu.memref_slice %arg8[%c0_i32_47, %c0_i32_50, %c0_i32_51] : memref<2x16x512xbf16, #tpu.memory_space<vmem>> -> memref<1x16x512xbf16, #tpu.memory_space<vmem>>
      %84 = tpu.memref_squeeze %83 : memref<1x16x512xbf16, #tpu.memory_space<vmem>> -> memref<16x512xbf16, #tpu.memory_space<vmem>>
      %85 = tpu.memref_slice %arg10[%c0_i32_48] : memref<2x!tpu.dma_semaphore, #tpu.memory_space<semaphore_mem>> -> memref<1x!tpu.dma_semaphore, #tpu.memory_space<semaphore_mem>>
      %86 = tpu.memref_squeeze %85 : memref<1x!tpu.dma_semaphore, #tpu.memory_space<semaphore_mem>> -> memref<!tpu.dma_semaphore, #tpu.memory_space<semaphore_mem>>
      tpu.enqueue_dma source(%82 : memref<16x512xbf16, #tpu.memory_space<any>>) target(%84 : memref<16x512xbf16, #tpu.memory_space<vmem>>) target_semaphore(%86 : memref<!tpu.dma_semaphore, #tpu.memory_space<semaphore_mem>>)
    } else {
    }
    %c1_i32 = arith.constant 1 : i32
    %5 = arith.addi %arg1, %c1_i32 : i32
    %c2_i32_1 = arith.constant 2 : i32
    %6 = arith.cmpi slt, %5, %c2_i32_1 : i32
    %7 = arith.extui %6 : i1 to i32
    %c0_i32_2 = arith.constant 0 : i32
    %8 = arith.cmpi ne, %7, %c0_i32_2 : i32
    scf.if %8 {
      %c1_i32_47 = arith.constant 1 : i32
      %80 = arith.addi %1, %c1_i32_47 : i32
      %c1_i32_48 = arith.constant 1 : i32
      %81 = arith.addi %arg1, %c1_i32_48 : i32
      %c2_i32_49 = arith.constant 2 : i32
      %c0_i32_50 = arith.constant 0 : i32
      %82 = arith.cmpi eq, %c2_i32_49, %c0_i32_50 : i32
      %c1_i32_51 = arith.constant 1 : i32
      %83 = arith.select %82, %c1_i32_51, %c2_i32_49 : i32
      %84 = arith.remsi %81, %83 : i32
      %c0_i32_52 = arith.constant 0 : i32
      %85 = arith.cmpi ne, %84, %c0_i32_52 : i32
      %c0_i32_53 = arith.constant 0 : i32
      %86 = arith.cmpi slt, %84, %c0_i32_53 : i32
      %c0_i32_54 = arith.constant 0 : i32
      %87 = arith.cmpi slt, %83, %c0_i32_54 : i32
      %88 = arith.xori %86, %87 : i1
      %89 = arith.andi %88, %85 : i1
      %90 = arith.addi %84, %83 : i32
      %91 = arith.select %89, %90, %84 : i32
      %c256_i32 = arith.constant 256 : i32
      %92 = arith.muli %80, %c256_i32 : i32
      %c128_i32 = arith.constant 128 : i32
      %93 = arith.addi %92, %c128_i32 : i32
      %c0_i32_55 = arith.constant 0 : i32
      %94 = tpu.memref_slice %arg2[%c0_i32_55, %93] : memref<16x1536xbf16, #tpu.memory_space<any>> -> memref<16x512xbf16, #tpu.memory_space<any>>
      %c0_i32_56 = arith.constant 0 : i32
      %c0_i32_57 = arith.constant 0 : i32
      %95 = tpu.memref_slice %arg8[%91, %c0_i32_56, %c0_i32_57] : memref<2x16x512xbf16, #tpu.memory_space<vmem>> -> memref<1x16x512xbf16, #tpu.memory_space<vmem>>
      %96 = tpu.memref_squeeze %95 : memref<1x16x512xbf16, #tpu.memory_space<vmem>> -> memref<16x512xbf16, #tpu.memory_space<vmem>>
      %97 = tpu.memref_slice %arg10[%91] : memref<2x!tpu.dma_semaphore, #tpu.memory_space<semaphore_mem>> -> memref<1x!tpu.dma_semaphore, #tpu.memory_space<semaphore_mem>>
      %98 = tpu.memref_squeeze %97 : memref<1x!tpu.dma_semaphore, #tpu.memory_space<semaphore_mem>> -> memref<!tpu.dma_semaphore, #tpu.memory_space<semaphore_mem>>
      tpu.enqueue_dma source(%94 : memref<16x512xbf16, #tpu.memory_space<any>>) target(%96 : memref<16x512xbf16, #tpu.memory_space<vmem>>) target_semaphore(%98 : memref<!tpu.dma_semaphore, #tpu.memory_space<semaphore_mem>>)
    } else {
    }
    %c2_i32_3 = arith.constant 2 : i32
    %c0_i32_4 = arith.constant 0 : i32
    %9 = arith.cmpi eq, %c2_i32_3, %c0_i32_4 : i32
    %c1_i32_5 = arith.constant 1 : i32
    %10 = arith.select %9, %c1_i32_5, %c2_i32_3 : i32
    %11 = arith.remsi %arg1, %10 : i32
    %c0_i32_6 = arith.constant 0 : i32
    %12 = arith.cmpi ne, %11, %c0_i32_6 : i32
    %c0_i32_7 = arith.constant 0 : i32
    %13 = arith.cmpi slt, %11, %c0_i32_7 : i32
    %c0_i32_8 = arith.constant 0 : i32
    %14 = arith.cmpi slt, %10, %c0_i32_8 : i32
    %15 = arith.xori %13, %14 : i1
    %16 = arith.andi %15, %12 : i1
    %17 = arith.addi %11, %10 : i32
    %18 = arith.select %16, %17, %11 : i32
    %c0_i32_9 = arith.constant 0 : i32
    %c0_i32_10 = arith.constant 0 : i32
    %19 = tpu.memref_slice %arg2[%c0_i32_9, %c0_i32_10] : memref<16x1536xbf16, #tpu.memory_space<any>> -> memref<16x512xbf16, #tpu.memory_space<any>>
    %c0_i32_11 = arith.constant 0 : i32
    %c0_i32_12 = arith.constant 0 : i32
    %20 = tpu.memref_slice %arg8[%18, %c0_i32_11, %c0_i32_12] : memref<2x16x512xbf16, #tpu.memory_space<vmem>> -> memref<1x16x512xbf16, #tpu.memory_space<vmem>>
    %21 = tpu.memref_squeeze %20 : memref<1x16x512xbf16, #tpu.memory_space<vmem>> -> memref<16x512xbf16, #tpu.memory_space<vmem>>
    %22 = tpu.memref_slice %arg10[%18] : memref<2x!tpu.dma_semaphore, #tpu.memory_space<semaphore_mem>> -> memref<1x!tpu.dma_semaphore, #tpu.memory_space<semaphore_mem>>
    %23 = tpu.memref_squeeze %22 : memref<1x!tpu.dma_semaphore, #tpu.memory_space<semaphore_mem>> -> memref<!tpu.dma_semaphore, #tpu.memory_space<semaphore_mem>>
    tpu.wait_dma2 semaphore(%23 : memref<!tpu.dma_semaphore, #tpu.memory_space<semaphore_mem>>) src(%19 : memref<16x512xbf16, #tpu.memory_space<any>>) dst(%21 : memref<16x512xbf16, #tpu.memory_space<vmem>>)
    %24 = arith.index_cast %18 : i32 to index
    %c0 = arith.constant 0 : index
    %c109 = arith.constant 109 : index
    %25 = vector.load %arg8[%24, %c0, %c109] : memref<2x16x512xbf16, #tpu.memory_space<vmem>>, vector<1x16x256xbf16>
    %26 = vector.shape_cast %25 : vector<1x16x256xbf16> to vector<16x256xbf16>
    %c0_13 = arith.constant 0 : index
    %c0_14 = arith.constant 0 : index
    %27 = vector.load %arg9[%c0_13, %c0_14] : memref<144x256xbf16, #tpu.memory_space<vmem>>, vector<16x256xbf16>
    tpu.vector_store %arg9[%c0_13, %c0_14], %26 {strides = array<i32>} : memref<144x256xbf16, #tpu.memory_space<vmem>>, vector<16x256xbf16>,
    %28 = arith.index_cast %18 : i32 to index
    %c0_15 = arith.constant 0 : index
    %c110 = arith.constant 110 : index
    %29 = vector.load %arg8[%28, %c0_15, %c110] : memref<2x16x512xbf16, #tpu.memory_space<vmem>>, vector<1x16x256xbf16>
    %30 = vector.shape_cast %29 : vector<1x16x256xbf16> to vector<16x256xbf16>
    %c16 = arith.constant 16 : index
    %c0_16 = arith.constant 0 : index
    %31 = vector.load %arg9[%c16, %c0_16] : memref<144x256xbf16, #tpu.memory_space<vmem>>, vector<16x256xbf16>
    tpu.vector_store %arg9[%c16, %c0_16], %30 {strides = array<i32>} : memref<144x256xbf16, #tpu.memory_space<vmem>>, vector<16x256xbf16>,
    %32 = arith.index_cast %18 : i32 to index
    %c0_17 = arith.constant 0 : index
    %c111 = arith.constant 111 : index
    %33 = vector.load %arg8[%32, %c0_17, %c111] : memref<2x16x512xbf16, #tpu.memory_space<vmem>>, vector<1x16x256xbf16>
    %34 = vector.shape_cast %33 : vector<1x16x256xbf16> to vector<16x256xbf16>
    %c32 = arith.constant 32 : index
    %c0_18 = arith.constant 0 : index
    %35 = vector.load %arg9[%c32, %c0_18] : memref<144x256xbf16, #tpu.memory_space<vmem>>, vector<16x256xbf16>
    tpu.vector_store %arg9[%c32, %c0_18], %34 {strides = array<i32>} : memref<144x256xbf16, #tpu.memory_space<vmem>>, vector<16x256xbf16>,
    %36 = arith.index_cast %18 : i32 to index
    %c0_19 = arith.constant 0 : index
    %c127 = arith.constant 127 : index
    %37 = vector.load %arg8[%36, %c0_19, %c127] : memref<2x16x512xbf16, #tpu.memory_space<vmem>>, vector<1x16x256xbf16>
    %38 = vector.shape_cast %37 : vector<1x16x256xbf16> to vector<16x256xbf16>
    %c48 = arith.constant 48 : index
    %c0_20 = arith.constant 0 : index
    %39 = vector.load %arg9[%c48, %c0_20] : memref<144x256xbf16, #tpu.memory_space<vmem>>, vector<16x256xbf16>
    tpu.vector_store %arg9[%c48, %c0_20], %38 {strides = array<i32>} : memref<144x256xbf16, #tpu.memory_space<vmem>>, vector<16x256xbf16>,
    %40 = arith.index_cast %18 : i32 to index
    %c0_21 = arith.constant 0 : index
    %c128 = arith.constant 128 : index
    %41 = vector.load %arg8[%40, %c0_21, %c128] : memref<2x16x512xbf16, #tpu.memory_space<vmem>>, vector<1x16x256xbf16>
    %42 = vector.shape_cast %41 : vector<1x16x256xbf16> to vector<16x256xbf16>
    %c64 = arith.constant 64 : index
    %c0_22 = arith.constant 0 : index
    %43 = vector.load %arg9[%c64, %c0_22] : memref<144x256xbf16, #tpu.memory_space<vmem>>, vector<16x256xbf16>
    tpu.vector_store %arg9[%c64, %c0_22], %42 {strides = array<i32>} : memref<144x256xbf16, #tpu.memory_space<vmem>>, vector<16x256xbf16>,
    %44 = arith.index_cast %18 : i32 to index
    %c0_23 = arith.constant 0 : index
    %c129 = arith.constant 129 : index
    %45 = vector.load %arg8[%44, %c0_23, %c129] : memref<2x16x512xbf16, #tpu.memory_space<vmem>>, vector<1x16x256xbf16>
    %46 = vector.shape_cast %45 : vector<1x16x256xbf16> to vector<16x256xbf16>
    %c80 = arith.constant 80 : index
    %c0_24 = arith.constant 0 : index
    %47 = vector.load %arg9[%c80, %c0_24] : memref<144x256xbf16, #tpu.memory_space<vmem>>, vector<16x256xbf16>
    tpu.vector_store %arg9[%c80, %c0_24], %46 {strides = array<i32>} : memref<144x256xbf16, #tpu.memory_space<vmem>>, vector<16x256xbf16>,
    %48 = arith.index_cast %18 : i32 to index
    %c0_25 = arith.constant 0 : index
    %c145 = arith.constant 145 : index
    %49 = vector.load %arg8[%48, %c0_25, %c145] : memref<2x16x512xbf16, #tpu.memory_space<vmem>>, vector<1x16x256xbf16>
    %50 = vector.shape_cast %49 : vector<1x16x256xbf16> to vector<16x256xbf16>
    %c96 = arith.constant 96 : index
    %c0_26 = arith.constant 0 : index
    %51 = vector.load %arg9[%c96, %c0_26] : memref<144x256xbf16, #tpu.memory_space<vmem>>, vector<16x256xbf16>
    tpu.vector_store %arg9[%c96, %c0_26], %50 {strides = array<i32>} : memref<144x256xbf16, #tpu.memory_space<vmem>>, vector<16x256xbf16>,
    %52 = arith.index_cast %18 : i32 to index
    %c0_27 = arith.constant 0 : index
    %c146 = arith.constant 146 : index
    %53 = vector.load %arg8[%52, %c0_27, %c146] : memref<2x16x512xbf16, #tpu.memory_space<vmem>>, vector<1x16x256xbf16>
    %54 = vector.shape_cast %53 : vector<1x16x256xbf16> to vector<16x256xbf16>
    %c112 = arith.constant 112 : index
    %c0_28 = arith.constant 0 : index
    %55 = vector.load %arg9[%c112, %c0_28] : memref<144x256xbf16, #tpu.memory_space<vmem>>, vector<16x256xbf16>
    tpu.vector_store %arg9[%c112, %c0_28], %54 {strides = array<i32>} : memref<144x256xbf16, #tpu.memory_space<vmem>>, vector<16x256xbf16>,
    %56 = arith.index_cast %18 : i32 to index
    %c0_29 = arith.constant 0 : index
    %c147 = arith.constant 147 : index
    %57 = vector.load %arg8[%56, %c0_29, %c147] : memref<2x16x512xbf16, #tpu.memory_space<vmem>>, vector<1x16x256xbf16>
    %58 = vector.shape_cast %57 : vector<1x16x256xbf16> to vector<16x256xbf16>
    %c128_30 = arith.constant 128 : index
    %c0_31 = arith.constant 0 : index
    %59 = vector.load %arg9[%c128_30, %c0_31] : memref<144x256xbf16, #tpu.memory_space<vmem>>, vector<16x256xbf16>
    tpu.vector_store %arg9[%c128_30, %c0_31], %58 {strides = array<i32>} : memref<144x256xbf16, #tpu.memory_space<vmem>>, vector<16x256xbf16>,
    %c0_32 = arith.constant 0 : index
    %c0_33 = arith.constant 0 : index
    %60 = vector.load %arg3[%c0_32, %c0_33] : memref<16x144xbf16, #tpu.memory_space<vmem>>, vector<16x144xbf16>
    %c0_34 = arith.constant 0 : index
    %c0_35 = arith.constant 0 : index
    %61 = vector.load %arg9[%c0_34, %c0_35] : memref<144x256xbf16, #tpu.memory_space<vmem>>, vector<144x256xbf16>
    %cst = arith.constant dense<0.000000e+00> : vector<16x256xf32>
    %62 = tpu.matmul %60, %61, %cst {dimension_numbers = #tpu.dot_dimension_numbers<[1], [0], [0], [1], [0, 0, 1, 1], [], []>} : vector<16x144xbf16>, vector<144x256xbf16>, vector<16x256xf32> -> vector<16x256xf32>
    %c0_36 = arith.constant 0 : index
    %c0_37 = arith.constant 0 : index
    %63 = vector.load %arg4[%c0_36, %c0_37] : memref<16x1xf32, #tpu.memory_space<vmem>>, vector<16x1xf32>
    %64 = vector.broadcast %63 : vector<16x1xf32> to vector<16x256xf32>
    %65 = arith.addf %62, %64 : vector<16x256xf32>
    %c0_38 = arith.constant 0 : index
    %c0_39 = arith.constant 0 : index
    %66 = vector.load %arg6[%c0_38, %c0_39] : memref<16x256xbf16, #tpu.memory_space<vmem>>, vector<16x256xbf16>
    %67 = arith.extf %66 : vector<16x256xbf16> to vector<16x256xf32>
    %68 = arith.addf %65, %67 : vector<16x256xf32>
    %cst_40 = arith.constant 0.000000e+00 : f32
    %69 = vector.broadcast %cst_40 : f32 to vector<16x256xf32>
    %70 = arith.maximumf %68, %69 : vector<16x256xf32>
    %c0_41 = arith.constant 0 : index
    %c0_42 = arith.constant 0 : index
    %71 = vector.load %arg5[%c0_41, %c0_42] : memref<1x256xf32, #tpu.memory_space<vmem>>, vector<1x256xf32>
    %cst_43 = arith.constant 0.000000e+00 : f32
    %72 = vector.broadcast %cst_43 : f32 to vector<1x256xf32>
    %73 = arith.cmpf ogt, %71, %72 : vector<1x256xf32>
    %cst_44 = arith.constant 0.000000e+00 : f32
    %74 = vector.shape_cast %73 : vector<1x256xi1> to vector<1x256xi1>
    %75 = vector.broadcast %74 : vector<1x256xi1> to vector<16x256xi1>
    %76 = vector.broadcast %cst_44 : f32 to vector<16x256xf32>
    %77 = arith.select %75, %70, %76 : vector<16x256xi1>, vector<16x256xf32>
    %78 = arith.truncf %77 : vector<16x256xf32> to vector<16x256xbf16>
    %c0_45 = arith.constant 0 : index
    %c0_46 = arith.constant 0 : index
    %79 = vector.load %arg7[%c0_45, %c0_46] : memref<16x256xbf16, #tpu.memory_space<vmem>>, vector<16x256xbf16>
    tpu.vector_store %arg7[%c0_45, %c0_46], %78 {strides = array<i32>} : memref<16x256xbf16, #tpu.memory_space<vmem>>, vector<16x256xbf16>,
    return
  }
  func.func @transform_1(%arg0: i32, %arg1: i32) -> (i32, i32) {
    %c0_i32 = arith.constant 0 : i32
    %c0_i32_0 = arith.constant 0 : i32
    %c0_i32_1 = arith.constant 0 : i32
    return %c0_i32, %c0_i32_0 : i32, i32
  }
  func.func @transform_2(%arg0: i32, %arg1: i32) -> (i32, i32) {
    %c0_i32 = arith.constant 0 : i32
    %c0_i32_0 = arith.constant 0 : i32
    %c0_i32_1 = arith.constant 0 : i32
    return %c0_i32, %c0_i32_0 : i32, i32
  }
  func.func @transform_3(%arg0: i32, %arg1: i32) -> (i32, i32) {
    %c2_i32 = arith.constant 2 : i32
    %0 = arith.muli %arg0, %c2_i32 : i32
    %1 = arith.addi %0, %arg1 : i32
    %c0_i32 = arith.constant 0 : i32
    %c0_i32_0 = arith.constant 0 : i32
    return %c0_i32, %1 : i32, i32
  }
  func.func @transform_4(%arg0: i32, %arg1: i32) -> (i32, i32) {
    %c2_i32 = arith.constant 2 : i32
    %0 = arith.muli %arg0, %c2_i32 : i32
    %1 = arith.addi %0, %arg1 : i32
    %c1_i32 = arith.constant 1 : i32
    %2 = arith.addi %1, %c1_i32 : i32
    %c0_i32 = arith.constant 0 : i32
    %c0_i32_0 = arith.constant 0 : i32
    return %c0_i32, %2 : i32, i32
  }
  func.func @transform_5(%arg0: i32, %arg1: i32) -> (i32, i32) {
    %c2_i32 = arith.constant 2 : i32
    %0 = arith.muli %arg0, %c2_i32 : i32
    %1 = arith.addi %0, %arg1 : i32
    %c1_i32 = arith.constant 1 : i32
    %2 = arith.addi %1, %c1_i32 : i32
    %c0_i32 = arith.constant 0 : i32
    %c0_i32_0 = arith.constant 0 : i32
    return %c0_i32, %2 : i32, i32
  }
}

module attributes {stable_mosaic.version = 11 : i64} {
  func.func @_conv_kernel(%arg0: i32, %arg1: i32, %arg2: memref<16x1536xbf16, #tpu.memory_space<any>>, %arg3: memref<16x144xbf16, #tpu.memory_space<vmem>>, %arg4: memref<16x1xf32, #tpu.memory_space<vmem>>, %arg5: memref<1x256xf32, #tpu.memory_space<vmem>>, %arg6: memref<16x256xbf16, #tpu.memory_space<vmem>>, %arg7: memref<2x16x512xbf16, #tpu.memory_space<vmem>>, %arg8: memref<144x256xbf16, #tpu.memory_space<vmem>>, %arg9: memref<2x!tpu.dma_semaphore, #tpu.memory_space<semaphore_mem>>) attributes {dimension_semantics = [#tpu.dimension_semantics<parallel>, #tpu.dimension_semantics<arbitrary>], iteration_bounds = array<i64: 2, 2>, scalar_prefetch = 0 : i64, scratch_operands = 3 : i64, tpu.core_type = #tpu.core_type<tc>, window_params = [{}, {pipeline_mode = #tpu.pipeline_mode<synchronous>, transform_indices = @transform_1, window_bounds = array<i64: 16, 144>}, {pipeline_mode = #tpu.pipeline_mode<synchronous>, transform_indices = @transform_2, window_bounds = array<i64: 16, 1>}, {transform_indices = @transform_3, window_bounds = array<i64: 1, 256>}, {transform_indices = @transform_4, window_bounds = array<i64: 16, 256>}]} {
    %c2_i32 = arith.constant 2 : i32
    %0 = arith.muli %arg0, %c2_i32 : i32
    %1 = arith.addi %0, %arg1 : i32
    %c0_i32 = arith.constant 0 : i32
    %2 = arith.cmpi eq, %arg1, %c0_i32 : i32
    %3 = arith.extui %2 : i1 to i32
    %c0_i32_0 = arith.constant 0 : i32
    %4 = arith.cmpi ne, %3, %c0_i32_0 : i32
    scf.if %4 {
      %c256_i32 = arith.constant 256 : i32
      %77 = arith.muli %1, %c256_i32 : i32
      %c128_i32 = arith.constant 128 : i32
      %78 = arith.addi %77, %c128_i32 : i32
      %c0_i32_45 = arith.constant 0 : i32
      %c0_i32_46 = arith.constant 0 : i32
      %c0_i32_47 = arith.constant 0 : i32
      %79 = tpu.memref_slice %arg2[%c0_i32_47, %78] : memref<16x1536xbf16, #tpu.memory_space<any>> -> memref<16x512xbf16, #tpu.memory_space<any>>
      %c0_i32_48 = arith.constant 0 : i32
      %c0_i32_49 = arith.constant 0 : i32
      %80 = tpu.memref_slice %arg7[%c0_i32_45, %c0_i32_48, %c0_i32_49] : memref<2x16x512xbf16, #tpu.memory_space<vmem>> -> memref<1x16x512xbf16, #tpu.memory_space<vmem>>
      %81 = tpu.memref_squeeze %80 : memref<1x16x512xbf16, #tpu.memory_space<vmem>> -> memref<16x512xbf16, #tpu.memory_space<vmem>>
      %82 = tpu.memref_slice %arg9[%c0_i32_46] : memref<2x!tpu.dma_semaphore, #tpu.memory_space<semaphore_mem>> -> memref<1x!tpu.dma_semaphore, #tpu.memory_space<semaphore_mem>>
      %83 = tpu.memref_squeeze %82 : memref<1x!tpu.dma_semaphore, #tpu.memory_space<semaphore_mem>> -> memref<!tpu.dma_semaphore, #tpu.memory_space<semaphore_mem>>
      tpu.enqueue_dma source(%79 : memref<16x512xbf16, #tpu.memory_space<any>>) target(%81 : memref<16x512xbf16, #tpu.memory_space<vmem>>) target_semaphore(%83 : memref<!tpu.dma_semaphore, #tpu.memory_space<semaphore_mem>>)
    } else {
    }
    %c1_i32 = arith.constant 1 : i32
    %5 = arith.addi %arg1, %c1_i32 : i32
    %c2_i32_1 = arith.constant 2 : i32
    %6 = arith.cmpi slt, %5, %c2_i32_1 : i32
    %7 = arith.extui %6 : i1 to i32
    %c0_i32_2 = arith.constant 0 : i32
    %8 = arith.cmpi ne, %7, %c0_i32_2 : i32
    scf.if %8 {
      %c1_i32_45 = arith.constant 1 : i32
      %77 = arith.addi %1, %c1_i32_45 : i32
      %c1_i32_46 = arith.constant 1 : i32
      %78 = arith.addi %arg1, %c1_i32_46 : i32
      %c2_i32_47 = arith.constant 2 : i32
      %c0_i32_48 = arith.constant 0 : i32
      %79 = arith.cmpi eq, %c2_i32_47, %c0_i32_48 : i32
      %c1_i32_49 = arith.constant 1 : i32
      %80 = arith.select %79, %c1_i32_49, %c2_i32_47 : i32
      %81 = arith.remsi %78, %80 : i32
      %c0_i32_50 = arith.constant 0 : i32
      %82 = arith.cmpi ne, %81, %c0_i32_50 : i32
      %c0_i32_51 = arith.constant 0 : i32
      %83 = arith.cmpi slt, %81, %c0_i32_51 : i32
      %c0_i32_52 = arith.constant 0 : i32
      %84 = arith.cmpi slt, %80, %c0_i32_52 : i32
      %85 = arith.xori %83, %84 : i1
      %86 = arith.andi %85, %82 : i1
      %87 = arith.addi %81, %80 : i32
      %88 = arith.select %86, %87, %81 : i32
      %c256_i32 = arith.constant 256 : i32
      %89 = arith.muli %77, %c256_i32 : i32
      %c128_i32 = arith.constant 128 : i32
      %90 = arith.addi %89, %c128_i32 : i32
      %c0_i32_53 = arith.constant 0 : i32
      %91 = tpu.memref_slice %arg2[%c0_i32_53, %90] : memref<16x1536xbf16, #tpu.memory_space<any>> -> memref<16x512xbf16, #tpu.memory_space<any>>
      %c0_i32_54 = arith.constant 0 : i32
      %c0_i32_55 = arith.constant 0 : i32
      %92 = tpu.memref_slice %arg7[%88, %c0_i32_54, %c0_i32_55] : memref<2x16x512xbf16, #tpu.memory_space<vmem>> -> memref<1x16x512xbf16, #tpu.memory_space<vmem>>
      %93 = tpu.memref_squeeze %92 : memref<1x16x512xbf16, #tpu.memory_space<vmem>> -> memref<16x512xbf16, #tpu.memory_space<vmem>>
      %94 = tpu.memref_slice %arg9[%88] : memref<2x!tpu.dma_semaphore, #tpu.memory_space<semaphore_mem>> -> memref<1x!tpu.dma_semaphore, #tpu.memory_space<semaphore_mem>>
      %95 = tpu.memref_squeeze %94 : memref<1x!tpu.dma_semaphore, #tpu.memory_space<semaphore_mem>> -> memref<!tpu.dma_semaphore, #tpu.memory_space<semaphore_mem>>
      tpu.enqueue_dma source(%91 : memref<16x512xbf16, #tpu.memory_space<any>>) target(%93 : memref<16x512xbf16, #tpu.memory_space<vmem>>) target_semaphore(%95 : memref<!tpu.dma_semaphore, #tpu.memory_space<semaphore_mem>>)
    } else {
    }
    %c2_i32_3 = arith.constant 2 : i32
    %c0_i32_4 = arith.constant 0 : i32
    %9 = arith.cmpi eq, %c2_i32_3, %c0_i32_4 : i32
    %c1_i32_5 = arith.constant 1 : i32
    %10 = arith.select %9, %c1_i32_5, %c2_i32_3 : i32
    %11 = arith.remsi %arg1, %10 : i32
    %c0_i32_6 = arith.constant 0 : i32
    %12 = arith.cmpi ne, %11, %c0_i32_6 : i32
    %c0_i32_7 = arith.constant 0 : i32
    %13 = arith.cmpi slt, %11, %c0_i32_7 : i32
    %c0_i32_8 = arith.constant 0 : i32
    %14 = arith.cmpi slt, %10, %c0_i32_8 : i32
    %15 = arith.xori %13, %14 : i1
    %16 = arith.andi %15, %12 : i1
    %17 = arith.addi %11, %10 : i32
    %18 = arith.select %16, %17, %11 : i32
    %c0_i32_9 = arith.constant 0 : i32
    %c0_i32_10 = arith.constant 0 : i32
    %19 = tpu.memref_slice %arg2[%c0_i32_9, %c0_i32_10] : memref<16x1536xbf16, #tpu.memory_space<any>> -> memref<16x512xbf16, #tpu.memory_space<any>>
    %c0_i32_11 = arith.constant 0 : i32
    %c0_i32_12 = arith.constant 0 : i32
    %20 = tpu.memref_slice %arg7[%18, %c0_i32_11, %c0_i32_12] : memref<2x16x512xbf16, #tpu.memory_space<vmem>> -> memref<1x16x512xbf16, #tpu.memory_space<vmem>>
    %21 = tpu.memref_squeeze %20 : memref<1x16x512xbf16, #tpu.memory_space<vmem>> -> memref<16x512xbf16, #tpu.memory_space<vmem>>
    %22 = tpu.memref_slice %arg9[%18] : memref<2x!tpu.dma_semaphore, #tpu.memory_space<semaphore_mem>> -> memref<1x!tpu.dma_semaphore, #tpu.memory_space<semaphore_mem>>
    %23 = tpu.memref_squeeze %22 : memref<1x!tpu.dma_semaphore, #tpu.memory_space<semaphore_mem>> -> memref<!tpu.dma_semaphore, #tpu.memory_space<semaphore_mem>>
    tpu.wait_dma2 semaphore(%23 : memref<!tpu.dma_semaphore, #tpu.memory_space<semaphore_mem>>) src(%19 : memref<16x512xbf16, #tpu.memory_space<any>>) dst(%21 : memref<16x512xbf16, #tpu.memory_space<vmem>>)
    %24 = arith.index_cast %18 : i32 to index
    %c0 = arith.constant 0 : index
    %c109 = arith.constant 109 : index
    %25 = vector.load %arg7[%24, %c0, %c109] : memref<2x16x512xbf16, #tpu.memory_space<vmem>>, vector<1x16x256xbf16>
    %26 = vector.shape_cast %25 : vector<1x16x256xbf16> to vector<16x256xbf16>
    %c0_13 = arith.constant 0 : index
    %c0_14 = arith.constant 0 : index
    %27 = vector.load %arg8[%c0_13, %c0_14] : memref<144x256xbf16, #tpu.memory_space<vmem>>, vector<16x256xbf16>
    tpu.vector_store %arg8[%c0_13, %c0_14], %26 {strides = array<i32>} : memref<144x256xbf16, #tpu.memory_space<vmem>>, vector<16x256xbf16>,
    %28 = arith.index_cast %18 : i32 to index
    %c0_15 = arith.constant 0 : index
    %c110 = arith.constant 110 : index
    %29 = vector.load %arg7[%28, %c0_15, %c110] : memref<2x16x512xbf16, #tpu.memory_space<vmem>>, vector<1x16x256xbf16>
    %30 = vector.shape_cast %29 : vector<1x16x256xbf16> to vector<16x256xbf16>
    %c16 = arith.constant 16 : index
    %c0_16 = arith.constant 0 : index
    %31 = vector.load %arg8[%c16, %c0_16] : memref<144x256xbf16, #tpu.memory_space<vmem>>, vector<16x256xbf16>
    tpu.vector_store %arg8[%c16, %c0_16], %30 {strides = array<i32>} : memref<144x256xbf16, #tpu.memory_space<vmem>>, vector<16x256xbf16>,
    %32 = arith.index_cast %18 : i32 to index
    %c0_17 = arith.constant 0 : index
    %c111 = arith.constant 111 : index
    %33 = vector.load %arg7[%32, %c0_17, %c111] : memref<2x16x512xbf16, #tpu.memory_space<vmem>>, vector<1x16x256xbf16>
    %34 = vector.shape_cast %33 : vector<1x16x256xbf16> to vector<16x256xbf16>
    %c32 = arith.constant 32 : index
    %c0_18 = arith.constant 0 : index
    %35 = vector.load %arg8[%c32, %c0_18] : memref<144x256xbf16, #tpu.memory_space<vmem>>, vector<16x256xbf16>
    tpu.vector_store %arg8[%c32, %c0_18], %34 {strides = array<i32>} : memref<144x256xbf16, #tpu.memory_space<vmem>>, vector<16x256xbf16>,
    %36 = arith.index_cast %18 : i32 to index
    %c0_19 = arith.constant 0 : index
    %c127 = arith.constant 127 : index
    %37 = vector.load %arg7[%36, %c0_19, %c127] : memref<2x16x512xbf16, #tpu.memory_space<vmem>>, vector<1x16x256xbf16>
    %38 = vector.shape_cast %37 : vector<1x16x256xbf16> to vector<16x256xbf16>
    %c48 = arith.constant 48 : index
    %c0_20 = arith.constant 0 : index
    %39 = vector.load %arg8[%c48, %c0_20] : memref<144x256xbf16, #tpu.memory_space<vmem>>, vector<16x256xbf16>
    tpu.vector_store %arg8[%c48, %c0_20], %38 {strides = array<i32>} : memref<144x256xbf16, #tpu.memory_space<vmem>>, vector<16x256xbf16>,
    %40 = arith.index_cast %18 : i32 to index
    %c0_21 = arith.constant 0 : index
    %c128 = arith.constant 128 : index
    %41 = vector.load %arg7[%40, %c0_21, %c128] : memref<2x16x512xbf16, #tpu.memory_space<vmem>>, vector<1x16x256xbf16>
    %42 = vector.shape_cast %41 : vector<1x16x256xbf16> to vector<16x256xbf16>
    %c64 = arith.constant 64 : index
    %c0_22 = arith.constant 0 : index
    %43 = vector.load %arg8[%c64, %c0_22] : memref<144x256xbf16, #tpu.memory_space<vmem>>, vector<16x256xbf16>
    tpu.vector_store %arg8[%c64, %c0_22], %42 {strides = array<i32>} : memref<144x256xbf16, #tpu.memory_space<vmem>>, vector<16x256xbf16>,
    %44 = arith.index_cast %18 : i32 to index
    %c0_23 = arith.constant 0 : index
    %c129 = arith.constant 129 : index
    %45 = vector.load %arg7[%44, %c0_23, %c129] : memref<2x16x512xbf16, #tpu.memory_space<vmem>>, vector<1x16x256xbf16>
    %46 = vector.shape_cast %45 : vector<1x16x256xbf16> to vector<16x256xbf16>
    %c80 = arith.constant 80 : index
    %c0_24 = arith.constant 0 : index
    %47 = vector.load %arg8[%c80, %c0_24] : memref<144x256xbf16, #tpu.memory_space<vmem>>, vector<16x256xbf16>
    tpu.vector_store %arg8[%c80, %c0_24], %46 {strides = array<i32>} : memref<144x256xbf16, #tpu.memory_space<vmem>>, vector<16x256xbf16>,
    %48 = arith.index_cast %18 : i32 to index
    %c0_25 = arith.constant 0 : index
    %c145 = arith.constant 145 : index
    %49 = vector.load %arg7[%48, %c0_25, %c145] : memref<2x16x512xbf16, #tpu.memory_space<vmem>>, vector<1x16x256xbf16>
    %50 = vector.shape_cast %49 : vector<1x16x256xbf16> to vector<16x256xbf16>
    %c96 = arith.constant 96 : index
    %c0_26 = arith.constant 0 : index
    %51 = vector.load %arg8[%c96, %c0_26] : memref<144x256xbf16, #tpu.memory_space<vmem>>, vector<16x256xbf16>
    tpu.vector_store %arg8[%c96, %c0_26], %50 {strides = array<i32>} : memref<144x256xbf16, #tpu.memory_space<vmem>>, vector<16x256xbf16>,
    %52 = arith.index_cast %18 : i32 to index
    %c0_27 = arith.constant 0 : index
    %c146 = arith.constant 146 : index
    %53 = vector.load %arg7[%52, %c0_27, %c146] : memref<2x16x512xbf16, #tpu.memory_space<vmem>>, vector<1x16x256xbf16>
    %54 = vector.shape_cast %53 : vector<1x16x256xbf16> to vector<16x256xbf16>
    %c112 = arith.constant 112 : index
    %c0_28 = arith.constant 0 : index
    %55 = vector.load %arg8[%c112, %c0_28] : memref<144x256xbf16, #tpu.memory_space<vmem>>, vector<16x256xbf16>
    tpu.vector_store %arg8[%c112, %c0_28], %54 {strides = array<i32>} : memref<144x256xbf16, #tpu.memory_space<vmem>>, vector<16x256xbf16>,
    %56 = arith.index_cast %18 : i32 to index
    %c0_29 = arith.constant 0 : index
    %c147 = arith.constant 147 : index
    %57 = vector.load %arg7[%56, %c0_29, %c147] : memref<2x16x512xbf16, #tpu.memory_space<vmem>>, vector<1x16x256xbf16>
    %58 = vector.shape_cast %57 : vector<1x16x256xbf16> to vector<16x256xbf16>
    %c128_30 = arith.constant 128 : index
    %c0_31 = arith.constant 0 : index
    %59 = vector.load %arg8[%c128_30, %c0_31] : memref<144x256xbf16, #tpu.memory_space<vmem>>, vector<16x256xbf16>
    tpu.vector_store %arg8[%c128_30, %c0_31], %58 {strides = array<i32>} : memref<144x256xbf16, #tpu.memory_space<vmem>>, vector<16x256xbf16>,
    %c0_32 = arith.constant 0 : index
    %c0_33 = arith.constant 0 : index
    %60 = vector.load %arg3[%c0_32, %c0_33] : memref<16x144xbf16, #tpu.memory_space<vmem>>, vector<16x144xbf16>
    %c0_34 = arith.constant 0 : index
    %c0_35 = arith.constant 0 : index
    %61 = vector.load %arg8[%c0_34, %c0_35] : memref<144x256xbf16, #tpu.memory_space<vmem>>, vector<144x256xbf16>
    %cst = arith.constant dense<0.000000e+00> : vector<16x256xf32>
    %62 = tpu.matmul %60, %61, %cst {dimension_numbers = #tpu.dot_dimension_numbers<[1], [0], [0], [1], [0, 0, 1, 1], [], []>} : vector<16x144xbf16>, vector<144x256xbf16>, vector<16x256xf32> -> vector<16x256xf32>
    %c0_36 = arith.constant 0 : index
    %c0_37 = arith.constant 0 : index
    %63 = vector.load %arg4[%c0_36, %c0_37] : memref<16x1xf32, #tpu.memory_space<vmem>>, vector<16x1xf32>
    %64 = vector.broadcast %63 : vector<16x1xf32> to vector<16x256xf32>
    %65 = arith.addf %62, %64 : vector<16x256xf32>
    %cst_38 = arith.constant 0.000000e+00 : f32
    %66 = vector.broadcast %cst_38 : f32 to vector<16x256xf32>
    %67 = arith.maximumf %65, %66 : vector<16x256xf32>
    %c0_39 = arith.constant 0 : index
    %c0_40 = arith.constant 0 : index
    %68 = vector.load %arg5[%c0_39, %c0_40] : memref<1x256xf32, #tpu.memory_space<vmem>>, vector<1x256xf32>
    %cst_41 = arith.constant 0.000000e+00 : f32
    %69 = vector.broadcast %cst_41 : f32 to vector<1x256xf32>
    %70 = arith.cmpf ogt, %68, %69 : vector<1x256xf32>
    %cst_42 = arith.constant 0.000000e+00 : f32
    %71 = vector.shape_cast %70 : vector<1x256xi1> to vector<1x256xi1>
    %72 = vector.broadcast %71 : vector<1x256xi1> to vector<16x256xi1>
    %73 = vector.broadcast %cst_42 : f32 to vector<16x256xf32>
    %74 = arith.select %72, %67, %73 : vector<16x256xi1>, vector<16x256xf32>
    %75 = arith.truncf %74 : vector<16x256xf32> to vector<16x256xbf16>
    %c0_43 = arith.constant 0 : index
    %c0_44 = arith.constant 0 : index
    %76 = vector.load %arg6[%c0_43, %c0_44] : memref<16x256xbf16, #tpu.memory_space<vmem>>, vector<16x256xbf16>
    tpu.vector_store %arg6[%c0_43, %c0_44], %75 {strides = array<i32>} : memref<16x256xbf16, #tpu.memory_space<vmem>>, vector<16x256xbf16>,
    return
  }
  func.func @transform_1(%arg0: i32, %arg1: i32) -> (i32, i32) {
    %c0_i32 = arith.constant 0 : i32
    %c0_i32_0 = arith.constant 0 : i32
    %c0_i32_1 = arith.constant 0 : i32
    return %c0_i32, %c0_i32_0 : i32, i32
  }
  func.func @transform_2(%arg0: i32, %arg1: i32) -> (i32, i32) {
    %c0_i32 = arith.constant 0 : i32
    %c0_i32_0 = arith.constant 0 : i32
    %c0_i32_1 = arith.constant 0 : i32
    return %c0_i32, %c0_i32_0 : i32, i32
  }
  func.func @transform_3(%arg0: i32, %arg1: i32) -> (i32, i32) {
    %c2_i32 = arith.constant 2 : i32
    %0 = arith.muli %arg0, %c2_i32 : i32
    %1 = arith.addi %0, %arg1 : i32
    %c0_i32 = arith.constant 0 : i32
    %c0_i32_0 = arith.constant 0 : i32
    return %c0_i32, %1 : i32, i32
  }
  func.func @transform_4(%arg0: i32, %arg1: i32) -> (i32, i32) {
    %c2_i32 = arith.constant 2 : i32
    %0 = arith.muli %arg0, %c2_i32 : i32
    %1 = arith.addi %0, %arg1 : i32
    %c1_i32 = arith.constant 1 : i32
    %2 = arith.addi %1, %c1_i32 : i32
    %c0_i32 = arith.constant 0 : i32
    %c0_i32_0 = arith.constant 0 : i32
    return %c0_i32, %2 : i32, i32
  }
}

module attributes {stable_mosaic.version = 11 : i64} {
  func.func @_conv_kernel(%arg0: i32, %arg1: i32, %arg2: memref<16x1536xbf16, #tpu.memory_space<any>>, %arg3: memref<32x16xbf16, #tpu.memory_space<vmem>>, %arg4: memref<32x1xf32, #tpu.memory_space<vmem>>, %arg5: memref<1x256xf32, #tpu.memory_space<vmem>>, %arg6: memref<32x256xbf16, #tpu.memory_space<vmem>>, %arg7: memref<2x16x512xbf16, #tpu.memory_space<vmem>>, %arg8: memref<16x256xbf16, #tpu.memory_space<vmem>>, %arg9: memref<2x!tpu.dma_semaphore, #tpu.memory_space<semaphore_mem>>) attributes {dimension_semantics = [#tpu.dimension_semantics<parallel>, #tpu.dimension_semantics<arbitrary>], iteration_bounds = array<i64: 2, 2>, scalar_prefetch = 0 : i64, scratch_operands = 3 : i64, tpu.core_type = #tpu.core_type<tc>, window_params = [{}, {pipeline_mode = #tpu.pipeline_mode<synchronous>, transform_indices = @transform_1, window_bounds = array<i64: 32, 16>}, {pipeline_mode = #tpu.pipeline_mode<synchronous>, transform_indices = @transform_2, window_bounds = array<i64: 32, 1>}, {transform_indices = @transform_3, window_bounds = array<i64: 1, 256>}, {transform_indices = @transform_4, window_bounds = array<i64: 32, 256>}]} {
    %c2_i32 = arith.constant 2 : i32
    %0 = arith.muli %arg0, %c2_i32 : i32
    %1 = arith.addi %0, %arg1 : i32
    %c0_i32 = arith.constant 0 : i32
    %2 = arith.cmpi eq, %arg1, %c0_i32 : i32
    %3 = arith.extui %2 : i1 to i32
    %c0_i32_0 = arith.constant 0 : i32
    %4 = arith.cmpi ne, %3, %c0_i32_0 : i32
    scf.if %4 {
      %c256_i32 = arith.constant 256 : i32
      %43 = arith.muli %1, %c256_i32 : i32
      %c128_i32 = arith.constant 128 : i32
      %44 = arith.addi %43, %c128_i32 : i32
      %c0_i32_27 = arith.constant 0 : i32
      %c0_i32_28 = arith.constant 0 : i32
      %c0_i32_29 = arith.constant 0 : i32
      %45 = tpu.memref_slice %arg2[%c0_i32_29, %44] : memref<16x1536xbf16, #tpu.memory_space<any>> -> memref<16x512xbf16, #tpu.memory_space<any>>
      %c0_i32_30 = arith.constant 0 : i32
      %c0_i32_31 = arith.constant 0 : i32
      %46 = tpu.memref_slice %arg7[%c0_i32_27, %c0_i32_30, %c0_i32_31] : memref<2x16x512xbf16, #tpu.memory_space<vmem>> -> memref<1x16x512xbf16, #tpu.memory_space<vmem>>
      %47 = tpu.memref_squeeze %46 : memref<1x16x512xbf16, #tpu.memory_space<vmem>> -> memref<16x512xbf16, #tpu.memory_space<vmem>>
      %48 = tpu.memref_slice %arg9[%c0_i32_28] : memref<2x!tpu.dma_semaphore, #tpu.memory_space<semaphore_mem>> -> memref<1x!tpu.dma_semaphore, #tpu.memory_space<semaphore_mem>>
      %49 = tpu.memref_squeeze %48 : memref<1x!tpu.dma_semaphore, #tpu.memory_space<semaphore_mem>> -> memref<!tpu.dma_semaphore, #tpu.memory_space<semaphore_mem>>
      tpu.enqueue_dma source(%45 : memref<16x512xbf16, #tpu.memory_space<any>>) target(%47 : memref<16x512xbf16, #tpu.memory_space<vmem>>) target_semaphore(%49 : memref<!tpu.dma_semaphore, #tpu.memory_space<semaphore_mem>>)
    } else {
    }
    %c1_i32 = arith.constant 1 : i32
    %5 = arith.addi %arg1, %c1_i32 : i32
    %c2_i32_1 = arith.constant 2 : i32
    %6 = arith.cmpi slt, %5, %c2_i32_1 : i32
    %7 = arith.extui %6 : i1 to i32
    %c0_i32_2 = arith.constant 0 : i32
    %8 = arith.cmpi ne, %7, %c0_i32_2 : i32
    scf.if %8 {
      %c1_i32_27 = arith.constant 1 : i32
      %43 = arith.addi %1, %c1_i32_27 : i32
      %c1_i32_28 = arith.constant 1 : i32
      %44 = arith.addi %arg1, %c1_i32_28 : i32
      %c2_i32_29 = arith.constant 2 : i32
      %c0_i32_30 = arith.constant 0 : i32
      %45 = arith.cmpi eq, %c2_i32_29, %c0_i32_30 : i32
      %c1_i32_31 = arith.constant 1 : i32
      %46 = arith.select %45, %c1_i32_31, %c2_i32_29 : i32
      %47 = arith.remsi %44, %46 : i32
      %c0_i32_32 = arith.constant 0 : i32
      %48 = arith.cmpi ne, %47, %c0_i32_32 : i32
      %c0_i32_33 = arith.constant 0 : i32
      %49 = arith.cmpi slt, %47, %c0_i32_33 : i32
      %c0_i32_34 = arith.constant 0 : i32
      %50 = arith.cmpi slt, %46, %c0_i32_34 : i32
      %51 = arith.xori %49, %50 : i1
      %52 = arith.andi %51, %48 : i1
      %53 = arith.addi %47, %46 : i32
      %54 = arith.select %52, %53, %47 : i32
      %c256_i32 = arith.constant 256 : i32
      %55 = arith.muli %43, %c256_i32 : i32
      %c128_i32 = arith.constant 128 : i32
      %56 = arith.addi %55, %c128_i32 : i32
      %c0_i32_35 = arith.constant 0 : i32
      %57 = tpu.memref_slice %arg2[%c0_i32_35, %56] : memref<16x1536xbf16, #tpu.memory_space<any>> -> memref<16x512xbf16, #tpu.memory_space<any>>
      %c0_i32_36 = arith.constant 0 : i32
      %c0_i32_37 = arith.constant 0 : i32
      %58 = tpu.memref_slice %arg7[%54, %c0_i32_36, %c0_i32_37] : memref<2x16x512xbf16, #tpu.memory_space<vmem>> -> memref<1x16x512xbf16, #tpu.memory_space<vmem>>
      %59 = tpu.memref_squeeze %58 : memref<1x16x512xbf16, #tpu.memory_space<vmem>> -> memref<16x512xbf16, #tpu.memory_space<vmem>>
      %60 = tpu.memref_slice %arg9[%54] : memref<2x!tpu.dma_semaphore, #tpu.memory_space<semaphore_mem>> -> memref<1x!tpu.dma_semaphore, #tpu.memory_space<semaphore_mem>>
      %61 = tpu.memref_squeeze %60 : memref<1x!tpu.dma_semaphore, #tpu.memory_space<semaphore_mem>> -> memref<!tpu.dma_semaphore, #tpu.memory_space<semaphore_mem>>
      tpu.enqueue_dma source(%57 : memref<16x512xbf16, #tpu.memory_space<any>>) target(%59 : memref<16x512xbf16, #tpu.memory_space<vmem>>) target_semaphore(%61 : memref<!tpu.dma_semaphore, #tpu.memory_space<semaphore_mem>>)
    } else {
    }
    %c2_i32_3 = arith.constant 2 : i32
    %c0_i32_4 = arith.constant 0 : i32
    %9 = arith.cmpi eq, %c2_i32_3, %c0_i32_4 : i32
    %c1_i32_5 = arith.constant 1 : i32
    %10 = arith.select %9, %c1_i32_5, %c2_i32_3 : i32
    %11 = arith.remsi %arg1, %10 : i32
    %c0_i32_6 = arith.constant 0 : i32
    %12 = arith.cmpi ne, %11, %c0_i32_6 : i32
    %c0_i32_7 = arith.constant 0 : i32
    %13 = arith.cmpi slt, %11, %c0_i32_7 : i32
    %c0_i32_8 = arith.constant 0 : i32
    %14 = arith.cmpi slt, %10, %c0_i32_8 : i32
    %15 = arith.xori %13, %14 : i1
    %16 = arith.andi %15, %12 : i1
    %17 = arith.addi %11, %10 : i32
    %18 = arith.select %16, %17, %11 : i32
    %c0_i32_9 = arith.constant 0 : i32
    %c0_i32_10 = arith.constant 0 : i32
    %19 = tpu.memref_slice %arg2[%c0_i32_9, %c0_i32_10] : memref<16x1536xbf16, #tpu.memory_space<any>> -> memref<16x512xbf16, #tpu.memory_space<any>>
    %c0_i32_11 = arith.constant 0 : i32
    %c0_i32_12 = arith.constant 0 : i32
    %20 = tpu.memref_slice %arg7[%18, %c0_i32_11, %c0_i32_12] : memref<2x16x512xbf16, #tpu.memory_space<vmem>> -> memref<1x16x512xbf16, #tpu.memory_space<vmem>>
    %21 = tpu.memref_squeeze %20 : memref<1x16x512xbf16, #tpu.memory_space<vmem>> -> memref<16x512xbf16, #tpu.memory_space<vmem>>
    %22 = tpu.memref_slice %arg9[%18] : memref<2x!tpu.dma_semaphore, #tpu.memory_space<semaphore_mem>> -> memref<1x!tpu.dma_semaphore, #tpu.memory_space<semaphore_mem>>
    %23 = tpu.memref_squeeze %22 : memref<1x!tpu.dma_semaphore, #tpu.memory_space<semaphore_mem>> -> memref<!tpu.dma_semaphore, #tpu.memory_space<semaphore_mem>>
    tpu.wait_dma2 semaphore(%23 : memref<!tpu.dma_semaphore, #tpu.memory_space<semaphore_mem>>) src(%19 : memref<16x512xbf16, #tpu.memory_space<any>>) dst(%21 : memref<16x512xbf16, #tpu.memory_space<vmem>>)
    %24 = arith.index_cast %18 : i32 to index
    %c0 = arith.constant 0 : index
    %c128 = arith.constant 128 : index
    %25 = vector.load %arg7[%24, %c0, %c128] : memref<2x16x512xbf16, #tpu.memory_space<vmem>>, vector<1x16x256xbf16>
    %26 = vector.shape_cast %25 : vector<1x16x256xbf16> to vector<16x256xbf16>
    %c0_13 = arith.constant 0 : index
    %c0_14 = arith.constant 0 : index
    %27 = vector.load %arg8[%c0_13, %c0_14] : memref<16x256xbf16, #tpu.memory_space<vmem>>, vector<16x256xbf16>
    tpu.vector_store %arg8[%c0_13, %c0_14], %26 {strides = array<i32>} : memref<16x256xbf16, #tpu.memory_space<vmem>>, vector<16x256xbf16>,
    %c0_15 = arith.constant 0 : index
    %c0_16 = arith.constant 0 : index
    %28 = vector.load %arg3[%c0_15, %c0_16] : memref<32x16xbf16, #tpu.memory_space<vmem>>, vector<32x16xbf16>
    %c0_17 = arith.constant 0 : index
    %c0_18 = arith.constant 0 : index
    %29 = vector.load %arg8[%c0_17, %c0_18] : memref<16x256xbf16, #tpu.memory_space<vmem>>, vector<16x256xbf16>
    %cst = arith.constant dense<0.000000e+00> : vector<32x256xf32>
    %30 = tpu.matmul %28, %29, %cst {dimension_numbers = #tpu.dot_dimension_numbers<[1], [0], [0], [1], [0, 0, 1, 1], [], []>} : vector<32x16xbf16>, vector<16x256xbf16>, vector<32x256xf32> -> vector<32x256xf32>
    %c0_19 = arith.constant 0 : index
    %c0_20 = arith.constant 0 : index
    %31 = vector.load %arg4[%c0_19, %c0_20] : memref<32x1xf32, #tpu.memory_space<vmem>>, vector<32x1xf32>
    %32 = vector.broadcast %31 : vector<32x1xf32> to vector<32x256xf32>
    %33 = arith.addf %30, %32 : vector<32x256xf32>
    %c0_21 = arith.constant 0 : index
    %c0_22 = arith.constant 0 : index
    %34 = vector.load %arg5[%c0_21, %c0_22] : memref<1x256xf32, #tpu.memory_space<vmem>>, vector<1x256xf32>
    %cst_23 = arith.constant 0.000000e+00 : f32
    %35 = vector.broadcast %cst_23 : f32 to vector<1x256xf32>
    %36 = arith.cmpf ogt, %34, %35 : vector<1x256xf32>
    %cst_24 = arith.constant 0.000000e+00 : f32
    %37 = vector.shape_cast %36 : vector<1x256xi1> to vector<1x256xi1>
    %38 = vector.broadcast %37 : vector<1x256xi1> to vector<32x256xi1>
    %39 = vector.broadcast %cst_24 : f32 to vector<32x256xf32>
    %40 = arith.select %38, %33, %39 : vector<32x256xi1>, vector<32x256xf32>
    %41 = arith.truncf %40 : vector<32x256xf32> to vector<32x256xbf16>
    %c0_25 = arith.constant 0 : index
    %c0_26 = arith.constant 0 : index
    %42 = vector.load %arg6[%c0_25, %c0_26] : memref<32x256xbf16, #tpu.memory_space<vmem>>, vector<32x256xbf16>
    tpu.vector_store %arg6[%c0_25, %c0_26], %41 {strides = array<i32>} : memref<32x256xbf16, #tpu.memory_space<vmem>>, vector<32x256xbf16>,
    return
  }
  func.func @transform_1(%arg0: i32, %arg1: i32) -> (i32, i32) {
    %c0_i32 = arith.constant 0 : i32
    %c0_i32_0 = arith.constant 0 : i32
    %c0_i32_1 = arith.constant 0 : i32
    return %c0_i32, %c0_i32_0 : i32, i32
  }
  func.func @transform_2(%arg0: i32, %arg1: i32) -> (i32, i32) {
    %c0_i32 = arith.constant 0 : i32
    %c0_i32_0 = arith.constant 0 : i32
    %c0_i32_1 = arith.constant 0 : i32
    return %c0_i32, %c0_i32_0 : i32, i32
  }
  func.func @transform_3(%arg0: i32, %arg1: i32) -> (i32, i32) {
    %c2_i32 = arith.constant 2 : i32
    %0 = arith.muli %arg0, %c2_i32 : i32
    %1 = arith.addi %0, %arg1 : i32
    %c0_i32 = arith.constant 0 : i32
    %c0_i32_0 = arith.constant 0 : i32
    return %c0_i32, %1 : i32, i32
  }
  func.func @transform_4(%arg0: i32, %arg1: i32) -> (i32, i32) {
    %c2_i32 = arith.constant 2 : i32
    %0 = arith.muli %arg0, %c2_i32 : i32
    %1 = arith.addi %0, %arg1 : i32
    %c1_i32 = arith.constant 1 : i32
    %2 = arith.addi %1, %c1_i32 : i32
    %c0_i32 = arith.constant 0 : i32
    %c0_i32_0 = arith.constant 0 : i32
    return %c0_i32, %2 : i32, i32
  }
}

module attributes {stable_mosaic.version = 11 : i64} {
  func.func @_conv_kernel(%arg0: i32, %arg1: i32, %arg2: memref<16x1536xbf16, #tpu.memory_space<any>>, %arg3: memref<32x144xbf16, #tpu.memory_space<vmem>>, %arg4: memref<32x1xf32, #tpu.memory_space<vmem>>, %arg5: memref<1x256xf32, #tpu.memory_space<vmem>>, %arg6: memref<32x256xbf16, #tpu.memory_space<vmem>>, %arg7: memref<2x16x512xbf16, #tpu.memory_space<vmem>>, %arg8: memref<144x256xbf16, #tpu.memory_space<vmem>>, %arg9: memref<2x!tpu.dma_semaphore, #tpu.memory_space<semaphore_mem>>) attributes {dimension_semantics = [#tpu.dimension_semantics<parallel>, #tpu.dimension_semantics<arbitrary>], iteration_bounds = array<i64: 2, 2>, scalar_prefetch = 0 : i64, scratch_operands = 3 : i64, tpu.core_type = #tpu.core_type<tc>, window_params = [{}, {pipeline_mode = #tpu.pipeline_mode<synchronous>, transform_indices = @transform_1, window_bounds = array<i64: 32, 144>}, {pipeline_mode = #tpu.pipeline_mode<synchronous>, transform_indices = @transform_2, window_bounds = array<i64: 32, 1>}, {transform_indices = @transform_3, window_bounds = array<i64: 1, 256>}, {transform_indices = @transform_4, window_bounds = array<i64: 32, 256>}]} {
    %c2_i32 = arith.constant 2 : i32
    %0 = arith.muli %arg0, %c2_i32 : i32
    %1 = arith.addi %0, %arg1 : i32
    %c0_i32 = arith.constant 0 : i32
    %2 = arith.cmpi eq, %arg1, %c0_i32 : i32
    %3 = arith.extui %2 : i1 to i32
    %c0_i32_0 = arith.constant 0 : i32
    %4 = arith.cmpi ne, %3, %c0_i32_0 : i32
    scf.if %4 {
      %c256_i32 = arith.constant 256 : i32
      %77 = arith.muli %1, %c256_i32 : i32
      %c128_i32 = arith.constant 128 : i32
      %78 = arith.addi %77, %c128_i32 : i32
      %c0_i32_45 = arith.constant 0 : i32
      %c0_i32_46 = arith.constant 0 : i32
      %c0_i32_47 = arith.constant 0 : i32
      %79 = tpu.memref_slice %arg2[%c0_i32_47, %78] : memref<16x1536xbf16, #tpu.memory_space<any>> -> memref<16x512xbf16, #tpu.memory_space<any>>
      %c0_i32_48 = arith.constant 0 : i32
      %c0_i32_49 = arith.constant 0 : i32
      %80 = tpu.memref_slice %arg7[%c0_i32_45, %c0_i32_48, %c0_i32_49] : memref<2x16x512xbf16, #tpu.memory_space<vmem>> -> memref<1x16x512xbf16, #tpu.memory_space<vmem>>
      %81 = tpu.memref_squeeze %80 : memref<1x16x512xbf16, #tpu.memory_space<vmem>> -> memref<16x512xbf16, #tpu.memory_space<vmem>>
      %82 = tpu.memref_slice %arg9[%c0_i32_46] : memref<2x!tpu.dma_semaphore, #tpu.memory_space<semaphore_mem>> -> memref<1x!tpu.dma_semaphore, #tpu.memory_space<semaphore_mem>>
      %83 = tpu.memref_squeeze %82 : memref<1x!tpu.dma_semaphore, #tpu.memory_space<semaphore_mem>> -> memref<!tpu.dma_semaphore, #tpu.memory_space<semaphore_mem>>
      tpu.enqueue_dma source(%79 : memref<16x512xbf16, #tpu.memory_space<any>>) target(%81 : memref<16x512xbf16, #tpu.memory_space<vmem>>) target_semaphore(%83 : memref<!tpu.dma_semaphore, #tpu.memory_space<semaphore_mem>>)
    } else {
    }
    %c1_i32 = arith.constant 1 : i32
    %5 = arith.addi %arg1, %c1_i32 : i32
    %c2_i32_1 = arith.constant 2 : i32
    %6 = arith.cmpi slt, %5, %c2_i32_1 : i32
    %7 = arith.extui %6 : i1 to i32
    %c0_i32_2 = arith.constant 0 : i32
    %8 = arith.cmpi ne, %7, %c0_i32_2 : i32
    scf.if %8 {
      %c1_i32_45 = arith.constant 1 : i32
      %77 = arith.addi %1, %c1_i32_45 : i32
      %c1_i32_46 = arith.constant 1 : i32
      %78 = arith.addi %arg1, %c1_i32_46 : i32
      %c2_i32_47 = arith.constant 2 : i32
      %c0_i32_48 = arith.constant 0 : i32
      %79 = arith.cmpi eq, %c2_i32_47, %c0_i32_48 : i32
      %c1_i32_49 = arith.constant 1 : i32
      %80 = arith.select %79, %c1_i32_49, %c2_i32_47 : i32
      %81 = arith.remsi %78, %80 : i32
      %c0_i32_50 = arith.constant 0 : i32
      %82 = arith.cmpi ne, %81, %c0_i32_50 : i32
      %c0_i32_51 = arith.constant 0 : i32
      %83 = arith.cmpi slt, %81, %c0_i32_51 : i32
      %c0_i32_52 = arith.constant 0 : i32
      %84 = arith.cmpi slt, %80, %c0_i32_52 : i32
      %85 = arith.xori %83, %84 : i1
      %86 = arith.andi %85, %82 : i1
      %87 = arith.addi %81, %80 : i32
      %88 = arith.select %86, %87, %81 : i32
      %c256_i32 = arith.constant 256 : i32
      %89 = arith.muli %77, %c256_i32 : i32
      %c128_i32 = arith.constant 128 : i32
      %90 = arith.addi %89, %c128_i32 : i32
      %c0_i32_53 = arith.constant 0 : i32
      %91 = tpu.memref_slice %arg2[%c0_i32_53, %90] : memref<16x1536xbf16, #tpu.memory_space<any>> -> memref<16x512xbf16, #tpu.memory_space<any>>
      %c0_i32_54 = arith.constant 0 : i32
      %c0_i32_55 = arith.constant 0 : i32
      %92 = tpu.memref_slice %arg7[%88, %c0_i32_54, %c0_i32_55] : memref<2x16x512xbf16, #tpu.memory_space<vmem>> -> memref<1x16x512xbf16, #tpu.memory_space<vmem>>
      %93 = tpu.memref_squeeze %92 : memref<1x16x512xbf16, #tpu.memory_space<vmem>> -> memref<16x512xbf16, #tpu.memory_space<vmem>>
      %94 = tpu.memref_slice %arg9[%88] : memref<2x!tpu.dma_semaphore, #tpu.memory_space<semaphore_mem>> -> memref<1x!tpu.dma_semaphore, #tpu.memory_space<semaphore_mem>>
      %95 = tpu.memref_squeeze %94 : memref<1x!tpu.dma_semaphore, #tpu.memory_space<semaphore_mem>> -> memref<!tpu.dma_semaphore, #tpu.memory_space<semaphore_mem>>
      tpu.enqueue_dma source(%91 : memref<16x512xbf16, #tpu.memory_space<any>>) target(%93 : memref<16x512xbf16, #tpu.memory_space<vmem>>) target_semaphore(%95 : memref<!tpu.dma_semaphore, #tpu.memory_space<semaphore_mem>>)
    } else {
    }
    %c2_i32_3 = arith.constant 2 : i32
    %c0_i32_4 = arith.constant 0 : i32
    %9 = arith.cmpi eq, %c2_i32_3, %c0_i32_4 : i32
    %c1_i32_5 = arith.constant 1 : i32
    %10 = arith.select %9, %c1_i32_5, %c2_i32_3 : i32
    %11 = arith.remsi %arg1, %10 : i32
    %c0_i32_6 = arith.constant 0 : i32
    %12 = arith.cmpi ne, %11, %c0_i32_6 : i32
    %c0_i32_7 = arith.constant 0 : i32
    %13 = arith.cmpi slt, %11, %c0_i32_7 : i32
    %c0_i32_8 = arith.constant 0 : i32
    %14 = arith.cmpi slt, %10, %c0_i32_8 : i32
    %15 = arith.xori %13, %14 : i1
    %16 = arith.andi %15, %12 : i1
    %17 = arith.addi %11, %10 : i32
    %18 = arith.select %16, %17, %11 : i32
    %c0_i32_9 = arith.constant 0 : i32
    %c0_i32_10 = arith.constant 0 : i32
    %19 = tpu.memref_slice %arg2[%c0_i32_9, %c0_i32_10] : memref<16x1536xbf16, #tpu.memory_space<any>> -> memref<16x512xbf16, #tpu.memory_space<any>>
    %c0_i32_11 = arith.constant 0 : i32
    %c0_i32_12 = arith.constant 0 : i32
    %20 = tpu.memref_slice %arg7[%18, %c0_i32_11, %c0_i32_12] : memref<2x16x512xbf16, #tpu.memory_space<vmem>> -> memref<1x16x512xbf16, #tpu.memory_space<vmem>>
    %21 = tpu.memref_squeeze %20 : memref<1x16x512xbf16, #tpu.memory_space<vmem>> -> memref<16x512xbf16, #tpu.memory_space<vmem>>
    %22 = tpu.memref_slice %arg9[%18] : memref<2x!tpu.dma_semaphore, #tpu.memory_space<semaphore_mem>> -> memref<1x!tpu.dma_semaphore, #tpu.memory_space<semaphore_mem>>
    %23 = tpu.memref_squeeze %22 : memref<1x!tpu.dma_semaphore, #tpu.memory_space<semaphore_mem>> -> memref<!tpu.dma_semaphore, #tpu.memory_space<semaphore_mem>>
    tpu.wait_dma2 semaphore(%23 : memref<!tpu.dma_semaphore, #tpu.memory_space<semaphore_mem>>) src(%19 : memref<16x512xbf16, #tpu.memory_space<any>>) dst(%21 : memref<16x512xbf16, #tpu.memory_space<vmem>>)
    %24 = arith.index_cast %18 : i32 to index
    %c0 = arith.constant 0 : index
    %c109 = arith.constant 109 : index
    %25 = vector.load %arg7[%24, %c0, %c109] : memref<2x16x512xbf16, #tpu.memory_space<vmem>>, vector<1x16x256xbf16>
    %26 = vector.shape_cast %25 : vector<1x16x256xbf16> to vector<16x256xbf16>
    %c0_13 = arith.constant 0 : index
    %c0_14 = arith.constant 0 : index
    %27 = vector.load %arg8[%c0_13, %c0_14] : memref<144x256xbf16, #tpu.memory_space<vmem>>, vector<16x256xbf16>
    tpu.vector_store %arg8[%c0_13, %c0_14], %26 {strides = array<i32>} : memref<144x256xbf16, #tpu.memory_space<vmem>>, vector<16x256xbf16>,
    %28 = arith.index_cast %18 : i32 to index
    %c0_15 = arith.constant 0 : index
    %c110 = arith.constant 110 : index
    %29 = vector.load %arg7[%28, %c0_15, %c110] : memref<2x16x512xbf16, #tpu.memory_space<vmem>>, vector<1x16x256xbf16>
    %30 = vector.shape_cast %29 : vector<1x16x256xbf16> to vector<16x256xbf16>
    %c16 = arith.constant 16 : index
    %c0_16 = arith.constant 0 : index
    %31 = vector.load %arg8[%c16, %c0_16] : memref<144x256xbf16, #tpu.memory_space<vmem>>, vector<16x256xbf16>
    tpu.vector_store %arg8[%c16, %c0_16], %30 {strides = array<i32>} : memref<144x256xbf16, #tpu.memory_space<vmem>>, vector<16x256xbf16>,
    %32 = arith.index_cast %18 : i32 to index
    %c0_17 = arith.constant 0 : index
    %c111 = arith.constant 111 : index
    %33 = vector.load %arg7[%32, %c0_17, %c111] : memref<2x16x512xbf16, #tpu.memory_space<vmem>>, vector<1x16x256xbf16>
    %34 = vector.shape_cast %33 : vector<1x16x256xbf16> to vector<16x256xbf16>
    %c32 = arith.constant 32 : index
    %c0_18 = arith.constant 0 : index
    %35 = vector.load %arg8[%c32, %c0_18] : memref<144x256xbf16, #tpu.memory_space<vmem>>, vector<16x256xbf16>
    tpu.vector_store %arg8[%c32, %c0_18], %34 {strides = array<i32>} : memref<144x256xbf16, #tpu.memory_space<vmem>>, vector<16x256xbf16>,
    %36 = arith.index_cast %18 : i32 to index
    %c0_19 = arith.constant 0 : index
    %c127 = arith.constant 127 : index
    %37 = vector.load %arg7[%36, %c0_19, %c127] : memref<2x16x512xbf16, #tpu.memory_space<vmem>>, vector<1x16x256xbf16>
    %38 = vector.shape_cast %37 : vector<1x16x256xbf16> to vector<16x256xbf16>
    %c48 = arith.constant 48 : index
    %c0_20 = arith.constant 0 : index
    %39 = vector.load %arg8[%c48, %c0_20] : memref<144x256xbf16, #tpu.memory_space<vmem>>, vector<16x256xbf16>
    tpu.vector_store %arg8[%c48, %c0_20], %38 {strides = array<i32>} : memref<144x256xbf16, #tpu.memory_space<vmem>>, vector<16x256xbf16>,
    %40 = arith.index_cast %18 : i32 to index
    %c0_21 = arith.constant 0 : index
    %c128 = arith.constant 128 : index
    %41 = vector.load %arg7[%40, %c0_21, %c128] : memref<2x16x512xbf16, #tpu.memory_space<vmem>>, vector<1x16x256xbf16>
    %42 = vector.shape_cast %41 : vector<1x16x256xbf16> to vector<16x256xbf16>
    %c64 = arith.constant 64 : index
    %c0_22 = arith.constant 0 : index
    %43 = vector.load %arg8[%c64, %c0_22] : memref<144x256xbf16, #tpu.memory_space<vmem>>, vector<16x256xbf16>
    tpu.vector_store %arg8[%c64, %c0_22], %42 {strides = array<i32>} : memref<144x256xbf16, #tpu.memory_space<vmem>>, vector<16x256xbf16>,
    %44 = arith.index_cast %18 : i32 to index
    %c0_23 = arith.constant 0 : index
    %c129 = arith.constant 129 : index
    %45 = vector.load %arg7[%44, %c0_23, %c129] : memref<2x16x512xbf16, #tpu.memory_space<vmem>>, vector<1x16x256xbf16>
    %46 = vector.shape_cast %45 : vector<1x16x256xbf16> to vector<16x256xbf16>
    %c80 = arith.constant 80 : index
    %c0_24 = arith.constant 0 : index
    %47 = vector.load %arg8[%c80, %c0_24] : memref<144x256xbf16, #tpu.memory_space<vmem>>, vector<16x256xbf16>
    tpu.vector_store %arg8[%c80, %c0_24], %46 {strides = array<i32>} : memref<144x256xbf16, #tpu.memory_space<vmem>>, vector<16x256xbf16>,
    %48 = arith.index_cast %18 : i32 to index
    %c0_25 = arith.constant 0 : index
    %c145 = arith.constant 145 : index
    %49 = vector.load %arg7[%48, %c0_25, %c145] : memref<2x16x512xbf16, #tpu.memory_space<vmem>>, vector<1x16x256xbf16>
    %50 = vector.shape_cast %49 : vector<1x16x256xbf16> to vector<16x256xbf16>
    %c96 = arith.constant 96 : index
    %c0_26 = arith.constant 0 : index
    %51 = vector.load %arg8[%c96, %c0_26] : memref<144x256xbf16, #tpu.memory_space<vmem>>, vector<16x256xbf16>
    tpu.vector_store %arg8[%c96, %c0_26], %50 {strides = array<i32>} : memref<144x256xbf16, #tpu.memory_space<vmem>>, vector<16x256xbf16>,
    %52 = arith.index_cast %18 : i32 to index
    %c0_27 = arith.constant 0 : index
    %c146 = arith.constant 146 : index
    %53 = vector.load %arg7[%52, %c0_27, %c146] : memref<2x16x512xbf16, #tpu.memory_space<vmem>>, vector<1x16x256xbf16>
    %54 = vector.shape_cast %53 : vector<1x16x256xbf16> to vector<16x256xbf16>
    %c112 = arith.constant 112 : index
    %c0_28 = arith.constant 0 : index
    %55 = vector.load %arg8[%c112, %c0_28] : memref<144x256xbf16, #tpu.memory_space<vmem>>, vector<16x256xbf16>
    tpu.vector_store %arg8[%c112, %c0_28], %54 {strides = array<i32>} : memref<144x256xbf16, #tpu.memory_space<vmem>>, vector<16x256xbf16>,
    %56 = arith.index_cast %18 : i32 to index
    %c0_29 = arith.constant 0 : index
    %c147 = arith.constant 147 : index
    %57 = vector.load %arg7[%56, %c0_29, %c147] : memref<2x16x512xbf16, #tpu.memory_space<vmem>>, vector<1x16x256xbf16>
    %58 = vector.shape_cast %57 : vector<1x16x256xbf16> to vector<16x256xbf16>
    %c128_30 = arith.constant 128 : index
    %c0_31 = arith.constant 0 : index
    %59 = vector.load %arg8[%c128_30, %c0_31] : memref<144x256xbf16, #tpu.memory_space<vmem>>, vector<16x256xbf16>
    tpu.vector_store %arg8[%c128_30, %c0_31], %58 {strides = array<i32>} : memref<144x256xbf16, #tpu.memory_space<vmem>>, vector<16x256xbf16>,
    %c0_32 = arith.constant 0 : index
    %c0_33 = arith.constant 0 : index
    %60 = vector.load %arg3[%c0_32, %c0_33] : memref<32x144xbf16, #tpu.memory_space<vmem>>, vector<32x144xbf16>
    %c0_34 = arith.constant 0 : index
    %c0_35 = arith.constant 0 : index
    %61 = vector.load %arg8[%c0_34, %c0_35] : memref<144x256xbf16, #tpu.memory_space<vmem>>, vector<144x256xbf16>
    %cst = arith.constant dense<0.000000e+00> : vector<32x256xf32>
    %62 = tpu.matmul %60, %61, %cst {dimension_numbers = #tpu.dot_dimension_numbers<[1], [0], [0], [1], [0, 0, 1, 1], [], []>} : vector<32x144xbf16>, vector<144x256xbf16>, vector<32x256xf32> -> vector<32x256xf32>
    %c0_36 = arith.constant 0 : index
    %c0_37 = arith.constant 0 : index
    %63 = vector.load %arg4[%c0_36, %c0_37] : memref<32x1xf32, #tpu.memory_space<vmem>>, vector<32x1xf32>
    %64 = vector.broadcast %63 : vector<32x1xf32> to vector<32x256xf32>
    %65 = arith.addf %62, %64 : vector<32x256xf32>
    %cst_38 = arith.constant 0.000000e+00 : f32
    %66 = vector.broadcast %cst_38 : f32 to vector<32x256xf32>
    %67 = arith.maximumf %65, %66 : vector<32x256xf32>
    %c0_39 = arith.constant 0 : index
    %c0_40 = arith.constant 0 : index
    %68 = vector.load %arg5[%c0_39, %c0_40] : memref<1x256xf32, #tpu.memory_space<vmem>>, vector<1x256xf32>
    %cst_41 = arith.constant 0.000000e+00 : f32
    %69 = vector.broadcast %cst_41 : f32 to vector<1x256xf32>
    %70 = arith.cmpf ogt, %68, %69 : vector<1x256xf32>
    %cst_42 = arith.constant 0.000000e+00 : f32
    %71 = vector.shape_cast %70 : vector<1x256xi1> to vector<1x256xi1>
    %72 = vector.broadcast %71 : vector<1x256xi1> to vector<32x256xi1>
    %73 = vector.broadcast %cst_42 : f32 to vector<32x256xf32>
    %74 = arith.select %72, %67, %73 : vector<32x256xi1>, vector<32x256xf32>
    %75 = arith.truncf %74 : vector<32x256xf32> to vector<32x256xbf16>
    %c0_43 = arith.constant 0 : index
    %c0_44 = arith.constant 0 : index
    %76 = vector.load %arg6[%c0_43, %c0_44] : memref<32x256xbf16, #tpu.memory_space<vmem>>, vector<32x256xbf16>
    tpu.vector_store %arg6[%c0_43, %c0_44], %75 {strides = array<i32>} : memref<32x256xbf16, #tpu.memory_space<vmem>>, vector<32x256xbf16>,
    return
  }
  func.func @transform_1(%arg0: i32, %arg1: i32) -> (i32, i32) {
    %c0_i32 = arith.constant 0 : i32
    %c0_i32_0 = arith.constant 0 : i32
    %c0_i32_1 = arith.constant 0 : i32
    return %c0_i32, %c0_i32_0 : i32, i32
  }
  func.func @transform_2(%arg0: i32, %arg1: i32) -> (i32, i32) {
    %c0_i32 = arith.constant 0 : i32
    %c0_i32_0 = arith.constant 0 : i32
    %c0_i32_1 = arith.constant 0 : i32
    return %c0_i32, %c0_i32_0 : i32, i32
  }
  func.func @transform_3(%arg0: i32, %arg1: i32) -> (i32, i32) {
    %c2_i32 = arith.constant 2 : i32
    %0 = arith.muli %arg0, %c2_i32 : i32
    %1 = arith.addi %0, %arg1 : i32
    %c0_i32 = arith.constant 0 : i32
    %c0_i32_0 = arith.constant 0 : i32
    return %c0_i32, %1 : i32, i32
  }
  func.func @transform_4(%arg0: i32, %arg1: i32) -> (i32, i32) {
    %c2_i32 = arith.constant 2 : i32
    %0 = arith.muli %arg0, %c2_i32 : i32
    %1 = arith.addi %0, %arg1 : i32
    %c1_i32 = arith.constant 1 : i32
    %2 = arith.addi %1, %c1_i32 : i32
    %c0_i32 = arith.constant 0 : i32
    %c0_i32_0 = arith.constant 0 : i32
    return %c0_i32, %2 : i32, i32
  }
}

module attributes {stable_mosaic.version = 11 : i64} {
  func.func @_conv_kernel(%arg0: i32, %arg1: i32, %arg2: memref<32x512xbf16, #tpu.memory_space<any>>, %arg3: memref<32x288xbf16, #tpu.memory_space<vmem>>, %arg4: memref<32x1xf32, #tpu.memory_space<vmem>>, %arg5: memref<1x128xf32, #tpu.memory_space<vmem>>, %arg6: memref<32x128xbf16, #tpu.memory_space<vmem>>, %arg7: memref<32x128xbf16, #tpu.memory_space<vmem>>, %arg8: memref<2x32x384xbf16, #tpu.memory_space<vmem>>, %arg9: memref<288x128xbf16, #tpu.memory_space<vmem>>, %arg10: memref<2x!tpu.dma_semaphore, #tpu.memory_space<semaphore_mem>>) attributes {dimension_semantics = [#tpu.dimension_semantics<parallel>, #tpu.dimension_semantics<arbitrary>], iteration_bounds = array<i64: 2, 1>, scalar_prefetch = 0 : i64, scratch_operands = 3 : i64, tpu.core_type = #tpu.core_type<tc>, window_params = [{}, {pipeline_mode = #tpu.pipeline_mode<synchronous>, transform_indices = @transform_1, window_bounds = array<i64: 32, 288>}, {pipeline_mode = #tpu.pipeline_mode<synchronous>, transform_indices = @transform_2, window_bounds = array<i64: 32, 1>}, {transform_indices = @transform_3, window_bounds = array<i64: 1, 128>}, {transform_indices = @transform_4, window_bounds = array<i64: 32, 128>}, {transform_indices = @transform_5, window_bounds = array<i64: 32, 128>}]} {
    %c1_i32 = arith.constant 1 : i32
    %0 = arith.muli %arg0, %c1_i32 : i32
    %1 = arith.addi %0, %arg1 : i32
    %c0_i32 = arith.constant 0 : i32
    %2 = arith.cmpi eq, %arg1, %c0_i32 : i32
    %3 = arith.extui %2 : i1 to i32
    %c0_i32_0 = arith.constant 0 : i32
    %4 = arith.cmpi ne, %3, %c0_i32_0 : i32
    scf.if %4 {
      %c128_i32 = arith.constant 128 : i32
      %80 = arith.muli %1, %c128_i32 : i32
      %c0_i32_47 = arith.constant 0 : i32
      %81 = arith.addi %80, %c0_i32_47 : i32
      %c0_i32_48 = arith.constant 0 : i32
      %c0_i32_49 = arith.constant 0 : i32
      %c0_i32_50 = arith.constant 0 : i32
      %82 = tpu.memref_slice %arg2[%c0_i32_50, %81] : memref<32x512xbf16, #tpu.memory_space<any>> -> memref<32x384xbf16, #tpu.memory_space<any>>
      %c0_i32_51 = arith.constant 0 : i32
      %c0_i32_52 = arith.constant 0 : i32
      %83 = tpu.memref_slice %arg8[%c0_i32_48, %c0_i32_51, %c0_i32_52] : memref<2x32x384xbf16, #tpu.memory_space<vmem>> -> memref<1x32x384xbf16, #tpu.memory_space<vmem>>
      %84 = tpu.memref_squeeze %83 : memref<1x32x384xbf16, #tpu.memory_space<vmem>> -> memref<32x384xbf16, #tpu.memory_space<vmem>>
      %85 = tpu.memref_slice %arg10[%c0_i32_49] : memref<2x!tpu.dma_semaphore, #tpu.memory_space<semaphore_mem>> -> memref<1x!tpu.dma_semaphore, #tpu.memory_space<semaphore_mem>>
      %86 = tpu.memref_squeeze %85 : memref<1x!tpu.dma_semaphore, #tpu.memory_space<semaphore_mem>> -> memref<!tpu.dma_semaphore, #tpu.memory_space<semaphore_mem>>
      tpu.enqueue_dma source(%82 : memref<32x384xbf16, #tpu.memory_space<any>>) target(%84 : memref<32x384xbf16, #tpu.memory_space<vmem>>) target_semaphore(%86 : memref<!tpu.dma_semaphore, #tpu.memory_space<semaphore_mem>>)
    } else {
    }
    %c1_i32_1 = arith.constant 1 : i32
    %5 = arith.addi %arg1, %c1_i32_1 : i32
    %c1_i32_2 = arith.constant 1 : i32
    %6 = arith.cmpi slt, %5, %c1_i32_2 : i32
    %7 = arith.extui %6 : i1 to i32
    %c0_i32_3 = arith.constant 0 : i32
    %8 = arith.cmpi ne, %7, %c0_i32_3 : i32
    scf.if %8 {
      %c1_i32_47 = arith.constant 1 : i32
      %80 = arith.addi %1, %c1_i32_47 : i32
      %c1_i32_48 = arith.constant 1 : i32
      %81 = arith.addi %arg1, %c1_i32_48 : i32
      %c2_i32_49 = arith.constant 2 : i32
      %c0_i32_50 = arith.constant 0 : i32
      %82 = arith.cmpi eq, %c2_i32_49, %c0_i32_50 : i32
      %c1_i32_51 = arith.constant 1 : i32
      %83 = arith.select %82, %c1_i32_51, %c2_i32_49 : i32
      %84 = arith.remsi %81, %83 : i32
      %c0_i32_52 = arith.constant 0 : i32
      %85 = arith.cmpi ne, %84, %c0_i32_52 : i32
      %c0_i32_53 = arith.constant 0 : i32
      %86 = arith.cmpi slt, %84, %c0_i32_53 : i32
      %c0_i32_54 = arith.constant 0 : i32
      %87 = arith.cmpi slt, %83, %c0_i32_54 : i32
      %88 = arith.xori %86, %87 : i1
      %89 = arith.andi %88, %85 : i1
      %90 = arith.addi %84, %83 : i32
      %91 = arith.select %89, %90, %84 : i32
      %c128_i32 = arith.constant 128 : i32
      %92 = arith.muli %80, %c128_i32 : i32
      %c0_i32_55 = arith.constant 0 : i32
      %93 = arith.addi %92, %c0_i32_55 : i32
      %c0_i32_56 = arith.constant 0 : i32
      %94 = tpu.memref_slice %arg2[%c0_i32_56, %93] : memref<32x512xbf16, #tpu.memory_space<any>> -> memref<32x384xbf16, #tpu.memory_space<any>>
      %c0_i32_57 = arith.constant 0 : i32
      %c0_i32_58 = arith.constant 0 : i32
      %95 = tpu.memref_slice %arg8[%91, %c0_i32_57, %c0_i32_58] : memref<2x32x384xbf16, #tpu.memory_space<vmem>> -> memref<1x32x384xbf16, #tpu.memory_space<vmem>>
      %96 = tpu.memref_squeeze %95 : memref<1x32x384xbf16, #tpu.memory_space<vmem>> -> memref<32x384xbf16, #tpu.memory_space<vmem>>
      %97 = tpu.memref_slice %arg10[%91] : memref<2x!tpu.dma_semaphore, #tpu.memory_space<semaphore_mem>> -> memref<1x!tpu.dma_semaphore, #tpu.memory_space<semaphore_mem>>
      %98 = tpu.memref_squeeze %97 : memref<1x!tpu.dma_semaphore, #tpu.memory_space<semaphore_mem>> -> memref<!tpu.dma_semaphore, #tpu.memory_space<semaphore_mem>>
      tpu.enqueue_dma source(%94 : memref<32x384xbf16, #tpu.memory_space<any>>) target(%96 : memref<32x384xbf16, #tpu.memory_space<vmem>>) target_semaphore(%98 : memref<!tpu.dma_semaphore, #tpu.memory_space<semaphore_mem>>)
    } else {
    }
    %c2_i32 = arith.constant 2 : i32
    %c0_i32_4 = arith.constant 0 : i32
    %9 = arith.cmpi eq, %c2_i32, %c0_i32_4 : i32
    %c1_i32_5 = arith.constant 1 : i32
    %10 = arith.select %9, %c1_i32_5, %c2_i32 : i32
    %11 = arith.remsi %arg1, %10 : i32
    %c0_i32_6 = arith.constant 0 : i32
    %12 = arith.cmpi ne, %11, %c0_i32_6 : i32
    %c0_i32_7 = arith.constant 0 : i32
    %13 = arith.cmpi slt, %11, %c0_i32_7 : i32
    %c0_i32_8 = arith.constant 0 : i32
    %14 = arith.cmpi slt, %10, %c0_i32_8 : i32
    %15 = arith.xori %13, %14 : i1
    %16 = arith.andi %15, %12 : i1
    %17 = arith.addi %11, %10 : i32
    %18 = arith.select %16, %17, %11 : i32
    %c0_i32_9 = arith.constant 0 : i32
    %c0_i32_10 = arith.constant 0 : i32
    %19 = tpu.memref_slice %arg2[%c0_i32_9, %c0_i32_10] : memref<32x512xbf16, #tpu.memory_space<any>> -> memref<32x384xbf16, #tpu.memory_space<any>>
    %c0_i32_11 = arith.constant 0 : i32
    %c0_i32_12 = arith.constant 0 : i32
    %20 = tpu.memref_slice %arg8[%18, %c0_i32_11, %c0_i32_12] : memref<2x32x384xbf16, #tpu.memory_space<vmem>> -> memref<1x32x384xbf16, #tpu.memory_space<vmem>>
    %21 = tpu.memref_squeeze %20 : memref<1x32x384xbf16, #tpu.memory_space<vmem>> -> memref<32x384xbf16, #tpu.memory_space<vmem>>
    %22 = tpu.memref_slice %arg10[%18] : memref<2x!tpu.dma_semaphore, #tpu.memory_space<semaphore_mem>> -> memref<1x!tpu.dma_semaphore, #tpu.memory_space<semaphore_mem>>
    %23 = tpu.memref_squeeze %22 : memref<1x!tpu.dma_semaphore, #tpu.memory_space<semaphore_mem>> -> memref<!tpu.dma_semaphore, #tpu.memory_space<semaphore_mem>>
    tpu.wait_dma2 semaphore(%23 : memref<!tpu.dma_semaphore, #tpu.memory_space<semaphore_mem>>) src(%19 : memref<32x384xbf16, #tpu.memory_space<any>>) dst(%21 : memref<32x384xbf16, #tpu.memory_space<vmem>>)
    %24 = arith.index_cast %18 : i32 to index
    %c0 = arith.constant 0 : index
    %c117 = arith.constant 117 : index
    %25 = vector.load %arg8[%24, %c0, %c117] : memref<2x32x384xbf16, #tpu.memory_space<vmem>>, vector<1x32x128xbf16>
    %26 = vector.shape_cast %25 : vector<1x32x128xbf16> to vector<32x128xbf16>
    %c0_13 = arith.constant 0 : index
    %c0_14 = arith.constant 0 : index
    %27 = vector.load %arg9[%c0_13, %c0_14] : memref<288x128xbf16, #tpu.memory_space<vmem>>, vector<32x128xbf16>
    tpu.vector_store %arg9[%c0_13, %c0_14], %26 {strides = array<i32>} : memref<288x128xbf16, #tpu.memory_space<vmem>>, vector<32x128xbf16>,
    %28 = arith.index_cast %18 : i32 to index
    %c0_15 = arith.constant 0 : index
    %c118 = arith.constant 118 : index
    %29 = vector.load %arg8[%28, %c0_15, %c118] : memref<2x32x384xbf16, #tpu.memory_space<vmem>>, vector<1x32x128xbf16>
    %30 = vector.shape_cast %29 : vector<1x32x128xbf16> to vector<32x128xbf16>
    %c32 = arith.constant 32 : index
    %c0_16 = arith.constant 0 : index
    %31 = vector.load %arg9[%c32, %c0_16] : memref<288x128xbf16, #tpu.memory_space<vmem>>, vector<32x128xbf16>
    tpu.vector_store %arg9[%c32, %c0_16], %30 {strides = array<i32>} : memref<288x128xbf16, #tpu.memory_space<vmem>>, vector<32x128xbf16>,
    %32 = arith.index_cast %18 : i32 to index
    %c0_17 = arith.constant 0 : index
    %c119 = arith.constant 119 : index
    %33 = vector.load %arg8[%32, %c0_17, %c119] : memref<2x32x384xbf16, #tpu.memory_space<vmem>>, vector<1x32x128xbf16>
    %34 = vector.shape_cast %33 : vector<1x32x128xbf16> to vector<32x128xbf16>
    %c64 = arith.constant 64 : index
    %c0_18 = arith.constant 0 : index
    %35 = vector.load %arg9[%c64, %c0_18] : memref<288x128xbf16, #tpu.memory_space<vmem>>, vector<32x128xbf16>
    tpu.vector_store %arg9[%c64, %c0_18], %34 {strides = array<i32>} : memref<288x128xbf16, #tpu.memory_space<vmem>>, vector<32x128xbf16>,
    %36 = arith.index_cast %18 : i32 to index
    %c0_19 = arith.constant 0 : index
    %c127 = arith.constant 127 : index
    %37 = vector.load %arg8[%36, %c0_19, %c127] : memref<2x32x384xbf16, #tpu.memory_space<vmem>>, vector<1x32x128xbf16>
    %38 = vector.shape_cast %37 : vector<1x32x128xbf16> to vector<32x128xbf16>
    %c96 = arith.constant 96 : index
    %c0_20 = arith.constant 0 : index
    %39 = vector.load %arg9[%c96, %c0_20] : memref<288x128xbf16, #tpu.memory_space<vmem>>, vector<32x128xbf16>
    tpu.vector_store %arg9[%c96, %c0_20], %38 {strides = array<i32>} : memref<288x128xbf16, #tpu.memory_space<vmem>>, vector<32x128xbf16>,
    %40 = arith.index_cast %18 : i32 to index
    %c0_21 = arith.constant 0 : index
    %c128 = arith.constant 128 : index
    %41 = vector.load %arg8[%40, %c0_21, %c128] : memref<2x32x384xbf16, #tpu.memory_space<vmem>>, vector<1x32x128xbf16>
    %42 = vector.shape_cast %41 : vector<1x32x128xbf16> to vector<32x128xbf16>
    %c128_22 = arith.constant 128 : index
    %c0_23 = arith.constant 0 : index
    %43 = vector.load %arg9[%c128_22, %c0_23] : memref<288x128xbf16, #tpu.memory_space<vmem>>, vector<32x128xbf16>
    tpu.vector_store %arg9[%c128_22, %c0_23], %42 {strides = array<i32>} : memref<288x128xbf16, #tpu.memory_space<vmem>>, vector<32x128xbf16>,
    %44 = arith.index_cast %18 : i32 to index
    %c0_24 = arith.constant 0 : index
    %c129 = arith.constant 129 : index
    %45 = vector.load %arg8[%44, %c0_24, %c129] : memref<2x32x384xbf16, #tpu.memory_space<vmem>>, vector<1x32x128xbf16>
    %46 = vector.shape_cast %45 : vector<1x32x128xbf16> to vector<32x128xbf16>
    %c160 = arith.constant 160 : index
    %c0_25 = arith.constant 0 : index
    %47 = vector.load %arg9[%c160, %c0_25] : memref<288x128xbf16, #tpu.memory_space<vmem>>, vector<32x128xbf16>
    tpu.vector_store %arg9[%c160, %c0_25], %46 {strides = array<i32>} : memref<288x128xbf16, #tpu.memory_space<vmem>>, vector<32x128xbf16>,
    %48 = arith.index_cast %18 : i32 to index
    %c0_26 = arith.constant 0 : index
    %c137 = arith.constant 137 : index
    %49 = vector.load %arg8[%48, %c0_26, %c137] : memref<2x32x384xbf16, #tpu.memory_space<vmem>>, vector<1x32x128xbf16>
    %50 = vector.shape_cast %49 : vector<1x32x128xbf16> to vector<32x128xbf16>
    %c192 = arith.constant 192 : index
    %c0_27 = arith.constant 0 : index
    %51 = vector.load %arg9[%c192, %c0_27] : memref<288x128xbf16, #tpu.memory_space<vmem>>, vector<32x128xbf16>
    tpu.vector_store %arg9[%c192, %c0_27], %50 {strides = array<i32>} : memref<288x128xbf16, #tpu.memory_space<vmem>>, vector<32x128xbf16>,
    %52 = arith.index_cast %18 : i32 to index
    %c0_28 = arith.constant 0 : index
    %c138 = arith.constant 138 : index
    %53 = vector.load %arg8[%52, %c0_28, %c138] : memref<2x32x384xbf16, #tpu.memory_space<vmem>>, vector<1x32x128xbf16>
    %54 = vector.shape_cast %53 : vector<1x32x128xbf16> to vector<32x128xbf16>
    %c224 = arith.constant 224 : index
    %c0_29 = arith.constant 0 : index
    %55 = vector.load %arg9[%c224, %c0_29] : memref<288x128xbf16, #tpu.memory_space<vmem>>, vector<32x128xbf16>
    tpu.vector_store %arg9[%c224, %c0_29], %54 {strides = array<i32>} : memref<288x128xbf16, #tpu.memory_space<vmem>>, vector<32x128xbf16>,
    %56 = arith.index_cast %18 : i32 to index
    %c0_30 = arith.constant 0 : index
    %c139 = arith.constant 139 : index
    %57 = vector.load %arg8[%56, %c0_30, %c139] : memref<2x32x384xbf16, #tpu.memory_space<vmem>>, vector<1x32x128xbf16>
    %58 = vector.shape_cast %57 : vector<1x32x128xbf16> to vector<32x128xbf16>
    %c256 = arith.constant 256 : index
    %c0_31 = arith.constant 0 : index
    %59 = vector.load %arg9[%c256, %c0_31] : memref<288x128xbf16, #tpu.memory_space<vmem>>, vector<32x128xbf16>
    tpu.vector_store %arg9[%c256, %c0_31], %58 {strides = array<i32>} : memref<288x128xbf16, #tpu.memory_space<vmem>>, vector<32x128xbf16>,
    %c0_32 = arith.constant 0 : index
    %c0_33 = arith.constant 0 : index
    %60 = vector.load %arg3[%c0_32, %c0_33] : memref<32x288xbf16, #tpu.memory_space<vmem>>, vector<32x288xbf16>
    %c0_34 = arith.constant 0 : index
    %c0_35 = arith.constant 0 : index
    %61 = vector.load %arg9[%c0_34, %c0_35] : memref<288x128xbf16, #tpu.memory_space<vmem>>, vector<288x128xbf16>
    %cst = arith.constant dense<0.000000e+00> : vector<32x128xf32>
    %62 = tpu.matmul %60, %61, %cst {dimension_numbers = #tpu.dot_dimension_numbers<[1], [0], [0], [1], [0, 0, 1, 1], [], []>} : vector<32x288xbf16>, vector<288x128xbf16>, vector<32x128xf32> -> vector<32x128xf32>
    %c0_36 = arith.constant 0 : index
    %c0_37 = arith.constant 0 : index
    %63 = vector.load %arg4[%c0_36, %c0_37] : memref<32x1xf32, #tpu.memory_space<vmem>>, vector<32x1xf32>
    %64 = vector.broadcast %63 : vector<32x1xf32> to vector<32x128xf32>
    %65 = arith.addf %62, %64 : vector<32x128xf32>
    %c0_38 = arith.constant 0 : index
    %c0_39 = arith.constant 0 : index
    %66 = vector.load %arg6[%c0_38, %c0_39] : memref<32x128xbf16, #tpu.memory_space<vmem>>, vector<32x128xbf16>
    %67 = arith.extf %66 : vector<32x128xbf16> to vector<32x128xf32>
    %68 = arith.addf %65, %67 : vector<32x128xf32>
    %cst_40 = arith.constant 0.000000e+00 : f32
    %69 = vector.broadcast %cst_40 : f32 to vector<32x128xf32>
    %70 = arith.maximumf %68, %69 : vector<32x128xf32>
    %c0_41 = arith.constant 0 : index
    %c0_42 = arith.constant 0 : index
    %71 = vector.load %arg5[%c0_41, %c0_42] : memref<1x128xf32, #tpu.memory_space<vmem>>, vector<1x128xf32>
    %cst_43 = arith.constant 0.000000e+00 : f32
    %72 = vector.broadcast %cst_43 : f32 to vector<1x128xf32>
    %73 = arith.cmpf ogt, %71, %72 : vector<1x128xf32>
    %cst_44 = arith.constant 0.000000e+00 : f32
    %74 = vector.shape_cast %73 : vector<1x128xi1> to vector<1x128xi1>
    %75 = vector.broadcast %74 : vector<1x128xi1> to vector<32x128xi1>
    %76 = vector.broadcast %cst_44 : f32 to vector<32x128xf32>
    %77 = arith.select %75, %70, %76 : vector<32x128xi1>, vector<32x128xf32>
    %78 = arith.truncf %77 : vector<32x128xf32> to vector<32x128xbf16>
    %c0_45 = arith.constant 0 : index
    %c0_46 = arith.constant 0 : index
    %79 = vector.load %arg7[%c0_45, %c0_46] : memref<32x128xbf16, #tpu.memory_space<vmem>>, vector<32x128xbf16>
    tpu.vector_store %arg7[%c0_45, %c0_46], %78 {strides = array<i32>} : memref<32x128xbf16, #tpu.memory_space<vmem>>, vector<32x128xbf16>,
    return
  }
  func.func @transform_1(%arg0: i32, %arg1: i32) -> (i32, i32) {
    %c0_i32 = arith.constant 0 : i32
    %c0_i32_0 = arith.constant 0 : i32
    %c0_i32_1 = arith.constant 0 : i32
    return %c0_i32, %c0_i32_0 : i32, i32
  }
  func.func @transform_2(%arg0: i32, %arg1: i32) -> (i32, i32) {
    %c0_i32 = arith.constant 0 : i32
    %c0_i32_0 = arith.constant 0 : i32
    %c0_i32_1 = arith.constant 0 : i32
    return %c0_i32, %c0_i32_0 : i32, i32
  }
  func.func @transform_3(%arg0: i32, %arg1: i32) -> (i32, i32) {
    %c1_i32 = arith.constant 1 : i32
    %0 = arith.muli %arg0, %c1_i32 : i32
    %1 = arith.addi %0, %arg1 : i32
    %c0_i32 = arith.constant 0 : i32
    %c0_i32_0 = arith.constant 0 : i32
    return %c0_i32, %1 : i32, i32
  }
  func.func @transform_4(%arg0: i32, %arg1: i32) -> (i32, i32) {
    %c1_i32 = arith.constant 1 : i32
    %0 = arith.muli %arg0, %c1_i32 : i32
    %1 = arith.addi %0, %arg1 : i32
    %c1_i32_0 = arith.constant 1 : i32
    %2 = arith.addi %1, %c1_i32_0 : i32
    %c0_i32 = arith.constant 0 : i32
    %c0_i32_1 = arith.constant 0 : i32
    return %c0_i32, %2 : i32, i32
  }
  func.func @transform_5(%arg0: i32, %arg1: i32) -> (i32, i32) {
    %c1_i32 = arith.constant 1 : i32
    %0 = arith.muli %arg0, %c1_i32 : i32
    %1 = arith.addi %0, %arg1 : i32
    %c1_i32_0 = arith.constant 1 : i32
    %2 = arith.addi %1, %c1_i32_0 : i32
    %c0_i32 = arith.constant 0 : i32
    %c0_i32_1 = arith.constant 0 : i32
    return %c0_i32, %2 : i32, i32
  }
}

module attributes {stable_mosaic.version = 11 : i64} {
  func.func @_conv_kernel(%arg0: i32, %arg1: i32, %arg2: memref<32x512xbf16, #tpu.memory_space<any>>, %arg3: memref<32x288xbf16, #tpu.memory_space<vmem>>, %arg4: memref<32x1xf32, #tpu.memory_space<vmem>>, %arg5: memref<1x128xf32, #tpu.memory_space<vmem>>, %arg6: memref<32x128xbf16, #tpu.memory_space<vmem>>, %arg7: memref<2x32x384xbf16, #tpu.memory_space<vmem>>, %arg8: memref<288x128xbf16, #tpu.memory_space<vmem>>, %arg9: memref<2x!tpu.dma_semaphore, #tpu.memory_space<semaphore_mem>>) attributes {dimension_semantics = [#tpu.dimension_semantics<parallel>, #tpu.dimension_semantics<arbitrary>], iteration_bounds = array<i64: 2, 1>, scalar_prefetch = 0 : i64, scratch_operands = 3 : i64, tpu.core_type = #tpu.core_type<tc>, window_params = [{}, {pipeline_mode = #tpu.pipeline_mode<synchronous>, transform_indices = @transform_1, window_bounds = array<i64: 32, 288>}, {pipeline_mode = #tpu.pipeline_mode<synchronous>, transform_indices = @transform_2, window_bounds = array<i64: 32, 1>}, {transform_indices = @transform_3, window_bounds = array<i64: 1, 128>}, {transform_indices = @transform_4, window_bounds = array<i64: 32, 128>}]} {
    %c1_i32 = arith.constant 1 : i32
    %0 = arith.muli %arg0, %c1_i32 : i32
    %1 = arith.addi %0, %arg1 : i32
    %c0_i32 = arith.constant 0 : i32
    %2 = arith.cmpi eq, %arg1, %c0_i32 : i32
    %3 = arith.extui %2 : i1 to i32
    %c0_i32_0 = arith.constant 0 : i32
    %4 = arith.cmpi ne, %3, %c0_i32_0 : i32
    scf.if %4 {
      %c128_i32 = arith.constant 128 : i32
      %77 = arith.muli %1, %c128_i32 : i32
      %c0_i32_45 = arith.constant 0 : i32
      %78 = arith.addi %77, %c0_i32_45 : i32
      %c0_i32_46 = arith.constant 0 : i32
      %c0_i32_47 = arith.constant 0 : i32
      %c0_i32_48 = arith.constant 0 : i32
      %79 = tpu.memref_slice %arg2[%c0_i32_48, %78] : memref<32x512xbf16, #tpu.memory_space<any>> -> memref<32x384xbf16, #tpu.memory_space<any>>
      %c0_i32_49 = arith.constant 0 : i32
      %c0_i32_50 = arith.constant 0 : i32
      %80 = tpu.memref_slice %arg7[%c0_i32_46, %c0_i32_49, %c0_i32_50] : memref<2x32x384xbf16, #tpu.memory_space<vmem>> -> memref<1x32x384xbf16, #tpu.memory_space<vmem>>
      %81 = tpu.memref_squeeze %80 : memref<1x32x384xbf16, #tpu.memory_space<vmem>> -> memref<32x384xbf16, #tpu.memory_space<vmem>>
      %82 = tpu.memref_slice %arg9[%c0_i32_47] : memref<2x!tpu.dma_semaphore, #tpu.memory_space<semaphore_mem>> -> memref<1x!tpu.dma_semaphore, #tpu.memory_space<semaphore_mem>>
      %83 = tpu.memref_squeeze %82 : memref<1x!tpu.dma_semaphore, #tpu.memory_space<semaphore_mem>> -> memref<!tpu.dma_semaphore, #tpu.memory_space<semaphore_mem>>
      tpu.enqueue_dma source(%79 : memref<32x384xbf16, #tpu.memory_space<any>>) target(%81 : memref<32x384xbf16, #tpu.memory_space<vmem>>) target_semaphore(%83 : memref<!tpu.dma_semaphore, #tpu.memory_space<semaphore_mem>>)
    } else {
    }
    %c1_i32_1 = arith.constant 1 : i32
    %5 = arith.addi %arg1, %c1_i32_1 : i32
    %c1_i32_2 = arith.constant 1 : i32
    %6 = arith.cmpi slt, %5, %c1_i32_2 : i32
    %7 = arith.extui %6 : i1 to i32
    %c0_i32_3 = arith.constant 0 : i32
    %8 = arith.cmpi ne, %7, %c0_i32_3 : i32
    scf.if %8 {
      %c1_i32_45 = arith.constant 1 : i32
      %77 = arith.addi %1, %c1_i32_45 : i32
      %c1_i32_46 = arith.constant 1 : i32
      %78 = arith.addi %arg1, %c1_i32_46 : i32
      %c2_i32_47 = arith.constant 2 : i32
      %c0_i32_48 = arith.constant 0 : i32
      %79 = arith.cmpi eq, %c2_i32_47, %c0_i32_48 : i32
      %c1_i32_49 = arith.constant 1 : i32
      %80 = arith.select %79, %c1_i32_49, %c2_i32_47 : i32
      %81 = arith.remsi %78, %80 : i32
      %c0_i32_50 = arith.constant 0 : i32
      %82 = arith.cmpi ne, %81, %c0_i32_50 : i32
      %c0_i32_51 = arith.constant 0 : i32
      %83 = arith.cmpi slt, %81, %c0_i32_51 : i32
      %c0_i32_52 = arith.constant 0 : i32
      %84 = arith.cmpi slt, %80, %c0_i32_52 : i32
      %85 = arith.xori %83, %84 : i1
      %86 = arith.andi %85, %82 : i1
      %87 = arith.addi %81, %80 : i32
      %88 = arith.select %86, %87, %81 : i32
      %c128_i32 = arith.constant 128 : i32
      %89 = arith.muli %77, %c128_i32 : i32
      %c0_i32_53 = arith.constant 0 : i32
      %90 = arith.addi %89, %c0_i32_53 : i32
      %c0_i32_54 = arith.constant 0 : i32
      %91 = tpu.memref_slice %arg2[%c0_i32_54, %90] : memref<32x512xbf16, #tpu.memory_space<any>> -> memref<32x384xbf16, #tpu.memory_space<any>>
      %c0_i32_55 = arith.constant 0 : i32
      %c0_i32_56 = arith.constant 0 : i32
      %92 = tpu.memref_slice %arg7[%88, %c0_i32_55, %c0_i32_56] : memref<2x32x384xbf16, #tpu.memory_space<vmem>> -> memref<1x32x384xbf16, #tpu.memory_space<vmem>>
      %93 = tpu.memref_squeeze %92 : memref<1x32x384xbf16, #tpu.memory_space<vmem>> -> memref<32x384xbf16, #tpu.memory_space<vmem>>
      %94 = tpu.memref_slice %arg9[%88] : memref<2x!tpu.dma_semaphore, #tpu.memory_space<semaphore_mem>> -> memref<1x!tpu.dma_semaphore, #tpu.memory_space<semaphore_mem>>
      %95 = tpu.memref_squeeze %94 : memref<1x!tpu.dma_semaphore, #tpu.memory_space<semaphore_mem>> -> memref<!tpu.dma_semaphore, #tpu.memory_space<semaphore_mem>>
      tpu.enqueue_dma source(%91 : memref<32x384xbf16, #tpu.memory_space<any>>) target(%93 : memref<32x384xbf16, #tpu.memory_space<vmem>>) target_semaphore(%95 : memref<!tpu.dma_semaphore, #tpu.memory_space<semaphore_mem>>)
    } else {
    }
    %c2_i32 = arith.constant 2 : i32
    %c0_i32_4 = arith.constant 0 : i32
    %9 = arith.cmpi eq, %c2_i32, %c0_i32_4 : i32
    %c1_i32_5 = arith.constant 1 : i32
    %10 = arith.select %9, %c1_i32_5, %c2_i32 : i32
    %11 = arith.remsi %arg1, %10 : i32
    %c0_i32_6 = arith.constant 0 : i32
    %12 = arith.cmpi ne, %11, %c0_i32_6 : i32
    %c0_i32_7 = arith.constant 0 : i32
    %13 = arith.cmpi slt, %11, %c0_i32_7 : i32
    %c0_i32_8 = arith.constant 0 : i32
    %14 = arith.cmpi slt, %10, %c0_i32_8 : i32
    %15 = arith.xori %13, %14 : i1
    %16 = arith.andi %15, %12 : i1
    %17 = arith.addi %11, %10 : i32
    %18 = arith.select %16, %17, %11 : i32
    %c0_i32_9 = arith.constant 0 : i32
    %c0_i32_10 = arith.constant 0 : i32
    %19 = tpu.memref_slice %arg2[%c0_i32_9, %c0_i32_10] : memref<32x512xbf16, #tpu.memory_space<any>> -> memref<32x384xbf16, #tpu.memory_space<any>>
    %c0_i32_11 = arith.constant 0 : i32
    %c0_i32_12 = arith.constant 0 : i32
    %20 = tpu.memref_slice %arg7[%18, %c0_i32_11, %c0_i32_12] : memref<2x32x384xbf16, #tpu.memory_space<vmem>> -> memref<1x32x384xbf16, #tpu.memory_space<vmem>>
    %21 = tpu.memref_squeeze %20 : memref<1x32x384xbf16, #tpu.memory_space<vmem>> -> memref<32x384xbf16, #tpu.memory_space<vmem>>
    %22 = tpu.memref_slice %arg9[%18] : memref<2x!tpu.dma_semaphore, #tpu.memory_space<semaphore_mem>> -> memref<1x!tpu.dma_semaphore, #tpu.memory_space<semaphore_mem>>
    %23 = tpu.memref_squeeze %22 : memref<1x!tpu.dma_semaphore, #tpu.memory_space<semaphore_mem>> -> memref<!tpu.dma_semaphore, #tpu.memory_space<semaphore_mem>>
    tpu.wait_dma2 semaphore(%23 : memref<!tpu.dma_semaphore, #tpu.memory_space<semaphore_mem>>) src(%19 : memref<32x384xbf16, #tpu.memory_space<any>>) dst(%21 : memref<32x384xbf16, #tpu.memory_space<vmem>>)
    %24 = arith.index_cast %18 : i32 to index
    %c0 = arith.constant 0 : index
    %c117 = arith.constant 117 : index
    %25 = vector.load %arg7[%24, %c0, %c117] : memref<2x32x384xbf16, #tpu.memory_space<vmem>>, vector<1x32x128xbf16>
    %26 = vector.shape_cast %25 : vector<1x32x128xbf16> to vector<32x128xbf16>
    %c0_13 = arith.constant 0 : index
    %c0_14 = arith.constant 0 : index
    %27 = vector.load %arg8[%c0_13, %c0_14] : memref<288x128xbf16, #tpu.memory_space<vmem>>, vector<32x128xbf16>
    tpu.vector_store %arg8[%c0_13, %c0_14], %26 {strides = array<i32>} : memref<288x128xbf16, #tpu.memory_space<vmem>>, vector<32x128xbf16>,
    %28 = arith.index_cast %18 : i32 to index
    %c0_15 = arith.constant 0 : index
    %c118 = arith.constant 118 : index
    %29 = vector.load %arg7[%28, %c0_15, %c118] : memref<2x32x384xbf16, #tpu.memory_space<vmem>>, vector<1x32x128xbf16>
    %30 = vector.shape_cast %29 : vector<1x32x128xbf16> to vector<32x128xbf16>
    %c32 = arith.constant 32 : index
    %c0_16 = arith.constant 0 : index
    %31 = vector.load %arg8[%c32, %c0_16] : memref<288x128xbf16, #tpu.memory_space<vmem>>, vector<32x128xbf16>
    tpu.vector_store %arg8[%c32, %c0_16], %30 {strides = array<i32>} : memref<288x128xbf16, #tpu.memory_space<vmem>>, vector<32x128xbf16>,
    %32 = arith.index_cast %18 : i32 to index
    %c0_17 = arith.constant 0 : index
    %c119 = arith.constant 119 : index
    %33 = vector.load %arg7[%32, %c0_17, %c119] : memref<2x32x384xbf16, #tpu.memory_space<vmem>>, vector<1x32x128xbf16>
    %34 = vector.shape_cast %33 : vector<1x32x128xbf16> to vector<32x128xbf16>
    %c64 = arith.constant 64 : index
    %c0_18 = arith.constant 0 : index
    %35 = vector.load %arg8[%c64, %c0_18] : memref<288x128xbf16, #tpu.memory_space<vmem>>, vector<32x128xbf16>
    tpu.vector_store %arg8[%c64, %c0_18], %34 {strides = array<i32>} : memref<288x128xbf16, #tpu.memory_space<vmem>>, vector<32x128xbf16>,
    %36 = arith.index_cast %18 : i32 to index
    %c0_19 = arith.constant 0 : index
    %c127 = arith.constant 127 : index
    %37 = vector.load %arg7[%36, %c0_19, %c127] : memref<2x32x384xbf16, #tpu.memory_space<vmem>>, vector<1x32x128xbf16>
    %38 = vector.shape_cast %37 : vector<1x32x128xbf16> to vector<32x128xbf16>
    %c96 = arith.constant 96 : index
    %c0_20 = arith.constant 0 : index
    %39 = vector.load %arg8[%c96, %c0_20] : memref<288x128xbf16, #tpu.memory_space<vmem>>, vector<32x128xbf16>
    tpu.vector_store %arg8[%c96, %c0_20], %38 {strides = array<i32>} : memref<288x128xbf16, #tpu.memory_space<vmem>>, vector<32x128xbf16>,
    %40 = arith.index_cast %18 : i32 to index
    %c0_21 = arith.constant 0 : index
    %c128 = arith.constant 128 : index
    %41 = vector.load %arg7[%40, %c0_21, %c128] : memref<2x32x384xbf16, #tpu.memory_space<vmem>>, vector<1x32x128xbf16>
    %42 = vector.shape_cast %41 : vector<1x32x128xbf16> to vector<32x128xbf16>
    %c128_22 = arith.constant 128 : index
    %c0_23 = arith.constant 0 : index
    %43 = vector.load %arg8[%c128_22, %c0_23] : memref<288x128xbf16, #tpu.memory_space<vmem>>, vector<32x128xbf16>
    tpu.vector_store %arg8[%c128_22, %c0_23], %42 {strides = array<i32>} : memref<288x128xbf16, #tpu.memory_space<vmem>>, vector<32x128xbf16>,
    %44 = arith.index_cast %18 : i32 to index
    %c0_24 = arith.constant 0 : index
    %c129 = arith.constant 129 : index
    %45 = vector.load %arg7[%44, %c0_24, %c129] : memref<2x32x384xbf16, #tpu.memory_space<vmem>>, vector<1x32x128xbf16>
    %46 = vector.shape_cast %45 : vector<1x32x128xbf16> to vector<32x128xbf16>
    %c160 = arith.constant 160 : index
    %c0_25 = arith.constant 0 : index
    %47 = vector.load %arg8[%c160, %c0_25] : memref<288x128xbf16, #tpu.memory_space<vmem>>, vector<32x128xbf16>
    tpu.vector_store %arg8[%c160, %c0_25], %46 {strides = array<i32>} : memref<288x128xbf16, #tpu.memory_space<vmem>>, vector<32x128xbf16>,
    %48 = arith.index_cast %18 : i32 to index
    %c0_26 = arith.constant 0 : index
    %c137 = arith.constant 137 : index
    %49 = vector.load %arg7[%48, %c0_26, %c137] : memref<2x32x384xbf16, #tpu.memory_space<vmem>>, vector<1x32x128xbf16>
    %50 = vector.shape_cast %49 : vector<1x32x128xbf16> to vector<32x128xbf16>
    %c192 = arith.constant 192 : index
    %c0_27 = arith.constant 0 : index
    %51 = vector.load %arg8[%c192, %c0_27] : memref<288x128xbf16, #tpu.memory_space<vmem>>, vector<32x128xbf16>
    tpu.vector_store %arg8[%c192, %c0_27], %50 {strides = array<i32>} : memref<288x128xbf16, #tpu.memory_space<vmem>>, vector<32x128xbf16>,
    %52 = arith.index_cast %18 : i32 to index
    %c0_28 = arith.constant 0 : index
    %c138 = arith.constant 138 : index
    %53 = vector.load %arg7[%52, %c0_28, %c138] : memref<2x32x384xbf16, #tpu.memory_space<vmem>>, vector<1x32x128xbf16>
    %54 = vector.shape_cast %53 : vector<1x32x128xbf16> to vector<32x128xbf16>
    %c224 = arith.constant 224 : index
    %c0_29 = arith.constant 0 : index
    %55 = vector.load %arg8[%c224, %c0_29] : memref<288x128xbf16, #tpu.memory_space<vmem>>, vector<32x128xbf16>
    tpu.vector_store %arg8[%c224, %c0_29], %54 {strides = array<i32>} : memref<288x128xbf16, #tpu.memory_space<vmem>>, vector<32x128xbf16>,
    %56 = arith.index_cast %18 : i32 to index
    %c0_30 = arith.constant 0 : index
    %c139 = arith.constant 139 : index
    %57 = vector.load %arg7[%56, %c0_30, %c139] : memref<2x32x384xbf16, #tpu.memory_space<vmem>>, vector<1x32x128xbf16>
    %58 = vector.shape_cast %57 : vector<1x32x128xbf16> to vector<32x128xbf16>
    %c256 = arith.constant 256 : index
    %c0_31 = arith.constant 0 : index
    %59 = vector.load %arg8[%c256, %c0_31] : memref<288x128xbf16, #tpu.memory_space<vmem>>, vector<32x128xbf16>
    tpu.vector_store %arg8[%c256, %c0_31], %58 {strides = array<i32>} : memref<288x128xbf16, #tpu.memory_space<vmem>>, vector<32x128xbf16>,
    %c0_32 = arith.constant 0 : index
    %c0_33 = arith.constant 0 : index
    %60 = vector.load %arg3[%c0_32, %c0_33] : memref<32x288xbf16, #tpu.memory_space<vmem>>, vector<32x288xbf16>
    %c0_34 = arith.constant 0 : index
    %c0_35 = arith.constant 0 : index
    %61 = vector.load %arg8[%c0_34, %c0_35] : memref<288x128xbf16, #tpu.memory_space<vmem>>, vector<288x128xbf16>
    %cst = arith.constant dense<0.000000e+00> : vector<32x128xf32>
    %62 = tpu.matmul %60, %61, %cst {dimension_numbers = #tpu.dot_dimension_numbers<[1], [0], [0], [1], [0, 0, 1, 1], [], []>} : vector<32x288xbf16>, vector<288x128xbf16>, vector<32x128xf32> -> vector<32x128xf32>
    %c0_36 = arith.constant 0 : index
    %c0_37 = arith.constant 0 : index
    %63 = vector.load %arg4[%c0_36, %c0_37] : memref<32x1xf32, #tpu.memory_space<vmem>>, vector<32x1xf32>
    %64 = vector.broadcast %63 : vector<32x1xf32> to vector<32x128xf32>
    %65 = arith.addf %62, %64 : vector<32x128xf32>
    %cst_38 = arith.constant 0.000000e+00 : f32
    %66 = vector.broadcast %cst_38 : f32 to vector<32x128xf32>
    %67 = arith.maximumf %65, %66 : vector<32x128xf32>
    %c0_39 = arith.constant 0 : index
    %c0_40 = arith.constant 0 : index
    %68 = vector.load %arg5[%c0_39, %c0_40] : memref<1x128xf32, #tpu.memory_space<vmem>>, vector<1x128xf32>
    %cst_41 = arith.constant 0.000000e+00 : f32
    %69 = vector.broadcast %cst_41 : f32 to vector<1x128xf32>
    %70 = arith.cmpf ogt, %68, %69 : vector<1x128xf32>
    %cst_42 = arith.constant 0.000000e+00 : f32
    %71 = vector.shape_cast %70 : vector<1x128xi1> to vector<1x128xi1>
    %72 = vector.broadcast %71 : vector<1x128xi1> to vector<32x128xi1>
    %73 = vector.broadcast %cst_42 : f32 to vector<32x128xf32>
    %74 = arith.select %72, %67, %73 : vector<32x128xi1>, vector<32x128xf32>
    %75 = arith.truncf %74 : vector<32x128xf32> to vector<32x128xbf16>
    %c0_43 = arith.constant 0 : index
    %c0_44 = arith.constant 0 : index
    %76 = vector.load %arg6[%c0_43, %c0_44] : memref<32x128xbf16, #tpu.memory_space<vmem>>, vector<32x128xbf16>
    tpu.vector_store %arg6[%c0_43, %c0_44], %75 {strides = array<i32>} : memref<32x128xbf16, #tpu.memory_space<vmem>>, vector<32x128xbf16>,
    return
  }
  func.func @transform_1(%arg0: i32, %arg1: i32) -> (i32, i32) {
    %c0_i32 = arith.constant 0 : i32
    %c0_i32_0 = arith.constant 0 : i32
    %c0_i32_1 = arith.constant 0 : i32
    return %c0_i32, %c0_i32_0 : i32, i32
  }
  func.func @transform_2(%arg0: i32, %arg1: i32) -> (i32, i32) {
    %c0_i32 = arith.constant 0 : i32
    %c0_i32_0 = arith.constant 0 : i32
    %c0_i32_1 = arith.constant 0 : i32
    return %c0_i32, %c0_i32_0 : i32, i32
  }
  func.func @transform_3(%arg0: i32, %arg1: i32) -> (i32, i32) {
    %c1_i32 = arith.constant 1 : i32
    %0 = arith.muli %arg0, %c1_i32 : i32
    %1 = arith.addi %0, %arg1 : i32
    %c0_i32 = arith.constant 0 : i32
    %c0_i32_0 = arith.constant 0 : i32
    return %c0_i32, %1 : i32, i32
  }
  func.func @transform_4(%arg0: i32, %arg1: i32) -> (i32, i32) {
    %c1_i32 = arith.constant 1 : i32
    %0 = arith.muli %arg0, %c1_i32 : i32
    %1 = arith.addi %0, %arg1 : i32
    %c1_i32_0 = arith.constant 1 : i32
    %2 = arith.addi %1, %c1_i32_0 : i32
    %c0_i32 = arith.constant 0 : i32
    %c0_i32_1 = arith.constant 0 : i32
    return %c0_i32, %2 : i32, i32
  }
}

module attributes {stable_mosaic.version = 11 : i64} {
  func.func @_conv_kernel(%arg0: i32, %arg1: i32, %arg2: memref<32x512xbf16, #tpu.memory_space<any>>, %arg3: memref<64x32xbf16, #tpu.memory_space<vmem>>, %arg4: memref<64x1xf32, #tpu.memory_space<vmem>>, %arg5: memref<1x128xf32, #tpu.memory_space<vmem>>, %arg6: memref<64x128xbf16, #tpu.memory_space<vmem>>, %arg7: memref<2x32x384xbf16, #tpu.memory_space<vmem>>, %arg8: memref<32x128xbf16, #tpu.memory_space<vmem>>, %arg9: memref<2x!tpu.dma_semaphore, #tpu.memory_space<semaphore_mem>>) attributes {dimension_semantics = [#tpu.dimension_semantics<parallel>, #tpu.dimension_semantics<arbitrary>], iteration_bounds = array<i64: 2, 1>, scalar_prefetch = 0 : i64, scratch_operands = 3 : i64, tpu.core_type = #tpu.core_type<tc>, window_params = [{}, {pipeline_mode = #tpu.pipeline_mode<synchronous>, transform_indices = @transform_1, window_bounds = array<i64: 64, 32>}, {pipeline_mode = #tpu.pipeline_mode<synchronous>, transform_indices = @transform_2, window_bounds = array<i64: 64, 1>}, {transform_indices = @transform_3, window_bounds = array<i64: 1, 128>}, {transform_indices = @transform_4, window_bounds = array<i64: 64, 128>}]} {
    %c1_i32 = arith.constant 1 : i32
    %0 = arith.muli %arg0, %c1_i32 : i32
    %1 = arith.addi %0, %arg1 : i32
    %c0_i32 = arith.constant 0 : i32
    %2 = arith.cmpi eq, %arg1, %c0_i32 : i32
    %3 = arith.extui %2 : i1 to i32
    %c0_i32_0 = arith.constant 0 : i32
    %4 = arith.cmpi ne, %3, %c0_i32_0 : i32
    scf.if %4 {
      %c128_i32 = arith.constant 128 : i32
      %43 = arith.muli %1, %c128_i32 : i32
      %c0_i32_27 = arith.constant 0 : i32
      %44 = arith.addi %43, %c0_i32_27 : i32
      %c0_i32_28 = arith.constant 0 : i32
      %c0_i32_29 = arith.constant 0 : i32
      %c0_i32_30 = arith.constant 0 : i32
      %45 = tpu.memref_slice %arg2[%c0_i32_30, %44] : memref<32x512xbf16, #tpu.memory_space<any>> -> memref<32x384xbf16, #tpu.memory_space<any>>
      %c0_i32_31 = arith.constant 0 : i32
      %c0_i32_32 = arith.constant 0 : i32
      %46 = tpu.memref_slice %arg7[%c0_i32_28, %c0_i32_31, %c0_i32_32] : memref<2x32x384xbf16, #tpu.memory_space<vmem>> -> memref<1x32x384xbf16, #tpu.memory_space<vmem>>
      %47 = tpu.memref_squeeze %46 : memref<1x32x384xbf16, #tpu.memory_space<vmem>> -> memref<32x384xbf16, #tpu.memory_space<vmem>>
      %48 = tpu.memref_slice %arg9[%c0_i32_29] : memref<2x!tpu.dma_semaphore, #tpu.memory_space<semaphore_mem>> -> memref<1x!tpu.dma_semaphore, #tpu.memory_space<semaphore_mem>>
      %49 = tpu.memref_squeeze %48 : memref<1x!tpu.dma_semaphore, #tpu.memory_space<semaphore_mem>> -> memref<!tpu.dma_semaphore, #tpu.memory_space<semaphore_mem>>
      tpu.enqueue_dma source(%45 : memref<32x384xbf16, #tpu.memory_space<any>>) target(%47 : memref<32x384xbf16, #tpu.memory_space<vmem>>) target_semaphore(%49 : memref<!tpu.dma_semaphore, #tpu.memory_space<semaphore_mem>>)
    } else {
    }
    %c1_i32_1 = arith.constant 1 : i32
    %5 = arith.addi %arg1, %c1_i32_1 : i32
    %c1_i32_2 = arith.constant 1 : i32
    %6 = arith.cmpi slt, %5, %c1_i32_2 : i32
    %7 = arith.extui %6 : i1 to i32
    %c0_i32_3 = arith.constant 0 : i32
    %8 = arith.cmpi ne, %7, %c0_i32_3 : i32
    scf.if %8 {
      %c1_i32_27 = arith.constant 1 : i32
      %43 = arith.addi %1, %c1_i32_27 : i32
      %c1_i32_28 = arith.constant 1 : i32
      %44 = arith.addi %arg1, %c1_i32_28 : i32
      %c2_i32_29 = arith.constant 2 : i32
      %c0_i32_30 = arith.constant 0 : i32
      %45 = arith.cmpi eq, %c2_i32_29, %c0_i32_30 : i32
      %c1_i32_31 = arith.constant 1 : i32
      %46 = arith.select %45, %c1_i32_31, %c2_i32_29 : i32
      %47 = arith.remsi %44, %46 : i32
      %c0_i32_32 = arith.constant 0 : i32
      %48 = arith.cmpi ne, %47, %c0_i32_32 : i32
      %c0_i32_33 = arith.constant 0 : i32
      %49 = arith.cmpi slt, %47, %c0_i32_33 : i32
      %c0_i32_34 = arith.constant 0 : i32
      %50 = arith.cmpi slt, %46, %c0_i32_34 : i32
      %51 = arith.xori %49, %50 : i1
      %52 = arith.andi %51, %48 : i1
      %53 = arith.addi %47, %46 : i32
      %54 = arith.select %52, %53, %47 : i32
      %c128_i32 = arith.constant 128 : i32
      %55 = arith.muli %43, %c128_i32 : i32
      %c0_i32_35 = arith.constant 0 : i32
      %56 = arith.addi %55, %c0_i32_35 : i32
      %c0_i32_36 = arith.constant 0 : i32
      %57 = tpu.memref_slice %arg2[%c0_i32_36, %56] : memref<32x512xbf16, #tpu.memory_space<any>> -> memref<32x384xbf16, #tpu.memory_space<any>>
      %c0_i32_37 = arith.constant 0 : i32
      %c0_i32_38 = arith.constant 0 : i32
      %58 = tpu.memref_slice %arg7[%54, %c0_i32_37, %c0_i32_38] : memref<2x32x384xbf16, #tpu.memory_space<vmem>> -> memref<1x32x384xbf16, #tpu.memory_space<vmem>>
      %59 = tpu.memref_squeeze %58 : memref<1x32x384xbf16, #tpu.memory_space<vmem>> -> memref<32x384xbf16, #tpu.memory_space<vmem>>
      %60 = tpu.memref_slice %arg9[%54] : memref<2x!tpu.dma_semaphore, #tpu.memory_space<semaphore_mem>> -> memref<1x!tpu.dma_semaphore, #tpu.memory_space<semaphore_mem>>
      %61 = tpu.memref_squeeze %60 : memref<1x!tpu.dma_semaphore, #tpu.memory_space<semaphore_mem>> -> memref<!tpu.dma_semaphore, #tpu.memory_space<semaphore_mem>>
      tpu.enqueue_dma source(%57 : memref<32x384xbf16, #tpu.memory_space<any>>) target(%59 : memref<32x384xbf16, #tpu.memory_space<vmem>>) target_semaphore(%61 : memref<!tpu.dma_semaphore, #tpu.memory_space<semaphore_mem>>)
    } else {
    }
    %c2_i32 = arith.constant 2 : i32
    %c0_i32_4 = arith.constant 0 : i32
    %9 = arith.cmpi eq, %c2_i32, %c0_i32_4 : i32
    %c1_i32_5 = arith.constant 1 : i32
    %10 = arith.select %9, %c1_i32_5, %c2_i32 : i32
    %11 = arith.remsi %arg1, %10 : i32
    %c0_i32_6 = arith.constant 0 : i32
    %12 = arith.cmpi ne, %11, %c0_i32_6 : i32
    %c0_i32_7 = arith.constant 0 : i32
    %13 = arith.cmpi slt, %11, %c0_i32_7 : i32
    %c0_i32_8 = arith.constant 0 : i32
    %14 = arith.cmpi slt, %10, %c0_i32_8 : i32
    %15 = arith.xori %13, %14 : i1
    %16 = arith.andi %15, %12 : i1
    %17 = arith.addi %11, %10 : i32
    %18 = arith.select %16, %17, %11 : i32
    %c0_i32_9 = arith.constant 0 : i32
    %c0_i32_10 = arith.constant 0 : i32
    %19 = tpu.memref_slice %arg2[%c0_i32_9, %c0_i32_10] : memref<32x512xbf16, #tpu.memory_space<any>> -> memref<32x384xbf16, #tpu.memory_space<any>>
    %c0_i32_11 = arith.constant 0 : i32
    %c0_i32_12 = arith.constant 0 : i32
    %20 = tpu.memref_slice %arg7[%18, %c0_i32_11, %c0_i32_12] : memref<2x32x384xbf16, #tpu.memory_space<vmem>> -> memref<1x32x384xbf16, #tpu.memory_space<vmem>>
    %21 = tpu.memref_squeeze %20 : memref<1x32x384xbf16, #tpu.memory_space<vmem>> -> memref<32x384xbf16, #tpu.memory_space<vmem>>
    %22 = tpu.memref_slice %arg9[%18] : memref<2x!tpu.dma_semaphore, #tpu.memory_space<semaphore_mem>> -> memref<1x!tpu.dma_semaphore, #tpu.memory_space<semaphore_mem>>
    %23 = tpu.memref_squeeze %22 : memref<1x!tpu.dma_semaphore, #tpu.memory_space<semaphore_mem>> -> memref<!tpu.dma_semaphore, #tpu.memory_space<semaphore_mem>>
    tpu.wait_dma2 semaphore(%23 : memref<!tpu.dma_semaphore, #tpu.memory_space<semaphore_mem>>) src(%19 : memref<32x384xbf16, #tpu.memory_space<any>>) dst(%21 : memref<32x384xbf16, #tpu.memory_space<vmem>>)
    %24 = arith.index_cast %18 : i32 to index
    %c0 = arith.constant 0 : index
    %c128 = arith.constant 128 : index
    %25 = vector.load %arg7[%24, %c0, %c128] : memref<2x32x384xbf16, #tpu.memory_space<vmem>>, vector<1x32x128xbf16>
    %26 = vector.shape_cast %25 : vector<1x32x128xbf16> to vector<32x128xbf16>
    %c0_13 = arith.constant 0 : index
    %c0_14 = arith.constant 0 : index
    %27 = vector.load %arg8[%c0_13, %c0_14] : memref<32x128xbf16, #tpu.memory_space<vmem>>, vector<32x128xbf16>
    tpu.vector_store %arg8[%c0_13, %c0_14], %26 {strides = array<i32>} : memref<32x128xbf16, #tpu.memory_space<vmem>>, vector<32x128xbf16>,
    %c0_15 = arith.constant 0 : index
    %c0_16 = arith.constant 0 : index
    %28 = vector.load %arg3[%c0_15, %c0_16] : memref<64x32xbf16, #tpu.memory_space<vmem>>, vector<64x32xbf16>
    %c0_17 = arith.constant 0 : index
    %c0_18 = arith.constant 0 : index
    %29 = vector.load %arg8[%c0_17, %c0_18] : memref<32x128xbf16, #tpu.memory_space<vmem>>, vector<32x128xbf16>
    %cst = arith.constant dense<0.000000e+00> : vector<64x128xf32>
    %30 = tpu.matmul %28, %29, %cst {dimension_numbers = #tpu.dot_dimension_numbers<[1], [0], [0], [1], [0, 0, 1, 1], [], []>} : vector<64x32xbf16>, vector<32x128xbf16>, vector<64x128xf32> -> vector<64x128xf32>
    %c0_19 = arith.constant 0 : index
    %c0_20 = arith.constant 0 : index
    %31 = vector.load %arg4[%c0_19, %c0_20] : memref<64x1xf32, #tpu.memory_space<vmem>>, vector<64x1xf32>
    %32 = vector.broadcast %31 : vector<64x1xf32> to vector<64x128xf32>
    %33 = arith.addf %30, %32 : vector<64x128xf32>
    %c0_21 = arith.constant 0 : index
    %c0_22 = arith.constant 0 : index
    %34 = vector.load %arg5[%c0_21, %c0_22] : memref<1x128xf32, #tpu.memory_space<vmem>>, vector<1x128xf32>
    %cst_23 = arith.constant 0.000000e+00 : f32
    %35 = vector.broadcast %cst_23 : f32 to vector<1x128xf32>
    %36 = arith.cmpf ogt, %34, %35 : vector<1x128xf32>
    %cst_24 = arith.constant 0.000000e+00 : f32
    %37 = vector.shape_cast %36 : vector<1x128xi1> to vector<1x128xi1>
    %38 = vector.broadcast %37 : vector<1x128xi1> to vector<64x128xi1>
    %39 = vector.broadcast %cst_24 : f32 to vector<64x128xf32>
    %40 = arith.select %38, %33, %39 : vector<64x128xi1>, vector<64x128xf32>
    %41 = arith.truncf %40 : vector<64x128xf32> to vector<64x128xbf16>
    %c0_25 = arith.constant 0 : index
    %c0_26 = arith.constant 0 : index
    %42 = vector.load %arg6[%c0_25, %c0_26] : memref<64x128xbf16, #tpu.memory_space<vmem>>, vector<64x128xbf16>
    tpu.vector_store %arg6[%c0_25, %c0_26], %41 {strides = array<i32>} : memref<64x128xbf16, #tpu.memory_space<vmem>>, vector<64x128xbf16>,
    return
  }
  func.func @transform_1(%arg0: i32, %arg1: i32) -> (i32, i32) {
    %c0_i32 = arith.constant 0 : i32
    %c0_i32_0 = arith.constant 0 : i32
    %c0_i32_1 = arith.constant 0 : i32
    return %c0_i32, %c0_i32_0 : i32, i32
  }
  func.func @transform_2(%arg0: i32, %arg1: i32) -> (i32, i32) {
    %c0_i32 = arith.constant 0 : i32
    %c0_i32_0 = arith.constant 0 : i32
    %c0_i32_1 = arith.constant 0 : i32
    return %c0_i32, %c0_i32_0 : i32, i32
  }
  func.func @transform_3(%arg0: i32, %arg1: i32) -> (i32, i32) {
    %c1_i32 = arith.constant 1 : i32
    %0 = arith.muli %arg0, %c1_i32 : i32
    %1 = arith.addi %0, %arg1 : i32
    %c0_i32 = arith.constant 0 : i32
    %c0_i32_0 = arith.constant 0 : i32
    return %c0_i32, %1 : i32, i32
  }
  func.func @transform_4(%arg0: i32, %arg1: i32) -> (i32, i32) {
    %c1_i32 = arith.constant 1 : i32
    %0 = arith.muli %arg0, %c1_i32 : i32
    %1 = arith.addi %0, %arg1 : i32
    %c1_i32_0 = arith.constant 1 : i32
    %2 = arith.addi %1, %c1_i32_0 : i32
    %c0_i32 = arith.constant 0 : i32
    %c0_i32_1 = arith.constant 0 : i32
    return %c0_i32, %2 : i32, i32
  }
}

module attributes {stable_mosaic.version = 11 : i64} {
  func.func @_pool_fc_kernel(%arg0: memref<64x72xbf16, #tpu.memory_space<vmem>>, %arg1: memref<72x2xbf16, #tpu.memory_space<vmem>>, %arg2: memref<10x64xf32, #tpu.memory_space<vmem>>, %arg3: memref<10x1xf32, #tpu.memory_space<vmem>>, %arg4: memref<10x2xf32, #tpu.memory_space<vmem>>) attributes {dimension_semantics = [], scalar_prefetch = 0 : i64, scratch_operands = 0 : i64, tpu.core_type = #tpu.core_type<tc>} {
    %c0 = arith.constant 0 : index
    %c0_0 = arith.constant 0 : index
    %0 = vector.load %arg0[%c0, %c0_0] : memref<64x72xbf16, #tpu.memory_space<vmem>>, vector<64x72xbf16>
    %c0_1 = arith.constant 0 : index
    %c0_2 = arith.constant 0 : index
    %1 = vector.load %arg1[%c0_1, %c0_2] : memref<72x2xbf16, #tpu.memory_space<vmem>>, vector<72x2xbf16>
    %cst = arith.constant dense<0.000000e+00> : vector<64x2xf32>
    %2 = tpu.matmul %0, %1, %cst {dimension_numbers = #tpu.dot_dimension_numbers<[1], [0], [0], [1], [0, 0, 1, 1], [], []>} : vector<64x72xbf16>, vector<72x2xbf16>, vector<64x2xf32> -> vector<64x2xf32>
    %c0_3 = arith.constant 0 : index
    %c0_4 = arith.constant 0 : index
    %3 = vector.load %arg2[%c0_3, %c0_4] : memref<10x64xf32, #tpu.memory_space<vmem>>, vector<10x64xf32>
    %cst_5 = arith.constant dense<0.000000e+00> : vector<10x2xf32>
    %4 = tpu.matmul %3, %2, %cst_5 {dimension_numbers = #tpu.dot_dimension_numbers<[1], [0], [0], [1], [0, 0, 1, 1], [], []>} : vector<10x64xf32>, vector<64x2xf32>, vector<10x2xf32> -> vector<10x2xf32>
    %c0_6 = arith.constant 0 : index
    %c0_7 = arith.constant 0 : index
    %5 = vector.load %arg3[%c0_6, %c0_7] : memref<10x1xf32, #tpu.memory_space<vmem>>, vector<10x1xf32>
    %6 = vector.broadcast %5 : vector<10x1xf32> to vector<10x2xf32>
    %7 = arith.addf %4, %6 : vector<10x2xf32>
    %c0_8 = arith.constant 0 : index
    %c0_9 = arith.constant 0 : index
    %8 = vector.load %arg4[%c0_8, %c0_9] : memref<10x2xf32, #tpu.memory_space<vmem>>, vector<10x2xf32>
    tpu.vector_store %arg4[%c0_8, %c0_9], %7 {strides = array<i32>} : memref<10x2xf32, #tpu.memory_space<vmem>>, vector<10x2xf32>,
    return
  }
}

module attributes {stable_mosaic.version = 11 : i64} {
  func.func @_conv_kernel(%arg0: i32, %arg1: i32, %arg2: memref<32x512xbf16, #tpu.memory_space<any>>, %arg3: memref<64x288xbf16, #tpu.memory_space<vmem>>, %arg4: memref<64x1xf32, #tpu.memory_space<vmem>>, %arg5: memref<1x128xf32, #tpu.memory_space<vmem>>, %arg6: memref<64x128xbf16, #tpu.memory_space<vmem>>, %arg7: memref<2x32x384xbf16, #tpu.memory_space<vmem>>, %arg8: memref<288x128xbf16, #tpu.memory_space<vmem>>, %arg9: memref<2x!tpu.dma_semaphore, #tpu.memory_space<semaphore_mem>>) attributes {dimension_semantics = [#tpu.dimension_semantics<parallel>, #tpu.dimension_semantics<arbitrary>], iteration_bounds = array<i64: 2, 1>, scalar_prefetch = 0 : i64, scratch_operands = 3 : i64, tpu.core_type = #tpu.core_type<tc>, window_params = [{}, {pipeline_mode = #tpu.pipeline_mode<synchronous>, transform_indices = @transform_1, window_bounds = array<i64: 64, 288>}, {pipeline_mode = #tpu.pipeline_mode<synchronous>, transform_indices = @transform_2, window_bounds = array<i64: 64, 1>}, {transform_indices = @transform_3, window_bounds = array<i64: 1, 128>}, {transform_indices = @transform_4, window_bounds = array<i64: 64, 128>}]} {
    %c1_i32 = arith.constant 1 : i32
    %0 = arith.muli %arg0, %c1_i32 : i32
    %1 = arith.addi %0, %arg1 : i32
    %c0_i32 = arith.constant 0 : i32
    %2 = arith.cmpi eq, %arg1, %c0_i32 : i32
    %3 = arith.extui %2 : i1 to i32
    %c0_i32_0 = arith.constant 0 : i32
    %4 = arith.cmpi ne, %3, %c0_i32_0 : i32
    scf.if %4 {
      %c128_i32 = arith.constant 128 : i32
      %77 = arith.muli %1, %c128_i32 : i32
      %c0_i32_45 = arith.constant 0 : i32
      %78 = arith.addi %77, %c0_i32_45 : i32
      %c0_i32_46 = arith.constant 0 : i32
      %c0_i32_47 = arith.constant 0 : i32
      %c0_i32_48 = arith.constant 0 : i32
      %79 = tpu.memref_slice %arg2[%c0_i32_48, %78] : memref<32x512xbf16, #tpu.memory_space<any>> -> memref<32x384xbf16, #tpu.memory_space<any>>
      %c0_i32_49 = arith.constant 0 : i32
      %c0_i32_50 = arith.constant 0 : i32
      %80 = tpu.memref_slice %arg7[%c0_i32_46, %c0_i32_49, %c0_i32_50] : memref<2x32x384xbf16, #tpu.memory_space<vmem>> -> memref<1x32x384xbf16, #tpu.memory_space<vmem>>
      %81 = tpu.memref_squeeze %80 : memref<1x32x384xbf16, #tpu.memory_space<vmem>> -> memref<32x384xbf16, #tpu.memory_space<vmem>>
      %82 = tpu.memref_slice %arg9[%c0_i32_47] : memref<2x!tpu.dma_semaphore, #tpu.memory_space<semaphore_mem>> -> memref<1x!tpu.dma_semaphore, #tpu.memory_space<semaphore_mem>>
      %83 = tpu.memref_squeeze %82 : memref<1x!tpu.dma_semaphore, #tpu.memory_space<semaphore_mem>> -> memref<!tpu.dma_semaphore, #tpu.memory_space<semaphore_mem>>
      tpu.enqueue_dma source(%79 : memref<32x384xbf16, #tpu.memory_space<any>>) target(%81 : memref<32x384xbf16, #tpu.memory_space<vmem>>) target_semaphore(%83 : memref<!tpu.dma_semaphore, #tpu.memory_space<semaphore_mem>>)
    } else {
    }
    %c1_i32_1 = arith.constant 1 : i32
    %5 = arith.addi %arg1, %c1_i32_1 : i32
    %c1_i32_2 = arith.constant 1 : i32
    %6 = arith.cmpi slt, %5, %c1_i32_2 : i32
    %7 = arith.extui %6 : i1 to i32
    %c0_i32_3 = arith.constant 0 : i32
    %8 = arith.cmpi ne, %7, %c0_i32_3 : i32
    scf.if %8 {
      %c1_i32_45 = arith.constant 1 : i32
      %77 = arith.addi %1, %c1_i32_45 : i32
      %c1_i32_46 = arith.constant 1 : i32
      %78 = arith.addi %arg1, %c1_i32_46 : i32
      %c2_i32_47 = arith.constant 2 : i32
      %c0_i32_48 = arith.constant 0 : i32
      %79 = arith.cmpi eq, %c2_i32_47, %c0_i32_48 : i32
      %c1_i32_49 = arith.constant 1 : i32
      %80 = arith.select %79, %c1_i32_49, %c2_i32_47 : i32
      %81 = arith.remsi %78, %80 : i32
      %c0_i32_50 = arith.constant 0 : i32
      %82 = arith.cmpi ne, %81, %c0_i32_50 : i32
      %c0_i32_51 = arith.constant 0 : i32
      %83 = arith.cmpi slt, %81, %c0_i32_51 : i32
      %c0_i32_52 = arith.constant 0 : i32
      %84 = arith.cmpi slt, %80, %c0_i32_52 : i32
      %85 = arith.xori %83, %84 : i1
      %86 = arith.andi %85, %82 : i1
      %87 = arith.addi %81, %80 : i32
      %88 = arith.select %86, %87, %81 : i32
      %c128_i32 = arith.constant 128 : i32
      %89 = arith.muli %77, %c128_i32 : i32
      %c0_i32_53 = arith.constant 0 : i32
      %90 = arith.addi %89, %c0_i32_53 : i32
      %c0_i32_54 = arith.constant 0 : i32
      %91 = tpu.memref_slice %arg2[%c0_i32_54, %90] : memref<32x512xbf16, #tpu.memory_space<any>> -> memref<32x384xbf16, #tpu.memory_space<any>>
      %c0_i32_55 = arith.constant 0 : i32
      %c0_i32_56 = arith.constant 0 : i32
      %92 = tpu.memref_slice %arg7[%88, %c0_i32_55, %c0_i32_56] : memref<2x32x384xbf16, #tpu.memory_space<vmem>> -> memref<1x32x384xbf16, #tpu.memory_space<vmem>>
      %93 = tpu.memref_squeeze %92 : memref<1x32x384xbf16, #tpu.memory_space<vmem>> -> memref<32x384xbf16, #tpu.memory_space<vmem>>
      %94 = tpu.memref_slice %arg9[%88] : memref<2x!tpu.dma_semaphore, #tpu.memory_space<semaphore_mem>> -> memref<1x!tpu.dma_semaphore, #tpu.memory_space<semaphore_mem>>
      %95 = tpu.memref_squeeze %94 : memref<1x!tpu.dma_semaphore, #tpu.memory_space<semaphore_mem>> -> memref<!tpu.dma_semaphore, #tpu.memory_space<semaphore_mem>>
      tpu.enqueue_dma source(%91 : memref<32x384xbf16, #tpu.memory_space<any>>) target(%93 : memref<32x384xbf16, #tpu.memory_space<vmem>>) target_semaphore(%95 : memref<!tpu.dma_semaphore, #tpu.memory_space<semaphore_mem>>)
    } else {
    }
    %c2_i32 = arith.constant 2 : i32
    %c0_i32_4 = arith.constant 0 : i32
    %9 = arith.cmpi eq, %c2_i32, %c0_i32_4 : i32
    %c1_i32_5 = arith.constant 1 : i32
    %10 = arith.select %9, %c1_i32_5, %c2_i32 : i32
    %11 = arith.remsi %arg1, %10 : i32
    %c0_i32_6 = arith.constant 0 : i32
    %12 = arith.cmpi ne, %11, %c0_i32_6 : i32
    %c0_i32_7 = arith.constant 0 : i32
    %13 = arith.cmpi slt, %11, %c0_i32_7 : i32
    %c0_i32_8 = arith.constant 0 : i32
    %14 = arith.cmpi slt, %10, %c0_i32_8 : i32
    %15 = arith.xori %13, %14 : i1
    %16 = arith.andi %15, %12 : i1
    %17 = arith.addi %11, %10 : i32
    %18 = arith.select %16, %17, %11 : i32
    %c0_i32_9 = arith.constant 0 : i32
    %c0_i32_10 = arith.constant 0 : i32
    %19 = tpu.memref_slice %arg2[%c0_i32_9, %c0_i32_10] : memref<32x512xbf16, #tpu.memory_space<any>> -> memref<32x384xbf16, #tpu.memory_space<any>>
    %c0_i32_11 = arith.constant 0 : i32
    %c0_i32_12 = arith.constant 0 : i32
    %20 = tpu.memref_slice %arg7[%18, %c0_i32_11, %c0_i32_12] : memref<2x32x384xbf16, #tpu.memory_space<vmem>> -> memref<1x32x384xbf16, #tpu.memory_space<vmem>>
    %21 = tpu.memref_squeeze %20 : memref<1x32x384xbf16, #tpu.memory_space<vmem>> -> memref<32x384xbf16, #tpu.memory_space<vmem>>
    %22 = tpu.memref_slice %arg9[%18] : memref<2x!tpu.dma_semaphore, #tpu.memory_space<semaphore_mem>> -> memref<1x!tpu.dma_semaphore, #tpu.memory_space<semaphore_mem>>
    %23 = tpu.memref_squeeze %22 : memref<1x!tpu.dma_semaphore, #tpu.memory_space<semaphore_mem>> -> memref<!tpu.dma_semaphore, #tpu.memory_space<semaphore_mem>>
    tpu.wait_dma2 semaphore(%23 : memref<!tpu.dma_semaphore, #tpu.memory_space<semaphore_mem>>) src(%19 : memref<32x384xbf16, #tpu.memory_space<any>>) dst(%21 : memref<32x384xbf16, #tpu.memory_space<vmem>>)
    %24 = arith.index_cast %18 : i32 to index
    %c0 = arith.constant 0 : index
    %c117 = arith.constant 117 : index
    %25 = vector.load %arg7[%24, %c0, %c117] : memref<2x32x384xbf16, #tpu.memory_space<vmem>>, vector<1x32x128xbf16>
    %26 = vector.shape_cast %25 : vector<1x32x128xbf16> to vector<32x128xbf16>
    %c0_13 = arith.constant 0 : index
    %c0_14 = arith.constant 0 : index
    %27 = vector.load %arg8[%c0_13, %c0_14] : memref<288x128xbf16, #tpu.memory_space<vmem>>, vector<32x128xbf16>
    tpu.vector_store %arg8[%c0_13, %c0_14], %26 {strides = array<i32>} : memref<288x128xbf16, #tpu.memory_space<vmem>>, vector<32x128xbf16>,
    %28 = arith.index_cast %18 : i32 to index
    %c0_15 = arith.constant 0 : index
    %c118 = arith.constant 118 : index
    %29 = vector.load %arg7[%28, %c0_15, %c118] : memref<2x32x384xbf16, #tpu.memory_space<vmem>>, vector<1x32x128xbf16>
    %30 = vector.shape_cast %29 : vector<1x32x128xbf16> to vector<32x128xbf16>
    %c32 = arith.constant 32 : index
    %c0_16 = arith.constant 0 : index
    %31 = vector.load %arg8[%c32, %c0_16] : memref<288x128xbf16, #tpu.memory_space<vmem>>, vector<32x128xbf16>
    tpu.vector_store %arg8[%c32, %c0_16], %30 {strides = array<i32>} : memref<288x128xbf16, #tpu.memory_space<vmem>>, vector<32x128xbf16>,
    %32 = arith.index_cast %18 : i32 to index
    %c0_17 = arith.constant 0 : index
    %c119 = arith.constant 119 : index
    %33 = vector.load %arg7[%32, %c0_17, %c119] : memref<2x32x384xbf16, #tpu.memory_space<vmem>>, vector<1x32x128xbf16>
    %34 = vector.shape_cast %33 : vector<1x32x128xbf16> to vector<32x128xbf16>
    %c64 = arith.constant 64 : index
    %c0_18 = arith.constant 0 : index
    %35 = vector.load %arg8[%c64, %c0_18] : memref<288x128xbf16, #tpu.memory_space<vmem>>, vector<32x128xbf16>
    tpu.vector_store %arg8[%c64, %c0_18], %34 {strides = array<i32>} : memref<288x128xbf16, #tpu.memory_space<vmem>>, vector<32x128xbf16>,
    %36 = arith.index_cast %18 : i32 to index
    %c0_19 = arith.constant 0 : index
    %c127 = arith.constant 127 : index
    %37 = vector.load %arg7[%36, %c0_19, %c127] : memref<2x32x384xbf16, #tpu.memory_space<vmem>>, vector<1x32x128xbf16>
    %38 = vector.shape_cast %37 : vector<1x32x128xbf16> to vector<32x128xbf16>
    %c96 = arith.constant 96 : index
    %c0_20 = arith.constant 0 : index
    %39 = vector.load %arg8[%c96, %c0_20] : memref<288x128xbf16, #tpu.memory_space<vmem>>, vector<32x128xbf16>
    tpu.vector_store %arg8[%c96, %c0_20], %38 {strides = array<i32>} : memref<288x128xbf16, #tpu.memory_space<vmem>>, vector<32x128xbf16>,
    %40 = arith.index_cast %18 : i32 to index
    %c0_21 = arith.constant 0 : index
    %c128 = arith.constant 128 : index
    %41 = vector.load %arg7[%40, %c0_21, %c128] : memref<2x32x384xbf16, #tpu.memory_space<vmem>>, vector<1x32x128xbf16>
    %42 = vector.shape_cast %41 : vector<1x32x128xbf16> to vector<32x128xbf16>
    %c128_22 = arith.constant 128 : index
    %c0_23 = arith.constant 0 : index
    %43 = vector.load %arg8[%c128_22, %c0_23] : memref<288x128xbf16, #tpu.memory_space<vmem>>, vector<32x128xbf16>
    tpu.vector_store %arg8[%c128_22, %c0_23], %42 {strides = array<i32>} : memref<288x128xbf16, #tpu.memory_space<vmem>>, vector<32x128xbf16>,
    %44 = arith.index_cast %18 : i32 to index
    %c0_24 = arith.constant 0 : index
    %c129 = arith.constant 129 : index
    %45 = vector.load %arg7[%44, %c0_24, %c129] : memref<2x32x384xbf16, #tpu.memory_space<vmem>>, vector<1x32x128xbf16>
    %46 = vector.shape_cast %45 : vector<1x32x128xbf16> to vector<32x128xbf16>
    %c160 = arith.constant 160 : index
    %c0_25 = arith.constant 0 : index
    %47 = vector.load %arg8[%c160, %c0_25] : memref<288x128xbf16, #tpu.memory_space<vmem>>, vector<32x128xbf16>
    tpu.vector_store %arg8[%c160, %c0_25], %46 {strides = array<i32>} : memref<288x128xbf16, #tpu.memory_space<vmem>>, vector<32x128xbf16>,
    %48 = arith.index_cast %18 : i32 to index
    %c0_26 = arith.constant 0 : index
    %c137 = arith.constant 137 : index
    %49 = vector.load %arg7[%48, %c0_26, %c137] : memref<2x32x384xbf16, #tpu.memory_space<vmem>>, vector<1x32x128xbf16>
    %50 = vector.shape_cast %49 : vector<1x32x128xbf16> to vector<32x128xbf16>
    %c192 = arith.constant 192 : index
    %c0_27 = arith.constant 0 : index
    %51 = vector.load %arg8[%c192, %c0_27] : memref<288x128xbf16, #tpu.memory_space<vmem>>, vector<32x128xbf16>
    tpu.vector_store %arg8[%c192, %c0_27], %50 {strides = array<i32>} : memref<288x128xbf16, #tpu.memory_space<vmem>>, vector<32x128xbf16>,
    %52 = arith.index_cast %18 : i32 to index
    %c0_28 = arith.constant 0 : index
    %c138 = arith.constant 138 : index
    %53 = vector.load %arg7[%52, %c0_28, %c138] : memref<2x32x384xbf16, #tpu.memory_space<vmem>>, vector<1x32x128xbf16>
    %54 = vector.shape_cast %53 : vector<1x32x128xbf16> to vector<32x128xbf16>
    %c224 = arith.constant 224 : index
    %c0_29 = arith.constant 0 : index
    %55 = vector.load %arg8[%c224, %c0_29] : memref<288x128xbf16, #tpu.memory_space<vmem>>, vector<32x128xbf16>
    tpu.vector_store %arg8[%c224, %c0_29], %54 {strides = array<i32>} : memref<288x128xbf16, #tpu.memory_space<vmem>>, vector<32x128xbf16>,
    %56 = arith.index_cast %18 : i32 to index
    %c0_30 = arith.constant 0 : index
    %c139 = arith.constant 139 : index
    %57 = vector.load %arg7[%56, %c0_30, %c139] : memref<2x32x384xbf16, #tpu.memory_space<vmem>>, vector<1x32x128xbf16>
    %58 = vector.shape_cast %57 : vector<1x32x128xbf16> to vector<32x128xbf16>
    %c256 = arith.constant 256 : index
    %c0_31 = arith.constant 0 : index
    %59 = vector.load %arg8[%c256, %c0_31] : memref<288x128xbf16, #tpu.memory_space<vmem>>, vector<32x128xbf16>
    tpu.vector_store %arg8[%c256, %c0_31], %58 {strides = array<i32>} : memref<288x128xbf16, #tpu.memory_space<vmem>>, vector<32x128xbf16>,
    %c0_32 = arith.constant 0 : index
    %c0_33 = arith.constant 0 : index
    %60 = vector.load %arg3[%c0_32, %c0_33] : memref<64x288xbf16, #tpu.memory_space<vmem>>, vector<64x288xbf16>
    %c0_34 = arith.constant 0 : index
    %c0_35 = arith.constant 0 : index
    %61 = vector.load %arg8[%c0_34, %c0_35] : memref<288x128xbf16, #tpu.memory_space<vmem>>, vector<288x128xbf16>
    %cst = arith.constant dense<0.000000e+00> : vector<64x128xf32>
    %62 = tpu.matmul %60, %61, %cst {dimension_numbers = #tpu.dot_dimension_numbers<[1], [0], [0], [1], [0, 0, 1, 1], [], []>} : vector<64x288xbf16>, vector<288x128xbf16>, vector<64x128xf32> -> vector<64x128xf32>
    %c0_36 = arith.constant 0 : index
    %c0_37 = arith.constant 0 : index
    %63 = vector.load %arg4[%c0_36, %c0_37] : memref<64x1xf32, #tpu.memory_space<vmem>>, vector<64x1xf32>
    %64 = vector.broadcast %63 : vector<64x1xf32> to vector<64x128xf32>
    %65 = arith.addf %62, %64 : vector<64x128xf32>
    %cst_38 = arith.constant 0.000000e+00 : f32
    %66 = vector.broadcast %cst_38 : f32 to vector<64x128xf32>
    %67 = arith.maximumf %65, %66 : vector<64x128xf32>
    %c0_39 = arith.constant 0 : index
    %c0_40 = arith.constant 0 : index
    %68 = vector.load %arg5[%c0_39, %c0_40] : memref<1x128xf32, #tpu.memory_space<vmem>>, vector<1x128xf32>
    %cst_41 = arith.constant 0.000000e+00 : f32
    %69 = vector.broadcast %cst_41 : f32 to vector<1x128xf32>
    %70 = arith.cmpf ogt, %68, %69 : vector<1x128xf32>
    %cst_42 = arith.constant 0.000000e+00 : f32
    %71 = vector.shape_cast %70 : vector<1x128xi1> to vector<1x128xi1>
    %72 = vector.broadcast %71 : vector<1x128xi1> to vector<64x128xi1>
    %73 = vector.broadcast %cst_42 : f32 to vector<64x128xf32>
    %74 = arith.select %72, %67, %73 : vector<64x128xi1>, vector<64x128xf32>
    %75 = arith.truncf %74 : vector<64x128xf32> to vector<64x128xbf16>
    %c0_43 = arith.constant 0 : index
    %c0_44 = arith.constant 0 : index
    %76 = vector.load %arg6[%c0_43, %c0_44] : memref<64x128xbf16, #tpu.memory_space<vmem>>, vector<64x128xbf16>
    tpu.vector_store %arg6[%c0_43, %c0_44], %75 {strides = array<i32>} : memref<64x128xbf16, #tpu.memory_space<vmem>>, vector<64x128xbf16>,
    return
  }
  func.func @transform_1(%arg0: i32, %arg1: i32) -> (i32, i32) {
    %c0_i32 = arith.constant 0 : i32
    %c0_i32_0 = arith.constant 0 : i32
    %c0_i32_1 = arith.constant 0 : i32
    return %c0_i32, %c0_i32_0 : i32, i32
  }
  func.func @transform_2(%arg0: i32, %arg1: i32) -> (i32, i32) {
    %c0_i32 = arith.constant 0 : i32
    %c0_i32_0 = arith.constant 0 : i32
    %c0_i32_1 = arith.constant 0 : i32
    return %c0_i32, %c0_i32_0 : i32, i32
  }
  func.func @transform_3(%arg0: i32, %arg1: i32) -> (i32, i32) {
    %c1_i32 = arith.constant 1 : i32
    %0 = arith.muli %arg0, %c1_i32 : i32
    %1 = arith.addi %0, %arg1 : i32
    %c0_i32 = arith.constant 0 : i32
    %c0_i32_0 = arith.constant 0 : i32
    return %c0_i32, %1 : i32, i32
  }
  func.func @transform_4(%arg0: i32, %arg1: i32) -> (i32, i32) {
    %c1_i32 = arith.constant 1 : i32
    %0 = arith.muli %arg0, %c1_i32 : i32
    %1 = arith.addi %0, %arg1 : i32
    %c1_i32_0 = arith.constant 1 : i32
    %2 = arith.addi %1, %c1_i32_0 : i32
    %c0_i32 = arith.constant 0 : i32
    %c0_i32_1 = arith.constant 0 : i32
    return %c0_i32, %2 : i32, i32
  }
}

module attributes {stable_mosaic.version = 11 : i64} {
  func.func @_conv_kernel(%arg0: i32, %arg1: i32, %arg2: memref<64x512xbf16, #tpu.memory_space<any>>, %arg3: memref<64x576xbf16, #tpu.memory_space<vmem>>, %arg4: memref<64x1xf32, #tpu.memory_space<vmem>>, %arg5: memref<1x128xf32, #tpu.memory_space<vmem>>, %arg6: memref<64x128xbf16, #tpu.memory_space<vmem>>, %arg7: memref<64x128xbf16, #tpu.memory_space<vmem>>, %arg8: memref<2x64x384xbf16, #tpu.memory_space<vmem>>, %arg9: memref<576x128xbf16, #tpu.memory_space<vmem>>, %arg10: memref<2x!tpu.dma_semaphore, #tpu.memory_space<semaphore_mem>>) attributes {dimension_semantics = [#tpu.dimension_semantics<parallel>, #tpu.dimension_semantics<arbitrary>], iteration_bounds = array<i64: 2, 1>, scalar_prefetch = 0 : i64, scratch_operands = 3 : i64, tpu.core_type = #tpu.core_type<tc>, window_params = [{}, {pipeline_mode = #tpu.pipeline_mode<synchronous>, transform_indices = @transform_1, window_bounds = array<i64: 64, 576>}, {pipeline_mode = #tpu.pipeline_mode<synchronous>, transform_indices = @transform_2, window_bounds = array<i64: 64, 1>}, {transform_indices = @transform_3, window_bounds = array<i64: 1, 128>}, {transform_indices = @transform_4, window_bounds = array<i64: 64, 128>}, {transform_indices = @transform_5, window_bounds = array<i64: 64, 128>}]} {
    %c1_i32 = arith.constant 1 : i32
    %0 = arith.muli %arg0, %c1_i32 : i32
    %1 = arith.addi %0, %arg1 : i32
    %c0_i32 = arith.constant 0 : i32
    %2 = arith.cmpi eq, %arg1, %c0_i32 : i32
    %3 = arith.extui %2 : i1 to i32
    %c0_i32_0 = arith.constant 0 : i32
    %4 = arith.cmpi ne, %3, %c0_i32_0 : i32
    scf.if %4 {
      %c128_i32 = arith.constant 128 : i32
      %80 = arith.muli %1, %c128_i32 : i32
      %c0_i32_47 = arith.constant 0 : i32
      %81 = arith.addi %80, %c0_i32_47 : i32
      %c0_i32_48 = arith.constant 0 : i32
      %c0_i32_49 = arith.constant 0 : i32
      %c0_i32_50 = arith.constant 0 : i32
      %82 = tpu.memref_slice %arg2[%c0_i32_50, %81] : memref<64x512xbf16, #tpu.memory_space<any>> -> memref<64x384xbf16, #tpu.memory_space<any>>
      %c0_i32_51 = arith.constant 0 : i32
      %c0_i32_52 = arith.constant 0 : i32
      %83 = tpu.memref_slice %arg8[%c0_i32_48, %c0_i32_51, %c0_i32_52] : memref<2x64x384xbf16, #tpu.memory_space<vmem>> -> memref<1x64x384xbf16, #tpu.memory_space<vmem>>
      %84 = tpu.memref_squeeze %83 : memref<1x64x384xbf16, #tpu.memory_space<vmem>> -> memref<64x384xbf16, #tpu.memory_space<vmem>>
      %85 = tpu.memref_slice %arg10[%c0_i32_49] : memref<2x!tpu.dma_semaphore, #tpu.memory_space<semaphore_mem>> -> memref<1x!tpu.dma_semaphore, #tpu.memory_space<semaphore_mem>>
      %86 = tpu.memref_squeeze %85 : memref<1x!tpu.dma_semaphore, #tpu.memory_space<semaphore_mem>> -> memref<!tpu.dma_semaphore, #tpu.memory_space<semaphore_mem>>
      tpu.enqueue_dma source(%82 : memref<64x384xbf16, #tpu.memory_space<any>>) target(%84 : memref<64x384xbf16, #tpu.memory_space<vmem>>) target_semaphore(%86 : memref<!tpu.dma_semaphore, #tpu.memory_space<semaphore_mem>>)
    } else {
    }
    %c1_i32_1 = arith.constant 1 : i32
    %5 = arith.addi %arg1, %c1_i32_1 : i32
    %c1_i32_2 = arith.constant 1 : i32
    %6 = arith.cmpi slt, %5, %c1_i32_2 : i32
    %7 = arith.extui %6 : i1 to i32
    %c0_i32_3 = arith.constant 0 : i32
    %8 = arith.cmpi ne, %7, %c0_i32_3 : i32
    scf.if %8 {
      %c1_i32_47 = arith.constant 1 : i32
      %80 = arith.addi %1, %c1_i32_47 : i32
      %c1_i32_48 = arith.constant 1 : i32
      %81 = arith.addi %arg1, %c1_i32_48 : i32
      %c2_i32_49 = arith.constant 2 : i32
      %c0_i32_50 = arith.constant 0 : i32
      %82 = arith.cmpi eq, %c2_i32_49, %c0_i32_50 : i32
      %c1_i32_51 = arith.constant 1 : i32
      %83 = arith.select %82, %c1_i32_51, %c2_i32_49 : i32
      %84 = arith.remsi %81, %83 : i32
      %c0_i32_52 = arith.constant 0 : i32
      %85 = arith.cmpi ne, %84, %c0_i32_52 : i32
      %c0_i32_53 = arith.constant 0 : i32
      %86 = arith.cmpi slt, %84, %c0_i32_53 : i32
      %c0_i32_54 = arith.constant 0 : i32
      %87 = arith.cmpi slt, %83, %c0_i32_54 : i32
      %88 = arith.xori %86, %87 : i1
      %89 = arith.andi %88, %85 : i1
      %90 = arith.addi %84, %83 : i32
      %91 = arith.select %89, %90, %84 : i32
      %c128_i32 = arith.constant 128 : i32
      %92 = arith.muli %80, %c128_i32 : i32
      %c0_i32_55 = arith.constant 0 : i32
      %93 = arith.addi %92, %c0_i32_55 : i32
      %c0_i32_56 = arith.constant 0 : i32
      %94 = tpu.memref_slice %arg2[%c0_i32_56, %93] : memref<64x512xbf16, #tpu.memory_space<any>> -> memref<64x384xbf16, #tpu.memory_space<any>>
      %c0_i32_57 = arith.constant 0 : i32
      %c0_i32_58 = arith.constant 0 : i32
      %95 = tpu.memref_slice %arg8[%91, %c0_i32_57, %c0_i32_58] : memref<2x64x384xbf16, #tpu.memory_space<vmem>> -> memref<1x64x384xbf16, #tpu.memory_space<vmem>>
      %96 = tpu.memref_squeeze %95 : memref<1x64x384xbf16, #tpu.memory_space<vmem>> -> memref<64x384xbf16, #tpu.memory_space<vmem>>
      %97 = tpu.memref_slice %arg10[%91] : memref<2x!tpu.dma_semaphore, #tpu.memory_space<semaphore_mem>> -> memref<1x!tpu.dma_semaphore, #tpu.memory_space<semaphore_mem>>
      %98 = tpu.memref_squeeze %97 : memref<1x!tpu.dma_semaphore, #tpu.memory_space<semaphore_mem>> -> memref<!tpu.dma_semaphore, #tpu.memory_space<semaphore_mem>>
      tpu.enqueue_dma source(%94 : memref<64x384xbf16, #tpu.memory_space<any>>) target(%96 : memref<64x384xbf16, #tpu.memory_space<vmem>>) target_semaphore(%98 : memref<!tpu.dma_semaphore, #tpu.memory_space<semaphore_mem>>)
    } else {
    }
    %c2_i32 = arith.constant 2 : i32
    %c0_i32_4 = arith.constant 0 : i32
    %9 = arith.cmpi eq, %c2_i32, %c0_i32_4 : i32
    %c1_i32_5 = arith.constant 1 : i32
    %10 = arith.select %9, %c1_i32_5, %c2_i32 : i32
    %11 = arith.remsi %arg1, %10 : i32
    %c0_i32_6 = arith.constant 0 : i32
    %12 = arith.cmpi ne, %11, %c0_i32_6 : i32
    %c0_i32_7 = arith.constant 0 : i32
    %13 = arith.cmpi slt, %11, %c0_i32_7 : i32
    %c0_i32_8 = arith.constant 0 : i32
    %14 = arith.cmpi slt, %10, %c0_i32_8 : i32
    %15 = arith.xori %13, %14 : i1
    %16 = arith.andi %15, %12 : i1
    %17 = arith.addi %11, %10 : i32
    %18 = arith.select %16, %17, %11 : i32
    %c0_i32_9 = arith.constant 0 : i32
    %c0_i32_10 = arith.constant 0 : i32
    %19 = tpu.memref_slice %arg2[%c0_i32_9, %c0_i32_10] : memref<64x512xbf16, #tpu.memory_space<any>> -> memref<64x384xbf16, #tpu.memory_space<any>>
    %c0_i32_11 = arith.constant 0 : i32
    %c0_i32_12 = arith.constant 0 : i32
    %20 = tpu.memref_slice %arg8[%18, %c0_i32_11, %c0_i32_12] : memref<2x64x384xbf16, #tpu.memory_space<vmem>> -> memref<1x64x384xbf16, #tpu.memory_space<vmem>>
    %21 = tpu.memref_squeeze %20 : memref<1x64x384xbf16, #tpu.memory_space<vmem>> -> memref<64x384xbf16, #tpu.memory_space<vmem>>
    %22 = tpu.memref_slice %arg10[%18] : memref<2x!tpu.dma_semaphore, #tpu.memory_space<semaphore_mem>> -> memref<1x!tpu.dma_semaphore, #tpu.memory_space<semaphore_mem>>
    %23 = tpu.memref_squeeze %22 : memref<1x!tpu.dma_semaphore, #tpu.memory_space<semaphore_mem>> -> memref<!tpu.dma_semaphore, #tpu.memory_space<semaphore_mem>>
    tpu.wait_dma2 semaphore(%23 : memref<!tpu.dma_semaphore, #tpu.memory_space<semaphore_mem>>) src(%19 : memref<64x384xbf16, #tpu.memory_space<any>>) dst(%21 : memref<64x384xbf16, #tpu.memory_space<vmem>>)
    %24 = arith.index_cast %18 : i32 to index
    %c0 = arith.constant 0 : index
    %c121 = arith.constant 121 : index
    %25 = vector.load %arg8[%24, %c0, %c121] : memref<2x64x384xbf16, #tpu.memory_space<vmem>>, vector<1x64x128xbf16>
    %26 = vector.shape_cast %25 : vector<1x64x128xbf16> to vector<64x128xbf16>
    %c0_13 = arith.constant 0 : index
    %c0_14 = arith.constant 0 : index
    %27 = vector.load %arg9[%c0_13, %c0_14] : memref<576x128xbf16, #tpu.memory_space<vmem>>, vector<64x128xbf16>
    tpu.vector_store %arg9[%c0_13, %c0_14], %26 {strides = array<i32>} : memref<576x128xbf16, #tpu.memory_space<vmem>>, vector<64x128xbf16>,
    %28 = arith.index_cast %18 : i32 to index
    %c0_15 = arith.constant 0 : index
    %c122 = arith.constant 122 : index
    %29 = vector.load %arg8[%28, %c0_15, %c122] : memref<2x64x384xbf16, #tpu.memory_space<vmem>>, vector<1x64x128xbf16>
    %30 = vector.shape_cast %29 : vector<1x64x128xbf16> to vector<64x128xbf16>
    %c64 = arith.constant 64 : index
    %c0_16 = arith.constant 0 : index
    %31 = vector.load %arg9[%c64, %c0_16] : memref<576x128xbf16, #tpu.memory_space<vmem>>, vector<64x128xbf16>
    tpu.vector_store %arg9[%c64, %c0_16], %30 {strides = array<i32>} : memref<576x128xbf16, #tpu.memory_space<vmem>>, vector<64x128xbf16>,
    %32 = arith.index_cast %18 : i32 to index
    %c0_17 = arith.constant 0 : index
    %c123 = arith.constant 123 : index
    %33 = vector.load %arg8[%32, %c0_17, %c123] : memref<2x64x384xbf16, #tpu.memory_space<vmem>>, vector<1x64x128xbf16>
    %34 = vector.shape_cast %33 : vector<1x64x128xbf16> to vector<64x128xbf16>
    %c128 = arith.constant 128 : index
    %c0_18 = arith.constant 0 : index
    %35 = vector.load %arg9[%c128, %c0_18] : memref<576x128xbf16, #tpu.memory_space<vmem>>, vector<64x128xbf16>
    tpu.vector_store %arg9[%c128, %c0_18], %34 {strides = array<i32>} : memref<576x128xbf16, #tpu.memory_space<vmem>>, vector<64x128xbf16>,
    %36 = arith.index_cast %18 : i32 to index
    %c0_19 = arith.constant 0 : index
    %c127 = arith.constant 127 : index
    %37 = vector.load %arg8[%36, %c0_19, %c127] : memref<2x64x384xbf16, #tpu.memory_space<vmem>>, vector<1x64x128xbf16>
    %38 = vector.shape_cast %37 : vector<1x64x128xbf16> to vector<64x128xbf16>
    %c192 = arith.constant 192 : index
    %c0_20 = arith.constant 0 : index
    %39 = vector.load %arg9[%c192, %c0_20] : memref<576x128xbf16, #tpu.memory_space<vmem>>, vector<64x128xbf16>
    tpu.vector_store %arg9[%c192, %c0_20], %38 {strides = array<i32>} : memref<576x128xbf16, #tpu.memory_space<vmem>>, vector<64x128xbf16>,
    %40 = arith.index_cast %18 : i32 to index
    %c0_21 = arith.constant 0 : index
    %c128_22 = arith.constant 128 : index
    %41 = vector.load %arg8[%40, %c0_21, %c128_22] : memref<2x64x384xbf16, #tpu.memory_space<vmem>>, vector<1x64x128xbf16>
    %42 = vector.shape_cast %41 : vector<1x64x128xbf16> to vector<64x128xbf16>
    %c256 = arith.constant 256 : index
    %c0_23 = arith.constant 0 : index
    %43 = vector.load %arg9[%c256, %c0_23] : memref<576x128xbf16, #tpu.memory_space<vmem>>, vector<64x128xbf16>
    tpu.vector_store %arg9[%c256, %c0_23], %42 {strides = array<i32>} : memref<576x128xbf16, #tpu.memory_space<vmem>>, vector<64x128xbf16>,
    %44 = arith.index_cast %18 : i32 to index
    %c0_24 = arith.constant 0 : index
    %c129 = arith.constant 129 : index
    %45 = vector.load %arg8[%44, %c0_24, %c129] : memref<2x64x384xbf16, #tpu.memory_space<vmem>>, vector<1x64x128xbf16>
    %46 = vector.shape_cast %45 : vector<1x64x128xbf16> to vector<64x128xbf16>
    %c320 = arith.constant 320 : index
    %c0_25 = arith.constant 0 : index
    %47 = vector.load %arg9[%c320, %c0_25] : memref<576x128xbf16, #tpu.memory_space<vmem>>, vector<64x128xbf16>
    tpu.vector_store %arg9[%c320, %c0_25], %46 {strides = array<i32>} : memref<576x128xbf16, #tpu.memory_space<vmem>>, vector<64x128xbf16>,
    %48 = arith.index_cast %18 : i32 to index
    %c0_26 = arith.constant 0 : index
    %c133 = arith.constant 133 : index
    %49 = vector.load %arg8[%48, %c0_26, %c133] : memref<2x64x384xbf16, #tpu.memory_space<vmem>>, vector<1x64x128xbf16>
    %50 = vector.shape_cast %49 : vector<1x64x128xbf16> to vector<64x128xbf16>
    %c384 = arith.constant 384 : index
    %c0_27 = arith.constant 0 : index
    %51 = vector.load %arg9[%c384, %c0_27] : memref<576x128xbf16, #tpu.memory_space<vmem>>, vector<64x128xbf16>
    tpu.vector_store %arg9[%c384, %c0_27], %50 {strides = array<i32>} : memref<576x128xbf16, #tpu.memory_space<vmem>>, vector<64x128xbf16>,
    %52 = arith.index_cast %18 : i32 to index
    %c0_28 = arith.constant 0 : index
    %c134 = arith.constant 134 : index
    %53 = vector.load %arg8[%52, %c0_28, %c134] : memref<2x64x384xbf16, #tpu.memory_space<vmem>>, vector<1x64x128xbf16>
    %54 = vector.shape_cast %53 : vector<1x64x128xbf16> to vector<64x128xbf16>
    %c448 = arith.constant 448 : index
    %c0_29 = arith.constant 0 : index
    %55 = vector.load %arg9[%c448, %c0_29] : memref<576x128xbf16, #tpu.memory_space<vmem>>, vector<64x128xbf16>
    tpu.vector_store %arg9[%c448, %c0_29], %54 {strides = array<i32>} : memref<576x128xbf16, #tpu.memory_space<vmem>>, vector<64x128xbf16>,
    %56 = arith.index_cast %18 : i32 to index
    %c0_30 = arith.constant 0 : index
    %c135 = arith.constant 135 : index
    %57 = vector.load %arg8[%56, %c0_30, %c135] : memref<2x64x384xbf16, #tpu.memory_space<vmem>>, vector<1x64x128xbf16>
    %58 = vector.shape_cast %57 : vector<1x64x128xbf16> to vector<64x128xbf16>
    %c512 = arith.constant 512 : index
    %c0_31 = arith.constant 0 : index
    %59 = vector.load %arg9[%c512, %c0_31] : memref<576x128xbf16, #tpu.memory_space<vmem>>, vector<64x128xbf16>
    tpu.vector_store %arg9[%c512, %c0_31], %58 {strides = array<i32>} : memref<576x128xbf16, #tpu.memory_space<vmem>>, vector<64x128xbf16>,
    %c0_32 = arith.constant 0 : index
    %c0_33 = arith.constant 0 : index
    %60 = vector.load %arg3[%c0_32, %c0_33] : memref<64x576xbf16, #tpu.memory_space<vmem>>, vector<64x576xbf16>
    %c0_34 = arith.constant 0 : index
    %c0_35 = arith.constant 0 : index
    %61 = vector.load %arg9[%c0_34, %c0_35] : memref<576x128xbf16, #tpu.memory_space<vmem>>, vector<576x128xbf16>
    %cst = arith.constant dense<0.000000e+00> : vector<64x128xf32>
    %62 = tpu.matmul %60, %61, %cst {dimension_numbers = #tpu.dot_dimension_numbers<[1], [0], [0], [1], [0, 0, 1, 1], [], []>} : vector<64x576xbf16>, vector<576x128xbf16>, vector<64x128xf32> -> vector<64x128xf32>
    %c0_36 = arith.constant 0 : index
    %c0_37 = arith.constant 0 : index
    %63 = vector.load %arg4[%c0_36, %c0_37] : memref<64x1xf32, #tpu.memory_space<vmem>>, vector<64x1xf32>
    %64 = vector.broadcast %63 : vector<64x1xf32> to vector<64x128xf32>
    %65 = arith.addf %62, %64 : vector<64x128xf32>
    %c0_38 = arith.constant 0 : index
    %c0_39 = arith.constant 0 : index
    %66 = vector.load %arg6[%c0_38, %c0_39] : memref<64x128xbf16, #tpu.memory_space<vmem>>, vector<64x128xbf16>
    %67 = arith.extf %66 : vector<64x128xbf16> to vector<64x128xf32>
    %68 = arith.addf %65, %67 : vector<64x128xf32>
    %cst_40 = arith.constant 0.000000e+00 : f32
    %69 = vector.broadcast %cst_40 : f32 to vector<64x128xf32>
    %70 = arith.maximumf %68, %69 : vector<64x128xf32>
    %c0_41 = arith.constant 0 : index
    %c0_42 = arith.constant 0 : index
    %71 = vector.load %arg5[%c0_41, %c0_42] : memref<1x128xf32, #tpu.memory_space<vmem>>, vector<1x128xf32>
    %cst_43 = arith.constant 0.000000e+00 : f32
    %72 = vector.broadcast %cst_43 : f32 to vector<1x128xf32>
    %73 = arith.cmpf ogt, %71, %72 : vector<1x128xf32>
    %cst_44 = arith.constant 0.000000e+00 : f32
    %74 = vector.shape_cast %73 : vector<1x128xi1> to vector<1x128xi1>
    %75 = vector.broadcast %74 : vector<1x128xi1> to vector<64x128xi1>
    %76 = vector.broadcast %cst_44 : f32 to vector<64x128xf32>
    %77 = arith.select %75, %70, %76 : vector<64x128xi1>, vector<64x128xf32>
    %78 = arith.truncf %77 : vector<64x128xf32> to vector<64x128xbf16>
    %c0_45 = arith.constant 0 : index
    %c0_46 = arith.constant 0 : index
    %79 = vector.load %arg7[%c0_45, %c0_46] : memref<64x128xbf16, #tpu.memory_space<vmem>>, vector<64x128xbf16>
    tpu.vector_store %arg7[%c0_45, %c0_46], %78 {strides = array<i32>} : memref<64x128xbf16, #tpu.memory_space<vmem>>, vector<64x128xbf16>,
    return
  }
  func.func @transform_1(%arg0: i32, %arg1: i32) -> (i32, i32) {
    %c0_i32 = arith.constant 0 : i32
    %c0_i32_0 = arith.constant 0 : i32
    %c0_i32_1 = arith.constant 0 : i32
    return %c0_i32, %c0_i32_0 : i32, i32
  }
  func.func @transform_2(%arg0: i32, %arg1: i32) -> (i32, i32) {
    %c0_i32 = arith.constant 0 : i32
    %c0_i32_0 = arith.constant 0 : i32
    %c0_i32_1 = arith.constant 0 : i32
    return %c0_i32, %c0_i32_0 : i32, i32
  }
  func.func @transform_3(%arg0: i32, %arg1: i32) -> (i32, i32) {
    %c1_i32 = arith.constant 1 : i32
    %0 = arith.muli %arg0, %c1_i32 : i32
    %1 = arith.addi %0, %arg1 : i32
    %c0_i32 = arith.constant 0 : i32
    %c0_i32_0 = arith.constant 0 : i32
    return %c0_i32, %1 : i32, i32
  }
  func.func @transform_4(%arg0: i32, %arg1: i32) -> (i32, i32) {
    %c1_i32 = arith.constant 1 : i32
    %0 = arith.muli %arg0, %c1_i32 : i32
    %1 = arith.addi %0, %arg1 : i32
    %c1_i32_0 = arith.constant 1 : i32
    %2 = arith.addi %1, %c1_i32_0 : i32
    %c0_i32 = arith.constant 0 : i32
    %c0_i32_1 = arith.constant 0 : i32
    return %c0_i32, %2 : i32, i32
  }
  func.func @transform_5(%arg0: i32, %arg1: i32) -> (i32, i32) {
    %c1_i32 = arith.constant 1 : i32
    %0 = arith.muli %arg0, %c1_i32 : i32
    %1 = arith.addi %0, %arg1 : i32
    %c1_i32_0 = arith.constant 1 : i32
    %2 = arith.addi %1, %c1_i32_0 : i32
    %c0_i32 = arith.constant 0 : i32
    %c0_i32_1 = arith.constant 0 : i32
    return %c0_i32, %2 : i32, i32
  }
}

module attributes {stable_mosaic.version = 11 : i64} {
  func.func @_conv_kernel(%arg0: i32, %arg1: i32, %arg2: memref<64x512xbf16, #tpu.memory_space<any>>, %arg3: memref<64x576xbf16, #tpu.memory_space<vmem>>, %arg4: memref<64x1xf32, #tpu.memory_space<vmem>>, %arg5: memref<1x128xf32, #tpu.memory_space<vmem>>, %arg6: memref<64x128xbf16, #tpu.memory_space<vmem>>, %arg7: memref<2x64x384xbf16, #tpu.memory_space<vmem>>, %arg8: memref<576x128xbf16, #tpu.memory_space<vmem>>, %arg9: memref<2x!tpu.dma_semaphore, #tpu.memory_space<semaphore_mem>>) attributes {dimension_semantics = [#tpu.dimension_semantics<parallel>, #tpu.dimension_semantics<arbitrary>], iteration_bounds = array<i64: 2, 1>, scalar_prefetch = 0 : i64, scratch_operands = 3 : i64, tpu.core_type = #tpu.core_type<tc>, window_params = [{}, {pipeline_mode = #tpu.pipeline_mode<synchronous>, transform_indices = @transform_1, window_bounds = array<i64: 64, 576>}, {pipeline_mode = #tpu.pipeline_mode<synchronous>, transform_indices = @transform_2, window_bounds = array<i64: 64, 1>}, {transform_indices = @transform_3, window_bounds = array<i64: 1, 128>}, {transform_indices = @transform_4, window_bounds = array<i64: 64, 128>}]} {
    %c1_i32 = arith.constant 1 : i32
    %0 = arith.muli %arg0, %c1_i32 : i32
    %1 = arith.addi %0, %arg1 : i32
    %c0_i32 = arith.constant 0 : i32
    %2 = arith.cmpi eq, %arg1, %c0_i32 : i32
    %3 = arith.extui %2 : i1 to i32
    %c0_i32_0 = arith.constant 0 : i32
    %4 = arith.cmpi ne, %3, %c0_i32_0 : i32
    scf.if %4 {
      %c128_i32 = arith.constant 128 : i32
      %77 = arith.muli %1, %c128_i32 : i32
      %c0_i32_45 = arith.constant 0 : i32
      %78 = arith.addi %77, %c0_i32_45 : i32
      %c0_i32_46 = arith.constant 0 : i32
      %c0_i32_47 = arith.constant 0 : i32
      %c0_i32_48 = arith.constant 0 : i32
      %79 = tpu.memref_slice %arg2[%c0_i32_48, %78] : memref<64x512xbf16, #tpu.memory_space<any>> -> memref<64x384xbf16, #tpu.memory_space<any>>
      %c0_i32_49 = arith.constant 0 : i32
      %c0_i32_50 = arith.constant 0 : i32
      %80 = tpu.memref_slice %arg7[%c0_i32_46, %c0_i32_49, %c0_i32_50] : memref<2x64x384xbf16, #tpu.memory_space<vmem>> -> memref<1x64x384xbf16, #tpu.memory_space<vmem>>
      %81 = tpu.memref_squeeze %80 : memref<1x64x384xbf16, #tpu.memory_space<vmem>> -> memref<64x384xbf16, #tpu.memory_space<vmem>>
      %82 = tpu.memref_slice %arg9[%c0_i32_47] : memref<2x!tpu.dma_semaphore, #tpu.memory_space<semaphore_mem>> -> memref<1x!tpu.dma_semaphore, #tpu.memory_space<semaphore_mem>>
      %83 = tpu.memref_squeeze %82 : memref<1x!tpu.dma_semaphore, #tpu.memory_space<semaphore_mem>> -> memref<!tpu.dma_semaphore, #tpu.memory_space<semaphore_mem>>
      tpu.enqueue_dma source(%79 : memref<64x384xbf16, #tpu.memory_space<any>>) target(%81 : memref<64x384xbf16, #tpu.memory_space<vmem>>) target_semaphore(%83 : memref<!tpu.dma_semaphore, #tpu.memory_space<semaphore_mem>>)
    } else {
    }
    %c1_i32_1 = arith.constant 1 : i32
    %5 = arith.addi %arg1, %c1_i32_1 : i32
    %c1_i32_2 = arith.constant 1 : i32
    %6 = arith.cmpi slt, %5, %c1_i32_2 : i32
    %7 = arith.extui %6 : i1 to i32
    %c0_i32_3 = arith.constant 0 : i32
    %8 = arith.cmpi ne, %7, %c0_i32_3 : i32
    scf.if %8 {
      %c1_i32_45 = arith.constant 1 : i32
      %77 = arith.addi %1, %c1_i32_45 : i32
      %c1_i32_46 = arith.constant 1 : i32
      %78 = arith.addi %arg1, %c1_i32_46 : i32
      %c2_i32_47 = arith.constant 2 : i32
      %c0_i32_48 = arith.constant 0 : i32
      %79 = arith.cmpi eq, %c2_i32_47, %c0_i32_48 : i32
      %c1_i32_49 = arith.constant 1 : i32
      %80 = arith.select %79, %c1_i32_49, %c2_i32_47 : i32
      %81 = arith.remsi %78, %80 : i32
      %c0_i32_50 = arith.constant 0 : i32
      %82 = arith.cmpi ne, %81, %c0_i32_50 : i32
      %c0_i32_51 = arith.constant 0 : i32
      %83 = arith.cmpi slt, %81, %c0_i32_51 : i32
      %c0_i32_52 = arith.constant 0 : i32
      %84 = arith.cmpi slt, %80, %c0_i32_52 : i32
      %85 = arith.xori %83, %84 : i1
      %86 = arith.andi %85, %82 : i1
      %87 = arith.addi %81, %80 : i32
      %88 = arith.select %86, %87, %81 : i32
      %c128_i32 = arith.constant 128 : i32
      %89 = arith.muli %77, %c128_i32 : i32
      %c0_i32_53 = arith.constant 0 : i32
      %90 = arith.addi %89, %c0_i32_53 : i32
      %c0_i32_54 = arith.constant 0 : i32
      %91 = tpu.memref_slice %arg2[%c0_i32_54, %90] : memref<64x512xbf16, #tpu.memory_space<any>> -> memref<64x384xbf16, #tpu.memory_space<any>>
      %c0_i32_55 = arith.constant 0 : i32
      %c0_i32_56 = arith.constant 0 : i32
      %92 = tpu.memref_slice %arg7[%88, %c0_i32_55, %c0_i32_56] : memref<2x64x384xbf16, #tpu.memory_space<vmem>> -> memref<1x64x384xbf16, #tpu.memory_space<vmem>>
      %93 = tpu.memref_squeeze %92 : memref<1x64x384xbf16, #tpu.memory_space<vmem>> -> memref<64x384xbf16, #tpu.memory_space<vmem>>
      %94 = tpu.memref_slice %arg9[%88] : memref<2x!tpu.dma_semaphore, #tpu.memory_space<semaphore_mem>> -> memref<1x!tpu.dma_semaphore, #tpu.memory_space<semaphore_mem>>
      %95 = tpu.memref_squeeze %94 : memref<1x!tpu.dma_semaphore, #tpu.memory_space<semaphore_mem>> -> memref<!tpu.dma_semaphore, #tpu.memory_space<semaphore_mem>>
      tpu.enqueue_dma source(%91 : memref<64x384xbf16, #tpu.memory_space<any>>) target(%93 : memref<64x384xbf16, #tpu.memory_space<vmem>>) target_semaphore(%95 : memref<!tpu.dma_semaphore, #tpu.memory_space<semaphore_mem>>)
    } else {
    }
    %c2_i32 = arith.constant 2 : i32
    %c0_i32_4 = arith.constant 0 : i32
    %9 = arith.cmpi eq, %c2_i32, %c0_i32_4 : i32
    %c1_i32_5 = arith.constant 1 : i32
    %10 = arith.select %9, %c1_i32_5, %c2_i32 : i32
    %11 = arith.remsi %arg1, %10 : i32
    %c0_i32_6 = arith.constant 0 : i32
    %12 = arith.cmpi ne, %11, %c0_i32_6 : i32
    %c0_i32_7 = arith.constant 0 : i32
    %13 = arith.cmpi slt, %11, %c0_i32_7 : i32
    %c0_i32_8 = arith.constant 0 : i32
    %14 = arith.cmpi slt, %10, %c0_i32_8 : i32
    %15 = arith.xori %13, %14 : i1
    %16 = arith.andi %15, %12 : i1
    %17 = arith.addi %11, %10 : i32
    %18 = arith.select %16, %17, %11 : i32
    %c0_i32_9 = arith.constant 0 : i32
    %c0_i32_10 = arith.constant 0 : i32
    %19 = tpu.memref_slice %arg2[%c0_i32_9, %c0_i32_10] : memref<64x512xbf16, #tpu.memory_space<any>> -> memref<64x384xbf16, #tpu.memory_space<any>>
    %c0_i32_11 = arith.constant 0 : i32
    %c0_i32_12 = arith.constant 0 : i32
    %20 = tpu.memref_slice %arg7[%18, %c0_i32_11, %c0_i32_12] : memref<2x64x384xbf16, #tpu.memory_space<vmem>> -> memref<1x64x384xbf16, #tpu.memory_space<vmem>>
    %21 = tpu.memref_squeeze %20 : memref<1x64x384xbf16, #tpu.memory_space<vmem>> -> memref<64x384xbf16, #tpu.memory_space<vmem>>
    %22 = tpu.memref_slice %arg9[%18] : memref<2x!tpu.dma_semaphore, #tpu.memory_space<semaphore_mem>> -> memref<1x!tpu.dma_semaphore, #tpu.memory_space<semaphore_mem>>
    %23 = tpu.memref_squeeze %22 : memref<1x!tpu.dma_semaphore, #tpu.memory_space<semaphore_mem>> -> memref<!tpu.dma_semaphore, #tpu.memory_space<semaphore_mem>>
    tpu.wait_dma2 semaphore(%23 : memref<!tpu.dma_semaphore, #tpu.memory_space<semaphore_mem>>) src(%19 : memref<64x384xbf16, #tpu.memory_space<any>>) dst(%21 : memref<64x384xbf16, #tpu.memory_space<vmem>>)
    %24 = arith.index_cast %18 : i32 to index
    %c0 = arith.constant 0 : index
    %c121 = arith.constant 121 : index
    %25 = vector.load %arg7[%24, %c0, %c121] : memref<2x64x384xbf16, #tpu.memory_space<vmem>>, vector<1x64x128xbf16>
    %26 = vector.shape_cast %25 : vector<1x64x128xbf16> to vector<64x128xbf16>
    %c0_13 = arith.constant 0 : index
    %c0_14 = arith.constant 0 : index
    %27 = vector.load %arg8[%c0_13, %c0_14] : memref<576x128xbf16, #tpu.memory_space<vmem>>, vector<64x128xbf16>
    tpu.vector_store %arg8[%c0_13, %c0_14], %26 {strides = array<i32>} : memref<576x128xbf16, #tpu.memory_space<vmem>>, vector<64x128xbf16>,
    %28 = arith.index_cast %18 : i32 to index
    %c0_15 = arith.constant 0 : index
    %c122 = arith.constant 122 : index
    %29 = vector.load %arg7[%28, %c0_15, %c122] : memref<2x64x384xbf16, #tpu.memory_space<vmem>>, vector<1x64x128xbf16>
    %30 = vector.shape_cast %29 : vector<1x64x128xbf16> to vector<64x128xbf16>
    %c64 = arith.constant 64 : index
    %c0_16 = arith.constant 0 : index
    %31 = vector.load %arg8[%c64, %c0_16] : memref<576x128xbf16, #tpu.memory_space<vmem>>, vector<64x128xbf16>
    tpu.vector_store %arg8[%c64, %c0_16], %30 {strides = array<i32>} : memref<576x128xbf16, #tpu.memory_space<vmem>>, vector<64x128xbf16>,
    %32 = arith.index_cast %18 : i32 to index
    %c0_17 = arith.constant 0 : index
    %c123 = arith.constant 123 : index
    %33 = vector.load %arg7[%32, %c0_17, %c123] : memref<2x64x384xbf16, #tpu.memory_space<vmem>>, vector<1x64x128xbf16>
    %34 = vector.shape_cast %33 : vector<1x64x128xbf16> to vector<64x128xbf16>
    %c128 = arith.constant 128 : index
    %c0_18 = arith.constant 0 : index
    %35 = vector.load %arg8[%c128, %c0_18] : memref<576x128xbf16, #tpu.memory_space<vmem>>, vector<64x128xbf16>
    tpu.vector_store %arg8[%c128, %c0_18], %34 {strides = array<i32>} : memref<576x128xbf16, #tpu.memory_space<vmem>>, vector<64x128xbf16>,
    %36 = arith.index_cast %18 : i32 to index
    %c0_19 = arith.constant 0 : index
    %c127 = arith.constant 127 : index
    %37 = vector.load %arg7[%36, %c0_19, %c127] : memref<2x64x384xbf16, #tpu.memory_space<vmem>>, vector<1x64x128xbf16>
    %38 = vector.shape_cast %37 : vector<1x64x128xbf16> to vector<64x128xbf16>
    %c192 = arith.constant 192 : index
    %c0_20 = arith.constant 0 : index
    %39 = vector.load %arg8[%c192, %c0_20] : memref<576x128xbf16, #tpu.memory_space<vmem>>, vector<64x128xbf16>
    tpu.vector_store %arg8[%c192, %c0_20], %38 {strides = array<i32>} : memref<576x128xbf16, #tpu.memory_space<vmem>>, vector<64x128xbf16>,
    %40 = arith.index_cast %18 : i32 to index
    %c0_21 = arith.constant 0 : index
    %c128_22 = arith.constant 128 : index
    %41 = vector.load %arg7[%40, %c0_21, %c128_22] : memref<2x64x384xbf16, #tpu.memory_space<vmem>>, vector<1x64x128xbf16>
    %42 = vector.shape_cast %41 : vector<1x64x128xbf16> to vector<64x128xbf16>
    %c256 = arith.constant 256 : index
    %c0_23 = arith.constant 0 : index
    %43 = vector.load %arg8[%c256, %c0_23] : memref<576x128xbf16, #tpu.memory_space<vmem>>, vector<64x128xbf16>
    tpu.vector_store %arg8[%c256, %c0_23], %42 {strides = array<i32>} : memref<576x128xbf16, #tpu.memory_space<vmem>>, vector<64x128xbf16>,
    %44 = arith.index_cast %18 : i32 to index
    %c0_24 = arith.constant 0 : index
    %c129 = arith.constant 129 : index
    %45 = vector.load %arg7[%44, %c0_24, %c129] : memref<2x64x384xbf16, #tpu.memory_space<vmem>>, vector<1x64x128xbf16>
    %46 = vector.shape_cast %45 : vector<1x64x128xbf16> to vector<64x128xbf16>
    %c320 = arith.constant 320 : index
    %c0_25 = arith.constant 0 : index
    %47 = vector.load %arg8[%c320, %c0_25] : memref<576x128xbf16, #tpu.memory_space<vmem>>, vector<64x128xbf16>
    tpu.vector_store %arg8[%c320, %c0_25], %46 {strides = array<i32>} : memref<576x128xbf16, #tpu.memory_space<vmem>>, vector<64x128xbf16>,
    %48 = arith.index_cast %18 : i32 to index
    %c0_26 = arith.constant 0 : index
    %c133 = arith.constant 133 : index
    %49 = vector.load %arg7[%48, %c0_26, %c133] : memref<2x64x384xbf16, #tpu.memory_space<vmem>>, vector<1x64x128xbf16>
    %50 = vector.shape_cast %49 : vector<1x64x128xbf16> to vector<64x128xbf16>
    %c384 = arith.constant 384 : index
    %c0_27 = arith.constant 0 : index
    %51 = vector.load %arg8[%c384, %c0_27] : memref<576x128xbf16, #tpu.memory_space<vmem>>, vector<64x128xbf16>
    tpu.vector_store %arg8[%c384, %c0_27], %50 {strides = array<i32>} : memref<576x128xbf16, #tpu.memory_space<vmem>>, vector<64x128xbf16>,
    %52 = arith.index_cast %18 : i32 to index
    %c0_28 = arith.constant 0 : index
    %c134 = arith.constant 134 : index
    %53 = vector.load %arg7[%52, %c0_28, %c134] : memref<2x64x384xbf16, #tpu.memory_space<vmem>>, vector<1x64x128xbf16>
    %54 = vector.shape_cast %53 : vector<1x64x128xbf16> to vector<64x128xbf16>
    %c448 = arith.constant 448 : index
    %c0_29 = arith.constant 0 : index
    %55 = vector.load %arg8[%c448, %c0_29] : memref<576x128xbf16, #tpu.memory_space<vmem>>, vector<64x128xbf16>
    tpu.vector_store %arg8[%c448, %c0_29], %54 {strides = array<i32>} : memref<576x128xbf16, #tpu.memory_space<vmem>>, vector<64x128xbf16>,
    %56 = arith.index_cast %18 : i32 to index
    %c0_30 = arith.constant 0 : index
    %c135 = arith.constant 135 : index
    %57 = vector.load %arg7[%56, %c0_30, %c135] : memref<2x64x384xbf16, #tpu.memory_space<vmem>>, vector<1x64x128xbf16>
    %58 = vector.shape_cast %57 : vector<1x64x128xbf16> to vector<64x128xbf16>
    %c512 = arith.constant 512 : index
    %c0_31 = arith.constant 0 : index
    %59 = vector.load %arg8[%c512, %c0_31] : memref<576x128xbf16, #tpu.memory_space<vmem>>, vector<64x128xbf16>
    tpu.vector_store %arg8[%c512, %c0_31], %58 {strides = array<i32>} : memref<576x128xbf16, #tpu.memory_space<vmem>>, vector<64x128xbf16>,
    %c0_32 = arith.constant 0 : index
    %c0_33 = arith.constant 0 : index
    %60 = vector.load %arg3[%c0_32, %c0_33] : memref<64x576xbf16, #tpu.memory_space<vmem>>, vector<64x576xbf16>
    %c0_34 = arith.constant 0 : index
    %c0_35 = arith.constant 0 : index
    %61 = vector.load %arg8[%c0_34, %c0_35] : memref<576x128xbf16, #tpu.memory_space<vmem>>, vector<576x128xbf16>
    %cst = arith.constant dense<0.000000e+00> : vector<64x128xf32>
    %62 = tpu.matmul %60, %61, %cst {dimension_numbers = #tpu.dot_dimension_numbers<[1], [0], [0], [1], [0, 0, 1, 1], [], []>} : vector<64x576xbf16>, vector<576x128xbf16>, vector<64x128xf32> -> vector<64x128xf32>
    %c0_36 = arith.constant 0 : index
    %c0_37 = arith.constant 0 : index
    %63 = vector.load %arg4[%c0_36, %c0_37] : memref<64x1xf32, #tpu.memory_space<vmem>>, vector<64x1xf32>
    %64 = vector.broadcast %63 : vector<64x1xf32> to vector<64x128xf32>
    %65 = arith.addf %62, %64 : vector<64x128xf32>
    %cst_38 = arith.constant 0.000000e+00 : f32
    %66 = vector.broadcast %cst_38 : f32 to vector<64x128xf32>
    %67 = arith.maximumf %65, %66 : vector<64x128xf32>
    %c0_39 = arith.constant 0 : index
    %c0_40 = arith.constant 0 : index
    %68 = vector.load %arg5[%c0_39, %c0_40] : memref<1x128xf32, #tpu.memory_space<vmem>>, vector<1x128xf32>
    %cst_41 = arith.constant 0.000000e+00 : f32
    %69 = vector.broadcast %cst_41 : f32 to vector<1x128xf32>
    %70 = arith.cmpf ogt, %68, %69 : vector<1x128xf32>
    %cst_42 = arith.constant 0.000000e+00 : f32
    %71 = vector.shape_cast %70 : vector<1x128xi1> to vector<1x128xi1>
    %72 = vector.broadcast %71 : vector<1x128xi1> to vector<64x128xi1>
    %73 = vector.broadcast %cst_42 : f32 to vector<64x128xf32>
    %74 = arith.select %72, %67, %73 : vector<64x128xi1>, vector<64x128xf32>
    %75 = arith.truncf %74 : vector<64x128xf32> to vector<64x128xbf16>
    %c0_43 = arith.constant 0 : index
    %c0_44 = arith.constant 0 : index
    %76 = vector.load %arg6[%c0_43, %c0_44] : memref<64x128xbf16, #tpu.memory_space<vmem>>, vector<64x128xbf16>
    tpu.vector_store %arg6[%c0_43, %c0_44], %75 {strides = array<i32>} : memref<64x128xbf16, #tpu.memory_space<vmem>>, vector<64x128xbf16>,
    return
  }
  func.func @transform_1(%arg0: i32, %arg1: i32) -> (i32, i32) {
    %c0_i32 = arith.constant 0 : i32
    %c0_i32_0 = arith.constant 0 : i32
    %c0_i32_1 = arith.constant 0 : i32
    return %c0_i32, %c0_i32_0 : i32, i32
  }
  func.func @transform_2(%arg0: i32, %arg1: i32) -> (i32, i32) {
    %c0_i32 = arith.constant 0 : i32
    %c0_i32_0 = arith.constant 0 : i32
    %c0_i32_1 = arith.constant 0 : i32
    return %c0_i32, %c0_i32_0 : i32, i32
  }
  func.func @transform_3(%arg0: i32, %arg1: i32) -> (i32, i32) {
    %c1_i32 = arith.constant 1 : i32
    %0 = arith.muli %arg0, %c1_i32 : i32
    %1 = arith.addi %0, %arg1 : i32
    %c0_i32 = arith.constant 0 : i32
    %c0_i32_0 = arith.constant 0 : i32
    return %c0_i32, %1 : i32, i32
  }
  func.func @transform_4(%arg0: i32, %arg1: i32) -> (i32, i32) {
    %c1_i32 = arith.constant 1 : i32
    %0 = arith.muli %arg0, %c1_i32 : i32
    %1 = arith.addi %0, %arg1 : i32
    %c1_i32_0 = arith.constant 1 : i32
    %2 = arith.addi %1, %c1_i32_0 : i32
    %c0_i32 = arith.constant 0 : i32
    %c0_i32_1 = arith.constant 0 : i32
    return %c0_i32, %2 : i32, i32
  }
}

</mosaic_0001>

<bundles_post_ra>
// kernel: resnet_cifar_forward.24
= control target key start
LH: loop header
LB: loop body
LE: loop exit
PB: predicated region body
PF: predicated region fallthrough
CT: control target
= control target key end

     0   :  { %s1551_s0 = inlined_call_operand.vmem [shape: bf16[16,1536], index: 0, kind: input, shape index: {}]   ;;  %s1552_s1 = inlined_call_operand.vmem [shape: bf16[16,144], index: 1, kind: input, shape index: {}]   ;;  %s1553_s2 = inlined_call_operand.vmem [shape: f32[16,1], index: 2, kind: input, shape index: {}]   ;;  %s1554_s3 = inlined_call_operand.vmem [shape: f32[1,1024], index: 3, kind: input, shape index: {}]   ;;  %s1555_s4 = inlined_call_operand.vmem [shape: bf16[16,1536], index: 4, kind: input, shape index: {}]   ;;  %s1556_s5 = inlined_call_operand.vmem [shape: bf16[16,1536], index: 5, kind: output, shape index: {}]  }
   0x1   :  { %1559 = sst [smem:[#allocation12_spill]] %s1555_s4 }
   0x2   :  { %s1340_s18 = smov 0   ;;  %s1342_s19 = smov 0  }
   0x3   :  { %s1344_s20 = smov 0   ;;  %s1346_s21 = smov 0  }
   0x4   :  { %s1348_s22 = smov 0   ;;  %s1350_s23 = smov 0  }
   0x5   :  { %s1352_s24 = smov 0  }
   0x6 LB: > { %s24_s25 = sadd.s32 1, %s1291_s22  ;;  %s27_s26 = sadd.s32 1, %s1295_s23  ;;  %s1299_s24 = sphi %s1352_s24, %s15_s24   ;;  %s1295_s23 = sphi %s1350_s23, %s1574_s23   ;;  %s1291_s22 = sphi %s1348_s22, %s1573_s22   ;;  %s1287_s21 = sphi %s1346_s21, %s1572_s21   ;;  %s1283_s20 = sphi %s1344_s20, %s1571_s20   ;;  %s1279_s19 = sphi %s1342_s19, %s1570_s19   ;;  %s1275_s18 = sphi %s1340_s18, %s1569_s18  }
   0x7   : > { %p25_p0 = scmp.ge.s32.totalorder %s24_s25, 2  ;;  %s1096_s27 = sadd.s32 4294967295, %s1299_s24  }
   0x8   : > { %s1100_s28 = sshll.u32 %s1295_s23, 1  ;;  %p119_p1 = scmp.ne.s32.totalorder %s1279_s19, %s1275_s18 }
   0x9   : > { %s1576_s25 = smov (%p25_p0, %s24_s25), 0  ;;  %s1578_s26 = smov (!%p25_p0, %s27_s26), %s1295_s23 }
   0xa   : > { %1560 = sst [smem:[#allocation10_spill]] %s1576_s25  ;;  %p29_p2 = scmp.ge.s32.totalorder %s1578_s26, 2 }
   0xb   : > { %s104_s29 = sadd.s32 %s1291_s22, %s1100_s28  ;;  %p120_p3 = scmp.eq.s32.totalorder %s1299_s24, 0 }
   0xc   : > { %p155_p4 = scmp.eq.s32.totalorder %s1096_s27, 3  ;;  %s1580_s26 = smov (%p29_p2, %s1578_s26), 0 }
   0xd   : > { %1561 = sst [smem:[#allocation11_spill]] %s1580_s26  ;;  %p121_p5 = por %p120_p3, %p119_p1 }
   0xe   : > { %p1388_p6 = por %p155_p4, %p119_p1  ;;  %s105_s6 = sadd.s32 1, %s104_s29 }
   0xf   : > { %s1101_s7 = sshll.u32 %s1580_s26, 1  ;;  %s112_s11 = sadd.s32 1, %s1279_s19 }
  0x10   : > { %s107_s8 = sadd.s32 %s1101_s7, %s1576_s25  ;;  %p1105_p8 = scmp.ge.s32.totalorder %s1299_s24, 4 }
  0x11   : > { %s108_s9 = sadd.s32 1, %s107_s8 }
  0x12   : > { %s109_s10 = ssub.s32 %s105_s6, %s108_s9  ;;  %183 = sbr.rel (%p1105_p8) target bundleno = 34 (0x22), region = 24 }
  0x13   : > { %p110_p7 = scmp.eq.s32.totalorder %s109_s10, 0 }
  0x15   : > { %s1396_s12 = scalar_select %p110_p7, %s1279_s19, %s112_s11  }
  0x17   : > { %198 = sbr.rel (!%p121_p5) target bundleno = 34 (0x22), region = 32  ;;  %s200_s13 = sand.u32 (%p121_p5), 1, %s1279_s19  }
  0x18   : > { %s1108_s14 = sshll.u32 (%p121_p5), %s104_s29, 3  ;;  %s1106_s15 = sshll.u32 (%p121_p5), %s200_s13, 4 }
  0x19   : > { %s1563_s4 = sld [smem:[#allocation12_spill]] (%p121_p5)  ;;  %s202_s28 = scalar_lea.vmem (%p121_p5), [#allocation5], %s1106_s15 }
  0x1f   : > { %s1005_s27 = scalar_lea.vmem %s1563_s4, %s1108_s14 }
  0x20   : > { %v1109_v0 = vld [vmem:[%s1005_s27 + $0x8] sm:$0xff]  ;;  %v1110_v1 = vld [vmem:[%s1005_s27 + $0x38] sm:$0xff] }
  0x21   : > { %240 = vst [vmem:[%s202_s28] sm:$0xff] %v1109_v0  ;;  %242 = vst [vmem:[%s202_s28 + $0x8] sm:$0xff] %v1110_v1 }
  0x22 PF: > { %p1111_p9 = scmp.ge.s32.totalorder %s1299_s24, 1  ;;  %p247_p10 = scmp.lt.s32.totalorder %s1299_s24, 5 }
  0x24   : > { %p248_p11 = pnand %p1111_p9, %p247_p10 }
  0x25   : > { %s254_s29 = sand.u32 (!%p248_p11), 1, %s1275_s18   ;;  %s1114_s6 = sshll.u32 (!%p248_p11), %s1287_s21, 1 }
  0x26   : > { %251 = sbr.rel (%p248_p11) target bundleno = 484 (0x1e4), region = 70  ;;  %s1407_s7 = sshll.u32 (!%p248_p11), %s254_s29, 4 }
  0x27   : > { %s1410_s8 = sadd.s32 (!%p248_p11), %s1283_s20, %s1114_s6  ;;  %s1421_s15 = scalar_lea.vmem (!%p248_p11), [#allocation6], %s1407_s7 }
  0x28   : > { %s1115_s9 = sshll.u32 (!%p248_p11), %s1410_s8, 1  ;;  %p1117_p13 = scmp.ne.s32.totalorder (!%p248_p11), %s1283_s20, 0 }
  0x29   : > { %p287_p12 = scmp.lt.s32.totalorder (!%p248_p11), %s1115_s9, 7 }
  0x2b   : > { %s1582_s9 = smov (!%p287_p12, %s1115_s9), 7  ;;  %307 = sbr.rel (%p1117_p13) target bundleno = 53 (0x35), region = 78 }
  0x2c   : > { %s1118_s18 = sshll.u32 (!%p1117_p13), %s1410_s8, 8 }
  0x2d   : > { %s309_s21 = sadd.s32 (!%p1117_p13), 128, %s1118_s18 }
  0x2e   : > { %s310_s16 = sshra.s32 (!%p1117_p13), %s309_s21, 7 }
  0x2f   : > { %s1119_s17 = sshll.u32 (!%p1117_p13), %s310_s16, 2 }
  0x30   : > { %s313_s29 = scalar_lea.vmem %s1551_s0, %s1119_s17 }
  0x31   : > { %v349_v2 = vld [vmem:[%s313_s29] sm:$0xff]  ;;  %v351_v3 = vld [vmem:[%s313_s29 + $0x8] sm:$0xff]  ;;  %v353_v4 = vld [vmem:[%s313_s29 + $0x30] sm:$0xff] }
  0x32   : > { %350 = vst [vmem:[#allocation2] sm:$0xff] %v349_v2  ;;  %352 = vst [vmem:[#allocation2 + $0x8] sm:$0xff] %v351_v3  ;;  %v355_v5 = vld [vmem:[%s313_s29 + $0x38] sm:$0xff] }
  0x33   : > { %354 = vst [vmem:[#allocation2 + $0x10] sm:$0xff] %v353_v4  ;;  %356 = vst [vmem:[#allocation2 + $0x18] sm:$0xff] %v355_v5 }
  0x34   : > { %364 = vsyncadd [#allocation4], 512 }
  0x35 PF: > { %s365_s6 = sadd.s32 1, %s1283_s20 }
  0x36   : > { %p1120_p0 = scmp.ge.s32.totalorder %s365_s6, 2 }
  0x37   : > { %p371_p1 = scmp.lt.s32.totalorder (!%p1120_p0), %s365_s6, 0  ;;  %s372_s10 = ssub.s32 (!%p1120_p0), 0, %s365_s6 }
  0x38   : > { %369 = sbr.rel (%p1120_p0) target bundleno = 70 (0x46), region = 116  ;;  %s1121_s11 = smin.u32 (!%p1120_p0), %s372_s10, %s365_s6 }
  0x39   : > { %s1165_s18 = sshll.u32 (!%p1120_p0), %s1410_s8, 8  ;;  %s374_s21 = sand.u32 (!%p1120_p0), 1, %s1121_s11  }
  0x3a   : > { %s1166_s16 = sadd.s32 (!%p1120_p0), 256, %s1165_s18  ;;  %s375_s17 = ssub.s32 (!%p1120_p0), 0, %s374_s21 }
  0x3b   : > { %s384_s27 = sadd.s32 (!%p1120_p0), 128, %s1166_s16 }
  0x3c   : > { %s385_s28 = sshra.s32 (!%p1120_p0), %s384_s27, 7 }
  0x3d   : > { %s1584_s17 = smov (!%p371_p1, %s375_s17), %s374_s21  ;;  %s1125_s14 = sshll.u32 %s385_s28, 2 }
  0x3e   : > { %p1123_p2 = scmp.lt.s32.totalorder %s1584_s17, 0  ;;  %s381_s29 = sadd.s32 2, %s1584_s17 }
  0x3f   : > { %s388_s26 = scalar_lea.vmem %s1551_s0, %s1125_s14 }
  0x40   : > { %s1586_s29 = smov (!%p1123_p2, %s381_s29), %s1584_s17  ;;  %v428_v6 = vld [vmem:[%s388_s26] sm:$0xff]  ;;  %v430_v7 = vld [vmem:[%s388_s26 + $0x8] sm:$0xff]  ;;  %v432_v8 = vld [vmem:[%s388_s26 + $0x30] sm:$0xff] }
  0x41   : > { %s1167_s25 = sshll.u32 %s1586_s29, 5  ;;  %v434_v9 = vld [vmem:[%s388_s26 + $0x38] sm:$0xff]  ;;  %s392_s10 = scalar_lea.sflag [#allocation4], %s1586_s29 }
  0x42   : > { %s391_s6 = scalar_lea.vmem [#allocation2], %s1167_s25 }
  0x43   : > { %429 = vst [vmem:[%s391_s6] sm:$0xff] %v428_v6  ;;  %431 = vst [vmem:[%s391_s6 + $0x8] sm:$0xff] %v430_v7 }
  0x44   : > { %433 = vst [vmem:[%s391_s6 + $0x10] sm:$0xff] %v432_v8  ;;  %435 = vst [vmem:[%s391_s6 + $0x18] sm:$0xff] %v434_v9 }
  0x45   : > { %443 = vsyncadd %s392_s10, 512 }
  0x46 PF: > { %p444_p3 = scmp.lt.s32.totalorder %s1283_s20, 0  ;;  %s445_s11 = ssub.s32 0, %s1283_s20 }
  0x47   : > { %s1128_s4 = smin.u32 %s1283_s20, %s445_s11 }
  0x48   : > { %s447_s13 = sand.u32 1, %s1128_s4  }
  0x49   : > { %s448_s14 = ssub.s32 0, %s447_s13 }
  0x4a   : > { %s1588_s14 = smov (!%p444_p3, %s448_s14), %s447_s13 }
  0x4b   : > { %p1130_p4 = scmp.lt.s32.totalorder %s1588_s14, 0  ;;  %s454_s18 = sadd.s32 2, %s1588_s14 }
  0x4d   : > { %s1590_s18 = smov (!%p1130_p4, %s454_s18), %s1588_s14 }
  0x4e   : > { %s1168_s25 = sshll.u32 %s1590_s18, 5  ;;  %s459_s21 = scalar_lea.sflag [#allocation4], %s1590_s18 }
  0x4f   : > { %s1436_s26 = scalar_lea.vmem [#allocation2], %s1168_s25 }
  0x50   : > { %1271 = dma.done.wait %s459_s21, 512 }
  0x51   : > { %1272 = vsyncadd %s459_s21, 4294966784  ;;  %v1439_v10 = vld [vmem:[%s1436_s26 + $0x14] sm:$0xff]  ;;  %v1442_v11 = vld [vmem:[%s1436_s26 + $0x4] sm:$0xff]  ;;  %s1301_s20 = smov 110   ;;  %s1302_s16 = smov 111   ;;  %vm832_vm0 = vcmask 130048  }
  0x52   : > { %655 = vrot.lane.b32.xlu1 %v1439_v10, %s1301_s20  ;;  %651 = vrot.lane.b32.xlu0 %v1442_v11, %s1301_s20  ;;  %v646_v12 = vld [vmem:[%s1436_s26 + $0x1c] sm:$0xf]  ;;  %v644_v13 = vld [vmem:[%s1436_s26 + $0xc] sm:$0xf]  ;;  %v1144_v17 = vcombine.high %v1442_v11, %v1439_v10  ;;  %s1303_s17 = smov 127   ;;  %v1143_v18 = vcombine.low %v1442_v11, %v1439_v10  ;;  %s1304_s27 = smov 1  }
  0x53   : > { %v615_v14 = vld [vmem:[%s1436_s26 + $0xc] sm:$0xf]  ;;  %v617_v15 = vld [vmem:[%s1436_s26 + $0x1c] sm:$0xf]  ;;  %v553_v20 = vld [vmem:[%s1436_s26 + $0x8] sm:$0xf] }
  0x54   : > { %v586_v16 = vld [vmem:[%s1436_s26 + $0xc] sm:$0xf]  ;;  %v588_v19 = vld [vmem:[%s1436_s26 + $0x1c] sm:$0xf]  ;;  %v552_v21 = vld [vmem:[%s1436_s26] sm:$0xff]  ;;  %s1305_s28 = smov 17  }
  0x55   : > { %v555_v22 = vld [vmem:[%s1436_s26 + $0x18] sm:$0xf]  ;;  %v554_v23 = vld [vmem:[%s1436_s26 + $0x10] sm:$0xff]  ;;  %v524_v24 = vld [vmem:[%s1436_s26 + $0x8] sm:$0xf]  ;;  %s1306_s29 = smov 18  }
  0x56   : > { %657 = vrot.lane.b32.xlu1 %v646_v12, %s1301_s20  ;;  %653 = vrot.lane.b32.xlu0 %v644_v13, %s1301_s20  ;;  %v526_v25 = vld [vmem:[%s1436_s26 + $0x18] sm:$0xf]  ;;  %v495_v26 = vld [vmem:[%s1436_s26 + $0x8] sm:$0xf]  ;;  %s1307_s6 = smov 19   ;;  %s1308_s4 = smov 109  }
  0x57   : > { %v497_v27 = vld [vmem:[%s1436_s26 + $0x18] sm:$0xf]  ;;  %v465_v28 = vld [vmem:[%s1436_s26 + $0x8] sm:$0xf]  ;;  %v673_v30 = vld [vmem:[%s1436_s26 + $0xc] sm:$0xf] }
  0x58   : > { %v467_v29 = vld [vmem:[%s1436_s26 + $0x18] sm:$0xf]  ;;  %v1242_v31 = vld [vmem:[%s1552_s1 + $0x4] ss:$8 sps:$4 sm:$0xff]   ;;  %v675_v32 = vld [vmem:[%s1436_s26 + $0x1c] sm:$0xf] }
  0x59   : > { %1153 = vmatprep.mubr.msk.bf16.mxu0 %vm832_vm0, %v1242_v31  ;;  %v1309_v33 = vmov 0   ;;  %v721_v34 = vld [vmem:[%s1553_s2] sm:$0xff]  ;;  %v722_v35 = vld [vmem:[%s1553_s2 + $0x8] sm:$0xff]  ;;  %vm484_vm1 = vcmask 1043456   ;;  %vm664_vm2 = vcmask 900096   ;;  %vm635_vm3 = vcmask 908288  }
  0x5a   : > { %624 = vrot.lane.b32.xlu1 %v615_v14, %s1302_s16  ;;  %622 = vrot.lane.b32.xlu0 %v1442_v11, %s1302_s16  ;;  %vm606_vm4 = vcmask 1039360   ;;  %vm573_vm5 = vcmask 7168   ;;  %vm544_vm6 = vcmask 138240   ;;  %vm515_vm7 = vcmask 146432  }
  0x5b   : > { %1236 = vset.pattern.permute.xlu0 %v1309_v33  ;;  %1237 = vset.pattern.permute.xlu1 %v1309_v33  ;;  %vm486_vm8 = vcmask 154624   ;;  %vm693_vm9 = vcmask 891904  }
  0x5e   : > { %628 = vrot.lane.b32.xlu1 %v617_v15, %s1302_s16  ;;  %626 = vrot.lane.b32.xlu0 %v1439_v10, %s1302_s16 }
  0x62   : > { %595 = vrot.lane.b32.xlu1 %v586_v16, %s1303_s17  ;;  %593 = vrot.lane.b32.xlu0 %v1442_v11, %s1303_s17 }
  0x66   : > { %599 = vrot.lane.b32.xlu1 %v588_v19, %s1303_s17  ;;  %597 = vrot.lane.b32.xlu0 %v1439_v10, %s1303_s17  ;;  %s1564_s17 = scalar_lea.vmem %s1554_s3, %s1582_s9 }
  0x6a   : > { %562 = vrot.lane.b32.xlu1 %v553_v20, %s1304_s27  ;;  %560 = vrot.lane.b32.xlu0 %v552_v21, %s1304_s27 }
  0x6e   : > { %566 = vrot.lane.b32.xlu1 %v555_v22, %s1304_s27  ;;  %564 = vrot.lane.b32.xlu0 %v554_v23, %s1304_s27  ;;  %s1565_s27 = scalar_lea.vmem [#allocation5], %s1407_s7  ;;  %s1158_s7 = sshll.u32 (%p1388_p6), %s1410_s8, 3 }
  0x72   : > { %533 = vrot.lane.b32.xlu1 %v524_v24, %s1305_s28  ;;  %531 = vrot.lane.b32.xlu0 %v552_v21, %s1305_s28 }
  0x76   : > { %537 = vrot.lane.b32.xlu1 %v526_v25, %s1305_s28  ;;  %535 = vrot.lane.b32.xlu0 %v554_v23, %s1305_s28  ;;  %s1566_s28 = smov %s1565_s27 }
  0x7a   : > { %504 = vrot.lane.b32.xlu1 %v495_v26, %s1306_s29  ;;  %502 = vrot.lane.b32.xlu0 %v552_v21, %s1306_s29 }
  0x7e   : > { %508 = vrot.lane.b32.xlu1 %v497_v27, %s1306_s29  ;;  %506 = vrot.lane.b32.xlu0 %v554_v23, %s1306_s29 }
  0x82   : > { %474 = vrot.lane.b32.xlu1 %v465_v28, %s1307_s6  ;;  %472 = vrot.lane.b32.xlu0 %v552_v21, %s1307_s6 }
  0x86   : > { %478 = vrot.lane.b32.xlu1 %v467_v29, %s1307_s6  ;;  %476 = vrot.lane.b32.xlu0 %v554_v23, %s1307_s6  ;;  %s1030_s6 = scalar_lea.vmem (%p1388_p6), %s1556_s5, %s1158_s7 }
  0x8a   : > { %682 = vrot.lane.b32.xlu1 %v673_v30, %s1308_s4  ;;  %680 = vrot.lane.b32.xlu0 %v1442_v11, %s1308_s4 }
  0x8e   : > { %686 = vrot.lane.b32.xlu1 %v675_v32, %s1308_s4  ;;  %684 = vrot.lane.b32.xlu0 %v1439_v10, %s1308_s4 }
  0x92   : > { %725 = vperm.xlu0 %1236, %v721_v34   ;;  %730 = vperm.xlu1 %1237, %v722_v35  }
  0xc4   : > { %v656_v36 = vpop.permute.xlu1 %655  ;;  %v652_v37 = vpop.permute.xlu0 %651 }
  0xc5   : > { %v661_v40 = vrot.slane %v656_v36, 4  ;;  %v659_v41 = vrot.slane %v652_v37, 4 }
  0xc8   : > { %v658_v38 = vpop.permute.xlu1 %657  ;;  %v654_v39 = vpop.permute.xlu0 %653 }
  0xc9   : > { %v662_v42 = vrot.slane %v658_v38, 4  ;;  %v660_v43 = vrot.slane %v654_v39, 4 }
  0xcb   : > { %v663_v44 = vsel %vm484_vm1, %v659_v41, %v660_v43  ;;  %v666_v45 = vsel %vm484_vm1, %v661_v40, %v662_v42 }
  0xcc   : > { %v625_v46 = vpop.permute.xlu1 %624  ;;  %v623_v47 = vpop.permute.xlu0 %622  ;;  %v665_v48 = vsel %vm664_vm2, %v652_v37, %v663_v44  ;;  %v667_v49 = vsel %vm664_vm2, %v656_v36, %v666_v45 }
  0xcd   : > { %v631_v50 = vrot.slane %v625_v46, 4  ;;  %v630_v51 = vrot.slane %v623_v47, 4  ;;  %v1150_v52 = vcombine.high %v665_v48, %v667_v49  ;;  %v1149_v53 = vcombine.low %v665_v48, %v667_v49 }
  0xcf   : > { %836 = vmatprep.subr.bf16.mxu0 %v1150_v52  ;;  %v634_v56 = vsel %vm484_vm1, %v630_v51, %v631_v50 }
  0xd0   : > { %837 = vmatpush1.bf16.msra.mxu0 %v1149_v53  ;;  %v629_v54 = vpop.permute.xlu1 %628  ;;  %v627_v55 = vpop.permute.xlu0 %626  ;;  %v636_v60 = vsel %vm635_vm3, %v623_v47, %v634_v56 }
  0xd1   : > { %v633_v57 = vrot.slane %v629_v54, 4  ;;  %v632_v58 = vrot.slane %v627_v55, 4 }
  0xd3   : > { %v637_v59 = vsel %vm484_vm1, %v632_v58, %v633_v57 }
  0xd4   : > { %v638_v61 = vsel %vm635_vm3, %v627_v55, %v637_v59  ;;  %v596_v62 = vpop.permute.xlu1 %595  ;;  %v594_v63 = vpop.permute.xlu0 %593 }
  0xd5   : > { %v1147_v0 = vcombine.low %v636_v60, %v638_v61  ;;  %v1148_v1 = vcombine.high %v636_v60, %v638_v61  ;;  %v602_v2 = vrot.slane %v596_v62, 4  ;;  %v601_v3 = vrot.slane %v594_v63, 4 }
  0xd7   : > { %838 = vmatprep.subr.bf16.mxu0 %v1148_v1  ;;  %v605_v6 = vsel %vm484_vm1, %v601_v3, %v602_v2 }
  0xd8   : > { %839 = vmatpush1.bf16.msra.mxu0 %v1147_v0  ;;  %v600_v4 = vpop.permute.xlu1 %599  ;;  %v598_v5 = vpop.permute.xlu0 %597  ;;  %v607_v12 = vsel %vm606_vm4, %v594_v63, %v605_v6 }
  0xd9   : > { %v604_v7 = vrot.slane %v600_v4, 4  ;;  %v603_v8 = vrot.slane %v598_v5, 4 }
  0xdb   : > { %v608_v9 = vsel %vm484_vm1, %v603_v8, %v604_v7 }
  0xdc   : > { %v609_v13 = vsel %vm606_vm4, %v598_v5, %v608_v9  ;;  %v563_v14 = vpop.permute.xlu1 %562  ;;  %v561_v15 = vpop.permute.xlu0 %560 }
  0xdd   : > { %v1145_v16 = vcombine.low %v607_v12, %v609_v13  ;;  %v1146_v19 = vcombine.high %v607_v12, %v609_v13  ;;  %v569_v20 = vrot.slane %v563_v14, 4  ;;  %v568_v21 = vrot.slane %v561_v15, 4 }
  0xdf   : > { %840 = vmatprep.subr.bf16.mxu0 %v1146_v19  ;;  %v572_v24 = vsel %vm484_vm1, %v568_v21, %v569_v20 }
  0xe0   : > { %841 = vmatpush1.bf16.msra.mxu0 %v1145_v16  ;;  %v567_v22 = vpop.permute.xlu1 %566  ;;  %v565_v23 = vpop.permute.xlu0 %564  ;;  %v574_v28 = vsel %vm573_vm5, %v561_v15, %v572_v24 }
  0xe1   : > { %v571_v25 = vrot.slane %v567_v22, 4  ;;  %v570_v26 = vrot.slane %v565_v23, 4  ;;  %842 = vmatprep.subr.bf16.mxu0 %v1144_v17 }
  0xe3   : > { %v575_v27 = vsel %vm484_vm1, %v570_v26, %v571_v25  ;;  %v1240_v25 = vld [vmem:[%s1552_s1] ss:$8 sps:$4 sm:$0xff]   ;;  %v896_v26 = vlaneseq }
  0xe4   : > { %v576_v29 = vsel %vm573_vm5, %v565_v23, %v575_v27  ;;  %843 = vmatpush1.bf16.msra.mxu0 %v1143_v18  ;;  %v534_v30 = vpop.permute.xlu1 %533  ;;  %v532_v31 = vpop.permute.xlu0 %531  ;;  %v893_v27 = vld [vmem:[%s1564_s17] sm:$0x3] }
  0xe5   : > { %v1141_v32 = vcombine.low %v574_v28, %v576_v29  ;;  %v1142_v34 = vcombine.high %v574_v28, %v576_v29  ;;  %v540_v35 = vrot.slane %v534_v30, 4  ;;  %v539_v36 = vrot.slane %v532_v31, 4  ;;  %v879_v29 = vld [vmem:[%s1565_s27] sm:$0xff] }
  0xe6   : > { %v897_v28 = vshrl.u32 %v896_v26, 7  ;;  %vm894_vm10 = vcmp.gt.f32.partialorder %v893_v27, 0.0 }
  0xe7   : > { %844 = vmatprep.subr.bf16.mxu0 %v1142_v34  ;;  %v543_v17 = vsel %vm484_vm1, %v539_v36, %v540_v35  ;;  %v895_v34 = vsel %vm894_vm10, 1, %v1309_v33  ;;  %v881_v35 = vunpack.c.l.bf16 %v879_v29 }
  0xe8   : > { %845 = vmatpush1.bf16.msra.mxu0 %v1141_v32  ;;  %v538_v37 = vpop.permute.xlu1 %537  ;;  %v536_v38 = vpop.permute.xlu0 %535  ;;  %v545_v42 = vsel %vm544_vm6, %v532_v31, %v543_v17  ;;  %v898_v30 = vsub.s32 0, %v897_v28  ;;  %v902_v31 = vsub.s32 1, %v897_v28  ;;  %v882_v17 = vunpack.c.h.bf16 %v879_v29 }
  0xe9   : > { %v542_v39 = vrot.slane %v538_v37, 4  ;;  %v541_v40 = vrot.slane %v536_v38, 4  ;;  %v880_v37 = vld [vmem:[%s1566_s28 + $0x8] sm:$0xff] }
  0xeb   : > { %v546_v41 = vsel %vm484_vm1, %v541_v40, %v542_v39  ;;  %v899_v39 = vrot.slane %v895_v34, %v898_v30  ;;  %v903_v40 = vrot.slane %v895_v34, %v902_v31 }
  0xec   : > { %v547_v10 = vsel %vm544_vm6, %v536_v38, %v546_v41  ;;  %v505_v11 = vpop.permute.xlu1 %504  ;;  %v503_v18 = vpop.permute.xlu0 %502 }
  0xed   : > { %v1139_v43 = vcombine.low %v545_v42, %v547_v10  ;;  %v1140_v44 = vcombine.high %v545_v42, %v547_v10  ;;  %v511_v45 = vrot.slane %v505_v11, 4  ;;  %v510_v46 = vrot.slane %v503_v18, 4 }
  0xee   : > { %vm904_vm11 = vcmp.eq.s32.totalorder %v899_v39, 1  ;;  %vm905_vm12 = vcmp.eq.s32.totalorder %v903_v40, 1 }
  0xef   : > { %846 = vmatprep.subr.bf16.mxu0 %v1140_v44  ;;  %v514_v49 = vsel %vm484_vm1, %v510_v46, %v511_v45 }
  0xf0   : > { %847 = vmatpush1.bf16.msra.mxu0 %v1139_v43  ;;  %v509_v47 = vpop.permute.xlu1 %508  ;;  %v507_v48 = vpop.permute.xlu0 %506  ;;  %v516_v53 = vsel %vm515_vm7, %v503_v18, %v514_v49  ;;  %v883_v18 = vunpack.c.l.bf16 %v880_v37 }
  0xf1   : > { %v513_v50 = vrot.slane %v509_v47, 4  ;;  %v512_v51 = vrot.slane %v507_v48, 4  ;;  %v884_v47 = vunpack.c.h.bf16 %v880_v37 }
  0xf3   : > { %v517_v52 = vsel %vm484_vm1, %v512_v51, %v513_v50 }
  0xf4   : > { %v518_v54 = vsel %vm515_vm7, %v507_v48, %v517_v52  ;;  %v475_v55 = vpop.permute.xlu1 %474  ;;  %v473_v56 = vpop.permute.xlu0 %472 }
  0xf5   : > { %v1137_v57 = vcombine.low %v516_v53, %v518_v54  ;;  %v1138_v58 = vcombine.high %v516_v53, %v518_v54  ;;  %v481_v59 = vrot.slane %v475_v55, 4  ;;  %v480_v60 = vrot.slane %v473_v56, 4 }
  0xf7   : > { %848 = vmatprep.subr.bf16.mxu0 %v1138_v58  ;;  %v485_v63 = vsel %vm484_vm1, %v480_v60, %v481_v59 }
  0xf8   : > { %849 = vmatpush1.bf16.msra.mxu0 %v1137_v57  ;;  %v479_v61 = vpop.permute.xlu1 %478  ;;  %v477_v62 = vpop.permute.xlu0 %476  ;;  %v487_v3 = vsel %vm486_vm8, %v473_v56, %v485_v63 }
  0xf9   : > { %v483_v0 = vrot.slane %v479_v61, 4  ;;  %v482_v1 = vrot.slane %v477_v62, 4 }
  0xfb   : > { %v488_v2 = vsel %vm484_vm1, %v482_v1, %v483_v0 }
  0xfc   : > { %v489_v4 = vsel %vm486_vm8, %v477_v62, %v488_v2  ;;  %v683_v5 = vpop.permute.xlu1 %682  ;;  %v681_v6 = vpop.permute.xlu0 %680 }
  0xfd   : > { %v1135_v7 = vcombine.low %v487_v3, %v489_v4  ;;  %v1136_v8 = vcombine.high %v487_v3, %v489_v4  ;;  %v689_v9 = vrot.slane %v683_v5, 4  ;;  %v688_v12 = vrot.slane %v681_v6, 4 }
  0xff   : > { %850 = vmatprep.subr.bf16.mxu0 %v1136_v8  ;;  %v692_v15 = vsel %vm484_vm1, %v688_v12, %v689_v9 }
 0x100   : > { %v687_v13 = vpop.permute.xlu1 %686  ;;  %851 = vmatpush1.bf16.msra.mxu0 %v1135_v7  ;;  %v685_v14 = vpop.permute.xlu0 %684  ;;  %v694_v21 = vsel %vm693_vm9, %v681_v6, %v692_v15 }
 0x101   : > { %v691_v16 = vrot.slane %v687_v13, 4  ;;  %v690_v19 = vrot.slane %v685_v14, 4 }
 0x103   : > { %v695_v20 = vsel %vm484_vm1, %v690_v19, %v691_v16 }
 0x104   : > { %v696_v22 = vsel %vm693_vm9, %v685_v14, %v695_v20 }
 0x105   : > { %v1151_v23 = vcombine.low %v694_v21, %v696_v22  ;;  %v1152_v24 = vcombine.high %v694_v21, %v696_v22 }
 0x107   : > { %866 = vmatprep.subr.bf16.mxu0 %v1152_v24 }
 0x108   : > { %867 = vmatpush2.bf16.msra.mxu0 %v1151_v23 }
 0x10b   : > { %869 = vmatmul.mubr.bf16.vlgmr.msra.gmra.mxu0 %v1240_v25 }
 0x10d   : > { %v726_v32 = vpop.permute.xlu0 %725  ;;  %v731_v42 = vpop.permute.xlu1 %730 }
 0x1cb   : > { %v870_v36 = vpop.f32.mrf.mxu0 }
 0x1cc   : > { %v871_v38 = vadd.f32 %v870_v36, %v726_v32 }
 0x1cd   : > { %v872_v41 = vpop.f32.mrf.mxu0 }
 0x1ce   : > { %v885_v10 = vadd.f32 %v881_v35, %v871_v38  ;;  %v873_v11 = vadd.f32 %v872_v41, %v726_v32 }
 0x1cf   : > { %v874_v43 = vpop.f32.mrf.mxu0 }
 0x1d0   : > { %v889_v44 = vmax.f32 %v885_v10, 0.0  ;;  %v886_v45 = vadd.f32 %v882_v17, %v873_v11  ;;  %v875_v46 = vadd.f32 %v874_v43, %v731_v42 }
 0x1d1   : > { %v876_v33 = vpop.f32.mrf.mxu0 }
 0x1d2   : > { %v890_v48 = vmax.f32 %v886_v45, 0.0  ;;  %v887_v49 = vadd.f32 %v883_v18, %v875_v46  ;;  %v877_v50 = vadd.f32 %v876_v33, %v731_v42  ;;  %v906_v51 = vsel %vm904_vm11, %v889_v44, 0.0 }
 0x1d4   : > { %v907_v52 = vsel %vm905_vm12, %v890_v48, 0.0  ;;  %v891_v53 = vmax.f32 %v887_v49, 0.0  ;;  %v888_v54 = vadd.f32 %v884_v47, %v877_v50 }
 0x1d5   : > { %v1169_v55 = vpack.c.bf16 %v907_v52, %v906_v51 }
 0x1d6   : > { %v892_v56 = vmax.f32 %v888_v54, 0.0  ;;  %v908_v57 = vsel %vm904_vm11, %v891_v53, 0.0 }
 0x1d7   : > { %922 = vst [vmem:[%s1421_s15] sm:$0xff] %v1169_v55  ;;  %930 = sbr.rel (!%p1388_p6) target bundleno = 484 (0x1e4), region = 154 }
 0x1d8   : > { %v909_v58 = vsel %vm905_vm12, %v892_v56, 0.0 }
 0x1d9   : > { %v1170_v59 = vpack.c.bf16 %v909_v58, %v908_v57 }
 0x1db   : > { %923 = vst [vmem:[%s1421_s15 + $0x8] sm:$0xff] %v1170_v59 }
 0x1de   : > { %v967_v60 = vld [vmem:[%s1421_s15] sm:$0xff] }
 0x1df   : > { %1159 = vst [vmem:[%s1030_s6 + $0x8] sm:$0xff] %v967_v60 }
 0x1e2   : > { %v969_v61 = vld [vmem:[%s1421_s15 + $0x8] sm:$0xff] }
 0x1e3   : > { %1160 = vst [vmem:[%s1030_s6 + $0x38] sm:$0xff] %v969_v61 }
 0x1e4 PF: > { %s15_s24 = sadd.s32 1, %s1299_s24   ;;  %s1567_s30 = sld [smem:[#allocation10_spill]] }
 0x1e5   : > { %p12_p5 = scmp.ge.s32.totalorder %s15_s24, 6   ;;  %s1568_s10 = sld [smem:[#allocation11_spill]] }
 0x1e6   : > { %s1569_s18 = smov %s1279_s19  ;;  %s1570_s19 = smov %s1396_s12 }
 0x1e7   : > { %s1571_s20 = smov %s1291_s22  ;;  %s1572_s21 = smov %s1295_s23 }
 0x1e8   :  { %14 = sbr.rel (!%p12_p5) target bundleno = 6 (0x6), region = 249 }
 0x1ea   : > { %s1573_s22 = smov %s1567_s30 }
 0x1eb   : > { %s1574_s23 = smov %s1568_s10 }
 0x1ed   :  { %986 = vsyncmov [#allocation4] }
 0x1f0   :  { %s987_s8 = vpop.sfrf %986 }
 0x1f1   :  { %p1163_p6 = scmp.ne.s32.totalorder %s987_s8, 0 }
 0x1f3   :  { %991 = shalt.err (%p1163_p6)  }
 0x1f4   :  { %993 = vsyncmov [#allocation4 + $0x1] }
 0x1f7   :  { %s994_s15 = vpop.sfrf %993 }
 0x1f8   :  { %p1164_p7 = scmp.ne.s32.totalorder %s994_s15, 0 }
 0x1fa   :  { %998 = shalt.err (%p1164_p7)  }

// kernel: resnet_cifar_forward.30
= control target key start
LH: loop header
LB: loop body
LE: loop exit
PB: predicated region body
PF: predicated region fallthrough
CT: control target
= control target key end

     0   :  { %s894_s15 = smov 0   ;;  %s896_s16 = smov 0   ;;  %s1046_s0 = inlined_call_operand.vmem [shape: bf16[16,1536], index: 0, kind: input, shape index: {}]   ;;  %s1047_s1 = inlined_call_operand.vmem [shape: bf16[32,16], index: 1, kind: input, shape index: {}]   ;;  %s1048_s2 = inlined_call_operand.vmem [shape: f32[32,1], index: 2, kind: input, shape index: {}]   ;;  %s1049_s3 = inlined_call_operand.vmem [shape: f32[1,1024], index: 3, kind: input, shape index: {}]   ;;  %s1050_s4 = inlined_call_operand.vmem [shape: bf16[32,1536], index: 4, kind: output, shape index: {}]  }
   0x1   :  { %s898_s17 = smov 0   ;;  %s900_s18 = smov 0  }
   0x2   :  { %s902_s19 = smov 0   ;;  %s904_s20 = smov 0  }
   0x3   :  { %s906_s21 = smov 0  }
   0x4 LB: > { %s23_s22 = sadd.s32 1, %s858_s19  ;;  %s26_s23 = sadd.s32 1, %s862_s20  ;;  %s866_s21 = sphi %s906_s21, %s14_s21   ;;  %s862_s20 = sphi %s904_s20, %s1061_s20   ;;  %s858_s19 = sphi %s902_s19, %s1060_s19   ;;  %s854_s18 = sphi %s900_s18, %s1059_s18   ;;  %s850_s17 = sphi %s898_s17, %s1058_s17   ;;  %s846_s16 = sphi %s896_s16, %s1057_s16   ;;  %s842_s15 = sphi %s894_s15, %s1056_s15  }
   0x5   : > { %p24_p0 = scmp.ge.s32.totalorder %s23_s22, 2  ;;  %s686_s24 = sadd.s32 4294967295, %s866_s21  }
   0x6   : > { %s690_s25 = sshll.u32 %s862_s20, 1  ;;  %p121_p1 = scmp.ne.s32.totalorder %s846_s16, %s842_s15 }
   0x7   : > { %s1063_s22 = smov (%p24_p0, %s23_s22), 0  ;;  %s1065_s23 = smov (!%p24_p0, %s26_s23), %s862_s20 }
   0x8   : > { %p28_p2 = scmp.ge.s32.totalorder %s1065_s23, 2  ;;  %s103_s26 = sadd.s32 %s858_s19, %s690_s25 }
   0x9   : > { %p122_p3 = scmp.eq.s32.totalorder %s686_s24, 3  ;;  %p694_p4 = scmp.ge.s32.totalorder %s866_s21, 1 }
   0xa   : > { %s1067_s23 = smov (%p28_p2, %s1065_s23), 0  ;;  %p164_p6 = scmp.lt.s32.totalorder %s866_s21, 5 }
   0xb   : > { %1052 = sst [smem:[#allocation9_spill]] %s1067_s23  ;;  %p942_p5 = por %p122_p3, %p121_p1 }
   0xc   : > { %s104_s28 = sadd.s32 1, %s103_s26  ;;  %s691_s29 = sshll.u32 %s1067_s23, 1 }
   0xd   : > { %s106_s30 = sadd.s32 %s691_s29, %s1063_s22  ;;  %p165_p7 = pnand %p694_p4, %p164_p6 }
   0xe   : > { %s107_s5 = sadd.s32 1, %s106_s30  ;;  %s111_s7 = sadd.s32 1, %s846_s16 }
   0xf   : > { %s108_s6 = ssub.s32 %s104_s28, %s107_s5  ;;  %168 = sbr.rel (%p165_p7) target bundleno = 278 (0x116), region = 32 }
  0x10   : > { %p109_p8 = scmp.eq.s32.totalorder %s108_s6, 0  ;;  %s185_s9 = sand.u32 (!%p165_p7), 1, %s842_s15  }
  0x11   : > { %s696_s10 = sshll.u32 (!%p165_p7), %s854_s18, 1  ;;  %s695_s11 = sshll.u32 (!%p165_p7), %s185_s9, 5 }
  0x12   : > { %s951_s8 = scalar_select %p109_p8, %s846_s16, %s111_s7  }
  0x13   : > { %s956_s12 = sadd.s32 (!%p165_p7), %s850_s17, %s696_s10  ;;  %s965_s26 = scalar_lea.vmem (!%p165_p7), [#allocation5], %s695_s11 }
  0x14   : > { %s697_s13 = sshll.u32 %s956_s12, 1  ;;  %p699_p10 = scmp.ne.s32.totalorder %s850_s17, 0 }
  0x15   : > { %p191_p9 = scmp.lt.s32.totalorder %s697_s13, 7  ;;  %s700_s15 = sshll.u32 (!%p699_p10), %s956_s12, 8 }
  0x16   : > { %207 = sbr.rel (%p699_p10) target bundleno = 31 (0x1f), region = 36  ;;  %s209_s18 = sadd.s32 (!%p699_p10), 128, %s700_s15 }
  0x17   : > { %s1069_s13 = smov (!%p191_p9, %s697_s13), 7  ;;  %s210_s28 = sshra.s32 (!%p699_p10), %s209_s18, 7 }
  0x18   : > { %s701_s29 = sshll.u32 (!%p699_p10), %s210_s28, 2 }
  0x19   : > { %s213_s6 = scalar_lea.vmem (!%p699_p10), %s1046_s0, %s701_s29 }
  0x1b   : > { %v249_v0 = vld [vmem:[%s213_s6] sm:$0xff]  ;;  %v251_v1 = vld [vmem:[%s213_s6 + $0x8] sm:$0xff]  ;;  %v253_v2 = vld [vmem:[%s213_s6 + $0x30] sm:$0xff] }
  0x1c   : > { %250 = vst [vmem:[#allocation2] sm:$0xff] %v249_v0  ;;  %252 = vst [vmem:[#allocation2 + $0x8] sm:$0xff] %v251_v1  ;;  %v255_v3 = vld [vmem:[%s213_s6 + $0x38] sm:$0xff] }
  0x1d   : > { %254 = vst [vmem:[#allocation2 + $0x10] sm:$0xff] %v253_v2  ;;  %256 = vst [vmem:[#allocation2 + $0x18] sm:$0xff] %v255_v3 }
  0x1e   : > { %264 = vsyncadd [#allocation4], 512 }
  0x1f PF: > { %s265_s7 = sadd.s32 1, %s850_s17 }
  0x20   : > { %p702_p11 = scmp.ge.s32.totalorder %s265_s7, 2 }
  0x21   : > { %p271_p12 = scmp.lt.s32.totalorder (!%p702_p11), %s265_s7, 0  ;;  %s272_s9 = ssub.s32 (!%p702_p11), 0, %s265_s7 }
  0x22   : > { %269 = sbr.rel (%p702_p11) target bundleno = 48 (0x30), region = 74  ;;  %s703_s10 = smin.u32 (!%p702_p11), %s272_s9, %s265_s7 }
  0x23   : > { %s736_s11 = sshll.u32 (!%p702_p11), %s956_s12, 8  ;;  %s274_s14 = sand.u32 (!%p702_p11), 1, %s703_s10  }
  0x24   : > { %s737_s24 = sadd.s32 (!%p702_p11), 256, %s736_s11  ;;  %s275_s15 = ssub.s32 (!%p702_p11), 0, %s274_s14 }
  0x25   : > { %s284_s18 = sadd.s32 (!%p702_p11), 128, %s737_s24 }
  0x26   : > { %s285_s28 = sshra.s32 (!%p702_p11), %s284_s18, 7 }
  0x27   : > { %s1071_s15 = smov (!%p271_p12, %s275_s15), %s274_s14  ;;  %s707_s30 = sshll.u32 %s285_s28, 2 }
  0x28   : > { %p705_p13 = scmp.lt.s32.totalorder %s1071_s15, 0  ;;  %s281_s29 = sadd.s32 2, %s1071_s15 }
  0x29   : > { %s288_s25 = scalar_lea.vmem %s1046_s0, %s707_s30 }
  0x2a   : > { %s1073_s29 = smov (!%p705_p13, %s281_s29), %s1071_s15  ;;  %v328_v4 = vld [vmem:[%s288_s25] sm:$0xff]  ;;  %v330_v5 = vld [vmem:[%s288_s25 + $0x8] sm:$0xff]  ;;  %v332_v6 = vld [vmem:[%s288_s25 + $0x30] sm:$0xff] }
  0x2b   : > { %s738_s23 = sshll.u32 %s1073_s29, 5  ;;  %v334_v7 = vld [vmem:[%s288_s25 + $0x38] sm:$0xff]  ;;  %s292_s9 = scalar_lea.sflag [#allocation4], %s1073_s29 }
  0x2c   : > { %s291_s7 = scalar_lea.vmem [#allocation2], %s738_s23 }
  0x2d   : > { %329 = vst [vmem:[%s291_s7] sm:$0xff] %v328_v4  ;;  %331 = vst [vmem:[%s291_s7 + $0x8] sm:$0xff] %v330_v5 }
  0x2e   : > { %333 = vst [vmem:[%s291_s7 + $0x10] sm:$0xff] %v332_v6  ;;  %335 = vst [vmem:[%s291_s7 + $0x18] sm:$0xff] %v334_v7 }
  0x2f   : > { %343 = vsyncadd %s292_s9, 512 }
  0x30 PF: > { %p344_p0 = scmp.lt.s32.totalorder %s850_s17, 0  ;;  %s345_s10 = ssub.s32 0, %s850_s17 }
  0x31   : > { %s710_s11 = smin.u32 %s850_s17, %s345_s10 }
  0x32   : > { %s347_s14 = sand.u32 1, %s710_s11  }
  0x33   : > { %s348_s24 = ssub.s32 0, %s347_s14 }
  0x34   : > { %s1075_s24 = smov (!%p344_p0, %s348_s24), %s347_s14 }
  0x35   : > { %p712_p1 = scmp.lt.s32.totalorder %s1075_s24, 0  ;;  %s354_s15 = sadd.s32 2, %s1075_s24 }
  0x37   : > { %s1077_s15 = smov (!%p712_p1, %s354_s15), %s1075_s24 }
  0x38   : > { %s356_s23 = scalar_lea.sflag [#allocation4], %s1077_s15 }
  0x39   : > { %838 = dma.done.wait %s356_s23, 512 }
  0x3a   : > { %839 = vsyncadd %s356_s23, 4294966784  ;;  %s739_s25 = sshll.u32 %s1077_s15, 5  ;;  %v868_v8 = vmov 0   ;;  %v808_v11 = vld [vmem:[%s1047_s1] sm:$0xff]   ;;  %vm418_vm0 = vcmask 130048   ;;  %v809_v12 = vld [vmem:[%s1047_s1 + $0x8] sm:$0xff]   ;;  %v481_v17 = vlaneseq }
  0x3b   : > { %457 = vmatprep.mubr.bf16.mxu0 %v868_v8  ;;  %467 = vmatprep.mubr.bf16.mxu1 %v868_v8  ;;  %s363_s18 = scalar_lea.vmem [#allocation2], %s739_s25  ;;  %v376_v13 = vld [vmem:[%s1048_s2 + $0x10] sm:$0xff]  ;;  %v374_v14 = vld [vmem:[%s1048_s2] sm:$0xff]  ;;  %v377_v15 = vld [vmem:[%s1048_s2 + $0x18] sm:$0xff]  ;;  %s1054_s25 = scalar_lea.vmem %s1049_s3, %s1069_s13 }
  0x3c   : > { %804 = vset.pattern.permute.xlu1 %v868_v8  ;;  %803 = vset.pattern.permute.xlu0 %v868_v8  ;;  %v805_v9 = vld [vmem:[%s363_s18 + $0x8] ss:$16 sps:$4 sm:$0xff]   ;;  %v807_v10 = vld [vmem:[%s363_s18 + $0x4] ss:$16 sps:$4 sm:$0xff]   ;;  %v478_v18 = vld [vmem:[%s1054_s25] sm:$0x3] }
  0x3d   : > { %439 = vmatprep.subr.bf16.mxu0 %v805_v9  ;;  %744 = vmatprep.subr.bf16.mxu1 %v805_v9  ;;  %v375_v16 = vld [vmem:[%s1048_s2 + $0x8] sm:$0xff]  ;;  %v482_v19 = vshrl.u32 %v481_v17, 7  ;;  %vm479_vm1 = vcmp.gt.f32.partialorder %v478_v18, 0.0  ;;  %s727_s13 = sshll.u32 (%p942_p5), %s956_s12, 3 }
  0x3e   : > { %440 = vmatpush1.bf16.msra.mxu0 %v807_v10  ;;  %745 = vmatpush1.bf16.msra.mxu1 %v807_v10  ;;  %v480_v21 = vsel %vm479_vm1, 1, %v868_v8  ;;  %s630_s28 = scalar_lea.vmem (%p942_p5), %s1050_s4, %s727_s13 }
  0x3f   : > { %390 = vperm.xlu1 %804, %v376_v13   ;;  %380 = vperm.xlu0 %803, %v374_v14   ;;  %v483_v20 = vsub.s32 0, %v482_v19  ;;  %v487_v22 = vsub.s32 1, %v482_v19 }
  0x41   : > { %719 = vmatmul.mubr.msk.bf16.vlgmr.msra.gmra.mxu0 %vm418_vm0, %v808_v11  ;;  %720 = vmatmul.mubr.msk.bf16.vlgmr.msra.gmra.mxu1 %vm418_vm0, %v809_v12  ;;  %v484_v25 = vrot.slane %v480_v21, %v483_v20  ;;  %v488_v26 = vrot.slane %v480_v21, %v487_v22 }
  0x43   : > { %395 = vperm.xlu1 %804, %v377_v15   ;;  %385 = vperm.xlu0 %803, %v375_v16   ;;  %vm489_vm2 = vcmp.eq.s32.totalorder %v484_v25, 1  ;;  %vm490_vm3 = vcmp.eq.s32.totalorder %v488_v26, 1 }
  0xba   : > { %v391_v23 = vpop.permute.xlu1 %390  ;;  %v381_v24 = vpop.permute.xlu0 %380 }
  0xbe   : > { %v396_v33 = vpop.permute.xlu1 %395  ;;  %v386_v34 = vpop.permute.xlu0 %385 }
 0x101   : > { %v459_v27 = vpop.f32.mrf.mxu0  ;;  %v469_v28 = vpop.f32.mrf.mxu1 }
 0x102   : > { %v460_v29 = vadd.f32 %v459_v27, %v381_v24  ;;  %v470_v30 = vadd.f32 %v469_v28, %v391_v23 }
 0x103   : > { %v461_v31 = vpop.f32.mrf.mxu0  ;;  %v471_v32 = vpop.f32.mrf.mxu1 }
 0x104   : > { %v462_v35 = vadd.f32 %v461_v31, %v381_v24  ;;  %v472_v36 = vadd.f32 %v471_v32, %v391_v23  ;;  %v491_v37 = vsel %vm489_vm2, %v460_v29, 0.0  ;;  %v495_v38 = vsel %vm489_vm2, %v470_v30, 0.0 }
 0x105   : > { %v463_v39 = vpop.f32.mrf.mxu0  ;;  %v473_v40 = vpop.f32.mrf.mxu1 }
 0x106   : > { %v492_v41 = vsel %vm490_vm3, %v462_v35, 0.0  ;;  %v496_v42 = vsel %vm490_vm3, %v472_v36, 0.0  ;;  %v464_v43 = vadd.f32 %v463_v39, %v386_v34  ;;  %v474_v44 = vadd.f32 %v473_v40, %v396_v33 }
 0x107   : > { %v740_v45 = vpack.c.bf16 %v492_v41, %v491_v37  ;;  %v742_v46 = vpack.c.bf16 %v496_v42, %v495_v38  ;;  %v465_v47 = vpop.f32.mrf.mxu0  ;;  %v475_v48 = vpop.f32.mrf.mxu1 }
 0x108   : > { %v466_v49 = vadd.f32 %v465_v47, %v386_v34  ;;  %v476_v50 = vadd.f32 %v475_v48, %v396_v33  ;;  %v493_v51 = vsel %vm489_vm2, %v464_v43, 0.0  ;;  %v497_v52 = vsel %vm489_vm2, %v474_v44, 0.0 }
 0x109   : > { %523 = vst [vmem:[%s965_s26] sm:$0xff] %v740_v45  ;;  %525 = vst [vmem:[%s965_s26 + $0x10] sm:$0xff] %v742_v46  ;;  %533 = sbr.rel (!%p942_p5) target bundleno = 278 (0x116), region = 112 }
 0x10a   : > { %v494_v53 = vsel %vm490_vm3, %v466_v49, 0.0  ;;  %v498_v54 = vsel %vm490_vm3, %v476_v50, 0.0 }
 0x10b   : > { %v741_v55 = vpack.c.bf16 %v494_v53, %v493_v51  ;;  %v743_v56 = vpack.c.bf16 %v498_v54, %v497_v52 }
 0x10d   : > { %524 = vst [vmem:[%s965_s26 + $0x8] sm:$0xff] %v741_v55  ;;  %526 = vst [vmem:[%s965_s26 + $0x18] sm:$0xff] %v743_v56 }
 0x110   : > { %v574_v57 = vld [vmem:[%s965_s26] sm:$0xff]  ;;  %v578_v59 = vld [vmem:[%s965_s26 + $0x10] sm:$0xff] }
 0x111   : > { %728 = vst [vmem:[%s630_s28 + $0x8] sm:$0xff] %v574_v57  ;;  %730 = vst [vmem:[%s630_s28 + $0x68] sm:$0xff] %v578_v59 }
 0x114   : > { %v576_v58 = vld [vmem:[%s965_s26 + $0x8] sm:$0xff]  ;;  %v580_v60 = vld [vmem:[%s965_s26 + $0x18] sm:$0xff] }
 0x115   : > { %729 = vst [vmem:[%s630_s28 + $0x38] sm:$0xff] %v576_v58  ;;  %731 = vst [vmem:[%s630_s28 + $0x98] sm:$0xff] %v580_v60 }
 0x116 PF: > { %s14_s21 = sadd.s32 1, %s866_s21   ;;  %s1055_s27 = sld [smem:[#allocation9_spill]] }
 0x117   : > { %p11_p2 = scmp.ge.s32.totalorder %s14_s21, 6   ;;  %s1056_s15 = smov %s846_s16 }
 0x118   : > { %s1057_s16 = smov %s951_s8  ;;  %s1058_s17 = smov %s858_s19 }
 0x119   : > { %s1059_s18 = smov %s862_s20  ;;  %s1060_s19 = smov %s1063_s22 }
 0x11a   :  { %13 = sbr.rel (!%p11_p2) target bundleno = 4 (0x4), region = 199 }
 0x11c   : > { %s1061_s20 = smov %s1055_s27 }
 0x11f   :  { %597 = vsyncmov [#allocation4] }
 0x122   :  { %s598_s12 = vpop.sfrf %597 }
 0x123   :  { %p734_p3 = scmp.ne.s32.totalorder %s598_s12, 0 }
 0x125   :  { %602 = shalt.err (%p734_p3)  }
 0x126   :  { %604 = vsyncmov [#allocation4 + $0x1] }
 0x129   :  { %s605_s26 = vpop.sfrf %604 }
 0x12a   :  { %p735_p4 = scmp.ne.s32.totalorder %s605_s26, 0 }
 0x12c   :  { %609 = shalt.err (%p735_p4)  }

// kernel: resnet_cifar_forward.22
= control target key start
LH: loop header
LB: loop body
LE: loop exit
PB: predicated region body
PF: predicated region fallthrough
CT: control target
= control target key end

     0   :  { %s1196_s15 = smov 0   ;;  %s1198_s16 = smov 0   ;;  %s1393_s0 = inlined_call_operand.vmem [shape: bf16[16,1536], index: 0, kind: input, shape index: {}]   ;;  %s1394_s1 = inlined_call_operand.vmem [shape: bf16[16,144], index: 1, kind: input, shape index: {}]   ;;  %s1395_s2 = inlined_call_operand.vmem [shape: f32[16,1], index: 2, kind: input, shape index: {}]   ;;  %s1396_s3 = inlined_call_operand.vmem [shape: f32[1,1024], index: 3, kind: input, shape index: {}]   ;;  %s1397_s4 = inlined_call_operand.vmem [shape: bf16[16,1536], index: 4, kind: output, shape index: {}]  }
   0x1   :  { %s1200_s17 = smov 0   ;;  %s1202_s18 = smov 0  }
   0x2   :  { %s1204_s19 = smov 0   ;;  %s1206_s20 = smov 0  }
   0x3   :  { %s1208_s21 = smov 0  }
   0x4 LB: > { %s23_s22 = sadd.s32 1, %s1152_s19  ;;  %s26_s23 = sadd.s32 1, %s1156_s20  ;;  %s1160_s21 = sphi %s1208_s21, %s14_s21   ;;  %s1156_s20 = sphi %s1206_s20, %s1408_s20   ;;  %s1152_s19 = sphi %s1204_s19, %s1407_s19   ;;  %s1148_s18 = sphi %s1202_s18, %s1406_s18   ;;  %s1144_s17 = sphi %s1200_s17, %s1405_s17   ;;  %s1140_s16 = sphi %s1198_s16, %s1404_s16   ;;  %s1136_s15 = sphi %s1196_s15, %s1403_s15  }
   0x5   : > { %p24_p0 = scmp.ge.s32.totalorder %s23_s22, 2  ;;  %s965_s24 = sadd.s32 4294967295, %s1160_s21  }
   0x6   : > { %s969_s25 = sshll.u32 %s1156_s20, 1  ;;  %p121_p1 = scmp.ne.s32.totalorder %s1140_s16, %s1136_s15 }
   0x7   : > { %s1410_s22 = smov (%p24_p0, %s23_s22), 0  ;;  %s1412_s23 = smov (!%p24_p0, %s26_s23), %s1156_s20 }
   0x8   : > { %p28_p2 = scmp.ge.s32.totalorder %s1412_s23, 2  ;;  %s103_s26 = sadd.s32 %s1152_s19, %s969_s25 }
   0x9   : > { %p122_p3 = scmp.eq.s32.totalorder %s965_s24, 3  ;;  %p973_p4 = scmp.ge.s32.totalorder %s1160_s21, 1 }
   0xa   : > { %s1414_s23 = smov (%p28_p2, %s1412_s23), 0  ;;  %p164_p6 = scmp.lt.s32.totalorder %s1160_s21, 5 }
   0xb   : > { %1399 = sst [smem:[#allocation9_spill]] %s1414_s23  ;;  %p1244_p5 = por %p122_p3, %p121_p1 }
   0xc   : > { %s104_s28 = sadd.s32 1, %s103_s26  ;;  %s970_s29 = sshll.u32 %s1414_s23, 1 }
   0xd   : > { %s106_s30 = sadd.s32 %s970_s29, %s1410_s22  ;;  %p165_p7 = pnand %p973_p4, %p164_p6 }
   0xe   : > { %s107_s5 = sadd.s32 1, %s106_s30  ;;  %s111_s7 = sadd.s32 1, %s1140_s16 }
   0xf   : > { %s108_s6 = ssub.s32 %s104_s28, %s107_s5  ;;  %168 = sbr.rel (%p165_p7) target bundleno = 460 (0x1cc), region = 32 }
  0x10   : > { %p109_p8 = scmp.eq.s32.totalorder %s108_s6, 0  ;;  %s185_s9 = sand.u32 (!%p165_p7), 1, %s1136_s15  }
  0x11   : > { %s975_s10 = sshll.u32 (!%p165_p7), %s1148_s18, 1  ;;  %s974_s11 = sshll.u32 (!%p165_p7), %s185_s9, 4 }
  0x12   : > { %s1253_s8 = scalar_select %p109_p8, %s1140_s16, %s111_s7  }
  0x13   : > { %s1258_s12 = sadd.s32 (!%p165_p7), %s1144_s17, %s975_s10  ;;  %s1267_s26 = scalar_lea.vmem (!%p165_p7), [#allocation5], %s974_s11 }
  0x14   : > { %s976_s13 = sshll.u32 %s1258_s12, 1  ;;  %p978_p10 = scmp.ne.s32.totalorder %s1144_s17, 0 }
  0x15   : > { %p191_p9 = scmp.lt.s32.totalorder %s976_s13, 7  ;;  %s979_s15 = sshll.u32 (!%p978_p10), %s1258_s12, 8 }
  0x16   : > { %207 = sbr.rel (%p978_p10) target bundleno = 31 (0x1f), region = 36  ;;  %s209_s18 = sadd.s32 (!%p978_p10), 128, %s979_s15 }
  0x17   : > { %s1416_s13 = smov (!%p191_p9, %s976_s13), 7  ;;  %s210_s28 = sshra.s32 (!%p978_p10), %s209_s18, 7 }
  0x18   : > { %s980_s29 = sshll.u32 (!%p978_p10), %s210_s28, 2 }
  0x19   : > { %s213_s6 = scalar_lea.vmem (!%p978_p10), %s1393_s0, %s980_s29 }
  0x1b   : > { %v249_v0 = vld [vmem:[%s213_s6] sm:$0xff]  ;;  %v251_v1 = vld [vmem:[%s213_s6 + $0x8] sm:$0xff]  ;;  %v253_v2 = vld [vmem:[%s213_s6 + $0x30] sm:$0xff] }
  0x1c   : > { %250 = vst [vmem:[#allocation2] sm:$0xff] %v249_v0  ;;  %252 = vst [vmem:[#allocation2 + $0x8] sm:$0xff] %v251_v1  ;;  %v255_v3 = vld [vmem:[%s213_s6 + $0x38] sm:$0xff] }
  0x1d   : > { %254 = vst [vmem:[#allocation2 + $0x10] sm:$0xff] %v253_v2  ;;  %256 = vst [vmem:[#allocation2 + $0x18] sm:$0xff] %v255_v3 }
  0x1e   : > { %264 = vsyncadd [#allocation4], 512 }
  0x1f PF: > { %s265_s7 = sadd.s32 1, %s1144_s17 }
  0x20   : > { %p981_p11 = scmp.ge.s32.totalorder %s265_s7, 2 }
  0x21   : > { %p271_p12 = scmp.lt.s32.totalorder (!%p981_p11), %s265_s7, 0  ;;  %s272_s9 = ssub.s32 (!%p981_p11), 0, %s265_s7 }
  0x22   : > { %269 = sbr.rel (%p981_p11) target bundleno = 48 (0x30), region = 74  ;;  %s982_s10 = smin.u32 (!%p981_p11), %s272_s9, %s265_s7 }
  0x23   : > { %s1026_s11 = sshll.u32 (!%p981_p11), %s1258_s12, 8  ;;  %s274_s14 = sand.u32 (!%p981_p11), 1, %s982_s10  }
  0x24   : > { %s1027_s24 = sadd.s32 (!%p981_p11), 256, %s1026_s11  ;;  %s275_s15 = ssub.s32 (!%p981_p11), 0, %s274_s14 }
  0x25   : > { %s284_s18 = sadd.s32 (!%p981_p11), 128, %s1027_s24 }
  0x26   : > { %s285_s28 = sshra.s32 (!%p981_p11), %s284_s18, 7 }
  0x27   : > { %s1418_s15 = smov (!%p271_p12, %s275_s15), %s274_s14  ;;  %s986_s30 = sshll.u32 %s285_s28, 2 }
  0x28   : > { %p984_p13 = scmp.lt.s32.totalorder %s1418_s15, 0  ;;  %s281_s29 = sadd.s32 2, %s1418_s15 }
  0x29   : > { %s288_s25 = scalar_lea.vmem %s1393_s0, %s986_s30 }
  0x2a   : > { %s1420_s29 = smov (!%p984_p13, %s281_s29), %s1418_s15  ;;  %v328_v4 = vld [vmem:[%s288_s25] sm:$0xff]  ;;  %v330_v5 = vld [vmem:[%s288_s25 + $0x8] sm:$0xff]  ;;  %v332_v6 = vld [vmem:[%s288_s25 + $0x30] sm:$0xff] }
  0x2b   : > { %s1028_s23 = sshll.u32 %s1420_s29, 5  ;;  %v334_v7 = vld [vmem:[%s288_s25 + $0x38] sm:$0xff]  ;;  %s292_s9 = scalar_lea.sflag [#allocation4], %s1420_s29 }
  0x2c   : > { %s291_s7 = scalar_lea.vmem [#allocation2], %s1028_s23 }
  0x2d   : > { %329 = vst [vmem:[%s291_s7] sm:$0xff] %v328_v4  ;;  %331 = vst [vmem:[%s291_s7 + $0x8] sm:$0xff] %v330_v5 }
  0x2e   : > { %333 = vst [vmem:[%s291_s7 + $0x10] sm:$0xff] %v332_v6  ;;  %335 = vst [vmem:[%s291_s7 + $0x18] sm:$0xff] %v334_v7 }
  0x2f   : > { %343 = vsyncadd %s292_s9, 512 }
  0x30 PF: > { %p344_p0 = scmp.lt.s32.totalorder %s1144_s17, 0  ;;  %s345_s10 = ssub.s32 0, %s1144_s17 }
  0x31   : > { %s989_s11 = smin.u32 %s1144_s17, %s345_s10 }
  0x32   : > { %s347_s14 = sand.u32 1, %s989_s11  }
  0x33   : > { %s348_s24 = ssub.s32 0, %s347_s14 }
  0x34   : > { %s1422_s24 = smov (!%p344_p0, %s348_s24), %s347_s14 }
  0x35   : > { %p991_p1 = scmp.lt.s32.totalorder %s1422_s24, 0  ;;  %s354_s15 = sadd.s32 2, %s1422_s24 }
  0x37   : > { %s1424_s15 = smov (!%p991_p1, %s354_s15), %s1422_s24 }
  0x38   : > { %s1029_s23 = sshll.u32 %s1424_s15, 5  ;;  %s359_s18 = scalar_lea.sflag [#allocation4], %s1424_s15 }
  0x39   : > { %s1282_s25 = scalar_lea.vmem [#allocation2], %s1029_s23 }
  0x3a   : > { %1132 = dma.done.wait %s359_s18, 512 }
  0x3b   : > { %1133 = vsyncadd %s359_s18, 4294966784  ;;  %v1285_v8 = vld [vmem:[%s1282_s25 + $0x14] sm:$0xff]  ;;  %v1288_v9 = vld [vmem:[%s1282_s25 + $0x4] sm:$0xff]  ;;  %s1162_s17 = smov 110   ;;  %s1163_s28 = smov 111   ;;  %vm732_vm0 = vcmask 130048  }
  0x3c   : > { %555 = vrot.lane.b32.xlu1 %v1285_v8, %s1162_s17  ;;  %551 = vrot.lane.b32.xlu0 %v1288_v9, %s1162_s17  ;;  %v546_v10 = vld [vmem:[%s1282_s25 + $0x1c] sm:$0xf]  ;;  %v544_v11 = vld [vmem:[%s1282_s25 + $0xc] sm:$0xf]  ;;  %v1005_v15 = vcombine.high %v1288_v9, %v1285_v8  ;;  %s1164_s29 = smov 127   ;;  %v1004_v16 = vcombine.low %v1288_v9, %v1285_v8  ;;  %s1165_s30 = smov 1  }
  0x3d   : > { %v515_v12 = vld [vmem:[%s1282_s25 + $0xc] sm:$0xf]  ;;  %v517_v13 = vld [vmem:[%s1282_s25 + $0x1c] sm:$0xf]  ;;  %v453_v18 = vld [vmem:[%s1282_s25 + $0x8] sm:$0xf] }
  0x3e   : > { %v486_v14 = vld [vmem:[%s1282_s25 + $0xc] sm:$0xf]  ;;  %v488_v17 = vld [vmem:[%s1282_s25 + $0x1c] sm:$0xf]  ;;  %v452_v19 = vld [vmem:[%s1282_s25] sm:$0xff]  ;;  %s1166_s5 = smov 17  }
  0x3f   : > { %v455_v20 = vld [vmem:[%s1282_s25 + $0x18] sm:$0xf]  ;;  %v454_v21 = vld [vmem:[%s1282_s25 + $0x10] sm:$0xff]  ;;  %v424_v22 = vld [vmem:[%s1282_s25 + $0x8] sm:$0xf]  ;;  %s1167_s6 = smov 18  }
  0x40   : > { %557 = vrot.lane.b32.xlu1 %v546_v10, %s1162_s17  ;;  %553 = vrot.lane.b32.xlu0 %v544_v11, %s1162_s17  ;;  %v426_v23 = vld [vmem:[%s1282_s25 + $0x18] sm:$0xf]  ;;  %v395_v24 = vld [vmem:[%s1282_s25 + $0x8] sm:$0xf]  ;;  %s1168_s7 = smov 19   ;;  %s1169_s11 = smov 109  }
  0x41   : > { %v397_v25 = vld [vmem:[%s1282_s25 + $0x18] sm:$0xf]  ;;  %v365_v26 = vld [vmem:[%s1282_s25 + $0x8] sm:$0xf]  ;;  %v573_v28 = vld [vmem:[%s1282_s25 + $0xc] sm:$0xf] }
  0x42   : > { %v367_v27 = vld [vmem:[%s1282_s25 + $0x18] sm:$0xf]  ;;  %v1103_v29 = vld [vmem:[%s1394_s1 + $0x4] ss:$8 sps:$4 sm:$0xff]   ;;  %v575_v30 = vld [vmem:[%s1282_s25 + $0x1c] sm:$0xf] }
  0x43   : > { %1014 = vmatprep.mubr.msk.bf16.mxu0 %vm732_vm0, %v1103_v29  ;;  %v1170_v31 = vmov 0   ;;  %v621_v32 = vld [vmem:[%s1395_s2] sm:$0xff]  ;;  %v622_v33 = vld [vmem:[%s1395_s2 + $0x8] sm:$0xff]  ;;  %vm384_vm1 = vcmask 1043456   ;;  %vm564_vm2 = vcmask 900096   ;;  %vm535_vm3 = vcmask 908288  }
  0x44   : > { %524 = vrot.lane.b32.xlu1 %v515_v12, %s1163_s28  ;;  %522 = vrot.lane.b32.xlu0 %v1288_v9, %s1163_s28  ;;  %vm506_vm4 = vcmask 1039360   ;;  %vm473_vm5 = vcmask 7168   ;;  %vm444_vm6 = vcmask 138240   ;;  %vm415_vm7 = vcmask 146432  }
  0x45   : > { %1097 = vset.pattern.permute.xlu0 %v1170_v31  ;;  %1098 = vset.pattern.permute.xlu1 %v1170_v31  ;;  %vm386_vm8 = vcmask 154624   ;;  %vm593_vm9 = vcmask 891904  }
  0x48   : > { %528 = vrot.lane.b32.xlu1 %v517_v13, %s1163_s28  ;;  %526 = vrot.lane.b32.xlu0 %v1285_v8, %s1163_s28 }
  0x4c   : > { %495 = vrot.lane.b32.xlu1 %v486_v14, %s1164_s29  ;;  %493 = vrot.lane.b32.xlu0 %v1288_v9, %s1164_s29 }
  0x50   : > { %499 = vrot.lane.b32.xlu1 %v488_v17, %s1164_s29  ;;  %497 = vrot.lane.b32.xlu0 %v1285_v8, %s1164_s29  ;;  %s1401_s29 = scalar_lea.vmem %s1396_s3, %s1416_s13  ;;  %s1019_s13 = sshll.u32 (%p1244_p5), %s1258_s12, 3 }
  0x54   : > { %462 = vrot.lane.b32.xlu1 %v453_v18, %s1165_s30  ;;  %460 = vrot.lane.b32.xlu0 %v452_v19, %s1165_s30 }
  0x58   : > { %466 = vrot.lane.b32.xlu1 %v455_v20, %s1165_s30  ;;  %464 = vrot.lane.b32.xlu0 %v454_v21, %s1165_s30 }
  0x5c   : > { %433 = vrot.lane.b32.xlu1 %v424_v22, %s1166_s5  ;;  %431 = vrot.lane.b32.xlu0 %v452_v19, %s1166_s5 }
  0x60   : > { %437 = vrot.lane.b32.xlu1 %v426_v23, %s1166_s5  ;;  %435 = vrot.lane.b32.xlu0 %v454_v21, %s1166_s5 }
  0x64   : > { %404 = vrot.lane.b32.xlu1 %v395_v24, %s1167_s6  ;;  %402 = vrot.lane.b32.xlu0 %v452_v19, %s1167_s6 }
  0x68   : > { %408 = vrot.lane.b32.xlu1 %v397_v25, %s1167_s6  ;;  %406 = vrot.lane.b32.xlu0 %v454_v21, %s1167_s6  ;;  %s909_s6 = scalar_lea.vmem (%p1244_p5), %s1397_s4, %s1019_s13 }
  0x6c   : > { %374 = vrot.lane.b32.xlu1 %v365_v26, %s1168_s7  ;;  %372 = vrot.lane.b32.xlu0 %v452_v19, %s1168_s7 }
  0x70   : > { %378 = vrot.lane.b32.xlu1 %v367_v27, %s1168_s7  ;;  %376 = vrot.lane.b32.xlu0 %v454_v21, %s1168_s7 }
  0x74   : > { %582 = vrot.lane.b32.xlu1 %v573_v28, %s1169_s11  ;;  %580 = vrot.lane.b32.xlu0 %v1288_v9, %s1169_s11 }
  0x78   : > { %586 = vrot.lane.b32.xlu1 %v575_v30, %s1169_s11  ;;  %584 = vrot.lane.b32.xlu0 %v1285_v8, %s1169_s11 }
  0x7c   : > { %625 = vperm.xlu0 %1097, %v621_v32   ;;  %630 = vperm.xlu1 %1098, %v622_v33  }
  0xae   : > { %v556_v34 = vpop.permute.xlu1 %555  ;;  %v552_v35 = vpop.permute.xlu0 %551 }
  0xaf   : > { %v561_v38 = vrot.slane %v556_v34, 4  ;;  %v559_v39 = vrot.slane %v552_v35, 4 }
  0xb2   : > { %v558_v36 = vpop.permute.xlu1 %557  ;;  %v554_v37 = vpop.permute.xlu0 %553 }
  0xb3   : > { %v562_v40 = vrot.slane %v558_v36, 4  ;;  %v560_v41 = vrot.slane %v554_v37, 4 }
  0xb5   : > { %v563_v42 = vsel %vm384_vm1, %v559_v39, %v560_v41  ;;  %v566_v43 = vsel %vm384_vm1, %v561_v38, %v562_v40 }
  0xb6   : > { %v525_v44 = vpop.permute.xlu1 %524  ;;  %v523_v45 = vpop.permute.xlu0 %522  ;;  %v565_v46 = vsel %vm564_vm2, %v552_v35, %v563_v42  ;;  %v567_v47 = vsel %vm564_vm2, %v556_v34, %v566_v43 }
  0xb7   : > { %v531_v48 = vrot.slane %v525_v44, 4  ;;  %v530_v49 = vrot.slane %v523_v45, 4  ;;  %v1011_v50 = vcombine.high %v565_v46, %v567_v47  ;;  %v1010_v51 = vcombine.low %v565_v46, %v567_v47 }
  0xb9   : > { %736 = vmatprep.subr.bf16.mxu0 %v1011_v50  ;;  %v534_v54 = vsel %vm384_vm1, %v530_v49, %v531_v48 }
  0xba   : > { %737 = vmatpush1.bf16.msra.mxu0 %v1010_v51  ;;  %v529_v52 = vpop.permute.xlu1 %528  ;;  %v527_v53 = vpop.permute.xlu0 %526  ;;  %v536_v58 = vsel %vm535_vm3, %v523_v45, %v534_v54 }
  0xbb   : > { %v533_v55 = vrot.slane %v529_v52, 4  ;;  %v532_v56 = vrot.slane %v527_v53, 4 }
  0xbd   : > { %v537_v57 = vsel %vm384_vm1, %v532_v56, %v533_v55 }
  0xbe   : > { %v538_v59 = vsel %vm535_vm3, %v527_v53, %v537_v57  ;;  %v496_v60 = vpop.permute.xlu1 %495  ;;  %v494_v61 = vpop.permute.xlu0 %493 }
  0xbf   : > { %v1008_v62 = vcombine.low %v536_v58, %v538_v59  ;;  %v1009_v63 = vcombine.high %v536_v58, %v538_v59  ;;  %v502_v0 = vrot.slane %v496_v60, 4  ;;  %v501_v1 = vrot.slane %v494_v61, 4 }
  0xc1   : > { %738 = vmatprep.subr.bf16.mxu0 %v1009_v63  ;;  %v505_v4 = vsel %vm384_vm1, %v501_v1, %v502_v0 }
  0xc2   : > { %739 = vmatpush1.bf16.msra.mxu0 %v1008_v62  ;;  %v500_v2 = vpop.permute.xlu1 %499  ;;  %v498_v3 = vpop.permute.xlu0 %497  ;;  %v507_v10 = vsel %vm506_vm4, %v494_v61, %v505_v4 }
  0xc3   : > { %v504_v5 = vrot.slane %v500_v2, 4  ;;  %v503_v6 = vrot.slane %v498_v3, 4 }
  0xc5   : > { %v508_v7 = vsel %vm384_vm1, %v503_v6, %v504_v5 }
  0xc6   : > { %v509_v11 = vsel %vm506_vm4, %v498_v3, %v508_v7  ;;  %v463_v12 = vpop.permute.xlu1 %462  ;;  %v461_v13 = vpop.permute.xlu0 %460 }
  0xc7   : > { %v1006_v14 = vcombine.low %v507_v10, %v509_v11  ;;  %v1007_v17 = vcombine.high %v507_v10, %v509_v11  ;;  %v469_v18 = vrot.slane %v463_v12, 4  ;;  %v468_v19 = vrot.slane %v461_v13, 4 }
  0xc9   : > { %740 = vmatprep.subr.bf16.mxu0 %v1007_v17  ;;  %v472_v22 = vsel %vm384_vm1, %v468_v19, %v469_v18 }
  0xca   : > { %741 = vmatpush1.bf16.msra.mxu0 %v1006_v14  ;;  %v467_v20 = vpop.permute.xlu1 %466  ;;  %v465_v21 = vpop.permute.xlu0 %464  ;;  %v474_v26 = vsel %vm473_vm5, %v461_v13, %v472_v22 }
  0xcb   : > { %v471_v23 = vrot.slane %v467_v20, 4  ;;  %v470_v24 = vrot.slane %v465_v21, 4  ;;  %742 = vmatprep.subr.bf16.mxu0 %v1005_v15 }
  0xcd   : > { %v475_v25 = vsel %vm384_vm1, %v470_v24, %v471_v23  ;;  %v1101_v23 = vld [vmem:[%s1394_s1] ss:$8 sps:$4 sm:$0xff]   ;;  %v786_v24 = vlaneseq }
  0xce   : > { %v476_v27 = vsel %vm473_vm5, %v465_v21, %v475_v25  ;;  %743 = vmatpush1.bf16.msra.mxu0 %v1004_v16  ;;  %v434_v28 = vpop.permute.xlu1 %433  ;;  %v432_v29 = vpop.permute.xlu0 %431  ;;  %v783_v25 = vld [vmem:[%s1401_s29] sm:$0x3] }
  0xcf   : > { %v1002_v30 = vcombine.low %v474_v26, %v476_v27  ;;  %v1003_v32 = vcombine.high %v474_v26, %v476_v27  ;;  %v440_v33 = vrot.slane %v434_v28, 4  ;;  %v439_v34 = vrot.slane %v432_v29, 4 }
  0xd0   : > { %v787_v26 = vshrl.u32 %v786_v24, 7  ;;  %vm784_vm10 = vcmp.gt.f32.partialorder %v783_v25, 0.0 }
  0xd1   : > { %744 = vmatprep.subr.bf16.mxu0 %v1003_v32  ;;  %v443_v15 = vsel %vm384_vm1, %v439_v34, %v440_v33 }
  0xd2   : > { %745 = vmatpush1.bf16.msra.mxu0 %v1002_v30  ;;  %v438_v35 = vpop.permute.xlu1 %437  ;;  %v436_v36 = vpop.permute.xlu0 %435  ;;  %v445_v40 = vsel %vm444_vm6, %v432_v29, %v443_v15  ;;  %v788_v27 = vsub.s32 0, %v787_v26  ;;  %v792_v28 = vsub.s32 1, %v787_v26  ;;  %v785_v29 = vsel %vm784_vm10, 1, %v1170_v31 }
  0xd3   : > { %v442_v37 = vrot.slane %v438_v35, 4  ;;  %v441_v38 = vrot.slane %v436_v36, 4 }
  0xd4   : > { %v789_v33 = vrot.slane %v785_v29, %v788_v27  ;;  %v793_v34 = vrot.slane %v785_v29, %v792_v28 }
  0xd5   : > { %v446_v39 = vsel %vm384_vm1, %v441_v38, %v442_v37 }
  0xd6   : > { %v447_v8 = vsel %vm444_vm6, %v436_v36, %v446_v39  ;;  %v405_v9 = vpop.permute.xlu1 %404  ;;  %v403_v16 = vpop.permute.xlu0 %402  ;;  %vm794_vm11 = vcmp.eq.s32.totalorder %v789_v33, 1  ;;  %vm795_vm12 = vcmp.eq.s32.totalorder %v793_v34, 1 }
  0xd7   : > { %v1000_v41 = vcombine.low %v445_v40, %v447_v8  ;;  %v1001_v42 = vcombine.high %v445_v40, %v447_v8  ;;  %v411_v43 = vrot.slane %v405_v9, 4  ;;  %v410_v44 = vrot.slane %v403_v16, 4 }
  0xd9   : > { %746 = vmatprep.subr.bf16.mxu0 %v1001_v42  ;;  %v414_v47 = vsel %vm384_vm1, %v410_v44, %v411_v43 }
  0xda   : > { %747 = vmatpush1.bf16.msra.mxu0 %v1000_v41  ;;  %v409_v45 = vpop.permute.xlu1 %408  ;;  %v407_v46 = vpop.permute.xlu0 %406  ;;  %v416_v51 = vsel %vm415_vm7, %v403_v16, %v414_v47 }
  0xdb   : > { %v413_v48 = vrot.slane %v409_v45, 4  ;;  %v412_v49 = vrot.slane %v407_v46, 4 }
  0xdd   : > { %v417_v50 = vsel %vm384_vm1, %v412_v49, %v413_v48 }
  0xde   : > { %v418_v52 = vsel %vm415_vm7, %v407_v46, %v417_v50  ;;  %v375_v53 = vpop.permute.xlu1 %374  ;;  %v373_v54 = vpop.permute.xlu0 %372 }
  0xdf   : > { %v998_v55 = vcombine.low %v416_v51, %v418_v52  ;;  %v999_v56 = vcombine.high %v416_v51, %v418_v52  ;;  %v381_v57 = vrot.slane %v375_v53, 4  ;;  %v380_v58 = vrot.slane %v373_v54, 4 }
  0xe1   : > { %748 = vmatprep.subr.bf16.mxu0 %v999_v56  ;;  %v385_v61 = vsel %vm384_vm1, %v380_v58, %v381_v57 }
  0xe2   : > { %749 = vmatpush1.bf16.msra.mxu0 %v998_v55  ;;  %v379_v59 = vpop.permute.xlu1 %378  ;;  %v377_v60 = vpop.permute.xlu0 %376  ;;  %v387_v1 = vsel %vm386_vm8, %v373_v54, %v385_v61 }
  0xe3   : > { %v383_v62 = vrot.slane %v379_v59, 4  ;;  %v382_v63 = vrot.slane %v377_v60, 4 }
  0xe5   : > { %v388_v0 = vsel %vm384_vm1, %v382_v63, %v383_v62 }
  0xe6   : > { %v389_v2 = vsel %vm386_vm8, %v377_v60, %v388_v0  ;;  %v583_v3 = vpop.permute.xlu1 %582  ;;  %v581_v4 = vpop.permute.xlu0 %580 }
  0xe7   : > { %v996_v5 = vcombine.low %v387_v1, %v389_v2  ;;  %v997_v6 = vcombine.high %v387_v1, %v389_v2  ;;  %v589_v7 = vrot.slane %v583_v3, 4  ;;  %v588_v10 = vrot.slane %v581_v4, 4 }
  0xe9   : > { %750 = vmatprep.subr.bf16.mxu0 %v997_v6  ;;  %v592_v13 = vsel %vm384_vm1, %v588_v10, %v589_v7 }
  0xea   : > { %v587_v11 = vpop.permute.xlu1 %586  ;;  %751 = vmatpush1.bf16.msra.mxu0 %v996_v5  ;;  %v585_v12 = vpop.permute.xlu0 %584  ;;  %v594_v19 = vsel %vm593_vm9, %v581_v4, %v592_v13 }
  0xeb   : > { %v591_v14 = vrot.slane %v587_v11, 4  ;;  %v590_v17 = vrot.slane %v585_v12, 4 }
  0xed   : > { %v595_v18 = vsel %vm384_vm1, %v590_v17, %v591_v14 }
  0xee   : > { %v596_v20 = vsel %vm593_vm9, %v585_v12, %v595_v18 }
  0xef   : > { %v1012_v21 = vcombine.low %v594_v19, %v596_v20  ;;  %v1013_v22 = vcombine.high %v594_v19, %v596_v20 }
  0xf1   : > { %766 = vmatprep.subr.bf16.mxu0 %v1013_v22 }
  0xf2   : > { %767 = vmatpush2.bf16.msra.mxu0 %v1012_v21 }
  0xf5   : > { %769 = vmatmul.mubr.bf16.vlgmr.msra.gmra.mxu0 %v1101_v23 }
  0xf7   : > { %v626_v30 = vpop.permute.xlu0 %625  ;;  %v631_v15 = vpop.permute.xlu1 %630 }
 0x1b5   : > { %v770_v32 = vpop.f32.mrf.mxu0 }
 0x1b6   : > { %v771_v35 = vadd.f32 %v770_v32, %v626_v30 }
 0x1b7   : > { %v772_v36 = vpop.f32.mrf.mxu0 }
 0x1b8   : > { %v779_v37 = vmax.f32 %v771_v35, 0.0  ;;  %v773_v38 = vadd.f32 %v772_v36, %v626_v30 }
 0x1b9   : > { %v774_v39 = vpop.f32.mrf.mxu0 }
 0x1ba   : > { %v780_v40 = vmax.f32 %v773_v38, 0.0  ;;  %v775_v8 = vadd.f32 %v774_v39, %v631_v15  ;;  %v796_v16 = vsel %vm794_vm11, %v779_v37, 0.0 }
 0x1bb   : > { %v776_v9 = vpop.f32.mrf.mxu0 }
 0x1bc   : > { %v797_v41 = vsel %vm795_vm12, %v780_v40, 0.0  ;;  %v781_v31 = vmax.f32 %v775_v8, 0.0  ;;  %v777_v42 = vadd.f32 %v776_v9, %v631_v15 }
 0x1bd   : > { %v1030_v43 = vpack.c.bf16 %v797_v41, %v796_v16 }
 0x1be   : > { %v782_v44 = vmax.f32 %v777_v42, 0.0  ;;  %v798_v45 = vsel %vm794_vm11, %v781_v31, 0.0 }
 0x1bf   : > { %812 = vst [vmem:[%s1267_s26] sm:$0xff] %v1030_v43  ;;  %820 = sbr.rel (!%p1244_p5) target bundleno = 460 (0x1cc), region = 112 }
 0x1c0   : > { %v799_v46 = vsel %vm795_vm12, %v782_v44, 0.0 }
 0x1c1   : > { %v1031_v47 = vpack.c.bf16 %v799_v46, %v798_v45 }
 0x1c3   : > { %813 = vst [vmem:[%s1267_s26 + $0x8] sm:$0xff] %v1031_v47 }
 0x1c6   : > { %v857_v48 = vld [vmem:[%s1267_s26] sm:$0xff] }
 0x1c7   : > { %1020 = vst [vmem:[%s909_s6 + $0x8] sm:$0xff] %v857_v48 }
 0x1ca   : > { %v859_v49 = vld [vmem:[%s1267_s26 + $0x8] sm:$0xff] }
 0x1cb   : > { %1021 = vst [vmem:[%s909_s6 + $0x38] sm:$0xff] %v859_v49 }
 0x1cc PF: > { %s14_s21 = sadd.s32 1, %s1160_s21   ;;  %s1402_s27 = sld [smem:[#allocation9_spill]] }
 0x1cd   : > { %p11_p2 = scmp.ge.s32.totalorder %s14_s21, 6   ;;  %s1403_s15 = smov %s1140_s16 }
 0x1ce   : > { %s1404_s16 = smov %s1253_s8  ;;  %s1405_s17 = smov %s1152_s19 }
 0x1cf   : > { %s1406_s18 = smov %s1156_s20  ;;  %s1407_s19 = smov %s1410_s22 }
 0x1d0   :  { %13 = sbr.rel (!%p11_p2) target bundleno = 4 (0x4), region = 199 }
 0x1d2   : > { %s1408_s20 = smov %s1402_s27 }
 0x1d5   :  { %876 = vsyncmov [#allocation4] }
 0x1d8   :  { %s877_s12 = vpop.sfrf %876 }
 0x1d9   :  { %p1024_p3 = scmp.ne.s32.totalorder %s877_s12, 0 }
 0x1db   :  { %881 = shalt.err (%p1024_p3)  }
 0x1dc   :  { %883 = vsyncmov [#allocation4 + $0x1] }
 0x1df   :  { %s884_s26 = vpop.sfrf %883 }
 0x1e0   :  { %p1025_p4 = scmp.ne.s32.totalorder %s884_s26, 0 }
 0x1e2   :  { %888 = shalt.err (%p1025_p4)  }

// kernel: resnet_cifar_forward.29
= control target key start
LH: loop header
LB: loop body
LE: loop exit
PB: predicated region body
PF: predicated region fallthrough
CT: control target
= control target key end

     0   :  { %s1292_s15 = smov 0   ;;  %s1294_s16 = smov 0   ;;  %s1507_s0 = inlined_call_operand.vmem [shape: bf16[16,1536], index: 0, kind: input, shape index: {}]   ;;  %s1508_s1 = inlined_call_operand.vmem [shape: bf16[32,144], index: 1, kind: input, shape index: {}]   ;;  %s1509_s2 = inlined_call_operand.vmem [shape: f32[32,1], index: 2, kind: input, shape index: {}]   ;;  %s1510_s3 = inlined_call_operand.vmem [shape: f32[1,1024], index: 3, kind: input, shape index: {}]   ;;  %s1511_s4 = inlined_call_operand.vmem [shape: bf16[32,1536], index: 4, kind: output, shape index: {}]  }
   0x1   :  { %s1296_s17 = smov 0   ;;  %s1298_s18 = smov 0  }
   0x2   :  { %s1300_s19 = smov 0   ;;  %s1302_s20 = smov 0  }
   0x3   :  { %s1304_s21 = smov 0  }
   0x4 LB: > { %s23_s22 = sadd.s32 1, %s1248_s19  ;;  %s26_s23 = sadd.s32 1, %s1252_s20  ;;  %s1256_s21 = sphi %s1304_s21, %s14_s21   ;;  %s1252_s20 = sphi %s1302_s20, %s1522_s20   ;;  %s1248_s19 = sphi %s1300_s19, %s1521_s19   ;;  %s1244_s18 = sphi %s1298_s18, %s1520_s18   ;;  %s1240_s17 = sphi %s1296_s17, %s1519_s17   ;;  %s1236_s16 = sphi %s1294_s16, %s1518_s16   ;;  %s1232_s15 = sphi %s1292_s15, %s1517_s15  }
   0x5   : > { %p24_p0 = scmp.ge.s32.totalorder %s23_s22, 2  ;;  %s1031_s24 = sadd.s32 4294967295, %s1256_s21  }
   0x6   : > { %s1035_s25 = sshll.u32 %s1252_s20, 1  ;;  %p121_p1 = scmp.ne.s32.totalorder %s1236_s16, %s1232_s15 }
   0x7   : > { %s1524_s22 = smov (%p24_p0, %s23_s22), 0  ;;  %s1526_s23 = smov (!%p24_p0, %s26_s23), %s1252_s20 }
   0x8   : > { %p28_p2 = scmp.ge.s32.totalorder %s1526_s23, 2  ;;  %s103_s26 = sadd.s32 %s1248_s19, %s1035_s25 }
   0x9   : > { %p122_p3 = scmp.eq.s32.totalorder %s1031_s24, 3  ;;  %p1039_p4 = scmp.ge.s32.totalorder %s1256_s21, 1 }
   0xa   : > { %s1528_s23 = smov (%p28_p2, %s1526_s23), 0  ;;  %p164_p6 = scmp.lt.s32.totalorder %s1256_s21, 5 }
   0xb   : > { %1513 = sst [smem:[#allocation9_spill]] %s1528_s23  ;;  %p1340_p5 = por %p122_p3, %p121_p1 }
   0xc   : > { %s104_s28 = sadd.s32 1, %s103_s26  ;;  %s1036_s29 = sshll.u32 %s1528_s23, 1 }
   0xd   : > { %s106_s30 = sadd.s32 %s1036_s29, %s1524_s22  ;;  %p165_p7 = pnand %p1039_p4, %p164_p6 }
   0xe   : > { %s107_s5 = sadd.s32 1, %s106_s30  ;;  %s111_s7 = sadd.s32 1, %s1236_s16 }
   0xf   : > { %s108_s6 = ssub.s32 %s104_s28, %s107_s5  ;;  %168 = sbr.rel (%p165_p7) target bundleno = 460 (0x1cc), region = 32 }
  0x10   : > { %p109_p8 = scmp.eq.s32.totalorder %s108_s6, 0  ;;  %s185_s9 = sand.u32 (!%p165_p7), 1, %s1232_s15  }
  0x11   : > { %s1041_s10 = sshll.u32 (!%p165_p7), %s1244_s18, 1  ;;  %s1040_s11 = sshll.u32 (!%p165_p7), %s185_s9, 5 }
  0x12   : > { %s1349_s8 = scalar_select %p109_p8, %s1236_s16, %s111_s7  }
  0x13   : > { %s1354_s12 = sadd.s32 (!%p165_p7), %s1240_s17, %s1041_s10  ;;  %s1363_s26 = scalar_lea.vmem (!%p165_p7), [#allocation5], %s1040_s11 }
  0x14   : > { %s1042_s13 = sshll.u32 %s1354_s12, 1  ;;  %p1044_p10 = scmp.ne.s32.totalorder %s1240_s17, 0 }
  0x15   : > { %p191_p9 = scmp.lt.s32.totalorder %s1042_s13, 7  ;;  %s1045_s15 = sshll.u32 (!%p1044_p10), %s1354_s12, 8 }
  0x16   : > { %207 = sbr.rel (%p1044_p10) target bundleno = 31 (0x1f), region = 36  ;;  %s209_s18 = sadd.s32 (!%p1044_p10), 128, %s1045_s15 }
  0x17   : > { %s1530_s13 = smov (!%p191_p9, %s1042_s13), 7  ;;  %s210_s28 = sshra.s32 (!%p1044_p10), %s209_s18, 7 }
  0x18   : > { %s1046_s29 = sshll.u32 (!%p1044_p10), %s210_s28, 2 }
  0x19   : > { %s213_s6 = scalar_lea.vmem (!%p1044_p10), %s1507_s0, %s1046_s29 }
  0x1b   : > { %v249_v0 = vld [vmem:[%s213_s6] sm:$0xff]  ;;  %v251_v1 = vld [vmem:[%s213_s6 + $0x8] sm:$0xff]  ;;  %v253_v2 = vld [vmem:[%s213_s6 + $0x30] sm:$0xff] }
  0x1c   : > { %250 = vst [vmem:[#allocation2] sm:$0xff] %v249_v0  ;;  %252 = vst [vmem:[#allocation2 + $0x8] sm:$0xff] %v251_v1  ;;  %v255_v3 = vld [vmem:[%s213_s6 + $0x38] sm:$0xff] }
  0x1d   : > { %254 = vst [vmem:[#allocation2 + $0x10] sm:$0xff] %v253_v2  ;;  %256 = vst [vmem:[#allocation2 + $0x18] sm:$0xff] %v255_v3 }
  0x1e   : > { %264 = vsyncadd [#allocation4], 512 }
  0x1f PF: > { %s265_s7 = sadd.s32 1, %s1240_s17 }
  0x20   : > { %p1047_p11 = scmp.ge.s32.totalorder %s265_s7, 2 }
  0x21   : > { %p271_p12 = scmp.lt.s32.totalorder (!%p1047_p11), %s265_s7, 0  ;;  %s272_s9 = ssub.s32 (!%p1047_p11), 0, %s265_s7 }
  0x22   : > { %269 = sbr.rel (%p1047_p11) target bundleno = 48 (0x30), region = 74  ;;  %s1048_s10 = smin.u32 (!%p1047_p11), %s272_s9, %s265_s7 }
  0x23   : > { %s1099_s11 = sshll.u32 (!%p1047_p11), %s1354_s12, 8  ;;  %s274_s14 = sand.u32 (!%p1047_p11), 1, %s1048_s10  }
  0x24   : > { %s1100_s24 = sadd.s32 (!%p1047_p11), 256, %s1099_s11  ;;  %s275_s15 = ssub.s32 (!%p1047_p11), 0, %s274_s14 }
  0x25   : > { %s284_s18 = sadd.s32 (!%p1047_p11), 128, %s1100_s24 }
  0x26   : > { %s285_s28 = sshra.s32 (!%p1047_p11), %s284_s18, 7 }
  0x27   : > { %s1532_s15 = smov (!%p271_p12, %s275_s15), %s274_s14  ;;  %s1052_s30 = sshll.u32 %s285_s28, 2 }
  0x28   : > { %p1050_p13 = scmp.lt.s32.totalorder %s1532_s15, 0  ;;  %s281_s29 = sadd.s32 2, %s1532_s15 }
  0x29   : > { %s288_s25 = scalar_lea.vmem %s1507_s0, %s1052_s30 }
  0x2a   : > { %s1534_s29 = smov (!%p1050_p13, %s281_s29), %s1532_s15  ;;  %v328_v4 = vld [vmem:[%s288_s25] sm:$0xff]  ;;  %v330_v5 = vld [vmem:[%s288_s25 + $0x8] sm:$0xff]  ;;  %v332_v6 = vld [vmem:[%s288_s25 + $0x30] sm:$0xff] }
  0x2b   : > { %s1101_s23 = sshll.u32 %s1534_s29, 5  ;;  %v334_v7 = vld [vmem:[%s288_s25 + $0x38] sm:$0xff]  ;;  %s292_s9 = scalar_lea.sflag [#allocation4], %s1534_s29 }
  0x2c   : > { %s291_s7 = scalar_lea.vmem [#allocation2], %s1101_s23 }
  0x2d   : > { %329 = vst [vmem:[%s291_s7] sm:$0xff] %v328_v4  ;;  %331 = vst [vmem:[%s291_s7 + $0x8] sm:$0xff] %v330_v5 }
  0x2e   : > { %333 = vst [vmem:[%s291_s7 + $0x10] sm:$0xff] %v332_v6  ;;  %335 = vst [vmem:[%s291_s7 + $0x18] sm:$0xff] %v334_v7 }
  0x2f   : > { %343 = vsyncadd %s292_s9, 512 }
  0x30 PF: > { %p344_p0 = scmp.lt.s32.totalorder %s1240_s17, 0  ;;  %s345_s10 = ssub.s32 0, %s1240_s17 }
  0x31   : > { %s1055_s11 = smin.u32 %s1240_s17, %s345_s10 }
  0x32   : > { %s347_s14 = sand.u32 1, %s1055_s11  }
  0x33   : > { %s348_s24 = ssub.s32 0, %s347_s14 }
  0x34   : > { %s1536_s24 = smov (!%p344_p0, %s348_s24), %s347_s14 }
  0x35   : > { %p1057_p1 = scmp.lt.s32.totalorder %s1536_s24, 0  ;;  %s354_s15 = sadd.s32 2, %s1536_s24 }
  0x37   : > { %s1538_s15 = smov (!%p1057_p1, %s354_s15), %s1536_s24 }
  0x38   : > { %s1102_s23 = sshll.u32 %s1538_s15, 5  ;;  %s359_s18 = scalar_lea.sflag [#allocation4], %s1538_s15 }
  0x39   : > { %s1378_s25 = scalar_lea.vmem [#allocation2], %s1102_s23 }
  0x3a   : > { %1228 = dma.done.wait %s359_s18, 512 }
  0x3b   : > { %1229 = vsyncadd %s359_s18, 4294966784  ;;  %v1381_v8 = vld [vmem:[%s1378_s25 + $0x14] sm:$0xff]  ;;  %v543_v9 = vld [vmem:[%s1378_s25 + $0x4] sm:$0xff]  ;;  %s1258_s17 = smov 110   ;;  %s1259_s28 = smov 111   ;;  %vm755_vm0 = vcmask 130048  }
  0x3c   : > { %555 = vrot.lane.b32.xlu1 %v1381_v8, %s1258_s17  ;;  %551 = vrot.lane.b32.xlu0 %v543_v9, %s1258_s17  ;;  %v546_v10 = vld [vmem:[%s1378_s25 + $0x1c] sm:$0xf]  ;;  %v544_v11 = vld [vmem:[%s1378_s25 + $0xc] sm:$0xf]  ;;  %v1392_v15 = vcombine.high %v543_v9, %v1381_v8  ;;  %s1260_s29 = smov 127   ;;  %v1395_v16 = vcombine.low %v543_v9, %v1381_v8  ;;  %s1261_s30 = smov 1  }
  0x3d   : > { %v515_v12 = vld [vmem:[%s1378_s25 + $0xc] sm:$0xf]  ;;  %v517_v13 = vld [vmem:[%s1378_s25 + $0x1c] sm:$0xf]  ;;  %v453_v18 = vld [vmem:[%s1378_s25 + $0x8] sm:$0xf]  ;;  %s1515_s14 = scalar_lea.vmem %s1510_s3, %s1530_s13 }
  0x3e   : > { %v486_v14 = vld [vmem:[%s1378_s25 + $0xc] sm:$0xf]  ;;  %v488_v17 = vld [vmem:[%s1378_s25 + $0x1c] sm:$0xf]  ;;  %v452_v19 = vld [vmem:[%s1378_s25] sm:$0xff]  ;;  %s1262_s5 = smov 17  }
  0x3f   : > { %v455_v20 = vld [vmem:[%s1378_s25 + $0x18] sm:$0xf]  ;;  %v454_v21 = vld [vmem:[%s1378_s25 + $0x10] sm:$0xff]  ;;  %v424_v22 = vld [vmem:[%s1378_s25 + $0x8] sm:$0xf]  ;;  %s1263_s6 = smov 18  }
  0x40   : > { %557 = vrot.lane.b32.xlu1 %v546_v10, %s1258_s17  ;;  %553 = vrot.lane.b32.xlu0 %v544_v11, %s1258_s17  ;;  %v426_v23 = vld [vmem:[%s1378_s25 + $0x18] sm:$0xf]  ;;  %v395_v24 = vld [vmem:[%s1378_s25 + $0x8] sm:$0xf]  ;;  %s1264_s7 = smov 19   ;;  %s1265_s24 = smov 109  }
  0x41   : > { %v397_v25 = vld [vmem:[%s1378_s25 + $0x18] sm:$0xf]  ;;  %v365_v26 = vld [vmem:[%s1378_s25 + $0x8] sm:$0xf]  ;;  %v573_v28 = vld [vmem:[%s1378_s25 + $0xc] sm:$0xf] }
  0x42   : > { %v367_v27 = vld [vmem:[%s1378_s25 + $0x18] sm:$0xf]  ;;  %v1196_v29 = vld [vmem:[%s1508_s1 + $0x4] ss:$8 sps:$4 sm:$0xff]   ;;  %v1199_v30 = vld [vmem:[%s1508_s1 + $0x14] ss:$8 sps:$4 sm:$0xff]  }
  0x43   : > { %v575_v31 = vld [vmem:[%s1378_s25 + $0x1c] sm:$0xf]  ;;  %1082 = vmatprep.mubr.msk.bf16.mxu0 %vm755_vm0, %v1196_v29  ;;  %1083 = vmatprep.mubr.msk.bf16.mxu1 %vm755_vm0, %v1199_v30  ;;  %v1266_v32 = vmov 0   ;;  %v624_v33 = vld [vmem:[%s1509_s2 + $0x8] sm:$0xff]  ;;  %v623_v34 = vld [vmem:[%s1509_s2] sm:$0xff]  ;;  %vm384_vm1 = vcmask 1043456  }
  0x44   : > { %524 = vrot.lane.b32.xlu1 %v515_v12, %s1259_s28  ;;  %522 = vrot.lane.b32.xlu0 %v543_v9, %s1259_s28  ;;  %v625_v35 = vld [vmem:[%s1509_s2 + $0x10] sm:$0xff]  ;;  %v626_v36 = vld [vmem:[%s1509_s2 + $0x18] sm:$0xff]  ;;  %vm564_vm2 = vcmask 900096   ;;  %vm535_vm3 = vcmask 908288   ;;  %vm506_vm4 = vcmask 1039360   ;;  %vm473_vm5 = vcmask 7168  }
  0x45   : > { %1191 = vset.pattern.permute.xlu1 %v1266_v32  ;;  %1190 = vset.pattern.permute.xlu0 %v1266_v32  ;;  %vm444_vm6 = vcmask 138240   ;;  %vm415_vm7 = vcmask 146432   ;;  %vm386_vm8 = vcmask 154624   ;;  %vm593_vm9 = vcmask 891904   ;;  %s1090_s13 = sshll.u32 (%p1340_p5), %s1354_s12, 3 }
  0x46   : > { %s975_s23 = scalar_lea.vmem (%p1340_p5), %s1511_s4, %s1090_s13 }
  0x48   : > { %528 = vrot.lane.b32.xlu1 %v517_v13, %s1259_s28  ;;  %526 = vrot.lane.b32.xlu0 %v1381_v8, %s1259_s28 }
  0x4c   : > { %495 = vrot.lane.b32.xlu1 %v486_v14, %s1260_s29  ;;  %493 = vrot.lane.b32.xlu0 %v543_v9, %s1260_s29 }
  0x50   : > { %499 = vrot.lane.b32.xlu1 %v488_v17, %s1260_s29  ;;  %497 = vrot.lane.b32.xlu0 %v1381_v8, %s1260_s29 }
  0x54   : > { %462 = vrot.lane.b32.xlu1 %v453_v18, %s1261_s30  ;;  %460 = vrot.lane.b32.xlu0 %v452_v19, %s1261_s30 }
  0x58   : > { %466 = vrot.lane.b32.xlu1 %v455_v20, %s1261_s30  ;;  %464 = vrot.lane.b32.xlu0 %v454_v21, %s1261_s30 }
  0x5c   : > { %433 = vrot.lane.b32.xlu1 %v424_v22, %s1262_s5  ;;  %431 = vrot.lane.b32.xlu0 %v452_v19, %s1262_s5 }
  0x60   : > { %437 = vrot.lane.b32.xlu1 %v426_v23, %s1262_s5  ;;  %435 = vrot.lane.b32.xlu0 %v454_v21, %s1262_s5 }
  0x64   : > { %404 = vrot.lane.b32.xlu1 %v395_v24, %s1263_s6  ;;  %402 = vrot.lane.b32.xlu0 %v452_v19, %s1263_s6 }
  0x68   : > { %408 = vrot.lane.b32.xlu1 %v397_v25, %s1263_s6  ;;  %406 = vrot.lane.b32.xlu0 %v454_v21, %s1263_s6 }
  0x6c   : > { %374 = vrot.lane.b32.xlu1 %v365_v26, %s1264_s7  ;;  %372 = vrot.lane.b32.xlu0 %v452_v19, %s1264_s7 }
  0x70   : > { %378 = vrot.lane.b32.xlu1 %v367_v27, %s1264_s7  ;;  %376 = vrot.lane.b32.xlu0 %v454_v21, %s1264_s7 }
  0x74   : > { %582 = vrot.lane.b32.xlu1 %v573_v28, %s1265_s24  ;;  %580 = vrot.lane.b32.xlu0 %v543_v9, %s1265_s24 }
  0x78   : > { %586 = vrot.lane.b32.xlu1 %v575_v31, %s1265_s24  ;;  %584 = vrot.lane.b32.xlu0 %v1381_v8, %s1265_s24 }
  0x7c   : > { %634 = vperm.xlu1 %1191, %v624_v33   ;;  %629 = vperm.xlu0 %1190, %v623_v34  }
  0x80   : > { %639 = vperm.xlu1 %1191, %v625_v35   ;;  %644 = vperm.xlu0 %1190, %v626_v36  }
  0xae   : > { %v556_v37 = vpop.permute.xlu1 %555  ;;  %v552_v38 = vpop.permute.xlu0 %551 }
  0xaf   : > { %v561_v41 = vrot.slane %v556_v37, 4  ;;  %v559_v42 = vrot.slane %v552_v38, 4 }
  0xb2   : > { %v558_v39 = vpop.permute.xlu1 %557  ;;  %v554_v40 = vpop.permute.xlu0 %553 }
  0xb3   : > { %v562_v43 = vrot.slane %v558_v39, 4  ;;  %v560_v44 = vrot.slane %v554_v40, 4 }
  0xb5   : > { %v563_v45 = vsel %vm384_vm1, %v559_v42, %v560_v44  ;;  %v566_v46 = vsel %vm384_vm1, %v561_v41, %v562_v43 }
  0xb6   : > { %v525_v47 = vpop.permute.xlu1 %524  ;;  %v523_v48 = vpop.permute.xlu0 %522  ;;  %v565_v49 = vsel %vm564_vm2, %v552_v38, %v563_v45  ;;  %v567_v50 = vsel %vm564_vm2, %v556_v37, %v566_v46 }
  0xb7   : > { %v531_v51 = vrot.slane %v525_v47, 4  ;;  %v530_v52 = vrot.slane %v523_v48, 4  ;;  %v1079_v53 = vcombine.high %v565_v49, %v567_v50  ;;  %v1078_v54 = vcombine.low %v565_v49, %v567_v50 }
  0xb9   : > { %762 = vmatprep.subr.bf16.mxu0 %v1079_v53  ;;  %1107 = vmatprep.subr.bf16.mxu1 %v1079_v53  ;;  %v534_v57 = vsel %vm384_vm1, %v530_v52, %v531_v51 }
  0xba   : > { %763 = vmatpush1.bf16.msra.mxu0 %v1078_v54  ;;  %1116 = vmatpush1.bf16.msra.mxu1 %v1078_v54  ;;  %v529_v55 = vpop.permute.xlu1 %528  ;;  %v527_v56 = vpop.permute.xlu0 %526  ;;  %v536_v61 = vsel %vm535_vm3, %v523_v48, %v534_v57 }
  0xbb   : > { %v533_v58 = vrot.slane %v529_v55, 4  ;;  %v532_v59 = vrot.slane %v527_v56, 4 }
  0xbd   : > { %v537_v60 = vsel %vm384_vm1, %v532_v59, %v533_v58 }
  0xbe   : > { %v538_v62 = vsel %vm535_vm3, %v527_v56, %v537_v60  ;;  %v496_v63 = vpop.permute.xlu1 %495  ;;  %v494_v0 = vpop.permute.xlu0 %493 }
  0xbf   : > { %v1076_v1 = vcombine.low %v536_v61, %v538_v62  ;;  %v1077_v2 = vcombine.high %v536_v61, %v538_v62  ;;  %v502_v3 = vrot.slane %v496_v63, 4  ;;  %v501_v4 = vrot.slane %v494_v0, 4 }
  0xc1   : > { %764 = vmatprep.subr.bf16.mxu0 %v1077_v2  ;;  %1108 = vmatprep.subr.bf16.mxu1 %v1077_v2  ;;  %v505_v7 = vsel %vm384_vm1, %v501_v4, %v502_v3 }
  0xc2   : > { %765 = vmatpush1.bf16.msra.mxu0 %v1076_v1  ;;  %1117 = vmatpush1.bf16.msra.mxu1 %v1076_v1  ;;  %v500_v5 = vpop.permute.xlu1 %499  ;;  %v498_v6 = vpop.permute.xlu0 %497  ;;  %v507_v11 = vsel %vm506_vm4, %v494_v0, %v505_v7 }
  0xc3   : > { %v504_v8 = vrot.slane %v500_v5, 4  ;;  %v503_v9 = vrot.slane %v498_v6, 4 }
  0xc5   : > { %v508_v10 = vsel %vm384_vm1, %v503_v9, %v504_v8 }
  0xc6   : > { %v509_v12 = vsel %vm506_vm4, %v498_v6, %v508_v10  ;;  %v463_v13 = vpop.permute.xlu1 %462  ;;  %v461_v14 = vpop.permute.xlu0 %460 }
  0xc7   : > { %v1074_v17 = vcombine.low %v507_v11, %v509_v12  ;;  %v1075_v18 = vcombine.high %v507_v11, %v509_v12  ;;  %v469_v19 = vrot.slane %v463_v13, 4  ;;  %v468_v20 = vrot.slane %v461_v14, 4 }
  0xc9   : > { %766 = vmatprep.subr.bf16.mxu0 %v1075_v18  ;;  %1109 = vmatprep.subr.bf16.mxu1 %v1075_v18  ;;  %v472_v23 = vsel %vm384_vm1, %v468_v20, %v469_v19 }
  0xca   : > { %767 = vmatpush1.bf16.msra.mxu0 %v1074_v17  ;;  %1118 = vmatpush1.bf16.msra.mxu1 %v1074_v17  ;;  %v467_v21 = vpop.permute.xlu1 %466  ;;  %v465_v22 = vpop.permute.xlu0 %464  ;;  %v474_v27 = vsel %vm473_vm5, %v461_v14, %v472_v23 }
  0xcb   : > { %v471_v24 = vrot.slane %v467_v21, 4  ;;  %v470_v25 = vrot.slane %v465_v22, 4  ;;  %768 = vmatprep.subr.bf16.mxu0 %v1392_v15  ;;  %1110 = vmatprep.subr.bf16.mxu1 %v1392_v15 }
  0xcd   : > { %v475_v26 = vsel %vm384_vm1, %v470_v25, %v471_v24  ;;  %v1194_v24 = vld [vmem:[%s1508_s1] ss:$8 sps:$4 sm:$0xff]   ;;  %v1197_v25 = vld [vmem:[%s1508_s1 + $0x10] ss:$8 sps:$4 sm:$0xff]  }
  0xce   : > { %v476_v28 = vsel %vm473_vm5, %v465_v22, %v475_v26  ;;  %769 = vmatpush1.bf16.msra.mxu0 %v1395_v16  ;;  %1119 = vmatpush1.bf16.msra.mxu1 %v1395_v16  ;;  %v434_v29 = vpop.permute.xlu1 %433  ;;  %v432_v30 = vpop.permute.xlu0 %431  ;;  %v826_v26 = vlaneseq }
  0xcf   : > { %v1070_v31 = vcombine.low %v474_v27, %v476_v28  ;;  %v1071_v33 = vcombine.high %v474_v27, %v476_v28  ;;  %v440_v34 = vrot.slane %v434_v29, 4  ;;  %v439_v35 = vrot.slane %v432_v30, 4  ;;  %v823_v27 = vld [vmem:[%s1515_s14] sm:$0x3] }
  0xd0   : > { %v827_v28 = vshrl.u32 %v826_v26, 7  ;;  %vm824_vm10 = vcmp.gt.f32.partialorder %v823_v27, 0.0 }
  0xd1   : > { %770 = vmatprep.subr.bf16.mxu0 %v1071_v33  ;;  %1111 = vmatprep.subr.bf16.mxu1 %v1071_v33  ;;  %v443_v37 = vsel %vm384_vm1, %v439_v35, %v440_v34 }
  0xd2   : > { %771 = vmatpush1.bf16.msra.mxu0 %v1070_v31  ;;  %1120 = vmatpush1.bf16.msra.mxu1 %v1070_v31  ;;  %v438_v36 = vpop.permute.xlu1 %437  ;;  %v436_v15 = vpop.permute.xlu0 %435  ;;  %v445_v16 = vsel %vm444_vm6, %v432_v30, %v443_v37  ;;  %v828_v30 = vsub.s32 0, %v827_v28  ;;  %v825_v31 = vsel %vm824_vm10, 1, %v1266_v32  ;;  %v832_v33 = vsub.s32 1, %v827_v28 }
  0xd3   : > { %v442_v38 = vrot.slane %v438_v36, 4  ;;  %v441_v39 = vrot.slane %v436_v15, 4 }
  0xd4   : > { %v829_v34 = vrot.slane %v825_v31, %v828_v30 }
  0xd5   : > { %v446_v40 = vsel %vm384_vm1, %v441_v39, %v442_v38 }
  0xd6   : > { %v447_v41 = vsel %vm444_vm6, %v436_v15, %v446_v40  ;;  %v405_v42 = vpop.permute.xlu1 %404  ;;  %v403_v43 = vpop.permute.xlu0 %402  ;;  %v833_v15 = vrot.slane %v825_v31, %v832_v33  ;;  %vm834_vm11 = vcmp.eq.s32.totalorder %v829_v34, 1 }
  0xd7   : > { %v1068_v44 = vcombine.low %v445_v16, %v447_v41  ;;  %v1069_v45 = vcombine.high %v445_v16, %v447_v41  ;;  %v411_v46 = vrot.slane %v405_v42, 4  ;;  %v410_v47 = vrot.slane %v403_v43, 4 }
  0xd8   : > { %vm835_vm12 = vcmp.eq.s32.totalorder %v833_v15, 1 }
  0xd9   : > { %772 = vmatprep.subr.bf16.mxu0 %v1069_v45  ;;  %1112 = vmatprep.subr.bf16.mxu1 %v1069_v45  ;;  %v414_v50 = vsel %vm384_vm1, %v410_v47, %v411_v46 }
  0xda   : > { %773 = vmatpush1.bf16.msra.mxu0 %v1068_v44  ;;  %1121 = vmatpush1.bf16.msra.mxu1 %v1068_v44  ;;  %v409_v48 = vpop.permute.xlu1 %408  ;;  %v407_v49 = vpop.permute.xlu0 %406  ;;  %v416_v54 = vsel %vm415_vm7, %v403_v43, %v414_v50 }
  0xdb   : > { %v413_v51 = vrot.slane %v409_v48, 4  ;;  %v412_v52 = vrot.slane %v407_v49, 4 }
  0xdd   : > { %v417_v53 = vsel %vm384_vm1, %v412_v52, %v413_v51 }
  0xde   : > { %v418_v55 = vsel %vm415_vm7, %v407_v49, %v417_v53  ;;  %v375_v56 = vpop.permute.xlu1 %374  ;;  %v373_v57 = vpop.permute.xlu0 %372 }
  0xdf   : > { %v1066_v58 = vcombine.low %v416_v54, %v418_v55  ;;  %v1067_v59 = vcombine.high %v416_v54, %v418_v55  ;;  %v381_v60 = vrot.slane %v375_v56, 4  ;;  %v380_v61 = vrot.slane %v373_v57, 4 }
  0xe1   : > { %774 = vmatprep.subr.bf16.mxu0 %v1067_v59  ;;  %1113 = vmatprep.subr.bf16.mxu1 %v1067_v59  ;;  %v385_v0 = vsel %vm384_vm1, %v380_v61, %v381_v60 }
  0xe2   : > { %775 = vmatpush1.bf16.msra.mxu0 %v1066_v58  ;;  %1122 = vmatpush1.bf16.msra.mxu1 %v1066_v58  ;;  %v379_v62 = vpop.permute.xlu1 %378  ;;  %v377_v63 = vpop.permute.xlu0 %376  ;;  %v387_v4 = vsel %vm386_vm8, %v373_v57, %v385_v0 }
  0xe3   : > { %v383_v1 = vrot.slane %v379_v62, 4  ;;  %v382_v2 = vrot.slane %v377_v63, 4 }
  0xe5   : > { %v388_v3 = vsel %vm384_vm1, %v382_v2, %v383_v1 }
  0xe6   : > { %v389_v5 = vsel %vm386_vm8, %v377_v63, %v388_v3  ;;  %v583_v6 = vpop.permute.xlu1 %582  ;;  %v581_v7 = vpop.permute.xlu0 %580 }
  0xe7   : > { %v1064_v8 = vcombine.low %v387_v4, %v389_v5  ;;  %v1065_v9 = vcombine.high %v387_v4, %v389_v5  ;;  %v589_v10 = vrot.slane %v583_v6, 4  ;;  %v588_v11 = vrot.slane %v581_v7, 4 }
  0xe9   : > { %776 = vmatprep.subr.bf16.mxu0 %v1065_v9  ;;  %1114 = vmatprep.subr.bf16.mxu1 %v1065_v9  ;;  %v592_v14 = vsel %vm384_vm1, %v588_v11, %v589_v10 }
  0xea   : > { %v587_v12 = vpop.permute.xlu1 %586  ;;  %777 = vmatpush1.bf16.msra.mxu0 %v1064_v8  ;;  %1123 = vmatpush1.bf16.msra.mxu1 %v1064_v8  ;;  %v585_v13 = vpop.permute.xlu0 %584  ;;  %v594_v20 = vsel %vm593_vm9, %v581_v7, %v592_v14 }
  0xeb   : > { %v591_v17 = vrot.slane %v587_v12, 4  ;;  %v590_v18 = vrot.slane %v585_v13, 4 }
  0xed   : > { %v595_v19 = vsel %vm384_vm1, %v590_v18, %v591_v17 }
  0xee   : > { %v596_v21 = vsel %vm593_vm9, %v585_v13, %v595_v19 }
  0xef   : > { %v1080_v22 = vcombine.low %v594_v20, %v596_v21  ;;  %v1081_v23 = vcombine.high %v594_v20, %v596_v21 }
  0xf1   : > { %792 = vmatprep.subr.bf16.mxu0 %v1081_v23  ;;  %1115 = vmatprep.subr.bf16.mxu1 %v1081_v23 }
  0xf2   : > { %793 = vmatpush2.bf16.msra.mxu0 %v1080_v22  ;;  %1124 = vmatpush2.bf16.msra.mxu1 %v1080_v22 }
  0xf5   : > { %795 = vmatmul.mubr.bf16.vlgmr.msra.gmra.mxu0 %v1194_v24  ;;  %805 = vmatmul.mubr.bf16.vlgmr.msra.gmra.mxu1 %v1197_v25 }
  0xf7   : > { %v635_v29 = vpop.permute.xlu1 %634  ;;  %v630_v36 = vpop.permute.xlu0 %629 }
  0xfb   : > { %v640_v35 = vpop.permute.xlu1 %639  ;;  %v645_v49 = vpop.permute.xlu0 %644 }
 0x1b5   : > { %v796_v37 = vpop.f32.mrf.mxu0  ;;  %v806_v38 = vpop.f32.mrf.mxu1 }
 0x1b6   : > { %v797_v39 = vadd.f32 %v796_v37, %v630_v36  ;;  %v807_v40 = vadd.f32 %v806_v38, %v640_v35 }
 0x1b7   : > { %v798_v16 = vpop.f32.mrf.mxu0  ;;  %v808_v41 = vpop.f32.mrf.mxu1 }
 0x1b8   : > { %v815_v42 = vmax.f32 %v797_v39, 0.0  ;;  %v819_v43 = vmax.f32 %v807_v40, 0.0  ;;  %v799_v44 = vadd.f32 %v798_v16, %v630_v36  ;;  %v809_v45 = vadd.f32 %v808_v41, %v640_v35 }
 0x1b9   : > { %v800_v46 = vpop.f32.mrf.mxu0  ;;  %v810_v47 = vpop.f32.mrf.mxu1 }
 0x1ba   : > { %v816_v32 = vmax.f32 %v799_v44, 0.0  ;;  %v820_v48 = vmax.f32 %v809_v45, 0.0  ;;  %v836_v50 = vsel %vm834_vm11, %v815_v42, 0.0  ;;  %v840_v51 = vsel %vm834_vm11, %v819_v43, 0.0 }
 0x1bb   : > { %v801_v52 = vadd.f32 %v800_v46, %v635_v29  ;;  %v811_v53 = vadd.f32 %v810_v47, %v645_v49  ;;  %v802_v54 = vpop.f32.mrf.mxu0  ;;  %v812_v55 = vpop.f32.mrf.mxu1 }
 0x1bc   : > { %v837_v56 = vsel %vm835_vm12, %v816_v32, 0.0  ;;  %v841_v57 = vsel %vm835_vm12, %v820_v48, 0.0  ;;  %v803_v58 = vadd.f32 %v802_v54, %v635_v29  ;;  %v813_v59 = vadd.f32 %v812_v55, %v645_v49 }
 0x1bd   : > { %v1103_v60 = vpack.c.bf16 %v837_v56, %v836_v50  ;;  %v1105_v61 = vpack.c.bf16 %v841_v57, %v840_v51  ;;  %v817_v62 = vmax.f32 %v801_v52, 0.0  ;;  %v821_v63 = vmax.f32 %v811_v53, 0.0 }
 0x1be   : > { %v818_v0 = vmax.f32 %v803_v58, 0.0  ;;  %v822_v1 = vmax.f32 %v813_v59, 0.0 }
 0x1bf   : > { %868 = vst [vmem:[%s1363_s26] sm:$0xff] %v1103_v60  ;;  %870 = vst [vmem:[%s1363_s26 + $0x10] sm:$0xff] %v1105_v61  ;;  %v838_v2 = vsel %vm834_vm11, %v817_v62, 0.0  ;;  %v842_v3 = vsel %vm834_vm11, %v821_v63, 0.0  ;;  %878 = sbr.rel (!%p1340_p5) target bundleno = 460 (0x1cc), region = 112 }
 0x1c0   : > { %v839_v4 = vsel %vm835_vm12, %v818_v0, 0.0  ;;  %v843_v5 = vsel %vm835_vm12, %v822_v1, 0.0 }
 0x1c1   : > { %v1104_v6 = vpack.c.bf16 %v839_v4, %v838_v2  ;;  %v1106_v7 = vpack.c.bf16 %v843_v5, %v842_v3 }
 0x1c3   : > { %869 = vst [vmem:[%s1363_s26 + $0x8] sm:$0xff] %v1104_v6  ;;  %871 = vst [vmem:[%s1363_s26 + $0x18] sm:$0xff] %v1106_v7 }
 0x1c6   : > { %v919_v8 = vld [vmem:[%s1363_s26] sm:$0xff]  ;;  %v923_v10 = vld [vmem:[%s1363_s26 + $0x10] sm:$0xff] }
 0x1c7   : > { %1091 = vst [vmem:[%s975_s23 + $0x8] sm:$0xff] %v919_v8  ;;  %1093 = vst [vmem:[%s975_s23 + $0x68] sm:$0xff] %v923_v10 }
 0x1ca   : > { %v921_v9 = vld [vmem:[%s1363_s26 + $0x8] sm:$0xff]  ;;  %v925_v11 = vld [vmem:[%s1363_s26 + $0x18] sm:$0xff] }
 0x1cb   : > { %1092 = vst [vmem:[%s975_s23 + $0x38] sm:$0xff] %v921_v9  ;;  %1094 = vst [vmem:[%s975_s23 + $0x98] sm:$0xff] %v925_v11 }
 0x1cc PF: > { %s14_s21 = sadd.s32 1, %s1256_s21   ;;  %s1516_s27 = sld [smem:[#allocation9_spill]] }
 0x1cd   : > { %p11_p2 = scmp.ge.s32.totalorder %s14_s21, 6   ;;  %s1517_s15 = smov %s1236_s16 }
 0x1ce   : > { %s1518_s16 = smov %s1349_s8  ;;  %s1519_s17 = smov %s1248_s19 }
 0x1cf   : > { %s1520_s18 = smov %s1252_s20  ;;  %s1521_s19 = smov %s1524_s22 }
 0x1d0   :  { %13 = sbr.rel (!%p11_p2) target bundleno = 4 (0x4), region = 199 }
 0x1d2   : > { %s1522_s20 = smov %s1516_s27 }
 0x1d5   :  { %942 = vsyncmov [#allocation4] }
 0x1d8   :  { %s943_s12 = vpop.sfrf %942 }
 0x1d9   :  { %p1097_p3 = scmp.ne.s32.totalorder %s943_s12, 0 }
 0x1db   :  { %947 = shalt.err (%p1097_p3)  }
 0x1dc   :  { %949 = vsyncmov [#allocation4 + $0x1] }
 0x1df   :  { %s950_s26 = vpop.sfrf %949 }
 0x1e0   :  { %p1098_p4 = scmp.ne.s32.totalorder %s950_s26, 0 }
 0x1e2   :  { %954 = shalt.err (%p1098_p4)  }

// kernel: resnet_cifar_forward.37
= control target key start
LH: loop header
LB: loop body
LE: loop exit
PB: predicated region body
PF: predicated region fallthrough
CT: control target
= control target key end

     0   :  { %s1049_s15 = smov 0   ;;  %s1051_s16 = smov 0   ;;  %s1188_s0 = inlined_call_operand.vmem [shape: bf16[32,512], index: 0, kind: input, shape index: {}]   ;;  %s1189_s1 = inlined_call_operand.vmem [shape: bf16[64,32], index: 1, kind: input, shape index: {}]   ;;  %s1190_s2 = inlined_call_operand.vmem [shape: f32[64,1], index: 2, kind: input, shape index: {}]   ;;  %s1191_s3 = inlined_call_operand.vmem [shape: f32[1,256], index: 3, kind: input, shape index: {}]   ;;  %s1192_s4 = inlined_call_operand.vmem [shape: bf16[64,512], index: 4, kind: output, shape index: {}]  }
   0x1   :  { %s1053_s17 = smov 0   ;;  %s1055_s18 = smov 0  }
   0x2   :  { %s1057_s19 = smov 0  }
   0x3 LB: > { %s814_s20 = sadd.s32 4294967295, %s1021_s19   ;;  %s26_s21 = sadd.s32 1, %s1017_s18  ;;  %s1021_s19 = sphi %s1057_s19, %s14_s19   ;;  %s1017_s18 = sphi %s1055_s18, %s1197_s18   ;;  %s1013_s17 = sphi %s1053_s17, %s1196_s17   ;;  %s1009_s16 = sphi %s1051_s16, %s1195_s16   ;;  %s1005_s15 = sphi %s1049_s15, %s1194_s15  }
   0x4   : > { %p28_p0 = scmp.ge.s32.totalorder %s26_s21, 2  ;;  %p117_p1 = scmp.ne.s32.totalorder %s1009_s16, %s1005_s15 }
   0x5   : > { %p118_p2 = scmp.eq.s32.totalorder %s814_s20, 1  ;;  %p818_p4 = scmp.ge.s32.totalorder %s1021_s19, 1 }
   0x6   : > { %s1075_s22 = scalar_select %p28_p0, 0, %s26_s21  }
   0x7   : > { %p1077_p3 = por %p118_p2, %p117_p1  ;;  %p156_p5 = scmp.lt.s32.totalorder %s1021_s19, 3 }
   0x8   : > { %s103_s24 = sadd.s32 1, %s1075_s22  ;;  %s107_s26 = sadd.s32 1, %s1009_s16 }
   0x9   : > { %s104_s25 = ssub.s32 %s26_s21, %s103_s24  ;;  %p157_p7 = pnand %p818_p4, %p156_p5 }
   0xa   : > { %p105_p6 = scmp.eq.s32.totalorder %s104_s25, 0  ;;  %s175_s28 = sand.u32 (!%p157_p7), 1, %s1005_s15  }
   0xb   : > { %160 = sbr.rel (%p157_p7) target bundleno = 259 (0x103), region = 32  ;;  %p179_p8 = scmp.lt.s32.totalorder (!%p157_p7), %s1013_s17, 1 }
   0xc   : > { %s1086_s27 = scalar_select %p105_p6, %s1009_s16, %s107_s26  }
   0xd   : > { %s819_s29 = sshll.u32 (!%p157_p7), %s175_s28, 5  ;;  %s820_s30 = sshll.u32 (!%p157_p7), %s1013_s17, 7 }
   0xe   : > { %s192_s5 = sshra.s32 (!%p157_p7), %s820_s30, 7  ;;  %s1100_s14 = scalar_lea.vmem (!%p157_p7), [#allocation5], %s819_s29 }
   0xf   : > { %s821_s7 = sshll.u32 (!%p157_p7), %s192_s5, 2 }
  0x10   : > { %s1091_s6 = scalar_select %p179_p8, %s1013_s17, 1 }
  0x11   : > { %s195_s13 = scalar_lea.vmem %s1188_s0, %s821_s7 }
  0x12   : > { %s181_s10 = scalar_lea.vmem %s1191_s3, %s1091_s6  ;;  %v240_v0 = vld [vmem:[%s195_s13] sm:$0xff]  ;;  %v242_v1 = vld [vmem:[%s195_s13 + $0x10] sm:$0xff] }
  0x13   : > { %v244_v2 = vld [vmem:[%s195_s13 + $0x20] sm:$0xff]  ;;  %241 = vst [vmem:[#allocation2] sm:$0xff] %v240_v0  ;;  %243 = vst [vmem:[#allocation2 + $0xc] sm:$0xff] %v242_v1  ;;  %v246_v3 = vld [vmem:[%s195_s13 + $0x30] sm:$0xff] }
  0x14   : > { %245 = vst [vmem:[#allocation2 + $0x18] sm:$0xff] %v244_v2  ;;  %247 = vst [vmem:[#allocation2 + $0x24] sm:$0xff] %v246_v3 }
  0x15   : > { %269 = vsyncadd [#allocation4], 768 }
  0x16   : > { %1001 = dma.done.wait [#allocation4], 768 }
  0x17   : > { %1002 = vsyncadd [#allocation4], 4294966528  ;;  %v1023_v4 = vmov 0   ;;  %vm491_vm0 = vcmask 261120   ;;  %v977_v9 = vld [vmem:[%s1189_s1] sm:$0xff]   ;;  %v978_v10 = vld [vmem:[%s1189_s1 + $0x10] sm:$0xff]   ;;  %v572_v25 = vlaneseq }
  0x18   : > { %974 = vset.pattern.permute.xlu1 %v1023_v4  ;;  %973 = vset.pattern.permute.xlu0 %v1023_v4  ;;  %v413_v11 = vld [vmem:[%s1190_s2 + $0x10] sm:$0xff]  ;;  %v411_v12 = vld [vmem:[%s1190_s2] sm:$0xff]  ;;  %v414_v15 = vld [vmem:[%s1190_s2 + $0x18] sm:$0xff]  ;;  %s864_s6 = sshll.u32 (%p1077_p3), %s1013_s17, 2 }
  0x19   : > { %920 = vmatprep.mubr.msk.bf16.mxu0 %vm491_vm0, %v977_v9  ;;  %924 = vmatprep.mubr.msk.bf16.mxu1 %vm491_vm0, %v978_v10  ;;  %v412_v16 = vld [vmem:[%s1190_s2 + $0x8] sm:$0xff]  ;;  %v980_v18 = vld [vmem:[%s1189_s1 + $0x18] sm:$0xff]   ;;  %v415_v20 = vld [vmem:[%s1190_s2 + $0x20] sm:$0xff]  ;;  %v573_v28 = vshrl.u32 %v572_v25, 7  ;;  %s753_s8 = scalar_lea.vmem (%p1077_p3), %s1192_s4, %s864_s6 }
  0x1a   : > { %v391_v7 = vld [vmem:[#allocation2 + $0x4] sm:$0xf]  ;;  %v392_v8 = vld [vmem:[#allocation2 + $0x10] sm:$0xf]  ;;  %431 = vperm.xlu1 %974, %v413_v11   ;;  %421 = vperm.xlu0 %973, %v411_v12   ;;  %v979_v17 = vld [vmem:[%s1189_s1 + $0x8] sm:$0xff]  }
  0x1b   : > { %v393_v5 = vld [vmem:[#allocation2 + $0x1c] sm:$0xf]  ;;  %v394_v6 = vld [vmem:[#allocation2 + $0x28] sm:$0xf]  ;;  %395 = vst [vmem:[#allocation3] sm:$0xf] %v391_v7 }
  0x1c   : > { %397 = vst [vmem:[#allocation3 + $0x8] sm:$0xf] %v393_v5  ;;  %398 = vst [vmem:[#allocation3 + $0xc] sm:$0xf] %v394_v6  ;;  %v416_v19 = vld [vmem:[%s1190_s2 + $0x28] sm:$0xff]  ;;  %v418_v21 = vld [vmem:[%s1190_s2 + $0x38] sm:$0xff] }
  0x1d   : > { %396 = vst [vmem:[#allocation3 + $0x4] sm:$0xf] %v392_v8  ;;  %v417_v22 = vld [vmem:[%s1190_s2 + $0x30] sm:$0xff]  ;;  %v569_v27 = vld [vmem:[%s181_s10] sm:$0x1]  ;;  %v574_v30 = vsub.s32 0, %v573_v28 }
  0x1e   : > { %436 = vperm.xlu1 %974, %v414_v15   ;;  %426 = vperm.xlu0 %973, %v412_v16   ;;  %vm570_vm1 = vcmp.gt.f32.partialorder %v569_v27, 0.0 }
  0x1f   : > { %v571_v32 = vsel %vm570_vm1, 1, %v1023_v4 }
  0x20   : > { %v575_v34 = vrot.slane %v571_v32, %v574_v30 }
  0x22   : > { %446 = vperm.xlu1 %974, %v416_v19   ;;  %441 = vperm.xlu0 %973, %v415_v20   ;;  %vm576_vm2 = vcmp.eq.s32.totalorder %v575_v34, 1 }
  0x23   : > { %v975_v13 = vld [vmem:[#allocation3 + $0x8] sm:$0xff]  }
  0x24   : > { %v976_v14 = vld [vmem:[#allocation3] sm:$0xff]   ;;  %916 = vmatprep.subr.bf16.mxu0 %v975_v13  ;;  %928 = vmatprep.subr.bf16.mxu1 %v975_v13 }
  0x25   : > { %917 = vmatpush3.bf16.msra.mxu0 %v975_v13  ;;  %930 = vmatpush3.bf16.msra.mxu1 %v975_v13 }
  0x26   : > { %918 = vmatprep.subr.bf16.mxu0 %v976_v14  ;;  %929 = vmatprep.subr.bf16.mxu1 %v976_v14 }
  0x27   : > { %456 = vperm.xlu1 %974, %v418_v21   ;;  %451 = vperm.xlu0 %973, %v417_v22  }
  0x29   : > { %919 = vmatpush3.bf16.msra.mxu0 %v976_v14  ;;  %931 = vmatpush3.bf16.msra.mxu1 %v976_v14 }
  0x2c   : > { %921 = vmatmul.mubr.msk.bf16.vlgmr.msra.gmra.mxu0 %vm491_vm0, %v979_v17  ;;  %925 = vmatmul.mubr.msk.bf16.vlgmr.msra.gmra.mxu1 %vm491_vm0, %v980_v18 }
  0x95   : > { %v422_v23 = vpop.permute.xlu0 %421  ;;  %v432_v24 = vpop.permute.xlu1 %431 }
  0x99   : > { %v427_v26 = vpop.permute.xlu0 %426  ;;  %v437_v29 = vpop.permute.xlu1 %436 }
  0x9d   : > { %v442_v31 = vpop.permute.xlu0 %441  ;;  %v447_v33 = vpop.permute.xlu1 %446 }
  0xa2   : > { %v452_v37 = vpop.permute.xlu0 %451  ;;  %v457_v42 = vpop.permute.xlu1 %456 }
  0xec   : > { %v922_v35 = vpop.f32.mrf.mxu0  ;;  %v926_v36 = vpop.f32.mrf.mxu1 }
  0xed   : > { %v547_v38 = vadd.f32 %v922_v35, %v432_v24  ;;  %v563_v39 = vadd.f32 %v926_v36, %v452_v37 }
  0xee   : > { %v538_v40 = vpop.f32.mrf.mxu0  ;;  %v554_v41 = vpop.f32.mrf.mxu1 }
  0xef   : > { %v539_v45 = vadd.f32 %v538_v40, %v422_v23  ;;  %v555_v46 = vadd.f32 %v554_v41, %v442_v31  ;;  %v579_v49 = vsel %vm576_vm2, %v547_v38, 0.0  ;;  %v583_v50 = vsel %vm576_vm2, %v563_v39, 0.0 }
  0xf0   : > { %v923_v43 = vpop.f32.mrf.mxu0  ;;  %v927_v44 = vpop.f32.mrf.mxu1 }
  0xf1   : > { %v550_v47 = vadd.f32 %v923_v43, %v437_v29  ;;  %v566_v48 = vadd.f32 %v927_v44, %v457_v42  ;;  %v577_v59 = vsel %vm576_vm2, %v539_v45, 0.0  ;;  %v581_v60 = vsel %vm576_vm2, %v555_v46, 0.0 }
  0xf2   : > { %v541_v51 = vpop.f32.mrf.mxu0  ;;  %v557_v52 = vpop.f32.mrf.mxu1 }
  0xf3   : > { %v580_v53 = vsel %vm576_vm2, %v550_v47, 0.0  ;;  %v584_v54 = vsel %vm576_vm2, %v566_v48, 0.0  ;;  %v542_v55 = vadd.f32 %v541_v51, %v427_v26  ;;  %v558_v56 = vadd.f32 %v557_v52, %v447_v33 }
  0xf4   : > { %v895_v57 = vpack.c.bf16 %v580_v53, %v579_v49  ;;  %v905_v58 = vpack.c.bf16 %v584_v54, %v583_v50  ;;  %631 = sbr.rel (!%p1077_p3) target bundleno = 259 (0x103), region = 118 }
  0xf5   : > { %v578_v61 = vsel %vm576_vm2, %v542_v55, 0.0  ;;  %v582_v62 = vsel %vm576_vm2, %v558_v56, 0.0 }
  0xf6   : > { %907 = vst [vmem:[%s1100_s14 + $0x8] sm:$0xff] %v895_v57   ;;  %909 = vst [vmem:[%s1100_s14 + $0x18] sm:$0xff] %v905_v58   ;;  %v890_v63 = vpack.c.bf16 %v578_v61, %v577_v59  ;;  %v900_v0 = vpack.c.bf16 %v582_v62, %v581_v60 }
  0xf8   : > { %891 = vst [vmem:[%s1100_s14] sm:$0xff] %v890_v63   ;;  %908 = vst [vmem:[%s1100_s14 + $0x10] sm:$0xff] %v900_v0  }
  0xfd   : > { %v656_v3 = vld [vmem:[%s1100_s14 + $0x8] sm:$0xf]  ;;  %v658_v4 = vld [vmem:[%s1100_s14 + $0xc] sm:$0xf]  ;;  %v664_v7 = vld [vmem:[%s1100_s14 + $0x18] sm:$0xf] }
  0xfe   : > { %867 = vst [vmem:[%s753_s8 + $0x24] sm:$0xf] %v656_v3  ;;  %868 = vst [vmem:[%s753_s8 + $0x34] sm:$0xf] %v658_v4  ;;  %v666_v8 = vld [vmem:[%s1100_s14 + $0x1c] sm:$0xf] }
  0xff   : > { %v652_v1 = vld [vmem:[%s1100_s14] sm:$0xf]  ;;  %v654_v2 = vld [vmem:[%s1100_s14 + $0x4] sm:$0xf]  ;;  %v660_v5 = vld [vmem:[%s1100_s14 + $0x10] sm:$0xf] }
 0x100   : > { %865 = vst [vmem:[%s753_s8 + $0x4] sm:$0xf] %v652_v1  ;;  %866 = vst [vmem:[%s753_s8 + $0x14] sm:$0xf] %v654_v2  ;;  %v662_v6 = vld [vmem:[%s1100_s14 + $0x14] sm:$0xf] }
 0x101   : > { %869 = vst [vmem:[%s753_s8 + $0x44] sm:$0xf] %v660_v5  ;;  %870 = vst [vmem:[%s753_s8 + $0x54] sm:$0xf] %v662_v6 }
 0x102   : > { %871 = vst [vmem:[%s753_s8 + $0x64] sm:$0xf] %v664_v7  ;;  %872 = vst [vmem:[%s753_s8 + $0x74] sm:$0xf] %v666_v8 }
 0x103 PF: > { %s14_s19 = sadd.s32 1, %s1021_s19   ;;  %s1194_s15 = smov %s1009_s16 }
 0x104   : > { %p11_p9 = scmp.ge.s32.totalorder %s14_s19, 4   ;;  %s1195_s16 = smov %s1086_s27 }
 0x105   : > { %s1196_s17 = smov %s1017_s18  ;;  %s1197_s18 = smov %s1075_s22 }
 0x106   :  { %13 = sbr.rel (!%p11_p9) target bundleno = 3 (0x3), region = 220 }
 0x10b   :  { %717 = vsyncmov [#allocation4] }
 0x10e   :  { %s718_s23 = vpop.sfrf %717 }
 0x10f   :  { %p875_p10 = scmp.ne.s32.totalorder %s718_s23, 0 }
 0x111   :  { %722 = shalt.err (%p875_p10)  }
 0x112   :  { %724 = vsyncmov [#allocation4 + $0x1] }
 0x115   :  { %s725_s14 = vpop.sfrf %724 }
 0x116   :  { %p876_p11 = scmp.ne.s32.totalorder %s725_s14, 0 }
 0x118   :  { %729 = shalt.err (%p876_p11)  }

// kernel: resnet_cifar_forward.31
= control target key start
LH: loop header
LB: loop body
LE: loop exit
PB: predicated region body
PF: predicated region fallthrough
CT: control target
= control target key end

     0   :  { %s1627_s18 = smov 0   ;;  %s1629_s19 = smov 0   ;;  %s1798_s0 = inlined_call_operand.vmem [shape: bf16[32,512], index: 0, kind: input, shape index: {}]   ;;  %s1799_s1 = inlined_call_operand.vmem [shape: bf16[32,288], index: 1, kind: input, shape index: {}]   ;;  %s1800_s2 = inlined_call_operand.vmem [shape: f32[32,1], index: 2, kind: input, shape index: {}]   ;;  %s1801_s3 = inlined_call_operand.vmem [shape: f32[1,256], index: 3, kind: input, shape index: {}]   ;;  %s1802_s4 = inlined_call_operand.vmem [shape: bf16[32,512], index: 4, kind: input, shape index: {}]   ;;  %s1803_s5 = inlined_call_operand.vmem [shape: bf16[32,512], index: 5, kind: output, shape index: {}]  }
   0x1   :  { %s1631_s20 = smov 0   ;;  %s1633_s21 = smov 0  }
   0x2   :  { %s1635_s22 = smov 0  }
   0x3 LB: > { %s27_s23 = sadd.s32 1, %s1582_s21  ;;  %s1325_s24 = sadd.s32 4294967295, %s1586_s22   ;;  %s1586_s22 = sphi %s1635_s22, %s15_s22   ;;  %s1582_s21 = sphi %s1633_s21, %s1808_s21   ;;  %s1578_s20 = sphi %s1631_s20, %s1807_s20   ;;  %s1574_s19 = sphi %s1629_s19, %s1806_s19   ;;  %s1570_s18 = sphi %s1627_s18, %s1805_s18  }
   0x4   : > { %p29_p0 = scmp.ge.s32.totalorder %s27_s23, 2  ;;  %p115_p1 = scmp.ne.s32.totalorder %s1574_s19, %s1570_s18 }
   0x5   : > { %p116_p2 = scmp.eq.s32.totalorder %s1586_s22, 0  ;;  %p149_p4 = scmp.eq.s32.totalorder %s1325_s24, 1 }
   0x6   : > { %s1657_s25 = scalar_select %p29_p0, 0, %s27_s23  }
   0x7   : > { %p117_p3 = por %p116_p2, %p115_p1  ;;  %s108_s27 = sadd.s32 1, %s1574_s19 }
   0x8   : > { %s104_s26 = sadd.s32 1, %s1657_s25  ;;  %p1661_p5 = por %p149_p4, %p115_p1 }
   0x9   : > { %s105_s28 = ssub.s32 %s27_s23, %s104_s26  ;;  %p1328_p7 = scmp.ge.s32.totalorder %s1586_s22, 2 }
   0xa   : > { %p106_p6 = scmp.eq.s32.totalorder %s105_s28, 0 }
   0xb   : > { %177 = sbr.rel (%p1328_p7) target bundleno = 23 (0x17), region = 24 }
   0xc   : > { %s1666_s30 = scalar_select %p106_p6, %s1574_s19, %s108_s27  }
  0x10   : > { %188 = sbr.rel (!%p117_p3) target bundleno = 23 (0x17), region = 32  ;;  %s190_s6 = sand.u32 (%p117_p3), 1, %s1574_s19  }
  0x11   : > { %s1330_s7 = sshll.u32 (%p117_p3), %s1582_s21, 2  ;;  %s1329_s8 = sshll.u32 (%p117_p3), %s190_s6, 4 }
  0x12   : > { %s1226_s11 = scalar_lea.vmem (%p117_p3), %s1802_s4, %s1330_s7  ;;  %s192_s12 = scalar_lea.vmem (%p117_p3), [#allocation5], %s1329_s8 }
  0x13   : > { %v1331_v0 = vld [vmem:[%s1226_s11 + $0x4] sm:$0xf] (%p117_p3)  ;;  %v1332_v1 = vld [vmem:[%s1226_s11 + $0x14] sm:$0xf] (%p117_p3) }
  0x14   : > { %214 = vst [vmem:[%s192_s12] sm:$0xf] (%p117_p3), %v1331_v0  ;;  %216 = vst [vmem:[%s192_s12 + $0x4] sm:$0xf] (%p117_p3), %v1332_v1  ;;  %v1333_v2 = vld [vmem:[%s1226_s11 + $0x24] sm:$0xf] (%p117_p3) }
  0x15   : > { %v1334_v3 = vld [vmem:[%s1226_s11 + $0x34] sm:$0xf]  ;;  %218 = vst [vmem:[%s192_s12 + $0x8] sm:$0xf] %v1333_v2 }
  0x16   : > { %220 = vst [vmem:[%s192_s12 + $0xc] sm:$0xf] %v1334_v3 }
  0x17 PF: > { %p1335_p8 = scmp.ge.s32.totalorder %s1586_s22, 1  ;;  %p251_p9 = scmp.lt.s32.totalorder %s1586_s22, 3 }
  0x19   : > { %p252_p10 = pnand %p1335_p8, %p251_p9 }
  0x1a   : > { %s258_s13 = sand.u32 (!%p252_p10), 1, %s1570_s18   ;;  %p287_p11 = scmp.lt.s32.totalorder (!%p252_p10), %s1578_s20, 1 }
  0x1b   : > { %255 = sbr.rel (%p252_p10) target bundleno = 454 (0x1c6), region = 73  ;;  %s1678_s14 = sshll.u32 (!%p252_p10), %s258_s13, 4 }
  0x1c   : > { %s1338_s15 = sshll.u32 (!%p252_p10), %s1578_s20, 7  ;;  %s260_s18 = scalar_lea.vmem (!%p252_p10), [#allocation5], %s1678_s14 }
  0x1d   : > { %s302_s17 = sshra.s32 (!%p252_p10), %s1338_s15, 7  ;;  %s1693_s8 = scalar_lea.vmem (!%p252_p10), [#allocation6], %s1678_s14 }
  0x1e   : > { %s1339_s27 = sshll.u32 (!%p252_p10), %s302_s17, 2 }
  0x1f   : > { %s305_s7 = scalar_lea.vmem (!%p252_p10), %s1798_s0, %s1339_s27 }
  0x20   : > { %s1682_s16 = scalar_select %p287_p11, %s1578_s20, 1  ;;  %v350_v4 = vld [vmem:[%s305_s7] sm:$0xff]  ;;  %v352_v5 = vld [vmem:[%s305_s7 + $0x10] sm:$0xff]  ;;  %v1340_v8 = vld [vmem:[%s305_s7 + $0x8] sm:$0xf] }
  0x21   : > { %v354_v6 = vld [vmem:[%s305_s7 + $0x20] sm:$0xff]  ;;  %351 = vst [vmem:[#allocation2] sm:$0xff] %v350_v4  ;;  %353 = vst [vmem:[#allocation2 + $0xc] sm:$0xff] %v352_v5  ;;  %v356_v7 = vld [vmem:[%s305_s7 + $0x30] sm:$0xff] }
  0x22   : > { %s289_s26 = scalar_lea.vmem %s1801_s3, %s1682_s16  ;;  %355 = vst [vmem:[#allocation2 + $0x18] sm:$0xff] %v354_v6  ;;  %v1341_v9 = vld [vmem:[%s305_s7 + $0x18] sm:$0xf]  ;;  %357 = vst [vmem:[#allocation2 + $0x24] sm:$0xff] %v356_v7  ;;  %v1342_v10 = vld [vmem:[%s305_s7 + $0x28] sm:$0xf] }
  0x23   : > { %369 = vst [vmem:[#allocation2 + $0x8] sm:$0xf] %v1340_v8  ;;  %371 = vst [vmem:[#allocation2 + $0x14] sm:$0xf] %v1341_v9  ;;  %v1343_v11 = vld [vmem:[%s305_s7 + $0x38] sm:$0xf] }
  0x24   : > { %373 = vst [vmem:[#allocation2 + $0x20] sm:$0xf] %v1342_v10  ;;  %375 = vst [vmem:[#allocation2 + $0x2c] sm:$0xf] %v1343_v11 }
  0x25   : > { %379 = vsyncadd [#allocation4], 768 }
  0x26   : > { %1566 = dma.done.wait [#allocation4], 768 }
  0x27   : > { %1567 = vsyncadd [#allocation4], 4294966528  ;;  %s1588_s9 = smov 118   ;;  %s1589_s10 = smov 1   ;;  %v1538_v24 = vld [vmem:[%s1799_s1 + $0x4] ss:$12 sps:$4 sm:$0xff]  }
  0x28   : > { %v601_v18 = vld [vmem:[#allocation2 + $0xc] sm:$0xff]  ;;  %v600_v19 = vld [vmem:[#allocation2] sm:$0xff]  ;;  %s1590_s11 = smov 119   ;;  %s1591_s12 = smov 9   ;;  %1018 = vmatprep.mubr.bf16.mxu0 %v1538_v24  ;;  %v1544_v25 = vld [vmem:[%s1799_s1 + $0x8] ss:$12 sps:$4 sm:$0xff]  }
  0x29   : > { %v602_v13 = vld [vmem:[#allocation2 + $0x18] sm:$0xff]  ;;  %v603_v15 = vld [vmem:[#allocation2 + $0x24] sm:$0xff]  ;;  %s1592_s13 = smov 127   ;;  %s1593_s15 = smov 10   ;;  %v634_v23 = vld [vmem:[#allocation2 + $0x10] sm:$0xf] }
  0x2a   : > { %612 = vrot.lane.b32.xlu1 %v602_v13, %s1589_s10  ;;  %v707_v16 = vld [vmem:[#allocation2 + $0x4] sm:$0xff]  ;;  %v708_v17 = vld [vmem:[#allocation2 + $0x10] sm:$0xff]  ;;  %v635_v20 = vld [vmem:[#allocation2 + $0x1c] sm:$0xf]  ;;  %638 = vst [vmem:[#allocation3 + $0x44] sm:$0xf] %v634_v23 }
  0x2b   : > { %v709_v12 = vld [vmem:[#allocation2 + $0x1c] sm:$0xff]  ;;  %v710_v14 = vld [vmem:[#allocation2 + $0x28] sm:$0xff]  ;;  %639 = vst [vmem:[#allocation3 + $0x48] sm:$0xf] %v635_v20  ;;  %v633_v22 = vld [vmem:[#allocation2 + $0x4] sm:$0xf] }
  0x2c   : > { %719 = vrot.lane.b32.xlu0 %v709_v12, %s1588_s9  ;;  %v636_v21 = vld [vmem:[#allocation2 + $0x28] sm:$0xf]  ;;  %637 = vst [vmem:[#allocation3 + $0x40] sm:$0xf] %v633_v22  ;;  %s1594_s17 = smov 11   ;;  %s1595_s27 = smov 117  }
  0x2d   : > { %640 = vst [vmem:[#allocation3 + $0x4c] sm:$0xf] %v636_v21  ;;  %vm979_vm0 = vcmask 261120   ;;  %v817_v26 = vld [vmem:[%s1800_s2] sm:$0xff]  ;;  %v818_v27 = vld [vmem:[%s1800_s2 + $0x8] sm:$0xff]  ;;  %v1596_v28 = vmov 0  }
  0x2e   : > { %614 = vrot.lane.b32.xlu1 %v603_v15, %s1589_s10  ;;  %1465 = vmatprep.mubr.msk.bf16.mxu1 %vm979_vm0, %v1544_v25  ;;  %v819_v29 = vld [vmem:[%s1800_s2 + $0x10] sm:$0xff]  ;;  %v820_v30 = vld [vmem:[%s1800_s2 + $0x18] sm:$0xff]  ;;  %vm727_vm1 = vcmask 965632   ;;  %vm620_vm2 = vcmask 7168   ;;  %vm694_vm3 = vcmask 973824   ;;  %vm587_vm4 = vcmask 72704  }
  0x2f   : > { %1518 = vset.pattern.permute.xlu0 %v1596_v28  ;;  %1519 = vset.pattern.permute.xlu1 %v1596_v28  ;;  %vm661_vm5 = vcmask 1039360   ;;  %vm554_vm6 = vcmask 80896   ;;  %vm521_vm7 = vcmask 89088   ;;  %vm760_vm8 = vcmask 957440   ;;  %s1394_s14 = sshll.u32 (%p1661_p5), %s1578_s20, 2 }
  0x30   : > { %721 = vrot.lane.b32.xlu0 %v710_v14, %s1588_s9 }
  0x32   : > { %717 = vrot.lane.b32.xlu1 %v708_v17, %s1588_s9 }
  0x34   : > { %715 = vrot.lane.b32.xlu0 %v707_v16, %s1588_s9 }
  0x36   : > { %610 = vrot.lane.b32.xlu1 %v601_v18, %s1589_s10 }
  0x38   : > { %608 = vrot.lane.b32.xlu0 %v600_v19, %s1589_s10 }
  0x3a   : > { %688 = vrot.lane.b32.xlu1 %v710_v14, %s1590_s11 }
  0x3c   : > { %686 = vrot.lane.b32.xlu0 %v709_v12, %s1590_s11 }
  0x3e   : > { %581 = vrot.lane.b32.xlu1 %v603_v15, %s1591_s12 }
  0x40   : > { %579 = vrot.lane.b32.xlu0 %v602_v13, %s1591_s12 }
  0x42   : > { %684 = vrot.lane.b32.xlu1 %v708_v17, %s1590_s11 }
  0x44   : > { %682 = vrot.lane.b32.xlu0 %v707_v16, %s1590_s11 }
  0x46   : > { %577 = vrot.lane.b32.xlu1 %v601_v18, %s1591_s12 }
  0x48   : > { %575 = vrot.lane.b32.xlu0 %v600_v19, %s1591_s12 }
  0x4a   : > { %655 = vrot.lane.b32.xlu1 %v710_v14, %s1592_s13 }
  0x4c   : > { %653 = vrot.lane.b32.xlu0 %v709_v12, %s1592_s13 }
  0x4e   : > { %548 = vrot.lane.b32.xlu1 %v603_v15, %s1593_s15 }
  0x50   : > { %546 = vrot.lane.b32.xlu0 %v602_v13, %s1593_s15 }
  0x52   : > { %651 = vrot.lane.b32.xlu1 %v708_v17, %s1592_s13 }
  0x54   : > { %649 = vrot.lane.b32.xlu0 %v707_v16, %s1592_s13 }
  0x56   : > { %544 = vrot.lane.b32.xlu1 %v601_v18, %s1593_s15 }
  0x58   : > { %542 = vrot.lane.b32.xlu0 %v600_v19, %s1593_s15 }
  0x5a   : > { %515 = vrot.lane.b32.xlu1 %v603_v15, %s1594_s17 }
  0x5c   : > { %513 = vrot.lane.b32.xlu0 %v602_v13, %s1594_s17 }
  0x5e   : > { %511 = vrot.lane.b32.xlu1 %v601_v18, %s1594_s17 }
  0x60   : > { %509 = vrot.lane.b32.xlu0 %v600_v19, %s1594_s17 }
  0x62   : > { %754 = vrot.lane.b32.xlu1 %v710_v14, %s1595_s27 }
  0x64   : > { %752 = vrot.lane.b32.xlu0 %v709_v12, %s1595_s27 }
  0x66   : > { %750 = vrot.lane.b32.xlu1 %v708_v17, %s1595_s27 }
  0x68   : > { %748 = vrot.lane.b32.xlu0 %v707_v16, %s1595_s27 }
  0x6a   : > { %828 = vperm.xlu1 %1519, %v818_v27  }
  0x6c   : > { %823 = vperm.xlu0 %1518, %v817_v26  }
  0x6e   : > { %833 = vperm.xlu1 %1519, %v819_v29  }
  0x70   : > { %838 = vperm.xlu0 %1518, %v820_v30  }
  0x9c   : > { %v613_v32 = vpop.permute.xlu1 %612 }
  0x9d   : > { %v618_v34 = vrot.slane %v613_v32, 4 }
  0x9e   : > { %v720_v31 = vpop.permute.xlu0 %719 }
  0x9f   : > { %v725_v33 = vrot.slane %v720_v31, 4  ;;  %v623_v36 = vsel %vm620_vm2, %v613_v32, %v618_v34 }
  0xa0   : > { %631 = vst [vmem:[#allocation3 + $0x38] sm:$0xf] %v623_v36  ;;  %v615_v38 = vpop.permute.xlu1 %614 }
  0xa1   : > { %v730_v35 = vsel %vm727_vm1, %v720_v31, %v725_v33  ;;  %v619_v40 = vrot.slane %v615_v38, 4 }
  0xa2   : > { %738 = vst [vmem:[#allocation3 + $0x78] sm:$0xf] %v730_v35  ;;  %v722_v37 = vpop.permute.xlu0 %721 }
  0xa3   : > { %v726_v39 = vrot.slane %v722_v37, 4  ;;  %v624_v42 = vsel %vm620_vm2, %v615_v38, %v619_v40 }
  0xa4   : > { %632 = vst [vmem:[#allocation3 + $0x3c] sm:$0xf] %v624_v42  ;;  %v718_v44 = vpop.permute.xlu1 %717 }
  0xa5   : > { %v731_v41 = vsel %vm727_vm1, %v722_v37, %v726_v39  ;;  %v724_v46 = vrot.slane %v718_v44, 4 }
  0xa6   : > { %739 = vst [vmem:[#allocation3 + $0x7c] sm:$0xf] %v731_v41  ;;  %v716_v43 = vpop.permute.xlu0 %715 }
  0xa7   : > { %v723_v45 = vrot.slane %v716_v43, 4  ;;  %v729_v48 = vsel %vm727_vm1, %v718_v44, %v724_v46 }
  0xa8   : > { %737 = vst [vmem:[#allocation3 + $0x74] sm:$0xf] %v729_v48  ;;  %v611_v49 = vpop.permute.xlu1 %610 }
  0xa9   : > { %v728_v47 = vsel %vm727_vm1, %v716_v43, %v723_v45  ;;  %v617_v51 = vrot.slane %v611_v49, 4 }
  0xaa   : > { %736 = vst [vmem:[#allocation3 + $0x70] sm:$0xf] %v728_v47  ;;  %v609_v50 = vpop.permute.xlu0 %608 }
  0xab   : > { %v616_v52 = vrot.slane %v609_v50, 4  ;;  %v622_v53 = vsel %vm620_vm2, %v611_v49, %v617_v51  ;;  %v1521_v58 = vld [vmem:[#allocation3 + $0x38] sm:$0xff]  }
  0xac   : > { %630 = vst [vmem:[#allocation3 + $0x34] sm:$0xf] %v622_v53  ;;  %v689_v56 = vpop.permute.xlu1 %688 }
  0xad   : > { %v621_v54 = vsel %vm620_vm2, %v609_v50, %v616_v52  ;;  %v1520_v55 = vld [vmem:[#allocation3 + $0x78] sm:$0xff]   ;;  %v693_v59 = vrot.slane %v689_v56, 4 }
  0xae   : > { %629 = vst [vmem:[#allocation3 + $0x30] sm:$0xf] %v621_v54  ;;  %v687_v57 = vpop.permute.xlu0 %686  ;;  %1429 = vmatprep.subr.bf16.mxu0 %v1520_v55 }
  0xaf   : > { %v692_v60 = vrot.slane %v687_v57, 4  ;;  %1430 = vmatpush3.bf16.msra.mxu0 %v1521_v58  ;;  %v698_v61 = vsel %vm694_vm3, %v689_v56, %v693_v59 }
  0xb0   : > { %706 = vst [vmem:[#allocation3 + $0x6c] sm:$0xf] %v698_v61  ;;  %v582_v0 = vpop.permute.xlu1 %581  ;;  %v1532_v61 = vld [vmem:[#allocation3 + $0x48] sm:$0xff]  }
  0xb1   : > { %v697_v62 = vsel %vm694_vm3, %v687_v57, %v692_v60  ;;  %v1522_v63 = vld [vmem:[#allocation3 + $0x70] sm:$0xff]   ;;  %v586_v2 = vrot.slane %v582_v0, 4 }
  0xb2   : > { %705 = vst [vmem:[#allocation3 + $0x68] sm:$0xf] %v697_v62  ;;  %v580_v1 = vpop.permute.xlu0 %579  ;;  %1431 = vmatprep.subr.bf16.mxu0 %v1522_v63 }
  0xb3   : > { %v585_v3 = vrot.slane %v580_v1, 4  ;;  %v591_v4 = vsel %vm587_vm4, %v582_v0, %v586_v2 }
  0xb4   : > { %599 = vst [vmem:[#allocation3 + $0x2c] sm:$0xf] %v591_v4  ;;  %v685_v7 = vpop.permute.xlu1 %684 }
  0xb5   : > { %v590_v5 = vsel %vm587_vm4, %v580_v1, %v585_v3  ;;  %v1523_v6 = vld [vmem:[#allocation3 + $0x30] sm:$0xff]   ;;  %v691_v9 = vrot.slane %v685_v7, 4 }
  0xb6   : > { %598 = vst [vmem:[#allocation3 + $0x28] sm:$0xf] %v590_v5  ;;  %v683_v8 = vpop.permute.xlu0 %682  ;;  %1432 = vmatpush3.bf16.msra.mxu0 %v1523_v6  ;;  %v1534_v5 = vld [vmem:[#allocation3 + $0x40] sm:$0xff]  }
  0xb7   : > { %v690_v10 = vrot.slane %v683_v8, 4  ;;  %v696_v11 = vsel %vm694_vm3, %v685_v7, %v691_v9 }
  0xb8   : > { %704 = vst [vmem:[#allocation3 + $0x64] sm:$0xf] %v696_v11  ;;  %v578_v14 = vpop.permute.xlu1 %577 }
  0xb9   : > { %v695_v12 = vsel %vm694_vm3, %v683_v8, %v690_v10  ;;  %v1524_v13 = vld [vmem:[#allocation3 + $0x68] sm:$0xff]   ;;  %v584_v16 = vrot.slane %v578_v14, 4 }
  0xba   : > { %703 = vst [vmem:[#allocation3 + $0x60] sm:$0xf] %v695_v12  ;;  %v576_v15 = vpop.permute.xlu0 %575  ;;  %1433 = vmatprep.subr.bf16.mxu0 %v1524_v13 }
  0xbb   : > { %v583_v17 = vrot.slane %v576_v15, 4  ;;  %v589_v18 = vsel %vm587_vm4, %v578_v14, %v584_v16  ;;  %v1536_v16 = vld [vmem:[%s1799_s1] ss:$12 sps:$4 sm:$0xff]  }
  0xbc   : > { %597 = vst [vmem:[#allocation3 + $0x24] sm:$0xf] %v589_v18  ;;  %v656_v21 = vpop.permute.xlu1 %655 }
  0xbd   : > { %v588_v19 = vsel %vm587_vm4, %v576_v15, %v583_v17  ;;  %v1525_v20 = vld [vmem:[#allocation3 + $0x28] sm:$0xff]   ;;  %v660_v23 = vrot.slane %v656_v21, 4 }
  0xbe   : > { %596 = vst [vmem:[#allocation3 + $0x20] sm:$0xf] %v588_v19  ;;  %v654_v22 = vpop.permute.xlu0 %653  ;;  %1434 = vmatpush3.bf16.msra.mxu0 %v1525_v20  ;;  %v1541_v17 = vld [vmem:[%s1799_s1 + $0x1c] ss:$12 sps:$4 sm:$0xff]   ;;  %v1543_v20 = vld [vmem:[%s1799_s1 + $0x18] ss:$12 sps:$4 sm:$0xff]  }
  0xbf   : > { %v659_v24 = vrot.slane %v654_v22, 4  ;;  %v665_v25 = vsel %vm661_vm5, %v656_v21, %v660_v23  ;;  %v1545_v21 = vld [vmem:[%s1799_s1 + $0x20] ss:$12 sps:$4 sm:$0xff]  }
  0xc0   : > { %673 = vst [vmem:[#allocation3 + $0x5c] sm:$0xf] %v665_v25  ;;  %v549_v29 = vpop.permute.xlu1 %548 }
  0xc1   : > { %v664_v26 = vsel %vm661_vm5, %v654_v22, %v659_v24  ;;  %v1526_v27 = vld [vmem:[#allocation3 + $0x60] sm:$0xff]   ;;  %v553_v31 = vrot.slane %v549_v29, 4  ;;  %v1103_v24 = vlaneseq }
  0xc2   : > { %672 = vst [vmem:[#allocation3 + $0x58] sm:$0xf] %v664_v26  ;;  %v547_v30 = vpop.permute.xlu0 %546  ;;  %1435 = vmatprep.subr.bf16.mxu0 %v1526_v27  ;;  %v1100_v27 = vld [vmem:[%s289_s26] sm:$0x1] }
  0xc3   : > { %v552_v32 = vrot.slane %v547_v30, 4  ;;  %v558_v33 = vsel %vm554_vm6, %v549_v29, %v553_v31  ;;  %v1104_v31 = vshrl.u32 %v1103_v24, 7  ;;  %vm1101_vm9 = vcmp.gt.f32.partialorder %v1100_v27, 0.0 }
  0xc4   : > { %566 = vst [vmem:[#allocation3 + $0x1c] sm:$0xf] %v558_v33  ;;  %v652_v36 = vpop.permute.xlu1 %651  ;;  %v1410_v33 = vld [vmem:[%s260_s18] sm:$0xff]  }
  0xc5   : > { %v557_v34 = vsel %vm554_vm6, %v547_v30, %v552_v32  ;;  %v1527_v35 = vld [vmem:[#allocation3 + $0x20] sm:$0xff]   ;;  %v658_v38 = vrot.slane %v652_v36, 4 }
  0xc6   : > { %565 = vst [vmem:[#allocation3 + $0x18] sm:$0xf] %v557_v34  ;;  %v650_v37 = vpop.permute.xlu0 %649  ;;  %1436 = vmatpush3.bf16.msra.mxu0 %v1527_v35 }
  0xc7   : > { %v657_v39 = vrot.slane %v650_v37, 4  ;;  %v663_v40 = vsel %vm661_vm5, %v652_v36, %v658_v38 }
  0xc8   : > { %671 = vst [vmem:[#allocation3 + $0x54] sm:$0xf] %v663_v40  ;;  %v545_v43 = vpop.permute.xlu1 %544  ;;  %v1427_v40 = vld [vmem:[%s260_s18 + $0x8] sm:$0xff]   ;;  %s1254_s18 = scalar_lea.vmem (%p1661_p5), %s1803_s5, %s1394_s14 }
  0xc9   : > { %v662_v41 = vsel %vm661_vm5, %v650_v37, %v657_v39  ;;  %v1528_v42 = vld [vmem:[#allocation3 + $0x58] sm:$0xff]   ;;  %v551_v45 = vrot.slane %v545_v43, 4  ;;  %v1411_v39 = vunpack.c.l.bf16 %v1410_v33 }
  0xca   : > { %670 = vst [vmem:[#allocation3 + $0x50] sm:$0xf] %v662_v41  ;;  %v543_v44 = vpop.permute.xlu0 %542  ;;  %1437 = vmatprep.subr.bf16.mxu0 %v1528_v42  ;;  %v1105_v42 = vsub.s32 0, %v1104_v31 }
  0xcb   : > { %v550_v46 = vrot.slane %v543_v44, 4  ;;  %v556_v47 = vsel %vm554_vm6, %v545_v43, %v551_v45  ;;  %v1102_v45 = vsel %vm1101_vm9, 1, %v1596_v28 }
  0xcc   : > { %564 = vst [vmem:[#allocation3 + $0x14] sm:$0xf] %v556_v47  ;;  %v516_v50 = vpop.permute.xlu1 %515 }
  0xcd   : > { %v555_v48 = vsel %vm554_vm6, %v543_v44, %v550_v46  ;;  %v1529_v49 = vld [vmem:[#allocation3 + $0x18] sm:$0xff]   ;;  %v520_v52 = vrot.slane %v516_v50, 4 }
  0xce   : > { %563 = vst [vmem:[#allocation3 + $0x10] sm:$0xf] %v555_v48  ;;  %v514_v51 = vpop.permute.xlu0 %513  ;;  %1438 = vmatpush3.bf16.msra.mxu0 %v1529_v49  ;;  %v1415_v48 = vunpack.c.l.bf16 %v1427_v40 }
  0xcf   : > { %v519_v53 = vrot.slane %v514_v51, 4  ;;  %v525_v54 = vsel %vm521_vm7, %v516_v50, %v520_v52 }
  0xd0   : > { %533 = vst [vmem:[#allocation3 + $0xc] sm:$0xf] %v525_v54  ;;  %v512_v57 = vpop.permute.xlu1 %511  ;;  %v1412_v54 = vunpack.c.h.bf16 %v1410_v33 }
  0xd1   : > { %v524_v55 = vsel %vm521_vm7, %v514_v51, %v519_v53  ;;  %v1530_v56 = vld [vmem:[#allocation3 + $0x50] sm:$0xff]   ;;  %v518_v59 = vrot.slane %v512_v57, 4 }
  0xd2   : > { %532 = vst [vmem:[#allocation3 + $0x8] sm:$0xf] %v524_v55  ;;  %v510_v58 = vpop.permute.xlu0 %509  ;;  %1439 = vmatprep.subr.bf16.mxu0 %v1530_v56  ;;  %v1106_v55 = vrot.slane %v1102_v45, %v1105_v42 }
  0xd3   : > { %v517_v60 = vrot.slane %v510_v58, 4  ;;  %v523_v62 = vsel %vm521_vm7, %v512_v57, %v518_v59 }
  0xd4   : > { %531 = vst [vmem:[#allocation3 + $0x4] sm:$0xf] %v523_v62  ;;  %v755_v1 = vpop.permute.xlu1 %754  ;;  %vm1107_vm10 = vcmp.eq.s32.totalorder %v1106_v55, 1 }
  0xd5   : > { %v522_v63 = vsel %vm521_vm7, %v510_v58, %v517_v60  ;;  %v1531_v0 = vld [vmem:[#allocation3 + $0x10] sm:$0xff]   ;;  %v759_v3 = vrot.slane %v755_v1, 4 }
  0xd6   : > { %530 = vst [vmem:[#allocation3] sm:$0xf] %v522_v63  ;;  %v753_v2 = vpop.permute.xlu0 %752  ;;  %1440 = vmatpush3.bf16.msra.mxu0 %v1531_v0  ;;  %v1416_v63 = vunpack.c.h.bf16 %v1427_v40 }
  0xd7   : > { %v758_v4 = vrot.slane %v753_v2, 4  ;;  %1441 = vmatprep.subr.bf16.mxu0 %v1532_v61  ;;  %v764_v6 = vsel %vm760_vm8, %v755_v1, %v759_v3 }
  0xd8   : > { %772 = vst [vmem:[#allocation3 + $0x8c] sm:$0xf] %v764_v6  ;;  %v751_v9 = vpop.permute.xlu1 %750 }
  0xd9   : > { %v763_v7 = vsel %vm760_vm8, %v753_v2, %v758_v4  ;;  %v1533_v8 = vld [vmem:[#allocation3 + $0x8] sm:$0xff]   ;;  %v757_v11 = vrot.slane %v751_v9, 4 }
  0xda   : > { %771 = vst [vmem:[#allocation3 + $0x88] sm:$0xf] %v763_v7  ;;  %v749_v10 = vpop.permute.xlu0 %748  ;;  %1442 = vmatpush3.bf16.msra.mxu0 %v1533_v8 }
  0xdb   : > { %v756_v12 = vrot.slane %v749_v10, 4  ;;  %1443 = vmatprep.subr.bf16.mxu0 %v1534_v5  ;;  %v762_v13 = vsel %vm760_vm8, %v751_v9, %v757_v11 }
  0xdc   : > { %770 = vst [vmem:[#allocation3 + $0x84] sm:$0xf] %v762_v13 }
  0xdd   : > { %v761_v14 = vsel %vm760_vm8, %v749_v10, %v756_v12  ;;  %v1535_v15 = vld [vmem:[#allocation3] sm:$0xff]  }
  0xde   : > { %769 = vst [vmem:[#allocation3 + $0x80] sm:$0xf] %v761_v14  ;;  %1444 = vmatpush3.bf16.msra.mxu0 %v1535_v15 }
  0xe1   : > { %v1539_v18 = vld [vmem:[#allocation3 + $0x88] sm:$0xff]   ;;  %1019 = vmatmul.mubr.bf16.vlgmr.msra.gmra.mxu0 %v1536_v16 }
  0xe2   : > { %1461 = vmatprep.subr.bf16.mxu1 %v1539_v18  ;;  %1026 = vmatprep.mubr.bf16.mxu0 %v1541_v17 }
  0xe3   : > { %1462 = vmatpush3.bf16.msra.mxu1 %v1539_v18 }
  0xe5   : > { %v1540_v19 = vld [vmem:[#allocation3 + $0x80] sm:$0xff]   ;;  %v829_v26 = vpop.permute.xlu1 %828 }
  0xe6   : > { %1463 = vmatprep.subr.bf16.mxu1 %v1540_v19 }
  0xe7   : > { %1464 = vmatpush3.bf16.msra.mxu1 %v1540_v19  ;;  %v824_v32 = vpop.permute.xlu0 %823 }
  0xe9   : > { %1027 = vmatmul.mubr.bf16.gmra.mxu0 %v1543_v20  ;;  %v834_v41 = vpop.permute.xlu1 %833 }
  0xea   : > { %1466 = vmatmul.mubr.msk.bf16.vlgmr.msra.gmra.mxu1 %vm979_vm0, %v1545_v21 }
  0xeb   : > { %v839_v59 = vpop.permute.xlu0 %838 }
 0x1a1   : > { %v1445_v22 = vpop.f32.mrf.mxu0 }
 0x1a3   : > { %v1446_v23 = vpop.f32.mrf.mxu0 }
 0x1a4   : > { %v1447_v29 = vadd.f32 %v1446_v23, %v1445_v22 }
 0x1a5   : > { %v1448_v25 = vpop.f32.mrf.mxu0 }
 0x1a6   : > { %v1021_v36 = vadd.f32 %v1447_v29, %v824_v32 }
 0x1a7   : > { %v1449_v30 = vpop.f32.mrf.mxu0 }
 0x1a8   : > { %v1450_v37 = vadd.f32 %v1449_v30, %v1448_v25 }
 0x1a9   : > { %v1451_v34 = vpop.f32.mrf.mxu0 }
 0x1aa   : > { %v1467_v35 = vpop.f32.mrf.mxu1  ;;  %v1024_v51 = vadd.f32 %v1450_v37, %v829_v26 }
 0x1ab   : > { %v1452_v38 = vpop.f32.mrf.mxu0 }
 0x1ac   : > { %v1453_v43 = vadd.f32 %v1452_v38, %v1451_v34  ;;  %v1069_v44 = vpop.f32.mrf.mxu1 }
 0x1ad   : > { %v1070_v46 = vadd.f32 %v1069_v44, %v1021_v36  ;;  %v1454_v47 = vpop.f32.mrf.mxu0 }
 0x1ae   : > { %v1029_v49 = vadd.f32 %v1453_v43, %v834_v41  ;;  %v1468_v50 = vpop.f32.mrf.mxu1 }
 0x1af   : > { %v1092_v52 = vadd.f32 %v1411_v39, %v1070_v46  ;;  %v1455_v53 = vpop.f32.mrf.mxu0 }
 0x1b0   : > { %v1078_v56 = vadd.f32 %v1467_v35, %v1029_v49  ;;  %v1456_v57 = vadd.f32 %v1455_v53, %v1454_v47  ;;  %v1072_v58 = vpop.f32.mrf.mxu1 }
 0x1b1   : > { %v1073_v60 = vadd.f32 %v1072_v58, %v1024_v51  ;;  %v1096_v28 = vmax.f32 %v1092_v52, 0.0 }
 0x1b2   : > { %v1094_v61 = vadd.f32 %v1415_v48, %v1078_v56  ;;  %v1032_v62 = vadd.f32 %v1456_v57, %v839_v59 }
 0x1b3   : > { %v1093_v0 = vadd.f32 %v1412_v54, %v1073_v60  ;;  %v1108_v5 = vsel %vm1107_vm10, %v1096_v28, 0.0 }
 0x1b4   : > { %v1081_v1 = vadd.f32 %v1468_v50, %v1032_v62  ;;  %v1098_v3 = vmax.f32 %v1094_v61, 0.0 }
 0x1b5   : > { %v1097_v2 = vmax.f32 %v1093_v0, 0.0 }
 0x1b6   : > { %v1095_v4 = vadd.f32 %v1416_v63, %v1081_v1  ;;  %v1110_v9 = vsel %vm1107_vm10, %v1098_v3, 0.0 }
 0x1b7   : > { %v1109_v6 = vsel %vm1107_vm10, %v1097_v2, 0.0 }
 0x1b8   : > { %v1099_v7 = vmax.f32 %v1095_v4, 0.0  ;;  %v1420_v8 = vpack.c.bf16 %v1109_v6, %v1108_v5 }
 0x1b9   : > { %1138 = sbr.rel (!%p1661_p5) target bundleno = 454 (0x1c6), region = 163 }
 0x1ba   : > { %v1111_v10 = vsel %vm1107_vm10, %v1099_v7, 0.0  ;;  %1421 = vst [vmem:[%s1693_s8] sm:$0xff] %v1420_v8  }
 0x1bb   : > { %v1425_v11 = vpack.c.bf16 %v1111_v10, %v1110_v9 }
 0x1bd   : > { %1428 = vst [vmem:[%s1693_s8 + $0x8] sm:$0xff] %v1425_v11  }
 0x1c1   : > { %v1159_v12 = vld [vmem:[%s1693_s8] sm:$0xf]  ;;  %v1161_v13 = vld [vmem:[%s1693_s8 + $0x4] sm:$0xf] }
 0x1c2   : > { %1395 = vst [vmem:[%s1254_s18 + $0x4] sm:$0xf] %v1159_v12  ;;  %1396 = vst [vmem:[%s1254_s18 + $0x14] sm:$0xf] %v1161_v13 }
 0x1c4   : > { %v1163_v14 = vld [vmem:[%s1693_s8 + $0x8] sm:$0xf]  ;;  %v1165_v15 = vld [vmem:[%s1693_s8 + $0xc] sm:$0xf] }
 0x1c5   : > { %1397 = vst [vmem:[%s1254_s18 + $0x24] sm:$0xf] %v1163_v14  ;;  %1398 = vst [vmem:[%s1254_s18 + $0x34] sm:$0xf] %v1165_v15 }
 0x1c6 PF: > { %s15_s22 = sadd.s32 1, %s1586_s22   ;;  %s1805_s18 = smov %s1574_s19 }
 0x1c7   : > { %p12_p12 = scmp.ge.s32.totalorder %s15_s22, 4   ;;  %s1806_s19 = smov %s1666_s30 }
 0x1c8   : > { %s1807_s20 = smov %s1582_s21  ;;  %s1808_s21 = smov %s1657_s25 }
 0x1c9   :  { %14 = sbr.rel (!%p12_p12) target bundleno = 3 (0x3), region = 273 }
 0x1ce   :  { %1208 = vsyncmov [#allocation4] }
 0x1d1   :  { %s1209_s29 = vpop.sfrf %1208 }
 0x1d2   :  { %p1401_p13 = scmp.ne.s32.totalorder %s1209_s29, 0 }
 0x1d4   :  { %1213 = shalt.err (%p1401_p13)  }
 0x1d5   :  { %1215 = vsyncmov [#allocation4 + $0x1] }
 0x1d8   :  { %s1216_s8 = vpop.sfrf %1215 }
 0x1d9   :  { %p1402_p0 = scmp.ne.s32.totalorder %s1216_s8, 0 }
 0x1db   :  { %1220 = shalt.err (%p1402_p0)  }

// kernel: resnet_cifar_forward.32
= control target key start
LH: loop header
LB: loop body
LE: loop exit
PB: predicated region body
PF: predicated region fallthrough
CT: control target
= control target key end

     0   :  { %s1464_s15 = smov 0   ;;  %s1466_s16 = smov 0   ;;  %s1616_s0 = inlined_call_operand.vmem [shape: bf16[32,512], index: 0, kind: input, shape index: {}]   ;;  %s1617_s1 = inlined_call_operand.vmem [shape: bf16[32,288], index: 1, kind: input, shape index: {}]   ;;  %s1618_s2 = inlined_call_operand.vmem [shape: f32[32,1], index: 2, kind: input, shape index: {}]   ;;  %s1619_s3 = inlined_call_operand.vmem [shape: f32[1,256], index: 3, kind: input, shape index: {}]   ;;  %s1620_s4 = inlined_call_operand.vmem [shape: bf16[32,512], index: 4, kind: output, shape index: {}]  }
   0x1   :  { %s1468_s17 = smov 0   ;;  %s1470_s18 = smov 0  }
   0x2   :  { %s1472_s19 = smov 0  }
   0x3 LB: > { %s1183_s20 = sadd.s32 4294967295, %s1428_s19   ;;  %s26_s21 = sadd.s32 1, %s1424_s18  ;;  %s1428_s19 = sphi %s1472_s19, %s14_s19   ;;  %s1424_s18 = sphi %s1470_s18, %s1625_s18   ;;  %s1420_s17 = sphi %s1468_s17, %s1624_s17   ;;  %s1416_s16 = sphi %s1466_s16, %s1623_s16   ;;  %s1412_s15 = sphi %s1464_s15, %s1622_s15  }
   0x4   : > { %p28_p0 = scmp.ge.s32.totalorder %s26_s21, 2  ;;  %p117_p1 = scmp.ne.s32.totalorder %s1416_s16, %s1412_s15 }
   0x5   : > { %p118_p2 = scmp.eq.s32.totalorder %s1183_s20, 1  ;;  %p1187_p4 = scmp.ge.s32.totalorder %s1428_s19, 1 }
   0x6   : > { %s1490_s22 = scalar_select %p28_p0, 0, %s26_s21  }
   0x7   : > { %p1492_p3 = por %p118_p2, %p117_p1  ;;  %p156_p5 = scmp.lt.s32.totalorder %s1428_s19, 3 }
   0x8   : > { %s103_s24 = sadd.s32 1, %s1490_s22  ;;  %s107_s26 = sadd.s32 1, %s1416_s16 }
   0x9   : > { %s104_s25 = ssub.s32 %s26_s21, %s103_s24  ;;  %p157_p7 = pnand %p1187_p4, %p156_p5 }
   0xa   : > { %p105_p6 = scmp.eq.s32.totalorder %s104_s25, 0  ;;  %s175_s28 = sand.u32 (!%p157_p7), 1, %s1412_s15  }
   0xb   : > { %160 = sbr.rel (%p157_p7) target bundleno = 438 (0x1b6), region = 32  ;;  %p179_p8 = scmp.lt.s32.totalorder (!%p157_p7), %s1420_s17, 1 }
   0xc   : > { %s1501_s27 = scalar_select %p105_p6, %s1416_s16, %s107_s26  }
   0xd   : > { %s1188_s29 = sshll.u32 (!%p157_p7), %s175_s28, 4  ;;  %s1189_s30 = sshll.u32 (!%p157_p7), %s1420_s17, 7 }
   0xe   : > { %s192_s5 = sshra.s32 (!%p157_p7), %s1189_s30, 7  ;;  %s1515_s14 = scalar_lea.vmem (!%p157_p7), [#allocation5], %s1188_s29 }
   0xf   : > { %s1190_s7 = sshll.u32 (!%p157_p7), %s192_s5, 2 }
  0x10   : > { %s1506_s6 = scalar_select %p179_p8, %s1420_s17, 1 }
  0x11   : > { %s195_s13 = scalar_lea.vmem %s1616_s0, %s1190_s7 }
  0x12   : > { %s181_s10 = scalar_lea.vmem %s1619_s3, %s1506_s6  ;;  %v240_v0 = vld [vmem:[%s195_s13] sm:$0xff]  ;;  %v242_v1 = vld [vmem:[%s195_s13 + $0x10] sm:$0xff]  ;;  %v1191_v4 = vld [vmem:[%s195_s13 + $0x8] sm:$0xf] }
  0x13   : > { %v244_v2 = vld [vmem:[%s195_s13 + $0x20] sm:$0xff]  ;;  %241 = vst [vmem:[#allocation2] sm:$0xff] %v240_v0  ;;  %243 = vst [vmem:[#allocation2 + $0xc] sm:$0xff] %v242_v1  ;;  %v246_v3 = vld [vmem:[%s195_s13 + $0x30] sm:$0xff] }
  0x14   : > { %245 = vst [vmem:[#allocation2 + $0x18] sm:$0xff] %v244_v2  ;;  %v1192_v5 = vld [vmem:[%s195_s13 + $0x18] sm:$0xf]  ;;  %247 = vst [vmem:[#allocation2 + $0x24] sm:$0xff] %v246_v3  ;;  %v1193_v6 = vld [vmem:[%s195_s13 + $0x28] sm:$0xf] }
  0x15   : > { %259 = vst [vmem:[#allocation2 + $0x8] sm:$0xf] %v1191_v4  ;;  %261 = vst [vmem:[#allocation2 + $0x14] sm:$0xf] %v1192_v5  ;;  %v1194_v7 = vld [vmem:[%s195_s13 + $0x38] sm:$0xf] }
  0x16   : > { %263 = vst [vmem:[#allocation2 + $0x20] sm:$0xf] %v1193_v6  ;;  %265 = vst [vmem:[#allocation2 + $0x2c] sm:$0xf] %v1194_v7 }
  0x17   : > { %269 = vsyncadd [#allocation4], 768 }
  0x18   : > { %1408 = dma.done.wait [#allocation4], 768 }
  0x19   : > { %1409 = vsyncadd [#allocation4], 4294966528  ;;  %s1430_s15 = smov 118   ;;  %s1431_s20 = smov 1   ;;  %v1380_v20 = vld [vmem:[%s1617_s1 + $0x4] ss:$12 sps:$4 sm:$0xff]  }
  0x1a   : > { %v491_v14 = vld [vmem:[#allocation2 + $0xc] sm:$0xff]  ;;  %v490_v15 = vld [vmem:[#allocation2] sm:$0xff]  ;;  %s1432_s21 = smov 119   ;;  %s1433_s24 = smov 9   ;;  %908 = vmatprep.mubr.bf16.mxu0 %v1380_v20  ;;  %v1386_v21 = vld [vmem:[%s1617_s1 + $0x8] ss:$12 sps:$4 sm:$0xff]  }
  0x1b   : > { %v492_v9 = vld [vmem:[#allocation2 + $0x18] sm:$0xff]  ;;  %v493_v11 = vld [vmem:[#allocation2 + $0x24] sm:$0xff]  ;;  %s1434_s25 = smov 127   ;;  %s1435_s26 = smov 10   ;;  %v524_v19 = vld [vmem:[#allocation2 + $0x10] sm:$0xf] }
  0x1c   : > { %502 = vrot.lane.b32.xlu1 %v492_v9, %s1431_s20  ;;  %v597_v12 = vld [vmem:[#allocation2 + $0x4] sm:$0xff]  ;;  %v598_v13 = vld [vmem:[#allocation2 + $0x10] sm:$0xff]  ;;  %v525_v16 = vld [vmem:[#allocation2 + $0x1c] sm:$0xf]  ;;  %528 = vst [vmem:[#allocation3 + $0x44] sm:$0xf] %v524_v19 }
  0x1d   : > { %v599_v8 = vld [vmem:[#allocation2 + $0x1c] sm:$0xff]  ;;  %v600_v10 = vld [vmem:[#allocation2 + $0x28] sm:$0xff]  ;;  %529 = vst [vmem:[#allocation3 + $0x48] sm:$0xf] %v525_v16  ;;  %v523_v18 = vld [vmem:[#allocation2 + $0x4] sm:$0xf] }
  0x1e   : > { %609 = vrot.lane.b32.xlu0 %v599_v8, %s1430_s15  ;;  %v526_v17 = vld [vmem:[#allocation2 + $0x28] sm:$0xf]  ;;  %527 = vst [vmem:[#allocation3 + $0x40] sm:$0xf] %v523_v18  ;;  %s1436_s28 = smov 11   ;;  %s1437_s5 = smov 117  }
  0x1f   : > { %530 = vst [vmem:[#allocation3 + $0x4c] sm:$0xf] %v526_v17  ;;  %vm869_vm0 = vcmask 261120   ;;  %v707_v22 = vld [vmem:[%s1618_s2] sm:$0xff]  ;;  %v708_v23 = vld [vmem:[%s1618_s2 + $0x8] sm:$0xff]  ;;  %v1438_v24 = vmov 0  }
  0x20   : > { %504 = vrot.lane.b32.xlu1 %v493_v11, %s1431_s20  ;;  %1307 = vmatprep.mubr.msk.bf16.mxu1 %vm869_vm0, %v1386_v21  ;;  %v709_v25 = vld [vmem:[%s1618_s2 + $0x10] sm:$0xff]  ;;  %v710_v26 = vld [vmem:[%s1618_s2 + $0x18] sm:$0xff]  ;;  %vm617_vm1 = vcmask 965632   ;;  %vm510_vm2 = vcmask 7168   ;;  %vm584_vm3 = vcmask 973824   ;;  %vm477_vm4 = vcmask 72704  }
  0x21   : > { %1360 = vset.pattern.permute.xlu0 %v1438_v24  ;;  %1361 = vset.pattern.permute.xlu1 %v1438_v24  ;;  %vm551_vm5 = vcmask 1039360   ;;  %vm444_vm6 = vcmask 80896   ;;  %vm411_vm7 = vcmask 89088   ;;  %vm650_vm8 = vcmask 957440   ;;  %s1245_s6 = sshll.u32 (%p1492_p3), %s1420_s17, 2 }
  0x22   : > { %611 = vrot.lane.b32.xlu0 %v600_v10, %s1430_s15  ;;  %s1122_s13 = scalar_lea.vmem (%p1492_p3), %s1620_s4, %s1245_s6 }
  0x24   : > { %607 = vrot.lane.b32.xlu1 %v598_v13, %s1430_s15 }
  0x26   : > { %605 = vrot.lane.b32.xlu0 %v597_v12, %s1430_s15 }
  0x28   : > { %500 = vrot.lane.b32.xlu1 %v491_v14, %s1431_s20 }
  0x2a   : > { %498 = vrot.lane.b32.xlu0 %v490_v15, %s1431_s20 }
  0x2c   : > { %578 = vrot.lane.b32.xlu1 %v600_v10, %s1432_s21 }
  0x2e   : > { %576 = vrot.lane.b32.xlu0 %v599_v8, %s1432_s21 }
  0x30   : > { %471 = vrot.lane.b32.xlu1 %v493_v11, %s1433_s24 }
  0x32   : > { %469 = vrot.lane.b32.xlu0 %v492_v9, %s1433_s24 }
  0x34   : > { %574 = vrot.lane.b32.xlu1 %v598_v13, %s1432_s21 }
  0x36   : > { %572 = vrot.lane.b32.xlu0 %v597_v12, %s1432_s21 }
  0x38   : > { %467 = vrot.lane.b32.xlu1 %v491_v14, %s1433_s24 }
  0x3a   : > { %465 = vrot.lane.b32.xlu0 %v490_v15, %s1433_s24 }
  0x3c   : > { %545 = vrot.lane.b32.xlu1 %v600_v10, %s1434_s25 }
  0x3e   : > { %543 = vrot.lane.b32.xlu0 %v599_v8, %s1434_s25 }
  0x40   : > { %438 = vrot.lane.b32.xlu1 %v493_v11, %s1435_s26 }
  0x42   : > { %436 = vrot.lane.b32.xlu0 %v492_v9, %s1435_s26 }
  0x44   : > { %541 = vrot.lane.b32.xlu1 %v598_v13, %s1434_s25 }
  0x46   : > { %539 = vrot.lane.b32.xlu0 %v597_v12, %s1434_s25 }
  0x48   : > { %434 = vrot.lane.b32.xlu1 %v491_v14, %s1435_s26 }
  0x4a   : > { %432 = vrot.lane.b32.xlu0 %v490_v15, %s1435_s26 }
  0x4c   : > { %405 = vrot.lane.b32.xlu1 %v493_v11, %s1436_s28 }
  0x4e   : > { %403 = vrot.lane.b32.xlu0 %v492_v9, %s1436_s28 }
  0x50   : > { %401 = vrot.lane.b32.xlu1 %v491_v14, %s1436_s28 }
  0x52   : > { %399 = vrot.lane.b32.xlu0 %v490_v15, %s1436_s28 }
  0x54   : > { %644 = vrot.lane.b32.xlu1 %v600_v10, %s1437_s5 }
  0x56   : > { %642 = vrot.lane.b32.xlu0 %v599_v8, %s1437_s5 }
  0x58   : > { %640 = vrot.lane.b32.xlu1 %v598_v13, %s1437_s5 }
  0x5a   : > { %638 = vrot.lane.b32.xlu0 %v597_v12, %s1437_s5 }
  0x5c   : > { %718 = vperm.xlu1 %1361, %v708_v23  }
  0x5e   : > { %713 = vperm.xlu0 %1360, %v707_v22  }
  0x60   : > { %723 = vperm.xlu1 %1361, %v709_v25  }
  0x62   : > { %728 = vperm.xlu0 %1360, %v710_v26  }
  0x8e   : > { %v503_v28 = vpop.permute.xlu1 %502 }
  0x8f   : > { %v508_v30 = vrot.slane %v503_v28, 4 }
  0x90   : > { %v610_v27 = vpop.permute.xlu0 %609 }
  0x91   : > { %v615_v29 = vrot.slane %v610_v27, 4  ;;  %v513_v32 = vsel %vm510_vm2, %v503_v28, %v508_v30 }
  0x92   : > { %521 = vst [vmem:[#allocation3 + $0x38] sm:$0xf] %v513_v32  ;;  %v505_v34 = vpop.permute.xlu1 %504 }
  0x93   : > { %v620_v31 = vsel %vm617_vm1, %v610_v27, %v615_v29  ;;  %v509_v36 = vrot.slane %v505_v34, 4 }
  0x94   : > { %628 = vst [vmem:[#allocation3 + $0x78] sm:$0xf] %v620_v31  ;;  %v612_v33 = vpop.permute.xlu0 %611 }
  0x95   : > { %v616_v35 = vrot.slane %v612_v33, 4  ;;  %v514_v38 = vsel %vm510_vm2, %v505_v34, %v509_v36 }
  0x96   : > { %522 = vst [vmem:[#allocation3 + $0x3c] sm:$0xf] %v514_v38  ;;  %v608_v40 = vpop.permute.xlu1 %607 }
  0x97   : > { %v621_v37 = vsel %vm617_vm1, %v612_v33, %v616_v35  ;;  %v614_v42 = vrot.slane %v608_v40, 4 }
  0x98   : > { %629 = vst [vmem:[#allocation3 + $0x7c] sm:$0xf] %v621_v37  ;;  %v606_v39 = vpop.permute.xlu0 %605 }
  0x99   : > { %v613_v41 = vrot.slane %v606_v39, 4  ;;  %v619_v44 = vsel %vm617_vm1, %v608_v40, %v614_v42 }
  0x9a   : > { %627 = vst [vmem:[#allocation3 + $0x74] sm:$0xf] %v619_v44  ;;  %v501_v45 = vpop.permute.xlu1 %500 }
  0x9b   : > { %v618_v43 = vsel %vm617_vm1, %v606_v39, %v613_v41  ;;  %v507_v47 = vrot.slane %v501_v45, 4 }
  0x9c   : > { %626 = vst [vmem:[#allocation3 + $0x70] sm:$0xf] %v618_v43  ;;  %v499_v46 = vpop.permute.xlu0 %498 }
  0x9d   : > { %v506_v48 = vrot.slane %v499_v46, 4  ;;  %v512_v49 = vsel %vm510_vm2, %v501_v45, %v507_v47  ;;  %v1363_v54 = vld [vmem:[#allocation3 + $0x38] sm:$0xff]  }
  0x9e   : > { %520 = vst [vmem:[#allocation3 + $0x34] sm:$0xf] %v512_v49  ;;  %v579_v52 = vpop.permute.xlu1 %578 }
  0x9f   : > { %v511_v50 = vsel %vm510_vm2, %v499_v46, %v506_v48  ;;  %v1362_v51 = vld [vmem:[#allocation3 + $0x78] sm:$0xff]   ;;  %v583_v55 = vrot.slane %v579_v52, 4 }
  0xa0   : > { %519 = vst [vmem:[#allocation3 + $0x30] sm:$0xf] %v511_v50  ;;  %v577_v53 = vpop.permute.xlu0 %576  ;;  %1271 = vmatprep.subr.bf16.mxu0 %v1362_v51 }
  0xa1   : > { %v582_v56 = vrot.slane %v577_v53, 4  ;;  %1272 = vmatpush3.bf16.msra.mxu0 %v1363_v54  ;;  %v588_v57 = vsel %vm584_vm3, %v579_v52, %v583_v55 }
  0xa2   : > { %596 = vst [vmem:[#allocation3 + $0x6c] sm:$0xf] %v588_v57  ;;  %v472_v60 = vpop.permute.xlu1 %471  ;;  %v1374_v57 = vld [vmem:[#allocation3 + $0x48] sm:$0xff]  }
  0xa3   : > { %v587_v58 = vsel %vm584_vm3, %v577_v53, %v582_v56  ;;  %v1364_v59 = vld [vmem:[#allocation3 + $0x70] sm:$0xff]   ;;  %v476_v62 = vrot.slane %v472_v60, 4 }
  0xa4   : > { %595 = vst [vmem:[#allocation3 + $0x68] sm:$0xf] %v587_v58  ;;  %v470_v61 = vpop.permute.xlu0 %469  ;;  %1273 = vmatprep.subr.bf16.mxu0 %v1364_v59 }
  0xa5   : > { %v475_v63 = vrot.slane %v470_v61, 4  ;;  %v481_v0 = vsel %vm477_vm4, %v472_v60, %v476_v62 }
  0xa6   : > { %489 = vst [vmem:[#allocation3 + $0x2c] sm:$0xf] %v481_v0  ;;  %v575_v3 = vpop.permute.xlu1 %574 }
  0xa7   : > { %v480_v1 = vsel %vm477_vm4, %v470_v61, %v475_v63  ;;  %v1365_v2 = vld [vmem:[#allocation3 + $0x30] sm:$0xff]   ;;  %v581_v5 = vrot.slane %v575_v3, 4 }
  0xa8   : > { %488 = vst [vmem:[#allocation3 + $0x28] sm:$0xf] %v480_v1  ;;  %v573_v4 = vpop.permute.xlu0 %572  ;;  %1274 = vmatpush3.bf16.msra.mxu0 %v1365_v2  ;;  %v1376_v1 = vld [vmem:[#allocation3 + $0x40] sm:$0xff]  }
  0xa9   : > { %v580_v6 = vrot.slane %v573_v4, 4  ;;  %v586_v7 = vsel %vm584_vm3, %v575_v3, %v581_v5 }
  0xaa   : > { %594 = vst [vmem:[#allocation3 + $0x64] sm:$0xf] %v586_v7  ;;  %v468_v10 = vpop.permute.xlu1 %467 }
  0xab   : > { %v585_v8 = vsel %vm584_vm3, %v573_v4, %v580_v6  ;;  %v1366_v9 = vld [vmem:[#allocation3 + $0x68] sm:$0xff]   ;;  %v474_v12 = vrot.slane %v468_v10, 4 }
  0xac   : > { %593 = vst [vmem:[#allocation3 + $0x60] sm:$0xf] %v585_v8  ;;  %v466_v11 = vpop.permute.xlu0 %465  ;;  %1275 = vmatprep.subr.bf16.mxu0 %v1366_v9 }
  0xad   : > { %v473_v13 = vrot.slane %v466_v11, 4  ;;  %v479_v14 = vsel %vm477_vm4, %v468_v10, %v474_v12  ;;  %v1378_v12 = vld [vmem:[%s1617_s1] ss:$12 sps:$4 sm:$0xff]  }
  0xae   : > { %487 = vst [vmem:[#allocation3 + $0x24] sm:$0xf] %v479_v14  ;;  %v546_v17 = vpop.permute.xlu1 %545 }
  0xaf   : > { %v478_v15 = vsel %vm477_vm4, %v466_v11, %v473_v13  ;;  %v1367_v16 = vld [vmem:[#allocation3 + $0x28] sm:$0xff]   ;;  %v550_v19 = vrot.slane %v546_v17, 4 }
  0xb0   : > { %486 = vst [vmem:[#allocation3 + $0x20] sm:$0xf] %v478_v15  ;;  %v544_v18 = vpop.permute.xlu0 %543  ;;  %1276 = vmatpush3.bf16.msra.mxu0 %v1367_v16  ;;  %v1383_v13 = vld [vmem:[%s1617_s1 + $0x1c] ss:$12 sps:$4 sm:$0xff]   ;;  %v1385_v16 = vld [vmem:[%s1617_s1 + $0x18] ss:$12 sps:$4 sm:$0xff]  }
  0xb1   : > { %v549_v20 = vrot.slane %v544_v18, 4  ;;  %v555_v21 = vsel %vm551_vm5, %v546_v17, %v550_v19  ;;  %v1387_v17 = vld [vmem:[%s1617_s1 + $0x20] ss:$12 sps:$4 sm:$0xff]   ;;  %v981_v19 = vlaneseq }
  0xb2   : > { %563 = vst [vmem:[#allocation3 + $0x5c] sm:$0xf] %v555_v21  ;;  %v439_v25 = vpop.permute.xlu1 %438  ;;  %v978_v21 = vld [vmem:[%s181_s10] sm:$0x1] }
  0xb3   : > { %v554_v22 = vsel %vm551_vm5, %v544_v18, %v549_v20  ;;  %v1368_v23 = vld [vmem:[#allocation3 + $0x60] sm:$0xff]   ;;  %v443_v27 = vrot.slane %v439_v25, 4  ;;  %vm979_vm9 = vcmp.gt.f32.partialorder %v978_v21, 0.0 }
  0xb4   : > { %562 = vst [vmem:[#allocation3 + $0x58] sm:$0xf] %v554_v22  ;;  %v437_v26 = vpop.permute.xlu0 %436  ;;  %1277 = vmatprep.subr.bf16.mxu0 %v1368_v23 }
  0xb5   : > { %v442_v28 = vrot.slane %v437_v26, 4  ;;  %v448_v29 = vsel %vm444_vm6, %v439_v25, %v443_v27  ;;  %v982_v25 = vshrl.u32 %v981_v19, 7 }
  0xb6   : > { %456 = vst [vmem:[#allocation3 + $0x1c] sm:$0xf] %v448_v29  ;;  %v542_v32 = vpop.permute.xlu1 %541 }
  0xb7   : > { %v447_v30 = vsel %vm444_vm6, %v437_v26, %v442_v28  ;;  %v1369_v31 = vld [vmem:[#allocation3 + $0x20] sm:$0xff]   ;;  %v548_v34 = vrot.slane %v542_v32, 4 }
  0xb8   : > { %455 = vst [vmem:[#allocation3 + $0x18] sm:$0xf] %v447_v30  ;;  %v540_v33 = vpop.permute.xlu0 %539  ;;  %1278 = vmatpush3.bf16.msra.mxu0 %v1369_v31  ;;  %v983_v30 = vsub.s32 0, %v982_v25 }
  0xb9   : > { %v547_v35 = vrot.slane %v540_v33, 4  ;;  %v553_v36 = vsel %vm551_vm5, %v542_v32, %v548_v34  ;;  %v980_v32 = vsel %vm979_vm9, 1, %v1438_v24 }
  0xba   : > { %561 = vst [vmem:[#allocation3 + $0x54] sm:$0xf] %v553_v36  ;;  %v435_v39 = vpop.permute.xlu1 %434 }
  0xbb   : > { %v552_v37 = vsel %vm551_vm5, %v540_v33, %v547_v35  ;;  %v1370_v38 = vld [vmem:[#allocation3 + $0x58] sm:$0xff]   ;;  %v441_v41 = vrot.slane %v435_v39, 4 }
  0xbc   : > { %560 = vst [vmem:[#allocation3 + $0x50] sm:$0xf] %v552_v37  ;;  %v433_v40 = vpop.permute.xlu0 %432  ;;  %1279 = vmatprep.subr.bf16.mxu0 %v1370_v38 }
  0xbd   : > { %v440_v42 = vrot.slane %v433_v40, 4  ;;  %v446_v43 = vsel %vm444_vm6, %v435_v39, %v441_v41  ;;  %v984_v41 = vrot.slane %v980_v32, %v983_v30 }
  0xbe   : > { %454 = vst [vmem:[#allocation3 + $0x14] sm:$0xf] %v446_v43  ;;  %v406_v46 = vpop.permute.xlu1 %405 }
  0xbf   : > { %v445_v44 = vsel %vm444_vm6, %v433_v40, %v440_v42  ;;  %v1371_v45 = vld [vmem:[#allocation3 + $0x18] sm:$0xff]   ;;  %v410_v48 = vrot.slane %v406_v46, 4  ;;  %vm985_vm10 = vcmp.eq.s32.totalorder %v984_v41, 1 }
  0xc0   : > { %453 = vst [vmem:[#allocation3 + $0x10] sm:$0xf] %v445_v44  ;;  %v404_v47 = vpop.permute.xlu0 %403  ;;  %1280 = vmatpush3.bf16.msra.mxu0 %v1371_v45 }
  0xc1   : > { %v409_v49 = vrot.slane %v404_v47, 4  ;;  %v415_v50 = vsel %vm411_vm7, %v406_v46, %v410_v48 }
  0xc2   : > { %423 = vst [vmem:[#allocation3 + $0xc] sm:$0xf] %v415_v50  ;;  %v402_v53 = vpop.permute.xlu1 %401 }
  0xc3   : > { %v414_v51 = vsel %vm411_vm7, %v404_v47, %v409_v49  ;;  %v1372_v52 = vld [vmem:[#allocation3 + $0x50] sm:$0xff]   ;;  %v408_v55 = vrot.slane %v402_v53, 4 }
  0xc4   : > { %422 = vst [vmem:[#allocation3 + $0x8] sm:$0xf] %v414_v51  ;;  %v400_v54 = vpop.permute.xlu0 %399  ;;  %1281 = vmatprep.subr.bf16.mxu0 %v1372_v52 }
  0xc5   : > { %v407_v56 = vrot.slane %v400_v54, 4  ;;  %v413_v58 = vsel %vm411_vm7, %v402_v53, %v408_v55 }
  0xc6   : > { %421 = vst [vmem:[#allocation3 + $0x4] sm:$0xf] %v413_v58  ;;  %v645_v61 = vpop.permute.xlu1 %644 }
  0xc7   : > { %v412_v59 = vsel %vm411_vm7, %v400_v54, %v407_v56  ;;  %v1373_v60 = vld [vmem:[#allocation3 + $0x10] sm:$0xff]   ;;  %v649_v63 = vrot.slane %v645_v61, 4 }
  0xc8   : > { %420 = vst [vmem:[#allocation3] sm:$0xf] %v412_v59  ;;  %v643_v62 = vpop.permute.xlu0 %642  ;;  %1282 = vmatpush3.bf16.msra.mxu0 %v1373_v60 }
  0xc9   : > { %v648_v0 = vrot.slane %v643_v62, 4  ;;  %1283 = vmatprep.subr.bf16.mxu0 %v1374_v57  ;;  %v654_v2 = vsel %vm650_vm8, %v645_v61, %v649_v63 }
  0xca   : > { %662 = vst [vmem:[#allocation3 + $0x8c] sm:$0xf] %v654_v2  ;;  %v641_v5 = vpop.permute.xlu1 %640 }
  0xcb   : > { %v653_v3 = vsel %vm650_vm8, %v643_v62, %v648_v0  ;;  %v1375_v4 = vld [vmem:[#allocation3 + $0x8] sm:$0xff]   ;;  %v647_v7 = vrot.slane %v641_v5, 4 }
  0xcc   : > { %661 = vst [vmem:[#allocation3 + $0x88] sm:$0xf] %v653_v3  ;;  %v639_v6 = vpop.permute.xlu0 %638  ;;  %1284 = vmatpush3.bf16.msra.mxu0 %v1375_v4 }
  0xcd   : > { %v646_v8 = vrot.slane %v639_v6, 4  ;;  %1285 = vmatprep.subr.bf16.mxu0 %v1376_v1  ;;  %v652_v9 = vsel %vm650_vm8, %v641_v5, %v647_v7 }
  0xce   : > { %660 = vst [vmem:[#allocation3 + $0x84] sm:$0xf] %v652_v9 }
  0xcf   : > { %v651_v10 = vsel %vm650_vm8, %v639_v6, %v646_v8  ;;  %v1377_v11 = vld [vmem:[#allocation3] sm:$0xff]  }
  0xd0   : > { %659 = vst [vmem:[#allocation3 + $0x80] sm:$0xf] %v651_v10  ;;  %1286 = vmatpush3.bf16.msra.mxu0 %v1377_v11 }
  0xd3   : > { %v1381_v14 = vld [vmem:[#allocation3 + $0x88] sm:$0xff]   ;;  %909 = vmatmul.mubr.bf16.vlgmr.msra.gmra.mxu0 %v1378_v12 }
  0xd4   : > { %1303 = vmatprep.subr.bf16.mxu1 %v1381_v14  ;;  %916 = vmatprep.mubr.bf16.mxu0 %v1383_v13 }
  0xd5   : > { %1304 = vmatpush3.bf16.msra.mxu1 %v1381_v14 }
  0xd7   : > { %v1382_v15 = vld [vmem:[#allocation3 + $0x80] sm:$0xff]   ;;  %v719_v23 = vpop.permute.xlu1 %718 }
  0xd8   : > { %1305 = vmatprep.subr.bf16.mxu1 %v1382_v15 }
  0xd9   : > { %1306 = vmatpush3.bf16.msra.mxu1 %v1382_v15  ;;  %v714_v28 = vpop.permute.xlu0 %713 }
  0xdb   : > { %917 = vmatmul.mubr.bf16.gmra.mxu0 %v1385_v16  ;;  %v724_v36 = vpop.permute.xlu1 %723 }
  0xdc   : > { %1308 = vmatmul.mubr.msk.bf16.vlgmr.msra.gmra.mxu1 %vm869_vm0, %v1387_v17 }
  0xdd   : > { %v729_v24 = vpop.permute.xlu0 %728 }
 0x193   : > { %v1287_v18 = vpop.f32.mrf.mxu0 }
 0x195   : > { %v1288_v20 = vpop.f32.mrf.mxu0 }
 0x196   : > { %v1289_v26 = vadd.f32 %v1288_v20, %v1287_v18 }
 0x197   : > { %v1290_v22 = vpop.f32.mrf.mxu0 }
 0x198   : > { %v911_v33 = vadd.f32 %v1289_v26, %v714_v28 }
 0x199   : > { %v1291_v27 = vpop.f32.mrf.mxu0 }
 0x19a   : > { %v1292_v34 = vadd.f32 %v1291_v27, %v1290_v22 }
 0x19b   : > { %v1293_v29 = vpop.f32.mrf.mxu0 }
 0x19c   : > { %v1309_v31 = vpop.f32.mrf.mxu1  ;;  %v914_v44 = vadd.f32 %v1292_v34, %v719_v23 }
 0x19d   : > { %v1294_v35 = vpop.f32.mrf.mxu0 }
 0x19e   : > { %v1295_v37 = vadd.f32 %v1294_v35, %v1293_v29  ;;  %v959_v38 = vpop.f32.mrf.mxu1 }
 0x19f   : > { %v960_v39 = vadd.f32 %v959_v38, %v911_v33  ;;  %v1296_v40 = vpop.f32.mrf.mxu0 }
 0x1a0   : > { %v919_v42 = vadd.f32 %v1295_v37, %v724_v36  ;;  %v1310_v43 = vpop.f32.mrf.mxu1 }
 0x1a1   : > { %v1297_v45 = vpop.f32.mrf.mxu0  ;;  %v974_v49 = vmax.f32 %v960_v39, 0.0 }
 0x1a2   : > { %v968_v46 = vadd.f32 %v1309_v31, %v919_v42  ;;  %v1298_v47 = vadd.f32 %v1297_v45, %v1296_v40  ;;  %v962_v48 = vpop.f32.mrf.mxu1 }
 0x1a3   : > { %v963_v50 = vadd.f32 %v962_v48, %v914_v44  ;;  %v986_v55 = vsel %vm985_vm10, %v974_v49, 0.0 }
 0x1a4   : > { %v922_v51 = vadd.f32 %v1298_v47, %v729_v24  ;;  %v976_v53 = vmax.f32 %v968_v46, 0.0 }
 0x1a5   : > { %v975_v52 = vmax.f32 %v963_v50, 0.0 }
 0x1a6   : > { %v971_v54 = vadd.f32 %v1310_v43, %v922_v51  ;;  %v988_v59 = vsel %vm985_vm10, %v976_v53, 0.0 }
 0x1a7   : > { %v987_v56 = vsel %vm985_vm10, %v975_v52, 0.0 }
 0x1a8   : > { %v977_v57 = vmax.f32 %v971_v54, 0.0  ;;  %v1263_v58 = vpack.c.bf16 %v987_v56, %v986_v55 }
 0x1a9   : > { %1016 = sbr.rel (!%p1492_p3) target bundleno = 438 (0x1b6), region = 118 }
 0x1aa   : > { %v989_v60 = vsel %vm985_vm10, %v977_v57, 0.0  ;;  %1264 = vst [vmem:[%s1515_s14] sm:$0xff] %v1263_v58  }
 0x1ab   : > { %v1268_v61 = vpack.c.bf16 %v989_v60, %v988_v59 }
 0x1ad   : > { %1270 = vst [vmem:[%s1515_s14 + $0x8] sm:$0xff] %v1268_v61  }
 0x1b1   : > { %v1037_v62 = vld [vmem:[%s1515_s14] sm:$0xf]  ;;  %v1039_v63 = vld [vmem:[%s1515_s14 + $0x4] sm:$0xf] }
 0x1b2   : > { %1246 = vst [vmem:[%s1122_s13 + $0x4] sm:$0xf] %v1037_v62  ;;  %1247 = vst [vmem:[%s1122_s13 + $0x14] sm:$0xf] %v1039_v63 }
 0x1b4   : > { %v1041_v0 = vld [vmem:[%s1515_s14 + $0x8] sm:$0xf]  ;;  %v1043_v1 = vld [vmem:[%s1515_s14 + $0xc] sm:$0xf] }
 0x1b5   : > { %1248 = vst [vmem:[%s1122_s13 + $0x24] sm:$0xf] %v1041_v0  ;;  %1249 = vst [vmem:[%s1122_s13 + $0x34] sm:$0xf] %v1043_v1 }
 0x1b6 PF: > { %s14_s19 = sadd.s32 1, %s1428_s19   ;;  %s1622_s15 = smov %s1416_s16 }
 0x1b7   : > { %p11_p9 = scmp.ge.s32.totalorder %s14_s19, 4   ;;  %s1623_s16 = smov %s1501_s27 }
 0x1b8   : > { %s1624_s17 = smov %s1424_s18  ;;  %s1625_s18 = smov %s1490_s22 }
 0x1b9   :  { %13 = sbr.rel (!%p11_p9) target bundleno = 3 (0x3), region = 220 }
 0x1be   :  { %1086 = vsyncmov [#allocation4] }
 0x1c1   :  { %s1087_s23 = vpop.sfrf %1086 }
 0x1c2   :  { %p1252_p10 = scmp.ne.s32.totalorder %s1087_s23, 0 }
 0x1c4   :  { %1091 = shalt.err (%p1252_p10)  }
 0x1c5   :  { %1093 = vsyncmov [#allocation4 + $0x1] }
 0x1c8   :  { %s1094_s14 = vpop.sfrf %1093 }
 0x1c9   :  { %p1253_p11 = scmp.ne.s32.totalorder %s1094_s14, 0 }
 0x1cb   :  { %1098 = shalt.err (%p1253_p11)  }

// kernel: resnet_cifar_forward.43
= control target key start
LH: loop header
LB: loop body
LE: loop exit
PB: predicated region body
PF: predicated region fallthrough
CT: control target
= control target key end

     0   :  { %vm95_vm0 = vcmask 1043456   ;;  %vm82_vm1 = vcmask 588800   ;;  %vm178_vm2 = vcmask 523264   ;;  %v351_v11 = vmov 0   ;;  %s428_s1 = inlined_call_operand.vmem [shape: bf16[72,2], index: 1, kind: input, shape index: {}]   ;;  %s429_s0 = inlined_call_operand.vmem [shape: bf16[64,72], index: 0, kind: input, shape index: {}]   ;;  %s430_s2 = inlined_call_operand.vmem [shape: f32[10,64], index: 2, kind: input, shape index: {}]   ;;  %s431_s3 = inlined_call_operand.vmem [shape: f32[10,1], index: 3, kind: input, shape index: {}]   ;;  %s432_s4 = inlined_call_operand.vmem [shape: f32[10,2], index: 4, kind: output, shape index: {}]  }
   0x1   :  { %v342_v0 = vld [vmem:[%s428_s1 + $0x20] ss:$0 sps:$4 sm:$0xff]   ;;  %v343_v1 = vld [vmem:[%s428_s1 + $0x18] sm:$0xff]   ;;  %v344_v3 = vld [vmem:[%s428_s1 + $0x10] sm:$0xff]   ;;  %341 = vset.pattern.permute.xlu0 %v351_v11  ;;  %vm262_vm3 = vcmask 9216   ;;  %vm260_vm4 = vcmask 15360  }
   0x2   :  { %339 = vmatprep.subr.msk.bf16.mxu0 %vm95_vm0, %v342_v0  ;;  %v97_v2 = vsel %vm95_vm0, %v342_v0, 0  ;;  %v347_v4 = vld [vmem:[%s429_s0] sm:$0xff]   ;;  %v345_v5 = vld [vmem:[%s428_s1 + $0x8] sm:$0xff]   ;;  %v349_v8 = vld [vmem:[%s429_s0 + $0x10] sm:$0xff]  }
   0x3   :  { %303 = vmatpush3.bf16.msra.mxu0 %v97_v2  ;;  %312 = vmatprep.mubr.msk.bf16.mxu0 %vm82_vm1, %v347_v4  ;;  %v346_v6 = vld [vmem:[%s428_s1] sm:$0xff]   ;;  %v348_v7 = vld [vmem:[%s429_s0 + $0x8] sm:$0xff]   ;;  %v350_v9 = vld [vmem:[%s429_s0 + $0x18] sm:$0xff]  }
   0x4   :  { %304 = vmatprep.subr.bf16.mxu0 %v343_v1  ;;  %v164_v10 = vld [vmem:[%s430_s2] sm:$0xff]  ;;  %v167_v13 = vld [vmem:[%s431_s3 + $0x8] sm:$0x3] }
   0x5   :  { %336 = vmatprep.mubr.msk.f32.mxu1 %vm178_vm2, %v164_v10  ;;  %v166_v12 = vld [vmem:[%s431_s3] sm:$0xff]  ;;  %v165_v22 = vld [vmem:[%s430_s2 + $0x8] sm:$0x3] }
   0x6   :  { %170 = vperm.xlu0 %341, %v166_v12  }
   0x7   :  { %305 = vmatpush3.bf16.msra.mxu0 %v343_v1 }
   0x8   :  { %306 = vmatprep.subr.bf16.mxu0 %v344_v3 }
   0xa   :  { %175 = vperm.xlu0 %341, %v167_v13  }
   0xb   :  { %307 = vmatpush3.bf16.msra.mxu0 %v344_v3 }
   0xc   :  { %308 = vmatprep.subr.bf16.mxu0 %v345_v5 }
   0xf   :  { %309 = vmatpush3.bf16.msra.mxu0 %v345_v5 }
  0x10   :  { %310 = vmatprep.subr.bf16.mxu0 %v346_v6 }
  0x13   :  { %311 = vmatpush3.bf16.msra.mxu0 %v346_v6 }
  0x16   :  { %313 = vmatmul.mubr.msk.bf16.vlgmr.msra.gmra.mxu0 %vm82_vm1, %v348_v7 }
  0x17   :  { %316 = vmatprep.mubr.msk.bf16.mxu0 %vm82_vm1, %v349_v8 }
  0x1e   :  { %317 = vmatmul.mubr.msk.bf16.gmra.mxu0 %vm82_vm1, %v350_v9 }
  0x81   :  { %v171_v23 = vpop.permute.xlu0 %170 }
  0x85   :  { %v176_v24 = vpop.permute.xlu0 %175 }
  0xd6   :  { %v314_v14 = vpop.f32.mrf.mxu0 }
  0xd8   :  { %v133_v15 = vpop.f32.mrf.mxu0 }
  0xda   :  { %v315_v16 = vpop.f32.mrf.mxu0 }
  0xdc   :  { %v136_v17 = vpop.f32.mrf.mxu0 }
  0xde   :  { %v318_v18 = vpop.f32.mrf.mxu0 }
  0xe0   :  { %v149_v19 = vpop.f32.mrf.mxu0 }
  0xe2   :  { %v319_v20 = vpop.f32.mrf.mxu0 }
  0xe3   :  { %320 = vmatprep.subr.mxu1 %v319_v20 }
  0xe4   :  { %321 = vmatpush3.msra.mxu1 %v319_v20  ;;  %v152_v21 = vpop.f32.mrf.mxu0 }
  0xe5   :  { %322 = vmatprep.subr.mxu1 %v318_v18 }
  0xe6   :  { %323 = vmatpush3.msra.mxu1 %v318_v18 }
  0xe7   :  { %324 = vmatprep.subr.mxu1 %v152_v21 }
  0xe8   :  { %325 = vmatpush3.msra.mxu1 %v152_v21 }
  0xe9   :  { %326 = vmatprep.subr.mxu1 %v149_v19 }
  0xea   :  { %327 = vmatpush3.msra.mxu1 %v149_v19 }
  0xeb   :  { %328 = vmatprep.subr.mxu1 %v315_v16 }
  0xec   :  { %329 = vmatpush3.msra.mxu1 %v315_v16 }
  0xed   :  { %330 = vmatprep.subr.mxu1 %v314_v14 }
  0xee   :  { %331 = vmatpush3.msra.mxu1 %v314_v14 }
  0xef   :  { %332 = vmatprep.subr.mxu1 %v136_v17 }
  0xf0   :  { %333 = vmatpush3.msra.mxu1 %v136_v17 }
  0xf1   :  { %334 = vmatprep.subr.mxu1 %v133_v15 }
  0xf2   :  { %335 = vmatpush3.msra.mxu1 %v133_v15 }
  0xf3   :  { %337 = vmatmul.mubr.msk.f32.vlgmr.msra.gmra.mxu1 %vm178_vm2, %v165_v22 }
 0x1b3   :  { %v338_v25 = vpop.f32.mrf.mxu1 }
 0x1b4   :  { %v257_v26 = vadd.f32 %v338_v25, %v176_v24 }
 0x1b5   :  { %v251_v27 = vpop.f32.mrf.mxu1 }
 0x1b6   :  { %263 = vst.msk [vmem:[%s432_s4 + $0x8] sm:$0x3] %vm262_vm3, %v257_v26  ;;  %v252_v28 = vadd.f32 %v251_v27, %v171_v23 }
 0x1b8   :  { %261 = vst.msk [vmem:[%s432_s4] sm:$0xff] %vm260_vm4, %v252_v28 }

// kernel: resnet_cifar_forward.36
= control target key start
LH: loop header
LB: loop body
LE: loop exit
PB: predicated region body
PF: predicated region fallthrough
CT: control target
= control target key end

     0   :  { %s1682_s15 = smov 0   ;;  %s1684_s16 = smov 0   ;;  %s1880_s0 = inlined_call_operand.vmem [shape: bf16[32,512], index: 0, kind: input, shape index: {}]   ;;  %s1881_s1 = inlined_call_operand.vmem [shape: bf16[64,288], index: 1, kind: input, shape index: {}]   ;;  %s1882_s2 = inlined_call_operand.vmem [shape: f32[64,1], index: 2, kind: input, shape index: {}]   ;;  %s1883_s3 = inlined_call_operand.vmem [shape: f32[1,256], index: 3, kind: input, shape index: {}]   ;;  %s1884_s4 = inlined_call_operand.vmem [shape: bf16[64,512], index: 4, kind: output, shape index: {}]  }
   0x1   :  { %s1686_s17 = smov 0   ;;  %s1688_s18 = smov 0  }
   0x2   :  { %s1690_s19 = smov 0  }
   0x3 LB: > { %s1327_s20 = sadd.s32 4294967295, %s1646_s19   ;;  %s26_s21 = sadd.s32 1, %s1642_s18  ;;  %s1646_s19 = sphi %s1690_s19, %s14_s19   ;;  %s1642_s18 = sphi %s1688_s18, %s1889_s18   ;;  %s1638_s17 = sphi %s1686_s17, %s1888_s17   ;;  %s1634_s16 = sphi %s1684_s16, %s1887_s16   ;;  %s1630_s15 = sphi %s1682_s15, %s1886_s15  }
   0x4   : > { %p28_p0 = scmp.ge.s32.totalorder %s26_s21, 2  ;;  %p117_p1 = scmp.ne.s32.totalorder %s1634_s16, %s1630_s15 }
   0x5   : > { %p118_p2 = scmp.eq.s32.totalorder %s1327_s20, 1  ;;  %p1331_p4 = scmp.ge.s32.totalorder %s1646_s19, 1 }
   0x6   : > { %s1708_s22 = scalar_select %p28_p0, 0, %s26_s21  }
   0x7   : > { %p1710_p3 = por %p118_p2, %p117_p1  ;;  %p156_p5 = scmp.lt.s32.totalorder %s1646_s19, 3 }
   0x8   : > { %s103_s24 = sadd.s32 1, %s1708_s22  ;;  %s107_s26 = sadd.s32 1, %s1634_s16 }
   0x9   : > { %s104_s25 = ssub.s32 %s26_s21, %s103_s24  ;;  %p157_p7 = pnand %p1331_p4, %p156_p5 }
   0xa   : > { %p105_p6 = scmp.eq.s32.totalorder %s104_s25, 0  ;;  %s175_s28 = sand.u32 (!%p157_p7), 1, %s1630_s15  }
   0xb   : > { %160 = sbr.rel (%p157_p7) target bundleno = 446 (0x1be), region = 32  ;;  %p179_p8 = scmp.lt.s32.totalorder (!%p157_p7), %s1638_s17, 1 }
   0xc   : > { %s1719_s27 = scalar_select %p105_p6, %s1634_s16, %s107_s26  }
   0xd   : > { %s1332_s29 = sshll.u32 (!%p157_p7), %s175_s28, 5  ;;  %s1333_s30 = sshll.u32 (!%p157_p7), %s1638_s17, 7 }
   0xe   : > { %s192_s5 = sshra.s32 (!%p157_p7), %s1333_s30, 7  ;;  %s1733_s14 = scalar_lea.vmem (!%p157_p7), [#allocation5], %s1332_s29 }
   0xf   : > { %s1334_s7 = sshll.u32 (!%p157_p7), %s192_s5, 2 }
  0x10   : > { %s1724_s6 = scalar_select %p179_p8, %s1638_s17, 1 }
  0x11   : > { %s195_s13 = scalar_lea.vmem %s1880_s0, %s1334_s7 }
  0x12   : > { %s181_s10 = scalar_lea.vmem %s1883_s3, %s1724_s6  ;;  %v240_v0 = vld [vmem:[%s195_s13] sm:$0xff]  ;;  %v242_v1 = vld [vmem:[%s195_s13 + $0x10] sm:$0xff]  ;;  %v1335_v4 = vld [vmem:[%s195_s13 + $0x8] sm:$0xf] }
  0x13   : > { %v244_v2 = vld [vmem:[%s195_s13 + $0x20] sm:$0xff]  ;;  %241 = vst [vmem:[#allocation2] sm:$0xff] %v240_v0  ;;  %243 = vst [vmem:[#allocation2 + $0xc] sm:$0xff] %v242_v1  ;;  %v246_v3 = vld [vmem:[%s195_s13 + $0x30] sm:$0xff] }
  0x14   : > { %245 = vst [vmem:[#allocation2 + $0x18] sm:$0xff] %v244_v2  ;;  %v1336_v5 = vld [vmem:[%s195_s13 + $0x18] sm:$0xf]  ;;  %247 = vst [vmem:[#allocation2 + $0x24] sm:$0xff] %v246_v3  ;;  %v1337_v6 = vld [vmem:[%s195_s13 + $0x28] sm:$0xf] }
  0x15   : > { %259 = vst [vmem:[#allocation2 + $0x8] sm:$0xf] %v1335_v4  ;;  %261 = vst [vmem:[#allocation2 + $0x14] sm:$0xf] %v1336_v5  ;;  %v1338_v7 = vld [vmem:[%s195_s13 + $0x38] sm:$0xf] }
  0x16   : > { %263 = vst [vmem:[#allocation2 + $0x20] sm:$0xf] %v1337_v6  ;;  %265 = vst [vmem:[#allocation2 + $0x2c] sm:$0xf] %v1338_v7 }
  0x17   : > { %269 = vsyncadd [#allocation4], 768 }
  0x18   : > { %1626 = dma.done.wait [#allocation4], 768 }
  0x19   : > { %1627 = vsyncadd [#allocation4], 4294966528  ;;  %s1648_s15 = smov 118   ;;  %s1649_s20 = smov 1   ;;  %v1590_v20 = vld [vmem:[%s1881_s1 + $0x4] ss:$12 sps:$4 sm:$0xff]  }
  0x1a   : > { %v491_v14 = vld [vmem:[#allocation2 + $0xc] sm:$0xff]  ;;  %v490_v15 = vld [vmem:[#allocation2] sm:$0xff]  ;;  %s1650_s21 = smov 119   ;;  %s1651_s24 = smov 9   ;;  %976 = vmatprep.mubr.bf16.mxu0 %v1590_v20  ;;  %v1656_v24 = vmov 0   ;;  %v718_v26 = vld [vmem:[%s1882_s2 + $0x18] sm:$0xff] }
  0x1b   : > { %v492_v9 = vld [vmem:[#allocation2 + $0x18] sm:$0xff]  ;;  %v493_v11 = vld [vmem:[#allocation2 + $0x24] sm:$0xff]  ;;  %s1652_s25 = smov 127   ;;  %s1653_s26 = smov 10   ;;  %v524_v19 = vld [vmem:[#allocation2 + $0x10] sm:$0xf]  ;;  %1571 = vset.pattern.permute.xlu1 %v1656_v24  ;;  %1570 = vset.pattern.permute.xlu0 %v1656_v24 }
  0x1c   : > { %502 = vrot.lane.b32.xlu1 %v492_v9, %s1649_s20  ;;  %v597_v12 = vld [vmem:[#allocation2 + $0x4] sm:$0xff]  ;;  %v598_v13 = vld [vmem:[#allocation2 + $0x10] sm:$0xff]  ;;  %v525_v16 = vld [vmem:[#allocation2 + $0x1c] sm:$0xf]  ;;  %528 = vst [vmem:[#allocation3 + $0x44] sm:$0xf] %v524_v19 }
  0x1d   : > { %v599_v8 = vld [vmem:[#allocation2 + $0x1c] sm:$0xff]  ;;  %v600_v10 = vld [vmem:[#allocation2 + $0x28] sm:$0xff]  ;;  %529 = vst [vmem:[#allocation3 + $0x48] sm:$0xf] %v525_v16  ;;  %v523_v18 = vld [vmem:[#allocation2 + $0x4] sm:$0xf] }
  0x1e   : > { %609 = vrot.lane.b32.xlu0 %v599_v8, %s1648_s15  ;;  %v526_v17 = vld [vmem:[#allocation2 + $0x28] sm:$0xf]  ;;  %527 = vst [vmem:[#allocation3 + $0x40] sm:$0xf] %v523_v18  ;;  %s1654_s28 = smov 11   ;;  %s1655_s8 = smov 117  }
  0x1f   : > { %530 = vst [vmem:[#allocation3 + $0x4c] sm:$0xf] %v526_v17  ;;  %v1593_v21 = vld [vmem:[%s1881_s1 + $0x4c] ss:$12 sps:$4 sm:$0xff]   ;;  %v715_v23 = vld [vmem:[%s1882_s2] sm:$0xff]  ;;  %v717_v25 = vld [vmem:[%s1882_s2 + $0x10] sm:$0xff] }
  0x20   : > { %504 = vrot.lane.b32.xlu1 %v493_v11, %s1649_s20  ;;  %1000 = vmatprep.mubr.bf16.mxu1 %v1593_v21  ;;  %v716_v22 = vld [vmem:[%s1882_s2 + $0x8] sm:$0xff]  ;;  %v719_v27 = vld [vmem:[%s1882_s2 + $0x20] sm:$0xff]  ;;  %v721_v29 = vld [vmem:[%s1882_s2 + $0x30] sm:$0xff]  ;;  %vm617_vm0 = vcmask 965632   ;;  %vm510_vm1 = vcmask 7168   ;;  %vm584_vm2 = vcmask 973824  }
  0x21   : > { %v720_v28 = vld [vmem:[%s1882_s2 + $0x28] sm:$0xff]  ;;  %v722_v30 = vld [vmem:[%s1882_s2 + $0x38] sm:$0xff]  ;;  %vm477_vm3 = vcmask 72704   ;;  %vm551_vm4 = vcmask 1039360   ;;  %vm444_vm5 = vcmask 80896   ;;  %vm411_vm6 = vcmask 89088  }
  0x22   : > { %611 = vrot.lane.b32.xlu0 %v600_v10, %s1648_s15  ;;  %vm650_vm7 = vcmask 957440   ;;  %vm931_vm8 = vcmask 261120   ;;  %s1401_s6 = sshll.u32 (%p1710_p3), %s1638_s17, 2 }
  0x24   : > { %607 = vrot.lane.b32.xlu1 %v598_v13, %s1648_s15 }
  0x26   : > { %605 = vrot.lane.b32.xlu0 %v597_v12, %s1648_s15 }
  0x28   : > { %500 = vrot.lane.b32.xlu1 %v491_v14, %s1649_s20 }
  0x2a   : > { %498 = vrot.lane.b32.xlu0 %v490_v15, %s1649_s20 }
  0x2c   : > { %578 = vrot.lane.b32.xlu1 %v600_v10, %s1650_s21 }
  0x2e   : > { %576 = vrot.lane.b32.xlu0 %v599_v8, %s1650_s21 }
  0x30   : > { %471 = vrot.lane.b32.xlu1 %v493_v11, %s1651_s24 }
  0x32   : > { %469 = vrot.lane.b32.xlu0 %v492_v9, %s1651_s24 }
  0x34   : > { %574 = vrot.lane.b32.xlu1 %v598_v13, %s1650_s21 }
  0x36   : > { %572 = vrot.lane.b32.xlu0 %v597_v12, %s1650_s21 }
  0x38   : > { %467 = vrot.lane.b32.xlu1 %v491_v14, %s1651_s24 }
  0x3a   : > { %465 = vrot.lane.b32.xlu0 %v490_v15, %s1651_s24  ;;  %s1266_s24 = scalar_lea.vmem (%p1710_p3), %s1884_s4, %s1401_s6 }
  0x3c   : > { %545 = vrot.lane.b32.xlu1 %v600_v10, %s1652_s25 }
  0x3e   : > { %543 = vrot.lane.b32.xlu0 %v599_v8, %s1652_s25 }
  0x40   : > { %438 = vrot.lane.b32.xlu1 %v493_v11, %s1653_s26 }
  0x42   : > { %436 = vrot.lane.b32.xlu0 %v492_v9, %s1653_s26 }
  0x44   : > { %541 = vrot.lane.b32.xlu1 %v598_v13, %s1652_s25 }
  0x46   : > { %539 = vrot.lane.b32.xlu0 %v597_v12, %s1652_s25 }
  0x48   : > { %434 = vrot.lane.b32.xlu1 %v491_v14, %s1653_s26 }
  0x4a   : > { %432 = vrot.lane.b32.xlu0 %v490_v15, %s1653_s26 }
  0x4c   : > { %405 = vrot.lane.b32.xlu1 %v493_v11, %s1654_s28 }
  0x4e   : > { %403 = vrot.lane.b32.xlu0 %v492_v9, %s1654_s28 }
  0x50   : > { %401 = vrot.lane.b32.xlu1 %v491_v14, %s1654_s28 }
  0x52   : > { %399 = vrot.lane.b32.xlu0 %v490_v15, %s1654_s28 }
  0x54   : > { %644 = vrot.lane.b32.xlu1 %v600_v10, %s1655_s8 }
  0x56   : > { %642 = vrot.lane.b32.xlu0 %v599_v8, %s1655_s8 }
  0x58   : > { %640 = vrot.lane.b32.xlu1 %v598_v13, %s1655_s8 }
  0x5a   : > { %638 = vrot.lane.b32.xlu0 %v597_v12, %s1655_s8 }
  0x5c   : > { %730 = vperm.xlu1 %1571, %v716_v22  }
  0x5e   : > { %725 = vperm.xlu0 %1570, %v715_v23  }
  0x60   : > { %735 = vperm.xlu1 %1571, %v717_v25  }
  0x62   : > { %740 = vperm.xlu0 %1570, %v718_v26  }
  0x64   : > { %745 = vperm.xlu1 %1571, %v719_v27  }
  0x66   : > { %750 = vperm.xlu0 %1570, %v720_v28  }
  0x68   : > { %755 = vperm.xlu1 %1571, %v721_v29  }
  0x6a   : > { %760 = vperm.xlu0 %1570, %v722_v30  }
  0x8e   : > { %v503_v32 = vpop.permute.xlu1 %502 }
  0x8f   : > { %v508_v34 = vrot.slane %v503_v32, 4 }
  0x90   : > { %v610_v31 = vpop.permute.xlu0 %609 }
  0x91   : > { %v615_v33 = vrot.slane %v610_v31, 4  ;;  %v513_v36 = vsel %vm510_vm1, %v503_v32, %v508_v34 }
  0x92   : > { %521 = vst [vmem:[#allocation3 + $0x38] sm:$0xf] %v513_v36  ;;  %v505_v38 = vpop.permute.xlu1 %504 }
  0x93   : > { %v620_v35 = vsel %vm617_vm0, %v610_v31, %v615_v33  ;;  %v509_v40 = vrot.slane %v505_v38, 4 }
  0x94   : > { %628 = vst [vmem:[#allocation3 + $0x78] sm:$0xf] %v620_v35  ;;  %v612_v37 = vpop.permute.xlu0 %611 }
  0x95   : > { %v616_v39 = vrot.slane %v612_v37, 4  ;;  %v514_v42 = vsel %vm510_vm1, %v505_v38, %v509_v40 }
  0x96   : > { %522 = vst [vmem:[#allocation3 + $0x3c] sm:$0xf] %v514_v42  ;;  %v608_v44 = vpop.permute.xlu1 %607 }
  0x97   : > { %v621_v41 = vsel %vm617_vm0, %v612_v37, %v616_v39  ;;  %v614_v46 = vrot.slane %v608_v44, 4 }
  0x98   : > { %629 = vst [vmem:[#allocation3 + $0x7c] sm:$0xf] %v621_v41  ;;  %v606_v43 = vpop.permute.xlu0 %605 }
  0x99   : > { %v613_v45 = vrot.slane %v606_v43, 4  ;;  %v619_v48 = vsel %vm617_vm0, %v608_v44, %v614_v46 }
  0x9a   : > { %627 = vst [vmem:[#allocation3 + $0x74] sm:$0xf] %v619_v48  ;;  %v501_v49 = vpop.permute.xlu1 %500 }
  0x9b   : > { %v618_v47 = vsel %vm617_vm0, %v606_v43, %v613_v45  ;;  %v507_v51 = vrot.slane %v501_v49, 4 }
  0x9c   : > { %626 = vst [vmem:[#allocation3 + $0x70] sm:$0xf] %v618_v47  ;;  %v499_v50 = vpop.permute.xlu0 %498 }
  0x9d   : > { %v506_v52 = vrot.slane %v499_v50, 4  ;;  %v512_v53 = vsel %vm510_vm1, %v501_v49, %v507_v51  ;;  %v1573_v58 = vld [vmem:[#allocation3 + $0x38] sm:$0xff]  }
  0x9e   : > { %520 = vst [vmem:[#allocation3 + $0x34] sm:$0xf] %v512_v53  ;;  %v579_v56 = vpop.permute.xlu1 %578 }
  0x9f   : > { %v511_v54 = vsel %vm510_vm1, %v499_v50, %v506_v52  ;;  %v1572_v55 = vld [vmem:[#allocation3 + $0x78] sm:$0xff]   ;;  %v583_v59 = vrot.slane %v579_v56, 4 }
  0xa0   : > { %519 = vst [vmem:[#allocation3 + $0x30] sm:$0xf] %v511_v54  ;;  %v577_v57 = vpop.permute.xlu0 %576  ;;  %1447 = vmatprep.subr.bf16.mxu0 %v1572_v55  ;;  %1505 = vmatprep.subr.bf16.mxu1 %v1572_v55 }
  0xa1   : > { %v582_v60 = vrot.slane %v577_v57, 4  ;;  %1448 = vmatpush3.bf16.msra.mxu0 %v1573_v58  ;;  %1513 = vmatpush3.bf16.msra.mxu1 %v1573_v58  ;;  %v588_v61 = vsel %vm584_vm2, %v579_v56, %v583_v59 }
  0xa2   : > { %596 = vst [vmem:[#allocation3 + $0x6c] sm:$0xf] %v588_v61  ;;  %v472_v0 = vpop.permute.xlu1 %471  ;;  %v1584_v61 = vld [vmem:[#allocation3 + $0x48] sm:$0xff]  }
  0xa3   : > { %v587_v62 = vsel %vm584_vm2, %v577_v57, %v582_v60  ;;  %v1574_v63 = vld [vmem:[#allocation3 + $0x70] sm:$0xff]   ;;  %v476_v2 = vrot.slane %v472_v0, 4 }
  0xa4   : > { %595 = vst [vmem:[#allocation3 + $0x68] sm:$0xf] %v587_v62  ;;  %v470_v1 = vpop.permute.xlu0 %469  ;;  %1449 = vmatprep.subr.bf16.mxu0 %v1574_v63  ;;  %1506 = vmatprep.subr.bf16.mxu1 %v1574_v63 }
  0xa5   : > { %v475_v3 = vrot.slane %v470_v1, 4  ;;  %v481_v4 = vsel %vm477_vm3, %v472_v0, %v476_v2 }
  0xa6   : > { %489 = vst [vmem:[#allocation3 + $0x2c] sm:$0xf] %v481_v4  ;;  %v575_v7 = vpop.permute.xlu1 %574 }
  0xa7   : > { %v480_v5 = vsel %vm477_vm3, %v470_v1, %v475_v3  ;;  %v1575_v6 = vld [vmem:[#allocation3 + $0x30] sm:$0xff]   ;;  %v581_v9 = vrot.slane %v575_v7, 4 }
  0xa8   : > { %488 = vst [vmem:[#allocation3 + $0x28] sm:$0xf] %v480_v5  ;;  %v573_v8 = vpop.permute.xlu0 %572  ;;  %1450 = vmatpush3.bf16.msra.mxu0 %v1575_v6  ;;  %1514 = vmatpush3.bf16.msra.mxu1 %v1575_v6  ;;  %v1586_v5 = vld [vmem:[#allocation3 + $0x40] sm:$0xff]  }
  0xa9   : > { %v580_v10 = vrot.slane %v573_v8, 4  ;;  %v586_v11 = vsel %vm584_vm2, %v575_v7, %v581_v9 }
  0xaa   : > { %594 = vst [vmem:[#allocation3 + $0x64] sm:$0xf] %v586_v11  ;;  %v468_v14 = vpop.permute.xlu1 %467 }
  0xab   : > { %v585_v12 = vsel %vm584_vm2, %v573_v8, %v580_v10  ;;  %v1576_v13 = vld [vmem:[#allocation3 + $0x68] sm:$0xff]   ;;  %v474_v16 = vrot.slane %v468_v14, 4 }
  0xac   : > { %593 = vst [vmem:[#allocation3 + $0x60] sm:$0xf] %v585_v12  ;;  %v466_v15 = vpop.permute.xlu0 %465  ;;  %1451 = vmatprep.subr.bf16.mxu0 %v1576_v13  ;;  %1507 = vmatprep.subr.bf16.mxu1 %v1576_v13 }
  0xad   : > { %v473_v17 = vrot.slane %v466_v15, 4  ;;  %v479_v18 = vsel %vm477_vm3, %v468_v14, %v474_v16  ;;  %v1588_v16 = vld [vmem:[%s1881_s1] ss:$12 sps:$4 sm:$0xff]  }
  0xae   : > { %487 = vst [vmem:[#allocation3 + $0x24] sm:$0xf] %v479_v18  ;;  %v546_v21 = vpop.permute.xlu1 %545  ;;  %v1596_v18 = vld [vmem:[%s1881_s1 + $0x1c] ss:$12 sps:$4 sm:$0xff]  }
  0xaf   : > { %v478_v19 = vsel %vm477_vm3, %v466_v15, %v473_v17  ;;  %v1577_v20 = vld [vmem:[#allocation3 + $0x28] sm:$0xff]   ;;  %v550_v23 = vrot.slane %v546_v21, 4 }
  0xb0   : > { %486 = vst [vmem:[#allocation3 + $0x20] sm:$0xf] %v478_v19  ;;  %v544_v22 = vpop.permute.xlu0 %543  ;;  %1452 = vmatpush3.bf16.msra.mxu0 %v1577_v20  ;;  %1515 = vmatpush3.bf16.msra.mxu1 %v1577_v20  ;;  %v1591_v17 = vld [vmem:[%s1881_s1 + $0x48] ss:$12 sps:$4 sm:$0xff]  }
  0xb1   : > { %v549_v25 = vrot.slane %v544_v22, 4  ;;  %v555_v26 = vsel %vm551_vm4, %v546_v21, %v550_v23  ;;  %v1599_v19 = vld [vmem:[%s1881_s1 + $0x8] ss:$12 sps:$4 sm:$0xff]   ;;  %v1600_v23 = vld [vmem:[%s1881_s1 + $0x20] ss:$12 sps:$4 sm:$0xff]  }
  0xb2   : > { %563 = vst [vmem:[#allocation3 + $0x5c] sm:$0xf] %v555_v26  ;;  %v439_v29 = vpop.permute.xlu1 %438  ;;  %v1604_v26 = vld [vmem:[%s1881_s1 + $0x38] ss:$12 sps:$4 sm:$0xff]  }
  0xb3   : > { %v554_v27 = vsel %vm551_vm4, %v544_v22, %v549_v25  ;;  %v1578_v28 = vld [vmem:[#allocation3 + $0x60] sm:$0xff]   ;;  %v443_v31 = vrot.slane %v439_v29, 4 }
  0xb4   : > { %562 = vst [vmem:[#allocation3 + $0x58] sm:$0xf] %v554_v27  ;;  %v437_v30 = vpop.permute.xlu0 %436  ;;  %1453 = vmatprep.subr.bf16.mxu0 %v1578_v28  ;;  %1508 = vmatprep.subr.bf16.mxu1 %v1578_v28  ;;  %v1598_v22 = vld [vmem:[%s1881_s1 + $0x18] ss:$12 sps:$4 sm:$0xff]   ;;  %v1601_v25 = vld [vmem:[%s1881_s1 + $0x34] ss:$12 sps:$4 sm:$0xff]  }
  0xb5   : > { %v442_v32 = vrot.slane %v437_v30, 4  ;;  %v448_v33 = vsel %vm444_vm5, %v439_v29, %v443_v31  ;;  %v1603_v27 = vld [vmem:[%s1881_s1 + $0x30] ss:$12 sps:$4 sm:$0xff]  }
  0xb6   : > { %456 = vst [vmem:[#allocation3 + $0x1c] sm:$0xf] %v448_v33  ;;  %v542_v36 = vpop.permute.xlu1 %541  ;;  %v1605_v28 = vld [vmem:[%s1881_s1 + $0x50] ss:$12 sps:$4 sm:$0xff]   ;;  %v1085_v33 = vlaneseq }
  0xb7   : > { %v447_v34 = vsel %vm444_vm5, %v437_v30, %v442_v32  ;;  %v1579_v35 = vld [vmem:[#allocation3 + $0x20] sm:$0xff]   ;;  %v548_v38 = vrot.slane %v542_v36, 4 }
  0xb8   : > { %455 = vst [vmem:[#allocation3 + $0x18] sm:$0xf] %v447_v34  ;;  %v540_v37 = vpop.permute.xlu0 %539  ;;  %1454 = vmatpush3.bf16.msra.mxu0 %v1579_v35  ;;  %1516 = vmatpush3.bf16.msra.mxu1 %v1579_v35 }
  0xb9   : > { %v547_v39 = vrot.slane %v540_v37, 4  ;;  %v553_v40 = vsel %vm551_vm4, %v542_v36, %v548_v38 }
  0xba   : > { %561 = vst [vmem:[#allocation3 + $0x54] sm:$0xf] %v553_v40  ;;  %v435_v43 = vpop.permute.xlu1 %434  ;;  %v1086_v40 = vshrl.u32 %v1085_v33, 7 }
  0xbb   : > { %v552_v41 = vsel %vm551_vm4, %v540_v37, %v547_v39  ;;  %v1580_v42 = vld [vmem:[#allocation3 + $0x58] sm:$0xff]   ;;  %v441_v45 = vrot.slane %v435_v43, 4  ;;  %v1082_v37 = vld [vmem:[%s181_s10] sm:$0x1] }
  0xbc   : > { %560 = vst [vmem:[#allocation3 + $0x50] sm:$0xf] %v552_v41  ;;  %v433_v44 = vpop.permute.xlu0 %432  ;;  %1455 = vmatprep.subr.bf16.mxu0 %v1580_v42  ;;  %1509 = vmatprep.subr.bf16.mxu1 %v1580_v42  ;;  %vm1083_vm9 = vcmp.gt.f32.partialorder %v1082_v37, 0.0 }
  0xbd   : > { %v440_v46 = vrot.slane %v433_v44, 4  ;;  %v446_v47 = vsel %vm444_vm5, %v435_v43, %v441_v45 }
  0xbe   : > { %454 = vst [vmem:[#allocation3 + $0x14] sm:$0xf] %v446_v47  ;;  %v406_v50 = vpop.permute.xlu1 %405  ;;  %v1087_v47 = vsub.s32 0, %v1086_v40 }
  0xbf   : > { %v445_v48 = vsel %vm444_vm5, %v433_v44, %v440_v46  ;;  %v1581_v49 = vld [vmem:[#allocation3 + $0x18] sm:$0xff]   ;;  %v410_v52 = vrot.slane %v406_v50, 4 }
  0xc0   : > { %453 = vst [vmem:[#allocation3 + $0x10] sm:$0xf] %v445_v48  ;;  %v404_v51 = vpop.permute.xlu0 %403  ;;  %1456 = vmatpush3.bf16.msra.mxu0 %v1581_v49  ;;  %1517 = vmatpush3.bf16.msra.mxu1 %v1581_v49  ;;  %v1084_v49 = vsel %vm1083_vm9, 1, %v1656_v24 }
  0xc1   : > { %v409_v53 = vrot.slane %v404_v51, 4  ;;  %v415_v54 = vsel %vm411_vm6, %v406_v50, %v410_v52 }
  0xc2   : > { %423 = vst [vmem:[#allocation3 + $0xc] sm:$0xf] %v415_v54  ;;  %v402_v57 = vpop.permute.xlu1 %401 }
  0xc3   : > { %v414_v55 = vsel %vm411_vm6, %v404_v51, %v409_v53  ;;  %v1582_v56 = vld [vmem:[#allocation3 + $0x50] sm:$0xff]   ;;  %v408_v59 = vrot.slane %v402_v57, 4 }
  0xc4   : > { %422 = vst [vmem:[#allocation3 + $0x8] sm:$0xf] %v414_v55  ;;  %v400_v58 = vpop.permute.xlu0 %399  ;;  %1457 = vmatprep.subr.bf16.mxu0 %v1582_v56  ;;  %1510 = vmatprep.subr.bf16.mxu1 %v1582_v56 }
  0xc5   : > { %v407_v60 = vrot.slane %v400_v58, 4  ;;  %v413_v62 = vsel %vm411_vm6, %v402_v57, %v408_v59  ;;  %v1088_v59 = vrot.slane %v1084_v49, %v1087_v47 }
  0xc6   : > { %421 = vst [vmem:[#allocation3 + $0x4] sm:$0xf] %v413_v62  ;;  %v645_v1 = vpop.permute.xlu1 %644 }
  0xc7   : > { %v412_v63 = vsel %vm411_vm6, %v400_v58, %v407_v60  ;;  %v1583_v0 = vld [vmem:[#allocation3 + $0x10] sm:$0xff]   ;;  %v649_v3 = vrot.slane %v645_v1, 4  ;;  %vm1089_vm10 = vcmp.eq.s32.totalorder %v1088_v59, 1 }
  0xc8   : > { %420 = vst [vmem:[#allocation3] sm:$0xf] %v412_v63  ;;  %v643_v2 = vpop.permute.xlu0 %642  ;;  %1458 = vmatpush3.bf16.msra.mxu0 %v1583_v0  ;;  %1518 = vmatpush3.bf16.msra.mxu1 %v1583_v0 }
  0xc9   : > { %v648_v4 = vrot.slane %v643_v2, 4  ;;  %1459 = vmatprep.subr.bf16.mxu0 %v1584_v61  ;;  %1511 = vmatprep.subr.bf16.mxu1 %v1584_v61  ;;  %v654_v6 = vsel %vm650_vm7, %v645_v1, %v649_v3 }
  0xca   : > { %662 = vst [vmem:[#allocation3 + $0x8c] sm:$0xf] %v654_v6  ;;  %v641_v9 = vpop.permute.xlu1 %640 }
  0xcb   : > { %v653_v7 = vsel %vm650_vm7, %v643_v2, %v648_v4  ;;  %v1585_v8 = vld [vmem:[#allocation3 + $0x8] sm:$0xff]   ;;  %v647_v11 = vrot.slane %v641_v9, 4 }
  0xcc   : > { %661 = vst [vmem:[#allocation3 + $0x88] sm:$0xf] %v653_v7  ;;  %v639_v10 = vpop.permute.xlu0 %638  ;;  %1460 = vmatpush3.bf16.msra.mxu0 %v1585_v8  ;;  %1519 = vmatpush3.bf16.msra.mxu1 %v1585_v8 }
  0xcd   : > { %v646_v12 = vrot.slane %v639_v10, 4  ;;  %1461 = vmatprep.subr.bf16.mxu0 %v1586_v5  ;;  %1512 = vmatprep.subr.bf16.mxu1 %v1586_v5  ;;  %v652_v13 = vsel %vm650_vm7, %v641_v9, %v647_v11 }
  0xce   : > { %660 = vst [vmem:[#allocation3 + $0x84] sm:$0xf] %v652_v13 }
  0xcf   : > { %v651_v14 = vsel %vm650_vm7, %v639_v10, %v646_v12  ;;  %v1587_v15 = vld [vmem:[#allocation3] sm:$0xff]  }
  0xd0   : > { %659 = vst [vmem:[#allocation3 + $0x80] sm:$0xf] %v651_v14  ;;  %1462 = vmatpush3.bf16.msra.mxu0 %v1587_v15  ;;  %1520 = vmatpush3.bf16.msra.mxu1 %v1587_v15 }
  0xd3   : > { %v1594_v20 = vld [vmem:[#allocation3 + $0x88] sm:$0xff]   ;;  %977 = vmatmul.mubr.bf16.vlgmr.msra.gmra.mxu0 %v1588_v16  ;;  %1001 = vmatmul.mubr.bf16.vlgmr.msra.gmra.mxu1 %v1591_v17 }
  0xd4   : > { %1493 = vmatprep.subr.bf16.mxu1 %v1594_v20  ;;  %984 = vmatprep.mubr.bf16.mxu0 %v1596_v18 }
  0xd5   : > { %1494 = vmatpush3.bf16.msra.mxu1 %v1594_v20  ;;  %1497 = vmatprep.mubr.msk.bf16.mxu1 %vm931_vm8, %v1599_v19 }
  0xd7   : > { %v1595_v21 = vld [vmem:[#allocation3 + $0x80] sm:$0xff]   ;;  %v731_v29 = vpop.permute.xlu1 %730 }
  0xd8   : > { %1495 = vmatprep.subr.bf16.mxu1 %v1595_v21 }
  0xd9   : > { %1496 = vmatpush3.bf16.msra.mxu1 %v1595_v21  ;;  %v726_v30 = vpop.permute.xlu0 %725 }
  0xdb   : > { %985 = vmatmul.mubr.bf16.gmra.mxu0 %v1598_v22  ;;  %v736_v34 = vpop.permute.xlu1 %735 }
  0xdc   : > { %1498 = vmatmul.mubr.msk.bf16.vlgmr.msra.gmra.mxu1 %vm931_vm8, %v1600_v23  ;;  %992 = vmatprep.mubr.bf16.mxu0 %v1601_v25 }
  0xdd   : > { %1501 = vmatprep.mubr.msk.bf16.mxu1 %vm931_vm8, %v1604_v26  ;;  %v741_v41 = vpop.permute.xlu0 %740 }
  0xdf   : > { %v746_v45 = vpop.permute.xlu1 %745 }
  0xe1   : > { %v751_v53 = vpop.permute.xlu0 %750 }
  0xe3   : > { %993 = vmatmul.mubr.bf16.gmra.mxu0 %v1603_v27  ;;  %v756_v60 = vpop.permute.xlu1 %755 }
  0xe4   : > { %1502 = vmatmul.mubr.msk.bf16.gmra.mxu1 %vm931_vm8, %v1605_v28 }
  0xe5   : > { %v761_v8 = vpop.permute.xlu0 %760 }
 0x193   : > { %v1463_v31 = vpop.f32.mrf.mxu0  ;;  %v1481_v32 = vpop.f32.mrf.mxu1 }
 0x195   : > { %v1464_v35 = vpop.f32.mrf.mxu0  ;;  %v1482_v36 = vpop.f32.mrf.mxu1 }
 0x196   : > { %v1465_v42 = vadd.f32 %v1464_v35, %v1463_v31  ;;  %v1483_v56 = vadd.f32 %v1482_v36, %v1481_v32 }
 0x197   : > { %v1466_v38 = vpop.f32.mrf.mxu0  ;;  %v1484_v39 = vpop.f32.mrf.mxu1 }
 0x198   : > { %v979_v52 = vadd.f32 %v1465_v42, %v726_v30  ;;  %v1003_v4 = vadd.f32 %v1483_v56, %v756_v60 }
 0x199   : > { %v1467_v43 = vpop.f32.mrf.mxu0  ;;  %v1485_v44 = vpop.f32.mrf.mxu1 }
 0x19a   : > { %v1468_v50 = vadd.f32 %v1467_v43, %v1466_v38  ;;  %v1486_v24 = vadd.f32 %v1485_v44, %v1484_v39 }
 0x19b   : > { %v1469_v46 = vpop.f32.mrf.mxu0 }
 0x19c   : > { %v1499_v48 = vpop.f32.mrf.mxu1  ;;  %v982_v0 = vadd.f32 %v1468_v50, %v731_v29  ;;  %v1006_v18 = vadd.f32 %v1486_v24, %v761_v8 }
 0x19d   : > { %v1470_v51 = vpop.f32.mrf.mxu0 }
 0x19e   : > { %v1471_v54 = vadd.f32 %v1470_v51, %v1469_v46  ;;  %v1043_v55 = vpop.f32.mrf.mxu1 }
 0x19f   : > { %v1044_v57 = vadd.f32 %v1043_v55, %v979_v52  ;;  %v1472_v58 = vpop.f32.mrf.mxu0 }
 0x1a0   : > { %v987_v61 = vadd.f32 %v1471_v54, %v736_v34  ;;  %v1500_v62 = vpop.f32.mrf.mxu1 }
 0x1a1   : > { %v1473_v63 = vpop.f32.mrf.mxu0  ;;  %v1074_v5 = vmax.f32 %v1044_v57, 0.0 }
 0x1a2   : > { %v1052_v1 = vadd.f32 %v1499_v48, %v987_v61  ;;  %v1474_v2 = vadd.f32 %v1473_v63, %v1472_v58  ;;  %v1046_v3 = vpop.f32.mrf.mxu1 }
 0x1a3   : > { %v1047_v6 = vadd.f32 %v1046_v3, %v982_v0  ;;  %v1475_v7 = vpop.f32.mrf.mxu0  ;;  %v1090_v19 = vsel %vm1089_vm10, %v1074_v5, 0.0 }
 0x1a4   : > { %v990_v9 = vadd.f32 %v1474_v2, %v741_v41  ;;  %v1503_v10 = vpop.f32.mrf.mxu1  ;;  %v1076_v14 = vmax.f32 %v1052_v1, 0.0 }
 0x1a5   : > { %v1075_v11 = vmax.f32 %v1047_v6, 0.0  ;;  %v1068_v12 = vadd.f32 %v1503_v10, %v1003_v4  ;;  %v1476_v13 = vpop.f32.mrf.mxu0 }
 0x1a6   : > { %v1055_v15 = vadd.f32 %v1500_v62, %v990_v9  ;;  %v1477_v16 = vadd.f32 %v1476_v13, %v1475_v7  ;;  %v1059_v17 = vpop.f32.mrf.mxu1  ;;  %v1092_v30 = vsel %vm1089_vm10, %v1076_v14, 0.0 }
 0x1a7   : > { %v1091_v20 = vsel %vm1089_vm10, %v1075_v11, 0.0  ;;  %v1478_v21 = vpop.f32.mrf.mxu0  ;;  %v1080_v27 = vmax.f32 %v1068_v12, 0.0 }
 0x1a8   : > { %v1077_v22 = vmax.f32 %v1055_v15, 0.0  ;;  %v1427_v23 = vpack.c.bf16 %v1091_v20, %v1090_v19  ;;  %v995_v25 = vadd.f32 %v1477_v16, %v746_v45  ;;  %v1504_v26 = vpop.f32.mrf.mxu1 }
 0x1a9   : > { %v1071_v28 = vadd.f32 %v1504_v26, %v1006_v18  ;;  %v1479_v29 = vpop.f32.mrf.mxu0  ;;  %v1096_v37 = vsel %vm1089_vm10, %v1080_v27, 0.0 }
 0x1aa   : > { %v1093_v31 = vsel %vm1089_vm10, %v1077_v22, 0.0  ;;  %1428 = vst [vmem:[%s1733_s14] sm:$0xff] %v1427_v23   ;;  %v1060_v32 = vadd.f32 %v1059_v17, %v995_v25  ;;  %v1480_v33 = vadd.f32 %v1479_v29, %v1478_v21  ;;  %v1062_v39 = vpop.f32.mrf.mxu1 }
 0x1ab   : > { %v1432_v34 = vpack.c.bf16 %v1093_v31, %v1092_v30  ;;  %v1081_v35 = vmax.f32 %v1071_v28, 0.0 }
 0x1ac   : > { %v998_v36 = vadd.f32 %v1480_v33, %v751_v53  ;;  %v1078_v40 = vmax.f32 %v1060_v32, 0.0 }
 0x1ad   : > { %1444 = vst [vmem:[%s1733_s14 + $0x8] sm:$0xff] %v1432_v34   ;;  %v1097_v38 = vsel %vm1089_vm10, %v1081_v35, 0.0 }
 0x1ae   : > { %v1442_v41 = vpack.c.bf16 %v1097_v38, %v1096_v37  ;;  %v1063_v42 = vadd.f32 %v1062_v39, %v998_v36  ;;  %v1094_v44 = vsel %vm1089_vm10, %v1078_v40, 0.0 }
 0x1b0   : > { %1446 = vst [vmem:[%s1733_s14 + $0x18] sm:$0xff] %v1442_v41   ;;  %v1079_v43 = vmax.f32 %v1063_v42, 0.0 }
 0x1b1   : > { %1144 = sbr.rel (!%p1710_p3) target bundleno = 446 (0x1be), region = 118  ;;  %v1165_v47 = vld [vmem:[%s1733_s14] sm:$0xf] (%p1710_p3)  ;;  %v1167_v48 = vld [vmem:[%s1733_s14 + $0x4] sm:$0xf] (%p1710_p3) }
 0x1b2   : > { %v1095_v45 = vsel %vm1089_vm10, %v1079_v43, 0.0  ;;  %1402 = vst [vmem:[%s1266_s24 + $0x4] sm:$0xf] (%p1710_p3), %v1165_v47  ;;  %1403 = vst [vmem:[%s1266_s24 + $0x14] sm:$0xf] (%p1710_p3), %v1167_v48 }
 0x1b3   : > { %v1437_v46 = vpack.c.bf16 %v1095_v45, %v1094_v44 }
 0x1b4   : > { %v1169_v49 = vld [vmem:[%s1733_s14 + $0x8] sm:$0xf] (%p1710_p3)  ;;  %v1171_v50 = vld [vmem:[%s1733_s14 + $0xc] sm:$0xf] (%p1710_p3) }
 0x1b5   : > { %1445 = vst [vmem:[%s1733_s14 + $0x10] sm:$0xff] %v1437_v46   ;;  %1404 = vst [vmem:[%s1266_s24 + $0x24] sm:$0xf] (%p1710_p3), %v1169_v49 }
 0x1b6   : > { %1405 = vst [vmem:[%s1266_s24 + $0x34] sm:$0xf] %v1171_v50 }
 0x1b7   : > { %v1177_v53 = vld [vmem:[%s1733_s14 + $0x18] sm:$0xf]  ;;  %v1179_v54 = vld [vmem:[%s1733_s14 + $0x1c] sm:$0xf] }
 0x1b8   : > { %1408 = vst [vmem:[%s1266_s24 + $0x64] sm:$0xf] %v1177_v53  ;;  %1409 = vst [vmem:[%s1266_s24 + $0x74] sm:$0xf] %v1179_v54 }
 0x1bc   : > { %v1173_v51 = vld [vmem:[%s1733_s14 + $0x10] sm:$0xf]  ;;  %v1175_v52 = vld [vmem:[%s1733_s14 + $0x14] sm:$0xf] }
 0x1bd   : > { %1406 = vst [vmem:[%s1266_s24 + $0x44] sm:$0xf] %v1173_v51  ;;  %1407 = vst [vmem:[%s1266_s24 + $0x54] sm:$0xf] %v1175_v52 }
 0x1be PF: > { %s14_s19 = sadd.s32 1, %s1646_s19   ;;  %s1886_s15 = smov %s1634_s16 }
 0x1bf   : > { %p11_p9 = scmp.ge.s32.totalorder %s14_s19, 4   ;;  %s1887_s16 = smov %s1719_s27 }
 0x1c0   : > { %s1888_s17 = smov %s1642_s18  ;;  %s1889_s18 = smov %s1708_s22 }
 0x1c1   :  { %13 = sbr.rel (!%p11_p9) target bundleno = 3 (0x3), region = 220 }
 0x1c6   :  { %1230 = vsyncmov [#allocation4] }
 0x1c9   :  { %s1231_s23 = vpop.sfrf %1230 }
 0x1ca   :  { %p1412_p10 = scmp.ne.s32.totalorder %s1231_s23, 0 }
 0x1cc   :  { %1235 = shalt.err (%p1412_p10)  }
 0x1cd   :  { %1237 = vsyncmov [#allocation4 + $0x1] }
 0x1d0   :  { %s1238_s14 = vpop.sfrf %1237 }
 0x1d1   :  { %p1413_p11 = scmp.ne.s32.totalorder %s1238_s14, 0 }
 0x1d3   :  { %1242 = shalt.err (%p1413_p11)  }

// kernel: resnet_cifar_forward.39
= control target key start
LH: loop header
LB: loop body
LE: loop exit
PB: predicated region body
PF: predicated region fallthrough
CT: control target
= control target key end

     0   :  { %s2365_s15 = smov 0   ;;  %s2367_s16 = smov 0   ;;  %s2760_s0 = inlined_call_operand.vmem [shape: bf16[64,512], index: 0, kind: input, shape index: {}]   ;;  %s2761_s1 = inlined_call_operand.vmem [shape: bf16[64,576], index: 1, kind: input, shape index: {}]   ;;  %s2762_s2 = inlined_call_operand.vmem [shape: f32[64,1], index: 2, kind: input, shape index: {}]   ;;  %s2763_s3 = inlined_call_operand.vmem [shape: f32[1,256], index: 3, kind: input, shape index: {}]   ;;  %s2764_s4 = inlined_call_operand.vmem [shape: bf16[64,512], index: 4, kind: output, shape index: {}]  }
   0x1   :  { %s2369_s17 = smov 0   ;;  %s2371_s18 = smov 0  }
   0x2   :  { %s2373_s19 = smov 0  }
   0x3 LB: > { %s1896_s20 = sadd.s32 4294967295, %s2329_s19   ;;  %s26_s21 = sadd.s32 1, %s2325_s18  ;;  %s2329_s19 = sphi %s2373_s19, %s14_s19   ;;  %s2325_s18 = sphi %s2371_s18, %s2769_s18   ;;  %s2321_s17 = sphi %s2369_s17, %s2768_s17   ;;  %s2317_s16 = sphi %s2367_s16, %s2767_s16   ;;  %s2313_s15 = sphi %s2365_s15, %s2766_s15  }
   0x4   : > { %p28_p0 = scmp.ge.s32.totalorder %s26_s21, 2  ;;  %p117_p1 = scmp.ne.s32.totalorder %s2317_s16, %s2313_s15 }
   0x5   : > { %p118_p2 = scmp.eq.s32.totalorder %s1896_s20, 1  ;;  %p1900_p4 = scmp.ge.s32.totalorder %s2329_s19, 1 }
   0x6   : > { %s2391_s22 = scalar_select %p28_p0, 0, %s26_s21  }
   0x7   : > { %p2393_p3 = por %p118_p2, %p117_p1  ;;  %p156_p5 = scmp.lt.s32.totalorder %s2329_s19, 3 }
   0x8   : > { %s103_s24 = sadd.s32 1, %s2391_s22  ;;  %s107_s26 = sadd.s32 1, %s2317_s16 }
   0x9   : > { %s104_s25 = ssub.s32 %s26_s21, %s103_s24  ;;  %p157_p7 = pnand %p1900_p4, %p156_p5 }
   0xa   : > { %p105_p6 = scmp.eq.s32.totalorder %s104_s25, 0  ;;  %s175_s28 = sand.u32 (!%p157_p7), 1, %s2313_s15  }
   0xb   : > { %160 = sbr.rel (%p157_p7) target bundleno = 520 (0x208), region = 32  ;;  %p179_p8 = scmp.lt.s32.totalorder (!%p157_p7), %s2321_s17, 1 }
   0xc   : > { %s2402_s27 = scalar_select %p105_p6, %s2317_s16, %s107_s26  }
   0xd   : > { %s2405_s29 = sshll.u32 (!%p157_p7), %s175_s28, 5  ;;  %s1902_s30 = sshll.u32 (!%p157_p7), %s2321_s17, 7 }
   0xe   : > { %s192_s5 = sshra.s32 (!%p157_p7), %s1902_s30, 7  ;;  %s2437_s14 = scalar_lea.vmem (!%p157_p7), [#allocation5], %s2405_s29 }
   0xf   : > { %s1903_s7 = sshll.u32 (!%p157_p7), %s192_s5, 2 }
  0x10   : > { %s2409_s6 = scalar_select %p179_p8, %s2321_s17, 1 }
  0x11   : > { %s2418_s13 = scalar_lea.vmem %s2760_s0, %s1903_s7 }
  0x12   : > { %s181_s10 = scalar_lea.vmem %s2763_s3, %s2409_s6  ;;  %v248_v0 = vld [vmem:[%s2418_s13] sm:$0xff]  ;;  %v250_v1 = vld [vmem:[%s2418_s13 + $0x10] sm:$0xff]  ;;  %v1904_v8 = vld [vmem:[%s2418_s13 + $0x8] sm:$0xf] }
  0x13   : > { %v252_v2 = vld [vmem:[%s2418_s13 + $0x20] sm:$0xff]  ;;  %249 = vst [vmem:[#allocation2] sm:$0xff] %v248_v0  ;;  %251 = vst [vmem:[#allocation2 + $0xc] sm:$0xff] %v250_v1  ;;  %v254_v3 = vld [vmem:[%s2418_s13 + $0x30] sm:$0xff] }
  0x14   : > { %253 = vst [vmem:[#allocation2 + $0x18] sm:$0xff] %v252_v2  ;;  %v256_v4 = vld [vmem:[%s2418_s13 + $0x40] sm:$0xff]  ;;  %v258_v5 = vld [vmem:[%s2418_s13 + $0x50] sm:$0xff]  ;;  %255 = vst [vmem:[#allocation2 + $0x24] sm:$0xff] %v254_v3 }
  0x15   : > { %257 = vst [vmem:[#allocation2 + $0x30] sm:$0xff] %v256_v4  ;;  %259 = vst [vmem:[#allocation2 + $0x3c] sm:$0xff] %v258_v5  ;;  %v260_v6 = vld [vmem:[%s2418_s13 + $0x60] sm:$0xff]  ;;  %v262_v7 = vld [vmem:[%s2418_s13 + $0x70] sm:$0xff] }
  0x16   : > { %261 = vst [vmem:[#allocation2 + $0x48] sm:$0xff] %v260_v6  ;;  %263 = vst [vmem:[#allocation2 + $0x54] sm:$0xff] %v262_v7  ;;  %v1905_v9 = vld [vmem:[%s2418_s13 + $0x18] sm:$0xf]  ;;  %v1906_v10 = vld [vmem:[%s2418_s13 + $0x28] sm:$0xf] }
  0x17   : > { %275 = vst [vmem:[#allocation2 + $0x8] sm:$0xf] %v1904_v8  ;;  %v1907_v11 = vld [vmem:[%s2418_s13 + $0x38] sm:$0xf]  ;;  %277 = vst [vmem:[#allocation2 + $0x14] sm:$0xf] %v1905_v9 }
  0x18   : > { %279 = vst [vmem:[#allocation2 + $0x20] sm:$0xf] %v1906_v10  ;;  %281 = vst [vmem:[#allocation2 + $0x2c] sm:$0xf] %v1907_v11  ;;  %v1908_v12 = vld [vmem:[%s2418_s13 + $0x48] sm:$0xf] }
  0x19   : > { %v1909_v13 = vld [vmem:[%s2418_s13 + $0x58] sm:$0xf]  ;;  %v1910_v14 = vld [vmem:[%s2418_s13 + $0x68] sm:$0xf]  ;;  %283 = vst [vmem:[#allocation2 + $0x38] sm:$0xf] %v1908_v12 }
  0x1a   : > { %285 = vst [vmem:[#allocation2 + $0x44] sm:$0xf] %v1909_v13  ;;  %287 = vst [vmem:[#allocation2 + $0x50] sm:$0xf] %v1910_v14  ;;  %v1911_v15 = vld [vmem:[%s2418_s13 + $0x78] sm:$0xf] }
  0x1b   : > { %289 = vst [vmem:[#allocation2 + $0x5c] sm:$0xf] %v1911_v15 }
  0x1c   : > { %293 = vsyncadd [#allocation4], 1536 }
  0x1d   : > { %2309 = dma.done.wait [#allocation4], 1536 }
  0x1e   : > { %2310 = vsyncadd [#allocation4], 4294965760  ;;  %v640_v17 = vld [vmem:[#allocation2 + $0x48] sm:$0xff]  ;;  %s2331_s15 = smov 122   ;;  %s2332_s20 = smov 1   ;;  %v641_v19 = vld [vmem:[#allocation2 + $0x54] sm:$0xff] }
  0x1f   : > { %662 = vrot.lane.b32.xlu0 %v640_v17, %s2332_s20  ;;  %s2333_s21 = smov 6   ;;  %s2334_s24 = smov 127   ;;  %v639_v20 = vld [vmem:[#allocation2 + $0x3c] sm:$0xff]  ;;  %v638_v21 = vld [vmem:[#allocation2 + $0x30] sm:$0xff]  ;;  %v637_v24 = vld [vmem:[#allocation2 + $0x24] sm:$0xff]  ;;  %vm885_vm0 = vcmask 998400  }
  0x20   : > { %v2459_v23 = vld [vmem:[#allocation2 + $0x34] sm:$0xff]  ;;  %v2473_v26 = vld [vmem:[#allocation2 + $0x28] sm:$0xff]  ;;  %v2475_v27 = vld [vmem:[#allocation2 + $0x1c] sm:$0xff]  ;;  %s2335_s25 = smov 5   ;;  %s2336_s26 = smov 123   ;;  %vm674_vm1 = vcmask 7168  }
  0x21   : > { %v2439_v16 = vld [vmem:[#allocation2 + $0x4c] sm:$0xff]  ;;  %v2457_v22 = vld [vmem:[#allocation2 + $0x40] sm:$0xff]  ;;  %v636_v25 = vld [vmem:[#allocation2 + $0x18] sm:$0xff]  ;;  %s2337_s28 = smov 7   ;;  %s2338_s8 = smov 121   ;;  %vm544_vm2 = vcmask 48128  }
  0x22   : > { %873 = vrot.lane.b32.xlu1 %v2439_v16, %s2331_s15  ;;  %v2444_v18 = vld [vmem:[#allocation2 + $0x58] sm:$0xff]  ;;  %v635_v28 = vld [vmem:[#allocation2 + $0xc] sm:$0xff]  ;;  %v634_v29 = vld [vmem:[#allocation2] sm:$0xff]  ;;  %vm755_vm3 = vcmask 1039360   ;;  %vm609_vm4 = vcmask 39936   ;;  %vm820_vm5 = vcmask 1006592  }
  0x23   : > { %664 = vrot.lane.b32.xlu0 %v641_v19, %s2332_s20  ;;  %v2489_v30 = vld [vmem:[#allocation2 + $0x10] sm:$0xff]  ;;  %v2491_v31 = vld [vmem:[#allocation2 + $0x4] sm:$0xff]  ;;  %v705_v32 = vld [vmem:[#allocation2 + $0x4c] sm:$0xf]  ;;  %vm479_vm6 = vcmask 56320   ;;  %vm950_vm7 = vcmask 990208  }
  0x24   : > { %v706_v33 = vld [vmem:[#allocation2 + $0x58] sm:$0xf]  ;;  %713 = vst [vmem:[#allocation3 + $0x98] sm:$0xf] %v705_v32  ;;  %v703_v34 = vld [vmem:[#allocation2 + $0x34] sm:$0xf] }
  0x25   : > { %714 = vst [vmem:[#allocation3 + $0x9c] sm:$0xf] %v706_v33  ;;  %v704_v35 = vld [vmem:[#allocation2 + $0x40] sm:$0xf]  ;;  %711 = vst [vmem:[#allocation3 + $0x90] sm:$0xf] %v703_v34 }
  0x26   : > { %875 = vrot.lane.b32.xlu1 %v2444_v18, %s2331_s15  ;;  %712 = vst [vmem:[#allocation3 + $0x94] sm:$0xf] %v704_v35  ;;  %v701_v36 = vld [vmem:[#allocation2 + $0x1c] sm:$0xf]  ;;  %v702_v37 = vld [vmem:[#allocation2 + $0x28] sm:$0xf] }
  0x27   : > { %532 = vrot.lane.b32.xlu0 %v640_v17, %s2333_s21  ;;  %709 = vst [vmem:[#allocation3 + $0x88] sm:$0xf] %v701_v36  ;;  %710 = vst [vmem:[#allocation3 + $0x8c] sm:$0xf] %v702_v37  ;;  %v699_v38 = vld [vmem:[#allocation2 + $0x4] sm:$0xf] }
  0x28   : > { %v700_v39 = vld [vmem:[#allocation2 + $0x10] sm:$0xf]  ;;  %707 = vst [vmem:[#allocation3 + $0x80] sm:$0xf] %v699_v38  ;;  %v2258_v40 = vld [vmem:[%s2761_s1 + $0xc] ss:$20 sps:$4 sm:$0xff]  }
  0x29   : > { %708 = vst [vmem:[#allocation3 + $0x84] sm:$0xf] %v700_v39  ;;  %1545 = vmatprep.mubr.bf16.mxu1 %v2258_v40  ;;  %v2262_v41 = vld [vmem:[%s2761_s1 + $0x4] ss:$20 sps:$4 sm:$0xff]   ;;  %v1073_v38 = vld [vmem:[%s2762_s2 + $0x10] sm:$0xff]  ;;  %vm1435_vm8 = vcmask 523264  }
  0x2a   : > { %534 = vrot.lane.b32.xlu1 %v641_v19, %s2333_s21  ;;  %1480 = vmatprep.mubr.bf16.mxu0 %v2262_v41  ;;  %v1074_v32 = vld [vmem:[%s2762_s2 + $0x18] sm:$0xff]  ;;  %v1076_v41 = vld [vmem:[%s2762_s2 + $0x28] sm:$0xff]  ;;  %s2016_s6 = sshll.u32 (%p2393_p3), %s2321_s17, 2 }
  0x2b   : > { %743 = vrot.lane.b32.xlu0 %v2439_v16, %s2334_s24 }
  0x2e   : > { %745 = vrot.lane.b32.xlu1 %v2444_v18, %s2334_s24 }
  0x2f   : > { %658 = vrot.lane.b32.xlu0 %v638_v21, %s2332_s20 }
  0x32   : > { %660 = vrot.lane.b32.xlu1 %v639_v20, %s2332_s20 }
  0x33   : > { %869 = vrot.lane.b32.xlu0 %v2459_v23, %s2331_s15 }
  0x36   : > { %871 = vrot.lane.b32.xlu1 %v2457_v22, %s2331_s15 }
  0x37   : > { %528 = vrot.lane.b32.xlu0 %v638_v21, %s2333_s21 }
  0x3a   : > { %530 = vrot.lane.b32.xlu1 %v639_v20, %s2333_s21 }
  0x3b   : > { %739 = vrot.lane.b32.xlu0 %v2459_v23, %s2334_s24 }
  0x3e   : > { %741 = vrot.lane.b32.xlu1 %v2457_v22, %s2334_s24 }
  0x3f   : > { %654 = vrot.lane.b32.xlu0 %v636_v25, %s2332_s20 }
  0x42   : > { %656 = vrot.lane.b32.xlu1 %v637_v24, %s2332_s20 }
  0x43   : > { %865 = vrot.lane.b32.xlu0 %v2475_v27, %s2331_s15 }
  0x46   : > { %867 = vrot.lane.b32.xlu1 %v2473_v26, %s2331_s15 }
  0x47   : > { %524 = vrot.lane.b32.xlu0 %v636_v25, %s2333_s21 }
  0x4a   : > { %526 = vrot.lane.b32.xlu1 %v637_v24, %s2333_s21 }
  0x4b   : > { %735 = vrot.lane.b32.xlu0 %v2475_v27, %s2334_s24 }
  0x4e   : > { %737 = vrot.lane.b32.xlu1 %v2473_v26, %s2334_s24 }
  0x4f   : > { %650 = vrot.lane.b32.xlu0 %v634_v29, %s2332_s20 }
  0x52   : > { %652 = vrot.lane.b32.xlu1 %v635_v28, %s2332_s20 }
  0x53   : > { %861 = vrot.lane.b32.xlu0 %v2491_v31, %s2331_s15 }
  0x56   : > { %863 = vrot.lane.b32.xlu1 %v2489_v30, %s2331_s15 }
  0x57   : > { %520 = vrot.lane.b32.xlu0 %v634_v29, %s2333_s21 }
  0x5a   : > { %522 = vrot.lane.b32.xlu1 %v635_v28, %s2333_s21 }
  0x5b   : > { %731 = vrot.lane.b32.xlu0 %v2491_v31, %s2334_s24 }
  0x5e   : > { %733 = vrot.lane.b32.xlu1 %v2489_v30, %s2334_s24  ;;  %s1835_s24 = scalar_lea.vmem (%p2393_p3), %s2764_s4, %s2016_s6 }
  0x5f   : > { %597 = vrot.lane.b32.xlu0 %v640_v17, %s2335_s25 }
  0x62   : > { %599 = vrot.lane.b32.xlu1 %v641_v19, %s2335_s25 }
  0x63   : > { %808 = vrot.lane.b32.xlu0 %v2439_v16, %s2336_s26 }
  0x66   : > { %810 = vrot.lane.b32.xlu1 %v2444_v18, %s2336_s26 }
  0x67   : > { %467 = vrot.lane.b32.xlu0 %v640_v17, %s2337_s28 }
  0x6a   : > { %469 = vrot.lane.b32.xlu1 %v641_v19, %s2337_s28 }
  0x6b   : > { %593 = vrot.lane.b32.xlu0 %v638_v21, %s2335_s25 }
  0x6e   : > { %595 = vrot.lane.b32.xlu1 %v639_v20, %s2335_s25 }
  0x6f   : > { %804 = vrot.lane.b32.xlu0 %v2459_v23, %s2336_s26 }
  0x72   : > { %806 = vrot.lane.b32.xlu1 %v2457_v22, %s2336_s26 }
  0x73   : > { %463 = vrot.lane.b32.xlu0 %v638_v21, %s2337_s28 }
  0x76   : > { %465 = vrot.lane.b32.xlu1 %v639_v20, %s2337_s28 }
  0x77   : > { %589 = vrot.lane.b32.xlu0 %v636_v25, %s2335_s25 }
  0x7a   : > { %591 = vrot.lane.b32.xlu1 %v637_v24, %s2335_s25 }
  0x7b   : > { %800 = vrot.lane.b32.xlu0 %v2475_v27, %s2336_s26 }
  0x7e   : > { %802 = vrot.lane.b32.xlu1 %v2473_v26, %s2336_s26 }
  0x7f   : > { %459 = vrot.lane.b32.xlu0 %v636_v25, %s2337_s28 }
  0x82   : > { %461 = vrot.lane.b32.xlu1 %v637_v24, %s2337_s28 }
  0x83   : > { %585 = vrot.lane.b32.xlu0 %v634_v29, %s2335_s25 }
  0x86   : > { %587 = vrot.lane.b32.xlu1 %v635_v28, %s2335_s25 }
  0x87   : > { %796 = vrot.lane.b32.xlu0 %v2491_v31, %s2336_s26 }
  0x8a   : > { %798 = vrot.lane.b32.xlu1 %v2489_v30, %s2336_s26 }
  0x8b   : > { %455 = vrot.lane.b32.xlu0 %v634_v29, %s2337_s28 }
  0x8e   : > { %457 = vrot.lane.b32.xlu1 %v635_v28, %s2337_s28  ;;  %v1072_v28 = vld [vmem:[%s2762_s2 + $0x8] sm:$0xff] }
  0x8f   : > { %938 = vrot.lane.b32.xlu0 %v2439_v16, %s2338_s8 }
  0x91   : > { %v663_v43 = vpop.permute.xlu0 %662 }
  0x92   : > { %940 = vrot.lane.b32.xlu1 %v2444_v18, %s2338_s8  ;;  %v672_v45 = vrot.slane %v663_v43, 4 }
  0x93   : > { %934 = vrot.lane.b32.xlu0 %v2459_v23, %s2338_s8 }
  0x94   : > { %v874_v42 = vpop.permute.xlu1 %873  ;;  %v681_v47 = vsel %vm674_vm1, %v663_v43, %v672_v45 }
  0x95   : > { %v883_v44 = vrot.slane %v874_v42, 4  ;;  %697 = vst [vmem:[#allocation3 + $0x78] sm:$0xf] %v681_v47  ;;  %v665_v49 = vpop.permute.xlu0 %664  ;;  %v1075_v47 = vld [vmem:[%s2762_s2 + $0x20] sm:$0xff] }
  0x96   : > { %936 = vrot.lane.b32.xlu1 %v2457_v22, %s2338_s8  ;;  %v673_v51 = vrot.slane %v665_v49, 4 }
  0x97   : > { %v892_v46 = vsel %vm885_vm0, %v874_v42, %v883_v44  ;;  %930 = vrot.lane.b32.xlu0 %v2475_v27, %s2338_s8  ;;  %v1071_v27 = vld [vmem:[%s2762_s2] sm:$0xff] }
  0x98   : > { %908 = vst [vmem:[#allocation3 + $0xf8] sm:$0xf] %v892_v46  ;;  %v876_v48 = vpop.permute.xlu1 %875  ;;  %v682_v53 = vsel %vm674_vm1, %v665_v49, %v673_v51 }
  0x99   : > { %v884_v50 = vrot.slane %v876_v48, 4  ;;  %698 = vst [vmem:[#allocation3 + $0x7c] sm:$0xf] %v682_v53  ;;  %v533_v55 = vpop.permute.xlu0 %532 }
  0x9a   : > { %932 = vrot.lane.b32.xlu1 %v2473_v26, %s2338_s8  ;;  %v542_v57 = vrot.slane %v533_v55, 4 }
  0x9b   : > { %v893_v52 = vsel %vm885_vm0, %v876_v48, %v884_v50  ;;  %926 = vrot.lane.b32.xlu0 %v2491_v31, %s2338_s8  ;;  %v2339_v31 = vmov 0   ;;  %v1078_v50 = vld [vmem:[%s2762_s2 + $0x38] sm:$0xff] }
  0x9c   : > { %909 = vst [vmem:[#allocation3 + $0xfc] sm:$0xf] %v893_v52  ;;  %v535_v54 = vpop.permute.xlu1 %534  ;;  %v551_v59 = vsel %vm544_vm2, %v533_v55, %v542_v57  ;;  %2223 = vset.pattern.permute.xlu0 %v2339_v31  ;;  %2224 = vset.pattern.permute.xlu1 %v2339_v31 }
  0x9d   : > { %v543_v56 = vrot.slane %v535_v54, 4  ;;  %567 = vst [vmem:[#allocation3 + $0x38] sm:$0xf] %v551_v59  ;;  %v744_v61 = vpop.permute.xlu0 %743 }
  0x9e   : > { %928 = vrot.lane.b32.xlu1 %v2489_v30, %s2338_s8  ;;  %v753_v63 = vrot.slane %v744_v61, 4 }
  0x9f   : > { %v552_v58 = vsel %vm544_vm2, %v535_v54, %v543_v56  ;;  %1081 = vperm.xlu0 %2223, %v1071_v27   ;;  %v1077_v56 = vld [vmem:[%s2762_s2 + $0x30] sm:$0xff] }
  0xa0   : > { %568 = vst [vmem:[#allocation3 + $0x3c] sm:$0xf] %v552_v58  ;;  %v746_v60 = vpop.permute.xlu1 %745  ;;  %v762_v1 = vsel %vm755_vm3, %v744_v61, %v753_v63  ;;  %v2225_v2 = vld [vmem:[#allocation3 + $0x78] sm:$0xff]  }
  0xa1   : > { %v754_v62 = vrot.slane %v746_v60, 4  ;;  %778 = vst [vmem:[#allocation3 + $0xb8] sm:$0xf] %v762_v1  ;;  %v659_v4 = vpop.permute.xlu0 %658  ;;  %2062 = vmatprep.subr.bf16.mxu0 %v2225_v2 }
  0xa2   : > { %v670_v7 = vrot.slane %v659_v4, 4  ;;  %1086 = vperm.xlu1 %2224, %v1072_v28  }
  0xa3   : > { %v763_v0 = vsel %vm755_vm3, %v746_v60, %v754_v62  ;;  %v2226_v5 = vld [vmem:[#allocation3 + $0xf8] sm:$0xff]   ;;  %1096 = vperm.xlu0 %2223, %v1074_v32  }
  0xa4   : > { %779 = vst [vmem:[#allocation3 + $0xbc] sm:$0xf] %v763_v0  ;;  %v661_v3 = vpop.permute.xlu1 %660  ;;  %2102 = vmatprep.subr.bf16.mxu1 %v2226_v5  ;;  %v679_v9 = vsel %vm674_vm1, %v659_v4, %v670_v7 }
  0xa5   : > { %v671_v6 = vrot.slane %v661_v3, 4  ;;  %695 = vst [vmem:[#allocation3 + $0x70] sm:$0xf] %v679_v9  ;;  %v870_v12 = vpop.permute.xlu0 %869 }
  0xa6   : > { %v881_v14 = vrot.slane %v870_v12, 4  ;;  %1091 = vperm.xlu1 %2224, %v1073_v38  }
  0xa7   : > { %v680_v8 = vsel %vm674_vm1, %v661_v3, %v671_v6  ;;  %v2227_v10 = vld [vmem:[#allocation3 + $0x38] sm:$0xff]   ;;  %1106 = vperm.xlu0 %2223, %v1076_v41  }
  0xa8   : > { %696 = vst [vmem:[#allocation3 + $0x74] sm:$0xf] %v680_v8  ;;  %v872_v11 = vpop.permute.xlu1 %871  ;;  %2063 = vmatpush3.bf16.msra.mxu0 %v2227_v10  ;;  %v890_v16 = vsel %vm885_vm0, %v870_v12, %v881_v14 }
  0xa9   : > { %v882_v13 = vrot.slane %v872_v11, 4  ;;  %906 = vst [vmem:[#allocation3 + $0xf0] sm:$0xf] %v890_v16  ;;  %v529_v19 = vpop.permute.xlu0 %528 }
  0xaa   : > { %v540_v21 = vrot.slane %v529_v19, 4  ;;  %1101 = vperm.xlu1 %2224, %v1075_v47  }
  0xab   : > { %v891_v15 = vsel %vm885_vm0, %v872_v11, %v882_v13  ;;  %v2228_v17 = vld [vmem:[#allocation3 + $0xb8] sm:$0xff]   ;;  %1116 = vperm.xlu0 %2223, %v1078_v50  }
  0xac   : > { %907 = vst [vmem:[#allocation3 + $0xf4] sm:$0xf] %v891_v15  ;;  %v531_v18 = vpop.permute.xlu1 %530  ;;  %2103 = vmatpush3.bf16.msra.mxu1 %v2228_v17  ;;  %v549_v23 = vsel %vm544_vm2, %v529_v19, %v540_v21 }
  0xad   : > { %v541_v20 = vrot.slane %v531_v18, 4  ;;  %565 = vst [vmem:[#allocation3 + $0x30] sm:$0xf] %v549_v23  ;;  %v740_v26 = vpop.permute.xlu0 %739 }
  0xae   : > { %v751_v30 = vrot.slane %v740_v26, 4  ;;  %1111 = vperm.xlu1 %2224, %v1077_v56  }
  0xaf   : > { %v550_v22 = vsel %vm544_vm2, %v531_v18, %v541_v20  ;;  %v2229_v24 = vld [vmem:[#allocation3 + $0x70] sm:$0xff]  }
  0xb0   : > { %566 = vst [vmem:[#allocation3 + $0x34] sm:$0xf] %v550_v22  ;;  %v742_v25 = vpop.permute.xlu1 %741  ;;  %2064 = vmatprep.subr.bf16.mxu0 %v2229_v24  ;;  %v760_v34 = vsel %vm755_vm3, %v740_v26, %v751_v30 }
  0xb1   : > { %v752_v29 = vrot.slane %v742_v25, 4  ;;  %776 = vst [vmem:[#allocation3 + $0xb0] sm:$0xf] %v760_v34  ;;  %v655_v37 = vpop.permute.xlu0 %654 }
  0xb2   : > { %v668_v40 = vrot.slane %v655_v37, 4 }
  0xb3   : > { %v761_v33 = vsel %vm755_vm3, %v742_v25, %v752_v29  ;;  %v2230_v35 = vld [vmem:[#allocation3 + $0xf0] sm:$0xff]  }
  0xb4   : > { %777 = vst [vmem:[#allocation3 + $0xb4] sm:$0xf] %v761_v33  ;;  %v657_v36 = vpop.permute.xlu1 %656  ;;  %2104 = vmatprep.subr.bf16.mxu1 %v2230_v35  ;;  %v677_v43 = vsel %vm674_vm1, %v655_v37, %v668_v40 }
  0xb5   : > { %v669_v39 = vrot.slane %v657_v36, 4  ;;  %693 = vst [vmem:[#allocation3 + $0x68] sm:$0xf] %v677_v43  ;;  %v866_v46 = vpop.permute.xlu0 %865 }
  0xb6   : > { %v879_v49 = vrot.slane %v866_v46, 4 }
  0xb7   : > { %v678_v42 = vsel %vm674_vm1, %v657_v36, %v669_v39  ;;  %v2231_v44 = vld [vmem:[#allocation3 + $0x30] sm:$0xff]  }
  0xb8   : > { %694 = vst [vmem:[#allocation3 + $0x6c] sm:$0xf] %v678_v42  ;;  %v868_v45 = vpop.permute.xlu1 %867  ;;  %2065 = vmatpush3.bf16.msra.mxu0 %v2231_v44  ;;  %v888_v52 = vsel %vm885_vm0, %v866_v46, %v879_v49 }
  0xb9   : > { %v880_v48 = vrot.slane %v868_v45, 4  ;;  %904 = vst [vmem:[#allocation3 + $0xe8] sm:$0xf] %v888_v52  ;;  %v525_v55 = vpop.permute.xlu0 %524 }
  0xba   : > { %v538_v58 = vrot.slane %v525_v55, 4 }
  0xbb   : > { %v889_v51 = vsel %vm885_vm0, %v868_v45, %v880_v48  ;;  %v2232_v53 = vld [vmem:[#allocation3 + $0xb0] sm:$0xff]  }
  0xbc   : > { %905 = vst [vmem:[#allocation3 + $0xec] sm:$0xf] %v889_v51  ;;  %v527_v54 = vpop.permute.xlu1 %526  ;;  %2105 = vmatpush3.bf16.msra.mxu1 %v2232_v53  ;;  %v547_v60 = vsel %vm544_vm2, %v525_v55, %v538_v58 }
  0xbd   : > { %v539_v57 = vrot.slane %v527_v54, 4  ;;  %563 = vst [vmem:[#allocation3 + $0x28] sm:$0xf] %v547_v60  ;;  %v736_v63 = vpop.permute.xlu0 %735 }
  0xbe   : > { %v749_v1 = vrot.slane %v736_v63, 4 }
  0xbf   : > { %v548_v59 = vsel %vm544_vm2, %v527_v54, %v539_v57  ;;  %v2233_v61 = vld [vmem:[#allocation3 + $0x68] sm:$0xff]  }
  0xc0   : > { %564 = vst [vmem:[#allocation3 + $0x2c] sm:$0xf] %v548_v59  ;;  %v738_v62 = vpop.permute.xlu1 %737  ;;  %2066 = vmatprep.subr.bf16.mxu0 %v2233_v61  ;;  %v758_v3 = vsel %vm755_vm3, %v736_v63, %v749_v1  ;;  %v2245_v59 = vld [vmem:[#allocation3 + $0x98] sm:$0xff]  }
  0xc1   : > { %v750_v0 = vrot.slane %v738_v62, 4  ;;  %774 = vst [vmem:[#allocation3 + $0xa8] sm:$0xf] %v758_v3  ;;  %v651_v6 = vpop.permute.xlu0 %650 }
  0xc2   : > { %v666_v8 = vrot.slane %v651_v6, 4 }
  0xc3   : > { %v759_v2 = vsel %vm755_vm3, %v738_v62, %v750_v0  ;;  %v2234_v4 = vld [vmem:[#allocation3 + $0xe8] sm:$0xff]  }
  0xc4   : > { %775 = vst [vmem:[#allocation3 + $0xac] sm:$0xf] %v759_v2  ;;  %v653_v5 = vpop.permute.xlu1 %652  ;;  %2106 = vmatprep.subr.bf16.mxu1 %v2234_v4  ;;  %v675_v10 = vsel %vm674_vm1, %v651_v6, %v666_v8 }
  0xc5   : > { %v667_v7 = vrot.slane %v653_v5, 4  ;;  %691 = vst [vmem:[#allocation3 + $0x60] sm:$0xf] %v675_v10  ;;  %v862_v13 = vpop.permute.xlu0 %861 }
  0xc6   : > { %v877_v15 = vrot.slane %v862_v13, 4 }
  0xc7   : > { %v676_v9 = vsel %vm674_vm1, %v653_v5, %v667_v7  ;;  %v2235_v11 = vld [vmem:[#allocation3 + $0x28] sm:$0xff]  }
  0xc8   : > { %692 = vst [vmem:[#allocation3 + $0x64] sm:$0xf] %v676_v9  ;;  %v864_v12 = vpop.permute.xlu1 %863  ;;  %2067 = vmatpush3.bf16.msra.mxu0 %v2235_v11  ;;  %v886_v17 = vsel %vm885_vm0, %v862_v13, %v877_v15 }
  0xc9   : > { %v878_v14 = vrot.slane %v864_v12, 4  ;;  %902 = vst [vmem:[#allocation3 + $0xe0] sm:$0xf] %v886_v17  ;;  %v521_v20 = vpop.permute.xlu0 %520  ;;  %v2249_v17 = vld [vmem:[#allocation3 + $0x90] sm:$0xff]  }
  0xca   : > { %v536_v22 = vrot.slane %v521_v20, 4 }
  0xcb   : > { %v887_v16 = vsel %vm885_vm0, %v864_v12, %v878_v14  ;;  %v2236_v18 = vld [vmem:[#allocation3 + $0xa8] sm:$0xff]  }
  0xcc   : > { %903 = vst [vmem:[#allocation3 + $0xe4] sm:$0xf] %v887_v16  ;;  %v523_v19 = vpop.permute.xlu1 %522  ;;  %2107 = vmatpush3.bf16.msra.mxu1 %v2236_v18  ;;  %v545_v24 = vsel %vm544_vm2, %v521_v20, %v536_v22 }
  0xcd   : > { %v537_v21 = vrot.slane %v523_v19, 4  ;;  %561 = vst [vmem:[#allocation3 + $0x20] sm:$0xf] %v545_v24  ;;  %v732_v27 = vpop.permute.xlu0 %731 }
  0xce   : > { %v747_v29 = vrot.slane %v732_v27, 4 }
  0xcf   : > { %v546_v23 = vsel %vm544_vm2, %v523_v19, %v537_v21  ;;  %v2237_v25 = vld [vmem:[#allocation3 + $0x60] sm:$0xff]  }
  0xd0   : > { %562 = vst [vmem:[#allocation3 + $0x24] sm:$0xf] %v546_v23  ;;  %v734_v26 = vpop.permute.xlu1 %733  ;;  %2068 = vmatprep.subr.bf16.mxu0 %v2237_v25  ;;  %v756_v32 = vsel %vm755_vm3, %v732_v27, %v747_v29 }
  0xd1   : > { %v748_v28 = vrot.slane %v734_v26, 4  ;;  %772 = vst [vmem:[#allocation3 + $0xa0] sm:$0xf] %v756_v32  ;;  %v598_v35 = vpop.permute.xlu0 %597 }
  0xd2   : > { %v607_v37 = vrot.slane %v598_v35, 4 }
  0xd3   : > { %v757_v30 = vsel %vm755_vm3, %v734_v26, %v748_v28  ;;  %v2238_v33 = vld [vmem:[#allocation3 + $0xe0] sm:$0xff]  }
  0xd4   : > { %773 = vst [vmem:[#allocation3 + $0xa4] sm:$0xf] %v757_v30  ;;  %v600_v34 = vpop.permute.xlu1 %599  ;;  %2108 = vmatprep.subr.bf16.mxu1 %v2238_v33  ;;  %v616_v39 = vsel %vm609_vm4, %v598_v35, %v607_v37 }
  0xd5   : > { %v608_v36 = vrot.slane %v600_v34, 4  ;;  %632 = vst [vmem:[#allocation3 + $0x58] sm:$0xf] %v616_v39  ;;  %v809_v42 = vpop.permute.xlu0 %808 }
  0xd6   : > { %v818_v44 = vrot.slane %v809_v42, 4 }
  0xd7   : > { %v617_v38 = vsel %vm609_vm4, %v600_v34, %v608_v36  ;;  %v2239_v40 = vld [vmem:[#allocation3 + $0x20] sm:$0xff]  }
  0xd8   : > { %633 = vst [vmem:[#allocation3 + $0x5c] sm:$0xf] %v617_v38  ;;  %v811_v41 = vpop.permute.xlu1 %810  ;;  %2069 = vmatpush3.bf16.msra.mxu0 %v2239_v40  ;;  %v827_v46 = vsel %vm820_vm5, %v809_v42, %v818_v44  ;;  %v2253_v40 = vld [vmem:[#allocation3 + $0x88] sm:$0xff]  }
  0xd9   : > { %v819_v43 = vrot.slane %v811_v41, 4  ;;  %843 = vst [vmem:[#allocation3 + $0xd8] sm:$0xf] %v827_v46  ;;  %v468_v49 = vpop.permute.xlu0 %467 }
  0xda   : > { %v477_v51 = vrot.slane %v468_v49, 4 }
  0xdb   : > { %v828_v45 = vsel %vm820_vm5, %v811_v41, %v819_v43  ;;  %v2240_v47 = vld [vmem:[#allocation3 + $0xa0] sm:$0xff]  }
  0xdc   : > { %844 = vst [vmem:[#allocation3 + $0xdc] sm:$0xf] %v828_v45  ;;  %v470_v48 = vpop.permute.xlu1 %469  ;;  %2109 = vmatpush3.bf16.msra.mxu1 %v2240_v47  ;;  %v486_v53 = vsel %vm479_vm6, %v468_v49, %v477_v51 }
  0xdd   : > { %v478_v50 = vrot.slane %v470_v48, 4  ;;  %502 = vst [vmem:[#allocation3 + $0x18] sm:$0xf] %v486_v53  ;;  %v594_v56 = vpop.permute.xlu0 %593 }
  0xde   : > { %v605_v58 = vrot.slane %v594_v56, 4 }
  0xdf   : > { %v487_v52 = vsel %vm479_vm6, %v470_v48, %v478_v50  ;;  %v2241_v54 = vld [vmem:[#allocation3 + $0x58] sm:$0xff]  }
  0xe0   : > { %503 = vst [vmem:[#allocation3 + $0x1c] sm:$0xf] %v487_v52  ;;  %v596_v55 = vpop.permute.xlu1 %595  ;;  %2070 = vmatprep.subr.bf16.mxu0 %v2241_v54  ;;  %v614_v61 = vsel %vm609_vm4, %v594_v56, %v605_v58 }
  0xe1   : > { %v606_v57 = vrot.slane %v596_v55, 4  ;;  %630 = vst [vmem:[#allocation3 + $0x50] sm:$0xf] %v614_v61  ;;  %v805_v0 = vpop.permute.xlu0 %804 }
  0xe2   : > { %v816_v2 = vrot.slane %v805_v0, 4 }
  0xe3   : > { %v615_v60 = vsel %vm609_vm4, %v596_v55, %v606_v57  ;;  %v2242_v62 = vld [vmem:[#allocation3 + $0xd8] sm:$0xff]  }
  0xe4   : > { %631 = vst [vmem:[#allocation3 + $0x54] sm:$0xf] %v615_v60  ;;  %v807_v63 = vpop.permute.xlu1 %806  ;;  %2110 = vmatprep.subr.bf16.mxu1 %v2242_v62  ;;  %v825_v4 = vsel %vm820_vm5, %v805_v0, %v816_v2  ;;  %v2255_v62 = vld [vmem:[#allocation3 + $0x80] sm:$0xff]  }
  0xe5   : > { %v817_v1 = vrot.slane %v807_v63, 4  ;;  %2111 = vmatpush3.bf16.msra.mxu1 %v2245_v59  ;;  %841 = vst [vmem:[#allocation3 + $0xd0] sm:$0xf] %v825_v4  ;;  %v464_v7 = vpop.permute.xlu0 %463 }
  0xe6   : > { %v475_v9 = vrot.slane %v464_v7, 4 }
  0xe7   : > { %v826_v3 = vsel %vm820_vm5, %v807_v63, %v817_v1  ;;  %v2243_v5 = vld [vmem:[#allocation3 + $0x18] sm:$0xff]  }
  0xe8   : > { %842 = vst [vmem:[#allocation3 + $0xd4] sm:$0xf] %v826_v3  ;;  %v466_v6 = vpop.permute.xlu1 %465  ;;  %2071 = vmatpush3.bf16.msra.mxu0 %v2243_v5  ;;  %v484_v11 = vsel %vm479_vm6, %v464_v7, %v475_v9  ;;  %v2264_v7 = vld [vmem:[%s2761_s1 + $0x34] ss:$20 sps:$4 sm:$0xff]  }
  0xe9   : > { %v476_v8 = vrot.slane %v466_v6, 4  ;;  %500 = vst [vmem:[#allocation3 + $0x10] sm:$0xf] %v484_v11  ;;  %v590_v14 = vpop.permute.xlu0 %589  ;;  %v2260_v11 = vld [vmem:[%s2761_s1] ss:$20 sps:$4 sm:$0xff]  }
  0xea   : > { %v603_v16 = vrot.slane %v590_v14, 4 }
  0xeb   : > { %v485_v10 = vsel %vm479_vm6, %v466_v6, %v476_v8  ;;  %v2244_v12 = vld [vmem:[#allocation3 + $0x50] sm:$0xff]   ;;  %v2256_v6 = vld [vmem:[%s2761_s1 + $0x8] ss:$20 sps:$4 sm:$0xff]  }
  0xec   : > { %501 = vst [vmem:[#allocation3 + $0x14] sm:$0xf] %v485_v10  ;;  %v592_v13 = vpop.permute.xlu1 %591  ;;  %2072 = vmatprep.subr.bf16.mxu0 %v2244_v12  ;;  %v612_v19 = vsel %vm609_vm4, %v590_v14, %v603_v16  ;;  %v2268_v16 = vld [vmem:[%s2761_s1 + $0x2c] ss:$20 sps:$4 sm:$0xff]  }
  0xed   : > { %v604_v15 = vrot.slane %v592_v13, 4  ;;  %628 = vst [vmem:[#allocation3 + $0x48] sm:$0xf] %v612_v19  ;;  %v801_v22 = vpop.permute.xlu0 %800 }
  0xee   : > { %v814_v24 = vrot.slane %v801_v22, 4 }
  0xef   : > { %v613_v18 = vsel %vm609_vm4, %v592_v13, %v604_v15  ;;  %v2246_v20 = vld [vmem:[#allocation3 + $0xd0] sm:$0xff]  }
  0xf0   : > { %629 = vst [vmem:[#allocation3 + $0x4c] sm:$0xf] %v613_v18  ;;  %v803_v21 = vpop.permute.xlu1 %802  ;;  %2112 = vmatprep.subr.bf16.mxu1 %v2246_v20  ;;  %v823_v26 = vsel %vm820_vm5, %v801_v22, %v814_v24  ;;  %v2266_v22 = vld [vmem:[%s2761_s1 + $0x30] ss:$20 sps:$4 sm:$0xff]  }
  0xf1   : > { %v815_v23 = vrot.slane %v803_v21, 4  ;;  %2113 = vmatpush3.bf16.msra.mxu1 %v2249_v17  ;;  %839 = vst [vmem:[#allocation3 + $0xc8] sm:$0xf] %v823_v26  ;;  %v460_v29 = vpop.permute.xlu0 %459 }
  0xf2   : > { %v473_v32 = vrot.slane %v460_v29, 4 }
  0xf3   : > { %v824_v25 = vsel %vm820_vm5, %v803_v21, %v815_v23  ;;  %v2247_v27 = vld [vmem:[#allocation3 + $0x10] sm:$0xff]  }
  0xf4   : > { %840 = vst [vmem:[#allocation3 + $0xcc] sm:$0xf] %v824_v25  ;;  %v462_v28 = vpop.permute.xlu1 %461  ;;  %2073 = vmatpush3.bf16.msra.mxu0 %v2247_v27  ;;  %v482_v34 = vsel %vm479_vm6, %v460_v29, %v473_v32  ;;  %v2271_v25 = vld [vmem:[%s2761_s1 + $0x5c] ss:$20 sps:$4 sm:$0xff]  }
  0xf5   : > { %v474_v30 = vrot.slane %v462_v28, 4  ;;  %498 = vst [vmem:[#allocation3 + $0x8] sm:$0xf] %v482_v34  ;;  %v586_v37 = vpop.permute.xlu0 %585  ;;  %v2270_v29 = vld [vmem:[%s2761_s1 + $0x28] ss:$20 sps:$4 sm:$0xff]  }
  0xf6   : > { %v601_v39 = vrot.slane %v586_v37, 4  ;;  %v2278_v34 = vld [vmem:[%s2761_s1 + $0x84] ss:$20 sps:$4 sm:$0xff]  }
  0xf7   : > { %v483_v33 = vsel %vm479_vm6, %v462_v28, %v474_v30  ;;  %v2248_v35 = vld [vmem:[#allocation3 + $0x48] sm:$0xff]  }
  0xf8   : > { %499 = vst [vmem:[#allocation3 + $0xc] sm:$0xf] %v483_v33  ;;  %v588_v36 = vpop.permute.xlu1 %587  ;;  %2074 = vmatprep.subr.bf16.mxu0 %v2248_v35  ;;  %v610_v42 = vsel %vm609_vm4, %v586_v37, %v601_v39  ;;  %v2275_v30 = vld [vmem:[%s2761_s1 + $0x54] ss:$20 sps:$4 sm:$0xff]   ;;  %v2273_v33 = vld [vmem:[%s2761_s1 + $0x58] ss:$20 sps:$4 sm:$0xff]  }
  0xf9   : > { %v602_v38 = vrot.slane %v588_v36, 4  ;;  %626 = vst [vmem:[#allocation3 + $0x40] sm:$0xf] %v610_v42  ;;  %v797_v45 = vpop.permute.xlu0 %796  ;;  %v2282_v37 = vld [vmem:[%s2761_s1 + $0x7c] ss:$20 sps:$4 sm:$0xff]  }
  0xfa   : > { %v812_v47 = vrot.slane %v797_v45, 4  ;;  %v2285_v39 = vld [vmem:[%s2761_s1 + $0x60] ss:$20 sps:$4 sm:$0xff]   ;;  %v2286_v42 = vld [vmem:[%s2761_s1 + $0x88] ss:$20 sps:$4 sm:$0xff]  }
  0xfb   : > { %v611_v41 = vsel %vm609_vm4, %v588_v36, %v602_v38  ;;  %v2250_v43 = vld [vmem:[#allocation3 + $0xc8] sm:$0xff]   ;;  %v2277_v36 = vld [vmem:[%s2761_s1 + $0x50] ss:$20 sps:$4 sm:$0xff]   ;;  %v2280_v38 = vld [vmem:[%s2761_s1 + $0x80] ss:$20 sps:$4 sm:$0xff]  }
  0xfc   : > { %627 = vst [vmem:[#allocation3 + $0x44] sm:$0xf] %v611_v41  ;;  %v799_v44 = vpop.permute.xlu1 %798  ;;  %2114 = vmatprep.subr.bf16.mxu1 %v2250_v43  ;;  %v821_v49 = vsel %vm820_vm5, %v797_v45, %v812_v47  ;;  %v2287_v41 = vld [vmem:[%s2761_s1 + $0x10] ss:$20 sps:$4 sm:$0xff]   ;;  %v2288_v43 = vld [vmem:[%s2761_s1 + $0x38] ss:$20 sps:$4 sm:$0xff]  }
  0xfd   : > { %v813_v46 = vrot.slane %v799_v44, 4  ;;  %2115 = vmatpush3.bf16.msra.mxu1 %v2253_v40  ;;  %837 = vst [vmem:[#allocation3 + $0xc0] sm:$0xf] %v821_v49  ;;  %v456_v52 = vpop.permute.xlu0 %455  ;;  %v2284_v40 = vld [vmem:[%s2761_s1 + $0x78] ss:$20 sps:$4 sm:$0xff]  }
  0xfe   : > { %v471_v54 = vrot.slane %v456_v52, 4 }
  0xff   : > { %v822_v48 = vsel %vm820_vm5, %v799_v44, %v813_v46  ;;  %v2251_v50 = vld [vmem:[#allocation3 + $0x8] sm:$0xff]  }
 0x100   : > { %838 = vst [vmem:[#allocation3 + $0xc4] sm:$0xf] %v822_v48  ;;  %v458_v51 = vpop.permute.xlu1 %457  ;;  %2075 = vmatpush3.bf16.msra.mxu0 %v2251_v50  ;;  %v480_v56 = vsel %vm479_vm6, %v456_v52, %v471_v54 }
 0x101   : > { %v472_v53 = vrot.slane %v458_v51, 4  ;;  %496 = vst [vmem:[#allocation3] sm:$0xf] %v480_v56  ;;  %v939_v59 = vpop.permute.xlu0 %938 }
 0x102   : > { %v948_v61 = vrot.slane %v939_v59, 4 }
 0x103   : > { %v481_v55 = vsel %vm479_vm6, %v458_v51, %v472_v53  ;;  %v2252_v57 = vld [vmem:[#allocation3 + $0x40] sm:$0xff]  }
 0x104   : > { %497 = vst [vmem:[#allocation3 + $0x4] sm:$0xf] %v481_v55  ;;  %v941_v58 = vpop.permute.xlu1 %940  ;;  %2076 = vmatprep.subr.bf16.mxu0 %v2252_v57  ;;  %v957_v0 = vsel %vm950_vm7, %v939_v59, %v948_v61 }
 0x105   : > { %v949_v60 = vrot.slane %v941_v58, 4  ;;  %973 = vst [vmem:[#allocation3 + $0x118] sm:$0xf] %v957_v0  ;;  %v935_v3 = vpop.permute.xlu0 %934 }
 0x106   : > { %v946_v5 = vrot.slane %v935_v3, 4 }
 0x107   : > { %v958_v63 = vsel %vm950_vm7, %v941_v58, %v949_v60  ;;  %v2254_v1 = vld [vmem:[#allocation3 + $0xc0] sm:$0xff]  }
 0x108   : > { %974 = vst [vmem:[#allocation3 + $0x11c] sm:$0xf] %v958_v63  ;;  %v937_v2 = vpop.permute.xlu1 %936  ;;  %2116 = vmatprep.subr.bf16.mxu1 %v2254_v1  ;;  %v955_v9 = vsel %vm950_vm7, %v935_v3, %v946_v5 }
 0x109   : > { %v947_v4 = vrot.slane %v937_v2, 4  ;;  %2117 = vmatpush3.bf16.msra.mxu1 %v2255_v62  ;;  %971 = vst [vmem:[#allocation3 + $0x110] sm:$0xf] %v955_v9  ;;  %v931_v13 = vpop.permute.xlu0 %930  ;;  %v1651_v9 = vld [vmem:[%s181_s10] sm:$0x1] }
 0x10a   : > { %v944_v15 = vrot.slane %v931_v13, 4  ;;  %vm1652_vm9 = vcmp.gt.f32.partialorder %v1651_v9, 0.0 }
 0x10b   : > { %v956_v8 = vsel %vm950_vm7, %v937_v2, %v947_v4  ;;  %v2259_v10 = vld [vmem:[#allocation3] sm:$0xff]   ;;  %v1654_v4 = vlaneseq }
 0x10c   : > { %972 = vst [vmem:[#allocation3 + $0x114] sm:$0xf] %v956_v8  ;;  %v933_v12 = vpop.permute.xlu1 %932  ;;  %2077 = vmatpush3.bf16.msra.mxu0 %v2259_v10  ;;  %1546 = vmatmul.mubr.bf16.vlgmr.msra.gmra.mxu1 %v2256_v6  ;;  %v953_v18 = vsel %vm950_vm7, %v931_v13, %v944_v15 }
 0x10d   : > { %v945_v14 = vrot.slane %v933_v12, 4  ;;  %1553 = vmatprep.mubr.bf16.mxu1 %v2264_v7  ;;  %969 = vst [vmem:[#allocation3 + $0x108] sm:$0xf] %v953_v18  ;;  %v927_v21 = vpop.permute.xlu0 %926  ;;  %v1655_v13 = vshrl.u32 %v1654_v4, 7 }
 0x10e   : > { %v942_v24 = vrot.slane %v927_v21, 4 }
 0x10f   : > { %v954_v17 = vsel %vm950_vm7, %v933_v12, %v945_v14  ;;  %v2263_v19 = vld [vmem:[#allocation3 + $0x118] sm:$0xff]   ;;  %1481 = vmatmul.mubr.bf16.vlgmr.msra.gmra.mxu0 %v2260_v11 }
 0x110   : > { %970 = vst [vmem:[#allocation3 + $0x10c] sm:$0xf] %v954_v17  ;;  %v929_v20 = vpop.permute.xlu1 %928  ;;  %2150 = vmatprep.subr.bf16.mxu0 %v2263_v19  ;;  %2166 = vmatprep.subr.bf16.mxu1 %v2263_v19  ;;  %v951_v28 = vsel %vm950_vm7, %v927_v21, %v942_v24 }
 0x111   : > { %v943_v23 = vrot.slane %v929_v20, 4  ;;  %2151 = vmatpush3.bf16.msra.mxu0 %v2263_v19  ;;  %2170 = vmatpush3.bf16.msra.mxu1 %v2263_v19  ;;  %967 = vst [vmem:[#allocation3 + $0x100] sm:$0xf] %v951_v28 }
 0x112   : > { %1488 = vmatprep.mubr.bf16.mxu0 %v2268_v16 }
 0x113   : > { %v2267_v26 = vld [vmem:[#allocation3 + $0x110] sm:$0xff]   ;;  %v952_v27 = vsel %vm950_vm7, %v929_v20, %v943_v23  ;;  %v1656_v23 = vsub.s32 0, %v1655_v13 }
 0x114   : > { %968 = vst [vmem:[#allocation3 + $0x104] sm:$0xf] %v952_v27  ;;  %1554 = vmatmul.mubr.bf16.gmra.mxu1 %v2266_v22  ;;  %2152 = vmatprep.subr.bf16.mxu0 %v2267_v26  ;;  %v1653_v27 = vsel %vm1652_vm9, 1, %v2339_v31 }
 0x115   : > { %2167 = vmatprep.subr.bf16.mxu1 %v2267_v26  ;;  %2153 = vmatpush3.bf16.msra.mxu0 %v2267_v26 }
 0x116   : > { %2171 = vmatpush3.bf16.msra.mxu1 %v2267_v26  ;;  %1561 = vmatprep.mubr.bf16.mxu1 %v2271_v25 }
 0x117   : > { %v2274_v32 = vld [vmem:[#allocation3 + $0x108] sm:$0xff]   ;;  %1489 = vmatmul.mubr.bf16.gmra.mxu0 %v2270_v29 }
 0x118   : > { %2154 = vmatprep.subr.bf16.mxu0 %v2274_v32  ;;  %2168 = vmatprep.subr.bf16.mxu1 %v2274_v32 }
 0x119   : > { %1496 = vmatprep.mubr.bf16.mxu0 %v2275_v30  ;;  %2155 = vmatpush3.bf16.msra.mxu0 %v2274_v32 }
 0x11a   : > { %2172 = vmatpush3.bf16.msra.mxu1 %v2274_v32  ;;  %v1082_v63 = vpop.permute.xlu0 %1081 }
 0x11b   : > { %v2281_v35 = vld [vmem:[#allocation3 + $0x100] sm:$0xff]  }
 0x11c   : > { %1562 = vmatmul.mubr.bf16.gmra.mxu1 %v2273_v33  ;;  %2156 = vmatprep.subr.bf16.mxu0 %v2281_v35 }
 0x11d   : > { %1569 = vmatprep.mubr.bf16.mxu1 %v2278_v34  ;;  %2169 = vmatprep.subr.bf16.mxu1 %v2281_v35  ;;  %v1087_v58 = vpop.permute.xlu1 %1086 }
 0x11e   : > { %2157 = vmatpush3.bf16.msra.mxu0 %v2281_v35  ;;  %2173 = vmatpush3.bf16.msra.mxu1 %v2281_v35  ;;  %v1097_v6 = vpop.permute.xlu0 %1096 }
 0x11f   : > { %1497 = vmatmul.mubr.bf16.gmra.mxu0 %v2277_v36 }
 0x120   : > { %1504 = vmatprep.mubr.bf16.mxu0 %v2282_v37 }
 0x121   : > { %v1092_v2 = vpop.permute.xlu1 %1091 }
 0x122   : > { %v1107_v20 = vpop.permute.xlu0 %1106 }
 0x124   : > { %1570 = vmatmul.mubr.bf16.gmra.mxu1 %v2280_v38 }
 0x125   : > { %2162 = vmatprep.mubr.msk.bf16.mxu1 %vm1435_vm8, %v2285_v39  ;;  %v1102_v11 = vpop.permute.xlu1 %1101 }
 0x127   : > { %1505 = vmatmul.mubr.bf16.gmra.mxu0 %v2284_v40 }
 0x128   : > { %2158 = vmatprep.mubr.msk.bf16.mxu0 %vm1435_vm8, %v2287_v41 }
 0x129   : > { %v1112_v32 = vpop.permute.xlu1 %1111 }
 0x12c   : > { %2163 = vmatmul.mubr.msk.bf16.vlgmr.msra.gmra.mxu1 %vm1435_vm8, %v2286_v42 }
 0x12f   : > { %2159 = vmatmul.mubr.msk.bf16.vlgmr.msra.gmra.mxu0 %vm1435_vm8, %v2288_v43  ;;  %v1657_v43 = vrot.slane %v1653_v27, %v1656_v23 }
 0x131   : > { %vm1658_vm10 = vcmp.eq.s32.totalorder %v1657_v43, 1 }
 0x1cc   : > { %v2118_v44 = vpop.f32.mrf.mxu1 }
 0x1ce   : > { %v2119_v45 = vpop.f32.mrf.mxu1 }
 0x1cf   : > { %v2078_v46 = vpop.f32.mrf.mxu0  ;;  %v2120_v34 = vadd.f32 %v2119_v45, %v2118_v44 }
 0x1d0   : > { %v2701_v47 = vpop.f32.mrf.mxu1 }
 0x1d1   : > { %v2079_v48 = vpop.f32.mrf.mxu0 }
 0x1d2   : > { %v2703_v49 = vpop.f32.mrf.mxu1  ;;  %v2080_v14 = vadd.f32 %v2079_v48, %v2078_v46 }
 0x1d3   : > { %v2081_v50 = vpop.f32.mrf.mxu0  ;;  %v2123_v4 = vadd.f32 %v2703_v49, %v2701_v47 }
 0x1d4   : > { %v2124_v51 = vpop.f32.mrf.mxu1  ;;  %v1483_v24 = vadd.f32 %v2080_v14, %v1082_v63 }
 0x1d5   : > { %v2082_v52 = vpop.f32.mrf.mxu0 }
 0x1d6   : > { %v2125_v53 = vpop.f32.mrf.mxu1  ;;  %v2083_v35 = vadd.f32 %v2082_v52, %v2081_v50 }
 0x1d7   : > { %v2084_v54 = vpop.f32.mrf.mxu0  ;;  %v2126_v39 = vadd.f32 %v2125_v53, %v2124_v51 }
 0x1d8   : > { %v2705_v55 = vpop.f32.mrf.mxu1  ;;  %v1486_v44 = vadd.f32 %v2083_v35, %v1087_v58 }
 0x1d9   : > { %v2085_v56 = vpop.f32.mrf.mxu0 }
 0x1da   : > { %v2707_v57 = vpop.f32.mrf.mxu1  ;;  %v2086_v16 = vadd.f32 %v2085_v56, %v2084_v54  ;;  %v1548_v56 = vadd.f32 %v2120_v34, %v1483_v24 }
 0x1db   : > { %v2087_v59 = vpop.f32.mrf.mxu0  ;;  %v2129_v51 = vadd.f32 %v2707_v57, %v2705_v55 }
 0x1dc   : > { %v2130_v60 = vpop.f32.mrf.mxu1  ;;  %v1491_v28 = vadd.f32 %v2086_v16, %v1092_v2 }
 0x1dd   : > { %v2088_v61 = vpop.f32.mrf.mxu0 }
 0x1de   : > { %v2131_v62 = vpop.f32.mrf.mxu1  ;;  %v2089_v29 = vadd.f32 %v2088_v61, %v2087_v59  ;;  %v1117_v59 = vpop.permute.xlu0 %1116  ;;  %v1556_v61 = vadd.f32 %v2126_v39, %v1491_v28 }
 0x1df   : > { %v2090_v0 = vpop.f32.mrf.mxu0  ;;  %v2132_v30 = vadd.f32 %v2131_v62, %v2130_v60 }
 0x1e0   : > { %v2133_v1 = vpop.f32.mrf.mxu1  ;;  %v1494_v31 = vadd.f32 %v2089_v29, %v1097_v6 }
 0x1e1   : > { %v2091_v3 = vpop.f32.mrf.mxu0 }
 0x1e2   : > { %v2134_v5 = vpop.f32.mrf.mxu1  ;;  %v2092_v10 = vadd.f32 %v2091_v3, %v2090_v0  ;;  %v1559_v9 = vadd.f32 %v2129_v51, %v1494_v31 }
 0x1e3   : > { %v2093_v7 = vpop.f32.mrf.mxu0  ;;  %v2135_v63 = vadd.f32 %v2134_v5, %v2133_v1 }
 0x1e4   : > { %v2136_v8 = vpop.f32.mrf.mxu1  ;;  %v1499_v19 = vadd.f32 %v2092_v10, %v1102_v11 }
 0x1e5   : > { %v2094_v12 = vpop.f32.mrf.mxu0 }
 0x1e6   : > { %v2137_v15 = vpop.f32.mrf.mxu1  ;;  %v2095_v21 = vadd.f32 %v2094_v12, %v2093_v7  ;;  %v1564_v42 = vadd.f32 %v2132_v30, %v1499_v19  ;;  %v1551_v12 = vadd.f32 %v2123_v4, %v1486_v44 }
 0x1e7   : > { %v2096_v17 = vpop.f32.mrf.mxu0  ;;  %v2138_v36 = vadd.f32 %v2137_v15, %v2136_v8 }
 0x1e8   : > { %v2139_v18 = vpop.f32.mrf.mxu1  ;;  %v1502_v40 = vadd.f32 %v2095_v21, %v1107_v20 }
 0x1e9   : > { %v2097_v22 = vpop.f32.mrf.mxu0 }
 0x1ea   : > { %v2098_v25 = vadd.f32 %v2097_v22, %v2096_v17  ;;  %v2140_v26 = vpop.f32.mrf.mxu1  ;;  %v1567_v3 = vadd.f32 %v2135_v63, %v1502_v40 }
 0x1eb   : > { %v2099_v33 = vpop.f32.mrf.mxu0  ;;  %v2141_v45 = vadd.f32 %v2140_v26, %v2139_v18 }
 0x1ec   : > { %v1507_v37 = vadd.f32 %v2098_v25, %v1112_v32  ;;  %v2164_v38 = vpop.f32.mrf.mxu1 }
 0x1ed   : > { %v2100_v41 = vpop.f32.mrf.mxu0 }
 0x1ee   : > { %v1572_v46 = vadd.f32 %v2138_v36, %v1507_v37  ;;  %v2101_v48 = vadd.f32 %v2100_v41, %v2099_v33  ;;  %v1628_v54 = vpop.f32.mrf.mxu1 }
 0x1ef   : > { %v1629_v60 = vadd.f32 %v1628_v54, %v1564_v42  ;;  %v2160_v62 = vpop.f32.mrf.mxu0 }
 0x1f0   : > { %v1637_v50 = vadd.f32 %v2164_v38, %v1572_v46  ;;  %v1510_v52 = vadd.f32 %v2101_v48, %v1117_v59  ;;  %v2165_v0 = vpop.f32.mrf.mxu1  ;;  %v1621_v53 = vadd.f32 %v2160_v62, %v1556_v61 }
 0x1f1   : > { %v1612_v2 = vpop.f32.mrf.mxu0  ;;  %v1647_v7 = vmax.f32 %v1629_v60, 0.0 }
 0x1f2   : > { %v1575_v6 = vadd.f32 %v2141_v45, %v1510_v52  ;;  %v1613_v1 = vadd.f32 %v1612_v2, %v1548_v56  ;;  %v1631_v5 = vpop.f32.mrf.mxu1  ;;  %v1649_v10 = vmax.f32 %v1637_v50, 0.0  ;;  %v1645_v13 = vmax.f32 %v1621_v53, 0.0 }
 0x1f3   : > { %v1632_v8 = vadd.f32 %v1631_v5, %v1567_v3  ;;  %v2161_v58 = vpop.f32.mrf.mxu0  ;;  %v1663_v49 = vsel %vm1658_vm10, %v1647_v7, 0.0 }
 0x1f4   : > { %v1640_v11 = vadd.f32 %v2165_v0, %v1575_v6  ;;  %v1624_v55 = vadd.f32 %v2161_v58, %v1559_v9  ;;  %v1643_v16 = vmax.f32 %v1613_v1, 0.0  ;;  %v1665_v19 = vsel %vm1658_vm10, %v1649_v10, 0.0 }
 0x1f5   : > { %v1648_v14 = vmax.f32 %v1632_v8, 0.0  ;;  %v1615_v57 = vpop.f32.mrf.mxu0  ;;  %v1661_v23 = vsel %vm1658_vm10, %v1645_v13, 0.0 }
 0x1f6   : > { %v1650_v15 = vmax.f32 %v1640_v11, 0.0  ;;  %v1616_v47 = vadd.f32 %v1615_v57, %v1551_v12  ;;  %v1646_v18 = vmax.f32 %v1624_v55, 0.0  ;;  %v1659_v26 = vsel %vm1658_vm10, %v1643_v16, 0.0 }
 0x1f7   : > { %v1664_v17 = vsel %vm1658_vm10, %v1648_v14, 0.0 }
 0x1f8   : > { %v1666_v20 = vsel %vm1658_vm10, %v1650_v15, 0.0  ;;  %v2052_v21 = vpack.c.bf16 %v1664_v17, %v1663_v49  ;;  %v1644_v22 = vmax.f32 %v1616_v47, 0.0  ;;  %v1662_v25 = vsel %vm1658_vm10, %v1646_v18, 0.0 }
 0x1f9   : > { %v2057_v24 = vpack.c.bf16 %v1666_v20, %v1665_v19  ;;  %v2047_v27 = vpack.c.bf16 %v1662_v25, %v1661_v23  ;;  %1713 = sbr.rel (!%p2393_p3) target bundleno = 520 (0x208), region = 118 }
 0x1fa   : > { %2060 = vst [vmem:[%s2437_s14 + $0x10] sm:$0xff] %v2052_v21   ;;  %v1660_v28 = vsel %vm1658_vm10, %v1644_v22, 0.0 }
 0x1fb   : > { %2061 = vst [vmem:[%s2437_s14 + $0x18] sm:$0xff] %v2057_v24   ;;  %v2042_v29 = vpack.c.bf16 %v1660_v28, %v1659_v26  ;;  %2059 = vst [vmem:[%s2437_s14 + $0x8] sm:$0xff] %v2047_v27  }
 0x1fd   : > { %2043 = vst [vmem:[%s2437_s14] sm:$0xff] %v2042_v29  }
 0x201   : > { %v1742_v35 = vld [vmem:[%s2437_s14 + $0x10] sm:$0xf]  ;;  %v1744_v36 = vld [vmem:[%s2437_s14 + $0x14] sm:$0xf] }
 0x202   : > { %v1738_v33 = vld [vmem:[%s2437_s14 + $0x8] sm:$0xf]  ;;  %v1740_v34 = vld [vmem:[%s2437_s14 + $0xc] sm:$0xf]  ;;  %2021 = vst [vmem:[%s1835_s24 + $0x44] sm:$0xf] %v1742_v35 }
 0x203   : > { %2019 = vst [vmem:[%s1835_s24 + $0x24] sm:$0xf] %v1738_v33  ;;  %2020 = vst [vmem:[%s1835_s24 + $0x34] sm:$0xf] %v1740_v34  ;;  %v1746_v37 = vld [vmem:[%s2437_s14 + $0x18] sm:$0xf] }
 0x204   : > { %v1734_v30 = vld [vmem:[%s2437_s14] sm:$0xf]  ;;  %v1736_v32 = vld [vmem:[%s2437_s14 + $0x4] sm:$0xf]  ;;  %v1748_v38 = vld [vmem:[%s2437_s14 + $0x1c] sm:$0xf] }
 0x205   : > { %2017 = vst [vmem:[%s1835_s24 + $0x4] sm:$0xf] %v1734_v30  ;;  %2018 = vst [vmem:[%s1835_s24 + $0x14] sm:$0xf] %v1736_v32 }
 0x206   : > { %2022 = vst [vmem:[%s1835_s24 + $0x54] sm:$0xf] %v1744_v36  ;;  %2023 = vst [vmem:[%s1835_s24 + $0x64] sm:$0xf] %v1746_v37 }
 0x207   : > { %2024 = vst [vmem:[%s1835_s24 + $0x74] sm:$0xf] %v1748_v38 }
 0x208 PF: > { %s14_s19 = sadd.s32 1, %s2329_s19   ;;  %s2766_s15 = smov %s2317_s16 }
 0x209   : > { %p11_p9 = scmp.ge.s32.totalorder %s14_s19, 4   ;;  %s2767_s16 = smov %s2402_s27 }
 0x20a   : > { %s2768_s17 = smov %s2325_s18  ;;  %s2769_s18 = smov %s2391_s22 }
 0x20b   :  { %13 = sbr.rel (!%p11_p9) target bundleno = 3 (0x3), region = 220 }
 0x210   :  { %1799 = vsyncmov [#allocation4] }
 0x213   :  { %s1800_s23 = vpop.sfrf %1799 }
 0x214   :  { %p2027_p10 = scmp.ne.s32.totalorder %s1800_s23, 0 }
 0x216   :  { %1804 = shalt.err (%p2027_p10)  }
 0x217   :  { %1806 = vsyncmov [#allocation4 + $0x1] }
 0x21a   :  { %s1807_s14 = vpop.sfrf %1806 }
 0x21b   :  { %p2028_p11 = scmp.ne.s32.totalorder %s1807_s14, 0 }
 0x21d   :  { %1811 = shalt.err (%p2028_p11)  }

// kernel: resnet_cifar_forward.38
= control target key start
LH: loop header
LB: loop body
LE: loop exit
PB: predicated region body
PF: predicated region fallthrough
CT: control target
= control target key end

     0   :  { %s2570_s18 = smov 0   ;;  %s2572_s19 = smov 0   ;;  %s3022_s0 = inlined_call_operand.vmem [shape: bf16[64,512], index: 0, kind: input, shape index: {}]   ;;  %s3023_s1 = inlined_call_operand.vmem [shape: bf16[64,576], index: 1, kind: input, shape index: {}]   ;;  %s3024_s2 = inlined_call_operand.vmem [shape: f32[64,1], index: 2, kind: input, shape index: {}]   ;;  %s3025_s3 = inlined_call_operand.vmem [shape: f32[1,256], index: 3, kind: input, shape index: {}]   ;;  %s3026_s4 = inlined_call_operand.vmem [shape: bf16[64,512], index: 4, kind: input, shape index: {}]   ;;  %s3027_s5 = inlined_call_operand.vmem [shape: bf16[64,512], index: 5, kind: output, shape index: {}]  }
   0x1   :  { %s2574_s20 = smov 0   ;;  %s2576_s21 = smov 0  }
   0x2   :  { %s2578_s22 = smov 0  }
   0x3 LB: > { %s27_s23 = sadd.s32 1, %s2525_s21  ;;  %s2066_s24 = sadd.s32 4294967295, %s2529_s22   ;;  %s2529_s22 = sphi %s2578_s22, %s15_s22   ;;  %s2525_s21 = sphi %s2576_s21, %s3032_s21   ;;  %s2521_s20 = sphi %s2574_s20, %s3031_s20   ;;  %s2517_s19 = sphi %s2572_s19, %s3030_s19   ;;  %s2513_s18 = sphi %s2570_s18, %s3029_s18  }
   0x4   : > { %p29_p0 = scmp.ge.s32.totalorder %s27_s23, 2  ;;  %p115_p1 = scmp.ne.s32.totalorder %s2517_s19, %s2513_s18 }
   0x5   : > { %p116_p2 = scmp.eq.s32.totalorder %s2529_s22, 0  ;;  %p149_p4 = scmp.eq.s32.totalorder %s2066_s24, 1 }
   0x6   : > { %s2600_s25 = scalar_select %p29_p0, 0, %s27_s23  }
   0x7   : > { %p117_p3 = por %p116_p2, %p115_p1  ;;  %s108_s27 = sadd.s32 1, %s2517_s19 }
   0x8   : > { %s104_s26 = sadd.s32 1, %s2600_s25  ;;  %p2604_p5 = por %p149_p4, %p115_p1 }
   0x9   : > { %s105_s28 = ssub.s32 %s27_s23, %s104_s26  ;;  %p2069_p7 = scmp.ge.s32.totalorder %s2529_s22, 2 }
   0xa   : > { %p106_p6 = scmp.eq.s32.totalorder %s105_s28, 0 }
   0xb   : > { %177 = sbr.rel (%p2069_p7) target bundleno = 25 (0x19), region = 24 }
   0xc   : > { %s2609_s30 = scalar_select %p106_p6, %s2517_s19, %s108_s27  }
  0x10   : > { %188 = sbr.rel (!%p117_p3) target bundleno = 25 (0x19), region = 32  ;;  %s190_s6 = sand.u32 (%p117_p3), 1, %s2517_s19  }
  0x11   : > { %s2071_s7 = sshll.u32 (%p117_p3), %s2525_s21, 2  ;;  %s2070_s8 = sshll.u32 (%p117_p3), %s190_s6, 5 }
  0x12   : > { %s1967_s11 = scalar_lea.vmem (%p117_p3), %s3026_s4, %s2071_s7  ;;  %s192_s12 = scalar_lea.vmem (%p117_p3), [#allocation5], %s2070_s8 }
  0x13   : > { %v2072_v0 = vld [vmem:[%s1967_s11 + $0x4] sm:$0xf] (%p117_p3)  ;;  %v2073_v1 = vld [vmem:[%s1967_s11 + $0x14] sm:$0xf] (%p117_p3) }
  0x14   : > { %214 = vst [vmem:[%s192_s12] sm:$0xf] (%p117_p3), %v2072_v0  ;;  %216 = vst [vmem:[%s192_s12 + $0x4] sm:$0xf] (%p117_p3), %v2073_v1  ;;  %v2074_v2 = vld [vmem:[%s1967_s11 + $0x24] sm:$0xf] (%p117_p3) }
  0x15   : > { %v2075_v3 = vld [vmem:[%s1967_s11 + $0x34] sm:$0xf]  ;;  %v2076_v4 = vld [vmem:[%s1967_s11 + $0x44] sm:$0xf]  ;;  %218 = vst [vmem:[%s192_s12 + $0x8] sm:$0xf] %v2074_v2 }
  0x16   : > { %220 = vst [vmem:[%s192_s12 + $0xc] sm:$0xf] %v2075_v3  ;;  %222 = vst [vmem:[%s192_s12 + $0x10] sm:$0xf] %v2076_v4  ;;  %v2077_v5 = vld [vmem:[%s1967_s11 + $0x54] sm:$0xf] }
  0x17   : > { %v2078_v6 = vld [vmem:[%s1967_s11 + $0x64] sm:$0xf]  ;;  %v2079_v7 = vld [vmem:[%s1967_s11 + $0x74] sm:$0xf]  ;;  %224 = vst [vmem:[%s192_s12 + $0x14] sm:$0xf] %v2077_v5 }
  0x18   : > { %226 = vst [vmem:[%s192_s12 + $0x18] sm:$0xf] %v2078_v6  ;;  %228 = vst [vmem:[%s192_s12 + $0x1c] sm:$0xf] %v2079_v7 }
  0x19 PF: > { %p2080_p8 = scmp.ge.s32.totalorder %s2529_s22, 1  ;;  %p267_p9 = scmp.lt.s32.totalorder %s2529_s22, 3 }
  0x1b   : > { %p268_p10 = pnand %p2080_p8, %p267_p9 }
  0x1c   : > { %s274_s13 = sand.u32 (!%p268_p10), 1, %s2513_s18   ;;  %p303_p11 = scmp.lt.s32.totalorder (!%p268_p10), %s2521_s20, 1 }
  0x1d   : > { %271 = sbr.rel (%p268_p10) target bundleno = 538 (0x21a), region = 73  ;;  %s2621_s14 = sshll.u32 (!%p268_p10), %s274_s13, 5 }
  0x1e   : > { %s2083_s15 = sshll.u32 (!%p268_p10), %s2521_s20, 7  ;;  %s2653_s18 = scalar_lea.vmem (!%p268_p10), [#allocation5], %s2621_s14 }
  0x1f   : > { %s318_s17 = sshra.s32 (!%p268_p10), %s2083_s15, 7  ;;  %s2656_s8 = scalar_lea.vmem (!%p268_p10), [#allocation6], %s2621_s14 }
  0x20   : > { %s2084_s27 = sshll.u32 (!%p268_p10), %s318_s17, 2 }
  0x21   : > { %s2634_s7 = scalar_lea.vmem (!%p268_p10), %s3022_s0, %s2084_s27 }
  0x22   : > { %s2625_s16 = scalar_select %p303_p11, %s2521_s20, 1  ;;  %v374_v8 = vld [vmem:[%s2634_s7] sm:$0xff]  ;;  %v376_v9 = vld [vmem:[%s2634_s7 + $0x10] sm:$0xff]  ;;  %v2085_v16 = vld [vmem:[%s2634_s7 + $0x8] sm:$0xf] }
  0x23   : > { %v378_v10 = vld [vmem:[%s2634_s7 + $0x20] sm:$0xff]  ;;  %375 = vst [vmem:[#allocation2] sm:$0xff] %v374_v8  ;;  %377 = vst [vmem:[#allocation2 + $0xc] sm:$0xff] %v376_v9  ;;  %v380_v11 = vld [vmem:[%s2634_s7 + $0x30] sm:$0xff] }
  0x24   : > { %s305_s26 = scalar_lea.vmem %s3025_s3, %s2625_s16  ;;  %379 = vst [vmem:[#allocation2 + $0x18] sm:$0xff] %v378_v10  ;;  %v382_v12 = vld [vmem:[%s2634_s7 + $0x40] sm:$0xff]  ;;  %v384_v13 = vld [vmem:[%s2634_s7 + $0x50] sm:$0xff]  ;;  %381 = vst [vmem:[#allocation2 + $0x24] sm:$0xff] %v380_v11 }
  0x25   : > { %383 = vst [vmem:[#allocation2 + $0x30] sm:$0xff] %v382_v12  ;;  %385 = vst [vmem:[#allocation2 + $0x3c] sm:$0xff] %v384_v13  ;;  %v386_v14 = vld [vmem:[%s2634_s7 + $0x60] sm:$0xff]  ;;  %v388_v15 = vld [vmem:[%s2634_s7 + $0x70] sm:$0xff] }
  0x26   : > { %387 = vst [vmem:[#allocation2 + $0x48] sm:$0xff] %v386_v14  ;;  %389 = vst [vmem:[#allocation2 + $0x54] sm:$0xff] %v388_v15  ;;  %v2086_v17 = vld [vmem:[%s2634_s7 + $0x18] sm:$0xf]  ;;  %v2087_v18 = vld [vmem:[%s2634_s7 + $0x28] sm:$0xf] }
  0x27   : > { %401 = vst [vmem:[#allocation2 + $0x8] sm:$0xf] %v2085_v16  ;;  %v2088_v19 = vld [vmem:[%s2634_s7 + $0x38] sm:$0xf]  ;;  %403 = vst [vmem:[#allocation2 + $0x14] sm:$0xf] %v2086_v17 }
  0x28   : > { %405 = vst [vmem:[#allocation2 + $0x20] sm:$0xf] %v2087_v18  ;;  %407 = vst [vmem:[#allocation2 + $0x2c] sm:$0xf] %v2088_v19  ;;  %v2089_v20 = vld [vmem:[%s2634_s7 + $0x48] sm:$0xf] }
  0x29   : > { %v2090_v21 = vld [vmem:[%s2634_s7 + $0x58] sm:$0xf]  ;;  %v2091_v22 = vld [vmem:[%s2634_s7 + $0x68] sm:$0xf]  ;;  %409 = vst [vmem:[#allocation2 + $0x38] sm:$0xf] %v2089_v20 }
  0x2a   : > { %411 = vst [vmem:[#allocation2 + $0x44] sm:$0xf] %v2090_v21  ;;  %413 = vst [vmem:[#allocation2 + $0x50] sm:$0xf] %v2091_v22  ;;  %v2092_v23 = vld [vmem:[%s2634_s7 + $0x78] sm:$0xf] }
  0x2b   : > { %415 = vst [vmem:[#allocation2 + $0x5c] sm:$0xf] %v2092_v23 }
  0x2c   : > { %419 = vsyncadd [#allocation4], 1536 }
  0x2d   : > { %2509 = dma.done.wait [#allocation4], 1536 }
  0x2e   : > { %2510 = vsyncadd [#allocation4], 4294965760  ;;  %v766_v25 = vld [vmem:[#allocation2 + $0x48] sm:$0xff]  ;;  %s2531_s9 = smov 122   ;;  %s2532_s10 = smov 1   ;;  %v767_v27 = vld [vmem:[#allocation2 + $0x54] sm:$0xff] }
  0x2f   : > { %788 = vrot.lane.b32.xlu0 %v766_v25, %s2532_s10  ;;  %s2533_s11 = smov 6   ;;  %s2534_s12 = smov 127   ;;  %v765_v28 = vld [vmem:[#allocation2 + $0x3c] sm:$0xff]  ;;  %v764_v29 = vld [vmem:[#allocation2 + $0x30] sm:$0xff]  ;;  %v763_v32 = vld [vmem:[#allocation2 + $0x24] sm:$0xff]  ;;  %vm1011_vm0 = vcmask 998400  }
  0x30   : > { %v2678_v31 = vld [vmem:[#allocation2 + $0x34] sm:$0xff]  ;;  %v2692_v34 = vld [vmem:[#allocation2 + $0x28] sm:$0xff]  ;;  %v2694_v35 = vld [vmem:[#allocation2 + $0x1c] sm:$0xff]  ;;  %s2535_s13 = smov 5   ;;  %s2536_s14 = smov 123   ;;  %vm800_vm1 = vcmask 7168  }
  0x31   : > { %v2658_v24 = vld [vmem:[#allocation2 + $0x4c] sm:$0xff]  ;;  %v2676_v30 = vld [vmem:[#allocation2 + $0x40] sm:$0xff]  ;;  %v762_v33 = vld [vmem:[#allocation2 + $0x18] sm:$0xff]  ;;  %s2537_s15 = smov 7   ;;  %s2538_s28 = smov 121   ;;  %vm670_vm2 = vcmask 48128  }
  0x32   : > { %999 = vrot.lane.b32.xlu1 %v2658_v24, %s2531_s9  ;;  %v2663_v26 = vld [vmem:[#allocation2 + $0x58] sm:$0xff]  ;;  %v761_v36 = vld [vmem:[#allocation2 + $0xc] sm:$0xff]  ;;  %v760_v37 = vld [vmem:[#allocation2] sm:$0xff]  ;;  %vm881_vm3 = vcmask 1039360   ;;  %vm735_vm4 = vcmask 39936   ;;  %vm946_vm5 = vcmask 1006592  }
  0x33   : > { %790 = vrot.lane.b32.xlu0 %v767_v27, %s2532_s10  ;;  %v2708_v38 = vld [vmem:[#allocation2 + $0x10] sm:$0xff]  ;;  %v2710_v39 = vld [vmem:[#allocation2 + $0x4] sm:$0xff]  ;;  %v831_v40 = vld [vmem:[#allocation2 + $0x4c] sm:$0xf]  ;;  %vm605_vm6 = vcmask 56320   ;;  %vm1076_vm7 = vcmask 990208  }
  0x34   : > { %v832_v41 = vld [vmem:[#allocation2 + $0x58] sm:$0xf]  ;;  %839 = vst [vmem:[#allocation3 + $0x98] sm:$0xf] %v831_v40  ;;  %v829_v42 = vld [vmem:[#allocation2 + $0x34] sm:$0xf] }
  0x35   : > { %840 = vst [vmem:[#allocation3 + $0x9c] sm:$0xf] %v832_v41  ;;  %v830_v43 = vld [vmem:[#allocation2 + $0x40] sm:$0xf]  ;;  %837 = vst [vmem:[#allocation3 + $0x90] sm:$0xf] %v829_v42 }
  0x36   : > { %1001 = vrot.lane.b32.xlu1 %v2663_v26, %s2531_s9  ;;  %838 = vst [vmem:[#allocation3 + $0x94] sm:$0xf] %v830_v43  ;;  %v827_v44 = vld [vmem:[#allocation2 + $0x1c] sm:$0xf]  ;;  %v828_v45 = vld [vmem:[#allocation2 + $0x28] sm:$0xf] }
  0x37   : > { %658 = vrot.lane.b32.xlu0 %v766_v25, %s2533_s11  ;;  %835 = vst [vmem:[#allocation3 + $0x88] sm:$0xf] %v827_v44  ;;  %836 = vst [vmem:[#allocation3 + $0x8c] sm:$0xf] %v828_v45  ;;  %v825_v46 = vld [vmem:[#allocation2 + $0x4] sm:$0xf] }
  0x38   : > { %v826_v47 = vld [vmem:[#allocation2 + $0x10] sm:$0xf]  ;;  %833 = vst [vmem:[#allocation3 + $0x80] sm:$0xf] %v825_v46  ;;  %v2458_v48 = vld [vmem:[%s3023_s1 + $0xc] ss:$20 sps:$4 sm:$0xff]  }
  0x39   : > { %834 = vst [vmem:[#allocation3 + $0x84] sm:$0xf] %v826_v47  ;;  %1671 = vmatprep.mubr.bf16.mxu1 %v2458_v48  ;;  %v2462_v49 = vld [vmem:[%s3023_s1 + $0x4] ss:$20 sps:$4 sm:$0xff]   ;;  %v1199_v46 = vld [vmem:[%s3024_s2 + $0x10] sm:$0xff]  ;;  %vm1561_vm8 = vcmask 523264  }
  0x3a   : > { %660 = vrot.lane.b32.xlu1 %v767_v27, %s2533_s11  ;;  %1606 = vmatprep.mubr.bf16.mxu0 %v2462_v49  ;;  %v1200_v40 = vld [vmem:[%s3024_s2 + $0x18] sm:$0xff]  ;;  %v1202_v49 = vld [vmem:[%s3024_s2 + $0x28] sm:$0xff]  ;;  %s2197_s16 = sshll.u32 (%p2604_p5), %s2521_s20, 2 }
  0x3b   : > { %869 = vrot.lane.b32.xlu0 %v2658_v24, %s2534_s12  ;;  %s1995_s27 = scalar_lea.vmem (%p2604_p5), %s3027_s5, %s2197_s16 }
  0x3e   : > { %871 = vrot.lane.b32.xlu1 %v2663_v26, %s2534_s12 }
  0x3f   : > { %784 = vrot.lane.b32.xlu0 %v764_v29, %s2532_s10 }
  0x42   : > { %786 = vrot.lane.b32.xlu1 %v765_v28, %s2532_s10 }
  0x43   : > { %995 = vrot.lane.b32.xlu0 %v2678_v31, %s2531_s9 }
  0x46   : > { %997 = vrot.lane.b32.xlu1 %v2676_v30, %s2531_s9 }
  0x47   : > { %654 = vrot.lane.b32.xlu0 %v764_v29, %s2533_s11 }
  0x4a   : > { %656 = vrot.lane.b32.xlu1 %v765_v28, %s2533_s11 }
  0x4b   : > { %865 = vrot.lane.b32.xlu0 %v2678_v31, %s2534_s12 }
  0x4e   : > { %867 = vrot.lane.b32.xlu1 %v2676_v30, %s2534_s12 }
  0x4f   : > { %780 = vrot.lane.b32.xlu0 %v762_v33, %s2532_s10 }
  0x52   : > { %782 = vrot.lane.b32.xlu1 %v763_v32, %s2532_s10 }
  0x53   : > { %991 = vrot.lane.b32.xlu0 %v2694_v35, %s2531_s9 }
  0x56   : > { %993 = vrot.lane.b32.xlu1 %v2692_v34, %s2531_s9 }
  0x57   : > { %650 = vrot.lane.b32.xlu0 %v762_v33, %s2533_s11 }
  0x5a   : > { %652 = vrot.lane.b32.xlu1 %v763_v32, %s2533_s11 }
  0x5b   : > { %861 = vrot.lane.b32.xlu0 %v2694_v35, %s2534_s12 }
  0x5e   : > { %863 = vrot.lane.b32.xlu1 %v2692_v34, %s2534_s12 }
  0x5f   : > { %776 = vrot.lane.b32.xlu0 %v760_v37, %s2532_s10 }
  0x62   : > { %778 = vrot.lane.b32.xlu1 %v761_v36, %s2532_s10 }
  0x63   : > { %987 = vrot.lane.b32.xlu0 %v2710_v39, %s2531_s9 }
  0x66   : > { %989 = vrot.lane.b32.xlu1 %v2708_v38, %s2531_s9 }
  0x67   : > { %646 = vrot.lane.b32.xlu0 %v760_v37, %s2533_s11 }
  0x6a   : > { %648 = vrot.lane.b32.xlu1 %v761_v36, %s2533_s11 }
  0x6b   : > { %857 = vrot.lane.b32.xlu0 %v2710_v39, %s2534_s12 }
  0x6e   : > { %859 = vrot.lane.b32.xlu1 %v2708_v38, %s2534_s12 }
  0x6f   : > { %723 = vrot.lane.b32.xlu0 %v766_v25, %s2535_s13 }
  0x72   : > { %725 = vrot.lane.b32.xlu1 %v767_v27, %s2535_s13 }
  0x73   : > { %934 = vrot.lane.b32.xlu0 %v2658_v24, %s2536_s14 }
  0x76   : > { %936 = vrot.lane.b32.xlu1 %v2663_v26, %s2536_s14 }
  0x77   : > { %593 = vrot.lane.b32.xlu0 %v766_v25, %s2537_s15 }
  0x7a   : > { %595 = vrot.lane.b32.xlu1 %v767_v27, %s2537_s15 }
  0x7b   : > { %719 = vrot.lane.b32.xlu0 %v764_v29, %s2535_s13 }
  0x7e   : > { %721 = vrot.lane.b32.xlu1 %v765_v28, %s2535_s13 }
  0x7f   : > { %930 = vrot.lane.b32.xlu0 %v2678_v31, %s2536_s14 }
  0x82   : > { %932 = vrot.lane.b32.xlu1 %v2676_v30, %s2536_s14 }
  0x83   : > { %589 = vrot.lane.b32.xlu0 %v764_v29, %s2537_s15 }
  0x86   : > { %591 = vrot.lane.b32.xlu1 %v765_v28, %s2537_s15 }
  0x87   : > { %715 = vrot.lane.b32.xlu0 %v762_v33, %s2535_s13 }
  0x8a   : > { %717 = vrot.lane.b32.xlu1 %v763_v32, %s2535_s13 }
  0x8b   : > { %926 = vrot.lane.b32.xlu0 %v2694_v35, %s2536_s14 }
  0x8e   : > { %928 = vrot.lane.b32.xlu1 %v2692_v34, %s2536_s14 }
  0x8f   : > { %585 = vrot.lane.b32.xlu0 %v762_v33, %s2537_s15 }
  0x92   : > { %587 = vrot.lane.b32.xlu1 %v763_v32, %s2537_s15 }
  0x93   : > { %711 = vrot.lane.b32.xlu0 %v760_v37, %s2535_s13 }
  0x96   : > { %713 = vrot.lane.b32.xlu1 %v761_v36, %s2535_s13 }
  0x97   : > { %922 = vrot.lane.b32.xlu0 %v2710_v39, %s2536_s14 }
  0x9a   : > { %924 = vrot.lane.b32.xlu1 %v2708_v38, %s2536_s14 }
  0x9b   : > { %581 = vrot.lane.b32.xlu0 %v760_v37, %s2537_s15 }
  0x9e   : > { %583 = vrot.lane.b32.xlu1 %v761_v36, %s2537_s15  ;;  %v1198_v36 = vld [vmem:[%s3024_s2 + $0x8] sm:$0xff] }
  0x9f   : > { %1064 = vrot.lane.b32.xlu0 %v2658_v24, %s2538_s28 }
  0xa1   : > { %v789_v51 = vpop.permute.xlu0 %788 }
  0xa2   : > { %1066 = vrot.lane.b32.xlu1 %v2663_v26, %s2538_s28  ;;  %v798_v53 = vrot.slane %v789_v51, 4 }
  0xa3   : > { %1060 = vrot.lane.b32.xlu0 %v2678_v31, %s2538_s28 }
  0xa4   : > { %v1000_v50 = vpop.permute.xlu1 %999  ;;  %v807_v55 = vsel %vm800_vm1, %v789_v51, %v798_v53 }
  0xa5   : > { %v1009_v52 = vrot.slane %v1000_v50, 4  ;;  %823 = vst [vmem:[#allocation3 + $0x78] sm:$0xf] %v807_v55  ;;  %v791_v57 = vpop.permute.xlu0 %790  ;;  %v1201_v55 = vld [vmem:[%s3024_s2 + $0x20] sm:$0xff] }
  0xa6   : > { %1062 = vrot.lane.b32.xlu1 %v2676_v30, %s2538_s28  ;;  %v799_v59 = vrot.slane %v791_v57, 4 }
  0xa7   : > { %v1018_v54 = vsel %vm1011_vm0, %v1000_v50, %v1009_v52  ;;  %1056 = vrot.lane.b32.xlu0 %v2694_v35, %s2538_s28  ;;  %v1197_v35 = vld [vmem:[%s3024_s2] sm:$0xff] }
  0xa8   : > { %1034 = vst [vmem:[#allocation3 + $0xf8] sm:$0xf] %v1018_v54  ;;  %v1002_v56 = vpop.permute.xlu1 %1001  ;;  %v808_v61 = vsel %vm800_vm1, %v791_v57, %v799_v59 }
  0xa9   : > { %v1010_v58 = vrot.slane %v1002_v56, 4  ;;  %824 = vst [vmem:[#allocation3 + $0x7c] sm:$0xf] %v808_v61  ;;  %v659_v63 = vpop.permute.xlu0 %658 }
  0xaa   : > { %1058 = vrot.lane.b32.xlu1 %v2692_v34, %s2538_s28  ;;  %v668_v1 = vrot.slane %v659_v63, 4 }
  0xab   : > { %v1019_v60 = vsel %vm1011_vm0, %v1002_v56, %v1010_v58  ;;  %1052 = vrot.lane.b32.xlu0 %v2710_v39, %s2538_s28  ;;  %v2539_v39 = vmov 0   ;;  %v1204_v58 = vld [vmem:[%s3024_s2 + $0x38] sm:$0xff] }
  0xac   : > { %1035 = vst [vmem:[#allocation3 + $0xfc] sm:$0xf] %v1019_v60  ;;  %v661_v62 = vpop.permute.xlu1 %660  ;;  %v677_v3 = vsel %vm670_vm2, %v659_v63, %v668_v1  ;;  %2423 = vset.pattern.permute.xlu0 %v2539_v39  ;;  %2424 = vset.pattern.permute.xlu1 %v2539_v39 }
  0xad   : > { %v669_v0 = vrot.slane %v661_v62, 4  ;;  %693 = vst [vmem:[#allocation3 + $0x38] sm:$0xf] %v677_v3  ;;  %v870_v5 = vpop.permute.xlu0 %869 }
  0xae   : > { %1054 = vrot.lane.b32.xlu1 %v2708_v38, %s2538_s28  ;;  %v879_v7 = vrot.slane %v870_v5, 4 }
  0xaf   : > { %v678_v2 = vsel %vm670_vm2, %v661_v62, %v669_v0  ;;  %1207 = vperm.xlu0 %2423, %v1197_v35   ;;  %v1203_v0 = vld [vmem:[%s3024_s2 + $0x30] sm:$0xff] }
  0xb0   : > { %694 = vst [vmem:[#allocation3 + $0x3c] sm:$0xf] %v678_v2  ;;  %v872_v4 = vpop.permute.xlu1 %871  ;;  %v888_v9 = vsel %vm881_vm3, %v870_v5, %v879_v7  ;;  %v2425_v10 = vld [vmem:[#allocation3 + $0x78] sm:$0xff]  }
  0xb1   : > { %v880_v6 = vrot.slane %v872_v4, 4  ;;  %904 = vst [vmem:[#allocation3 + $0xb8] sm:$0xf] %v888_v9  ;;  %v785_v12 = vpop.permute.xlu0 %784  ;;  %2262 = vmatprep.subr.bf16.mxu0 %v2425_v10 }
  0xb2   : > { %v796_v15 = vrot.slane %v785_v12, 4  ;;  %1212 = vperm.xlu1 %2424, %v1198_v36  }
  0xb3   : > { %v889_v8 = vsel %vm881_vm3, %v872_v4, %v880_v6  ;;  %v2426_v13 = vld [vmem:[#allocation3 + $0xf8] sm:$0xff]   ;;  %1222 = vperm.xlu0 %2423, %v1200_v40  }
  0xb4   : > { %905 = vst [vmem:[#allocation3 + $0xbc] sm:$0xf] %v889_v8  ;;  %v787_v11 = vpop.permute.xlu1 %786  ;;  %2302 = vmatprep.subr.bf16.mxu1 %v2426_v13  ;;  %v805_v17 = vsel %vm800_vm1, %v785_v12, %v796_v15 }
  0xb5   : > { %v797_v14 = vrot.slane %v787_v11, 4  ;;  %821 = vst [vmem:[#allocation3 + $0x70] sm:$0xf] %v805_v17  ;;  %v996_v20 = vpop.permute.xlu0 %995 }
  0xb6   : > { %v1007_v22 = vrot.slane %v996_v20, 4  ;;  %1217 = vperm.xlu1 %2424, %v1199_v46  }
  0xb7   : > { %v806_v16 = vsel %vm800_vm1, %v787_v11, %v797_v14  ;;  %v2427_v18 = vld [vmem:[#allocation3 + $0x38] sm:$0xff]   ;;  %1232 = vperm.xlu0 %2423, %v1202_v49  }
  0xb8   : > { %822 = vst [vmem:[#allocation3 + $0x74] sm:$0xf] %v806_v16  ;;  %v998_v19 = vpop.permute.xlu1 %997  ;;  %2263 = vmatpush3.bf16.msra.mxu0 %v2427_v18  ;;  %v1016_v24 = vsel %vm1011_vm0, %v996_v20, %v1007_v22 }
  0xb9   : > { %v1008_v21 = vrot.slane %v998_v19, 4  ;;  %1032 = vst [vmem:[#allocation3 + $0xf0] sm:$0xf] %v1016_v24  ;;  %v655_v27 = vpop.permute.xlu0 %654 }
  0xba   : > { %v666_v29 = vrot.slane %v655_v27, 4  ;;  %1227 = vperm.xlu1 %2424, %v1201_v55  }
  0xbb   : > { %v1017_v23 = vsel %vm1011_vm0, %v998_v19, %v1008_v21  ;;  %v2428_v25 = vld [vmem:[#allocation3 + $0xb8] sm:$0xff]   ;;  %1242 = vperm.xlu0 %2423, %v1204_v58  }
  0xbc   : > { %1033 = vst [vmem:[#allocation3 + $0xf4] sm:$0xf] %v1017_v23  ;;  %v657_v26 = vpop.permute.xlu1 %656  ;;  %2303 = vmatpush3.bf16.msra.mxu1 %v2428_v25  ;;  %v675_v31 = vsel %vm670_vm2, %v655_v27, %v666_v29 }
  0xbd   : > { %v667_v28 = vrot.slane %v657_v26, 4  ;;  %691 = vst [vmem:[#allocation3 + $0x30] sm:$0xf] %v675_v31  ;;  %v866_v34 = vpop.permute.xlu0 %865 }
  0xbe   : > { %v877_v38 = vrot.slane %v866_v34, 4  ;;  %1237 = vperm.xlu1 %2424, %v1203_v0  }
  0xbf   : > { %v676_v30 = vsel %vm670_vm2, %v657_v26, %v667_v28  ;;  %v2429_v32 = vld [vmem:[#allocation3 + $0x70] sm:$0xff]  }
  0xc0   : > { %692 = vst [vmem:[#allocation3 + $0x34] sm:$0xf] %v676_v30  ;;  %v868_v33 = vpop.permute.xlu1 %867  ;;  %2264 = vmatprep.subr.bf16.mxu0 %v2429_v32  ;;  %v886_v42 = vsel %vm881_vm3, %v866_v34, %v877_v38 }
  0xc1   : > { %v878_v37 = vrot.slane %v868_v33, 4  ;;  %902 = vst [vmem:[#allocation3 + $0xb0] sm:$0xf] %v886_v42  ;;  %v781_v45 = vpop.permute.xlu0 %780 }
  0xc2   : > { %v794_v48 = vrot.slane %v781_v45, 4 }
  0xc3   : > { %v887_v41 = vsel %vm881_vm3, %v868_v33, %v878_v37  ;;  %v2430_v43 = vld [vmem:[#allocation3 + $0xf0] sm:$0xff]  }
  0xc4   : > { %903 = vst [vmem:[#allocation3 + $0xb4] sm:$0xf] %v887_v41  ;;  %v783_v44 = vpop.permute.xlu1 %782  ;;  %2304 = vmatprep.subr.bf16.mxu1 %v2430_v43  ;;  %v803_v51 = vsel %vm800_vm1, %v781_v45, %v794_v48 }
  0xc5   : > { %v795_v47 = vrot.slane %v783_v44, 4  ;;  %819 = vst [vmem:[#allocation3 + $0x68] sm:$0xf] %v803_v51  ;;  %v992_v54 = vpop.permute.xlu0 %991 }
  0xc6   : > { %v1005_v57 = vrot.slane %v992_v54, 4 }
  0xc7   : > { %v804_v50 = vsel %vm800_vm1, %v783_v44, %v795_v47  ;;  %v2431_v52 = vld [vmem:[#allocation3 + $0x30] sm:$0xff]  }
  0xc8   : > { %820 = vst [vmem:[#allocation3 + $0x6c] sm:$0xf] %v804_v50  ;;  %v994_v53 = vpop.permute.xlu1 %993  ;;  %2265 = vmatpush3.bf16.msra.mxu0 %v2431_v52  ;;  %v1014_v60 = vsel %vm1011_vm0, %v992_v54, %v1005_v57 }
  0xc9   : > { %v1006_v56 = vrot.slane %v994_v53, 4  ;;  %1030 = vst [vmem:[#allocation3 + $0xe8] sm:$0xf] %v1014_v60  ;;  %v651_v63 = vpop.permute.xlu0 %650 }
  0xca   : > { %v664_v2 = vrot.slane %v651_v63, 4 }
  0xcb   : > { %v1015_v59 = vsel %vm1011_vm0, %v994_v53, %v1006_v56  ;;  %v2432_v61 = vld [vmem:[#allocation3 + $0xb0] sm:$0xff]  }
  0xcc   : > { %1031 = vst [vmem:[#allocation3 + $0xec] sm:$0xf] %v1015_v59  ;;  %v653_v62 = vpop.permute.xlu1 %652  ;;  %2305 = vmatpush3.bf16.msra.mxu1 %v2432_v61  ;;  %v673_v4 = vsel %vm670_vm2, %v651_v63, %v664_v2 }
  0xcd   : > { %v665_v1 = vrot.slane %v653_v62, 4  ;;  %689 = vst [vmem:[#allocation3 + $0x28] sm:$0xf] %v673_v4  ;;  %v862_v7 = vpop.permute.xlu0 %861 }
  0xce   : > { %v875_v9 = vrot.slane %v862_v7, 4 }
  0xcf   : > { %v674_v3 = vsel %vm670_vm2, %v653_v62, %v665_v1  ;;  %v2433_v5 = vld [vmem:[#allocation3 + $0x68] sm:$0xff]  }
  0xd0   : > { %690 = vst [vmem:[#allocation3 + $0x2c] sm:$0xf] %v674_v3  ;;  %v864_v6 = vpop.permute.xlu1 %863  ;;  %2266 = vmatprep.subr.bf16.mxu0 %v2433_v5  ;;  %v884_v11 = vsel %vm881_vm3, %v862_v7, %v875_v9  ;;  %v2445_v3 = vld [vmem:[#allocation3 + $0x98] sm:$0xff]  }
  0xd1   : > { %v876_v8 = vrot.slane %v864_v6, 4  ;;  %900 = vst [vmem:[#allocation3 + $0xa8] sm:$0xf] %v884_v11  ;;  %v777_v14 = vpop.permute.xlu0 %776 }
  0xd2   : > { %v792_v16 = vrot.slane %v777_v14, 4 }
  0xd3   : > { %v885_v10 = vsel %vm881_vm3, %v864_v6, %v876_v8  ;;  %v2434_v12 = vld [vmem:[#allocation3 + $0xe8] sm:$0xff]  }
  0xd4   : > { %901 = vst [vmem:[#allocation3 + $0xac] sm:$0xf] %v885_v10  ;;  %v779_v13 = vpop.permute.xlu1 %778  ;;  %2306 = vmatprep.subr.bf16.mxu1 %v2434_v12  ;;  %v801_v18 = vsel %vm800_vm1, %v777_v14, %v792_v16 }
  0xd5   : > { %v793_v15 = vrot.slane %v779_v13, 4  ;;  %817 = vst [vmem:[#allocation3 + $0x60] sm:$0xf] %v801_v18  ;;  %v988_v21 = vpop.permute.xlu0 %987 }
  0xd6   : > { %v1003_v23 = vrot.slane %v988_v21, 4 }
  0xd7   : > { %v802_v17 = vsel %vm800_vm1, %v779_v13, %v793_v15  ;;  %v2435_v19 = vld [vmem:[#allocation3 + $0x28] sm:$0xff]  }
  0xd8   : > { %818 = vst [vmem:[#allocation3 + $0x64] sm:$0xf] %v802_v17  ;;  %v990_v20 = vpop.permute.xlu1 %989  ;;  %2267 = vmatpush3.bf16.msra.mxu0 %v2435_v19  ;;  %v1012_v25 = vsel %vm1011_vm0, %v988_v21, %v1003_v23 }
  0xd9   : > { %v1004_v22 = vrot.slane %v990_v20, 4  ;;  %1028 = vst [vmem:[#allocation3 + $0xe0] sm:$0xf] %v1012_v25  ;;  %v647_v28 = vpop.permute.xlu0 %646  ;;  %v2449_v25 = vld [vmem:[#allocation3 + $0x90] sm:$0xff]  }
  0xda   : > { %v662_v30 = vrot.slane %v647_v28, 4 }
  0xdb   : > { %v1013_v24 = vsel %vm1011_vm0, %v990_v20, %v1004_v22  ;;  %v2436_v26 = vld [vmem:[#allocation3 + $0xa8] sm:$0xff]  }
  0xdc   : > { %1029 = vst [vmem:[#allocation3 + $0xe4] sm:$0xf] %v1013_v24  ;;  %v649_v27 = vpop.permute.xlu1 %648  ;;  %2307 = vmatpush3.bf16.msra.mxu1 %v2436_v26  ;;  %v671_v32 = vsel %vm670_vm2, %v647_v28, %v662_v30 }
  0xdd   : > { %v663_v29 = vrot.slane %v649_v27, 4  ;;  %687 = vst [vmem:[#allocation3 + $0x20] sm:$0xf] %v671_v32  ;;  %v858_v35 = vpop.permute.xlu0 %857 }
  0xde   : > { %v873_v37 = vrot.slane %v858_v35, 4 }
  0xdf   : > { %v672_v31 = vsel %vm670_vm2, %v649_v27, %v663_v29  ;;  %v2437_v33 = vld [vmem:[#allocation3 + $0x60] sm:$0xff]  }
  0xe0   : > { %688 = vst [vmem:[#allocation3 + $0x24] sm:$0xf] %v672_v31  ;;  %v860_v34 = vpop.permute.xlu1 %859  ;;  %2268 = vmatprep.subr.bf16.mxu0 %v2437_v33  ;;  %v882_v40 = vsel %vm881_vm3, %v858_v35, %v873_v37 }
  0xe1   : > { %v874_v36 = vrot.slane %v860_v34, 4  ;;  %898 = vst [vmem:[#allocation3 + $0xa0] sm:$0xf] %v882_v40  ;;  %v724_v43 = vpop.permute.xlu0 %723 }
  0xe2   : > { %v733_v45 = vrot.slane %v724_v43, 4 }
  0xe3   : > { %v883_v38 = vsel %vm881_vm3, %v860_v34, %v874_v36  ;;  %v2438_v41 = vld [vmem:[#allocation3 + $0xe0] sm:$0xff]  }
  0xe4   : > { %899 = vst [vmem:[#allocation3 + $0xa4] sm:$0xf] %v883_v38  ;;  %v726_v42 = vpop.permute.xlu1 %725  ;;  %2308 = vmatprep.subr.bf16.mxu1 %v2438_v41  ;;  %v742_v47 = vsel %vm735_vm4, %v724_v43, %v733_v45 }
  0xe5   : > { %v734_v44 = vrot.slane %v726_v42, 4  ;;  %758 = vst [vmem:[#allocation3 + $0x58] sm:$0xf] %v742_v47  ;;  %v935_v50 = vpop.permute.xlu0 %934 }
  0xe6   : > { %v944_v52 = vrot.slane %v935_v50, 4 }
  0xe7   : > { %v743_v46 = vsel %vm735_vm4, %v726_v42, %v734_v44  ;;  %v2439_v48 = vld [vmem:[#allocation3 + $0x20] sm:$0xff]  }
  0xe8   : > { %759 = vst [vmem:[#allocation3 + $0x5c] sm:$0xf] %v743_v46  ;;  %v937_v49 = vpop.permute.xlu1 %936  ;;  %2269 = vmatpush3.bf16.msra.mxu0 %v2439_v48  ;;  %v953_v54 = vsel %vm946_vm5, %v935_v50, %v944_v52  ;;  %v2453_v48 = vld [vmem:[#allocation3 + $0x88] sm:$0xff]  }
  0xe9   : > { %v945_v51 = vrot.slane %v937_v49, 4  ;;  %969 = vst [vmem:[#allocation3 + $0xd8] sm:$0xf] %v953_v54  ;;  %v594_v57 = vpop.permute.xlu0 %593 }
  0xea   : > { %v603_v59 = vrot.slane %v594_v57, 4 }
  0xeb   : > { %v954_v53 = vsel %vm946_vm5, %v937_v49, %v945_v51  ;;  %v2440_v55 = vld [vmem:[#allocation3 + $0xa0] sm:$0xff]  }
  0xec   : > { %970 = vst [vmem:[#allocation3 + $0xdc] sm:$0xf] %v954_v53  ;;  %v596_v56 = vpop.permute.xlu1 %595  ;;  %2309 = vmatpush3.bf16.msra.mxu1 %v2440_v55  ;;  %v612_v61 = vsel %vm605_vm6, %v594_v57, %v603_v59 }
  0xed   : > { %v604_v58 = vrot.slane %v596_v56, 4  ;;  %628 = vst [vmem:[#allocation3 + $0x18] sm:$0xf] %v612_v61  ;;  %v720_v0 = vpop.permute.xlu0 %719 }
  0xee   : > { %v731_v2 = vrot.slane %v720_v0, 4 }
  0xef   : > { %v613_v60 = vsel %vm605_vm6, %v596_v56, %v604_v58  ;;  %v2441_v62 = vld [vmem:[#allocation3 + $0x58] sm:$0xff]  }
  0xf0   : > { %629 = vst [vmem:[#allocation3 + $0x1c] sm:$0xf] %v613_v60  ;;  %v722_v63 = vpop.permute.xlu1 %721  ;;  %2270 = vmatprep.subr.bf16.mxu0 %v2441_v62  ;;  %v740_v5 = vsel %vm735_vm4, %v720_v0, %v731_v2 }
  0xf1   : > { %v732_v1 = vrot.slane %v722_v63, 4  ;;  %756 = vst [vmem:[#allocation3 + $0x50] sm:$0xf] %v740_v5  ;;  %v931_v8 = vpop.permute.xlu0 %930 }
  0xf2   : > { %v942_v10 = vrot.slane %v931_v8, 4 }
  0xf3   : > { %v741_v4 = vsel %vm735_vm4, %v722_v63, %v732_v1  ;;  %v2442_v6 = vld [vmem:[#allocation3 + $0xd8] sm:$0xff]  }
  0xf4   : > { %757 = vst [vmem:[#allocation3 + $0x54] sm:$0xf] %v741_v4  ;;  %v933_v7 = vpop.permute.xlu1 %932  ;;  %2310 = vmatprep.subr.bf16.mxu1 %v2442_v6  ;;  %v951_v12 = vsel %vm946_vm5, %v931_v8, %v942_v10  ;;  %v2455_v6 = vld [vmem:[#allocation3 + $0x80] sm:$0xff]  }
  0xf5   : > { %v943_v9 = vrot.slane %v933_v7, 4  ;;  %2311 = vmatpush3.bf16.msra.mxu1 %v2445_v3  ;;  %967 = vst [vmem:[#allocation3 + $0xd0] sm:$0xf] %v951_v12  ;;  %v590_v15 = vpop.permute.xlu0 %589 }
  0xf6   : > { %v601_v17 = vrot.slane %v590_v15, 4 }
  0xf7   : > { %v952_v11 = vsel %vm946_vm5, %v933_v7, %v943_v9  ;;  %v2443_v13 = vld [vmem:[#allocation3 + $0x18] sm:$0xff]  }
  0xf8   : > { %968 = vst [vmem:[#allocation3 + $0xd4] sm:$0xf] %v952_v11  ;;  %v592_v14 = vpop.permute.xlu1 %591  ;;  %2271 = vmatpush3.bf16.msra.mxu0 %v2443_v13  ;;  %v610_v19 = vsel %vm605_vm6, %v590_v15, %v601_v17  ;;  %v2464_v15 = vld [vmem:[%s3023_s1 + $0x34] ss:$20 sps:$4 sm:$0xff]  }
  0xf9   : > { %v602_v16 = vrot.slane %v592_v14, 4  ;;  %626 = vst [vmem:[#allocation3 + $0x10] sm:$0xf] %v610_v19  ;;  %v716_v22 = vpop.permute.xlu0 %715  ;;  %v2460_v19 = vld [vmem:[%s3023_s1] ss:$20 sps:$4 sm:$0xff]  }
  0xfa   : > { %v729_v24 = vrot.slane %v716_v22, 4 }
  0xfb   : > { %v611_v18 = vsel %vm605_vm6, %v592_v14, %v602_v16  ;;  %v2444_v20 = vld [vmem:[#allocation3 + $0x50] sm:$0xff]   ;;  %v2456_v14 = vld [vmem:[%s3023_s1 + $0x8] ss:$20 sps:$4 sm:$0xff]  }
  0xfc   : > { %627 = vst [vmem:[#allocation3 + $0x14] sm:$0xf] %v611_v18  ;;  %v718_v21 = vpop.permute.xlu1 %717  ;;  %2272 = vmatprep.subr.bf16.mxu0 %v2444_v20  ;;  %v738_v27 = vsel %vm735_vm4, %v716_v22, %v729_v24  ;;  %v2468_v24 = vld [vmem:[%s3023_s1 + $0x2c] ss:$20 sps:$4 sm:$0xff]  }
  0xfd   : > { %v730_v23 = vrot.slane %v718_v21, 4  ;;  %754 = vst [vmem:[#allocation3 + $0x48] sm:$0xf] %v738_v27  ;;  %v927_v30 = vpop.permute.xlu0 %926 }
  0xfe   : > { %v940_v32 = vrot.slane %v927_v30, 4 }
  0xff   : > { %v739_v26 = vsel %vm735_vm4, %v718_v21, %v730_v23  ;;  %v2446_v28 = vld [vmem:[#allocation3 + $0xd0] sm:$0xff]  }
 0x100   : > { %755 = vst [vmem:[#allocation3 + $0x4c] sm:$0xf] %v739_v26  ;;  %v929_v29 = vpop.permute.xlu1 %928  ;;  %2312 = vmatprep.subr.bf16.mxu1 %v2446_v28  ;;  %v949_v34 = vsel %vm946_vm5, %v927_v30, %v940_v32  ;;  %v2466_v30 = vld [vmem:[%s3023_s1 + $0x30] ss:$20 sps:$4 sm:$0xff]  }
 0x101   : > { %v941_v31 = vrot.slane %v929_v29, 4  ;;  %2313 = vmatpush3.bf16.msra.mxu1 %v2449_v25  ;;  %965 = vst [vmem:[#allocation3 + $0xc8] sm:$0xf] %v949_v34  ;;  %v586_v37 = vpop.permute.xlu0 %585 }
 0x102   : > { %v599_v40 = vrot.slane %v586_v37, 4 }
 0x103   : > { %v950_v33 = vsel %vm946_vm5, %v929_v29, %v941_v31  ;;  %v2447_v35 = vld [vmem:[#allocation3 + $0x10] sm:$0xff]  }
 0x104   : > { %966 = vst [vmem:[#allocation3 + $0xcc] sm:$0xf] %v950_v33  ;;  %v588_v36 = vpop.permute.xlu1 %587  ;;  %2273 = vmatpush3.bf16.msra.mxu0 %v2447_v35  ;;  %v608_v42 = vsel %vm605_vm6, %v586_v37, %v599_v40  ;;  %v2471_v33 = vld [vmem:[%s3023_s1 + $0x5c] ss:$20 sps:$4 sm:$0xff]  }
 0x105   : > { %v600_v38 = vrot.slane %v588_v36, 4  ;;  %624 = vst [vmem:[#allocation3 + $0x8] sm:$0xf] %v608_v42  ;;  %v712_v45 = vpop.permute.xlu0 %711  ;;  %v2470_v37 = vld [vmem:[%s3023_s1 + $0x28] ss:$20 sps:$4 sm:$0xff]  }
 0x106   : > { %v727_v47 = vrot.slane %v712_v45, 4  ;;  %v2478_v42 = vld [vmem:[%s3023_s1 + $0x84] ss:$20 sps:$4 sm:$0xff]  }
 0x107   : > { %v609_v41 = vsel %vm605_vm6, %v588_v36, %v600_v38  ;;  %v2448_v43 = vld [vmem:[#allocation3 + $0x48] sm:$0xff]  }
 0x108   : > { %625 = vst [vmem:[#allocation3 + $0xc] sm:$0xf] %v609_v41  ;;  %v714_v44 = vpop.permute.xlu1 %713  ;;  %2274 = vmatprep.subr.bf16.mxu0 %v2448_v43  ;;  %v736_v50 = vsel %vm735_vm4, %v712_v45, %v727_v47  ;;  %v2475_v38 = vld [vmem:[%s3023_s1 + $0x54] ss:$20 sps:$4 sm:$0xff]   ;;  %v2473_v41 = vld [vmem:[%s3023_s1 + $0x58] ss:$20 sps:$4 sm:$0xff]  }
 0x109   : > { %v728_v46 = vrot.slane %v714_v44, 4  ;;  %752 = vst [vmem:[#allocation3 + $0x40] sm:$0xf] %v736_v50  ;;  %v923_v53 = vpop.permute.xlu0 %922  ;;  %v2482_v45 = vld [vmem:[%s3023_s1 + $0x7c] ss:$20 sps:$4 sm:$0xff]  }
 0x10a   : > { %v938_v55 = vrot.slane %v923_v53, 4  ;;  %v2485_v47 = vld [vmem:[%s3023_s1 + $0x60] ss:$20 sps:$4 sm:$0xff]   ;;  %v2486_v50 = vld [vmem:[%s3023_s1 + $0x88] ss:$20 sps:$4 sm:$0xff]  }
 0x10b   : > { %v737_v49 = vsel %vm735_vm4, %v714_v44, %v728_v46  ;;  %v2450_v51 = vld [vmem:[#allocation3 + $0xc8] sm:$0xff]   ;;  %v2477_v44 = vld [vmem:[%s3023_s1 + $0x50] ss:$20 sps:$4 sm:$0xff]   ;;  %v2480_v46 = vld [vmem:[%s3023_s1 + $0x80] ss:$20 sps:$4 sm:$0xff]  }
 0x10c   : > { %753 = vst [vmem:[#allocation3 + $0x44] sm:$0xf] %v737_v49  ;;  %v925_v52 = vpop.permute.xlu1 %924  ;;  %2314 = vmatprep.subr.bf16.mxu1 %v2450_v51  ;;  %v947_v57 = vsel %vm946_vm5, %v923_v53, %v938_v55  ;;  %v2487_v49 = vld [vmem:[%s3023_s1 + $0x10] ss:$20 sps:$4 sm:$0xff]   ;;  %v2488_v51 = vld [vmem:[%s3023_s1 + $0x38] ss:$20 sps:$4 sm:$0xff]  }
 0x10d   : > { %v939_v54 = vrot.slane %v925_v52, 4  ;;  %2315 = vmatpush3.bf16.msra.mxu1 %v2453_v48  ;;  %963 = vst [vmem:[#allocation3 + $0xc0] sm:$0xf] %v947_v57  ;;  %v582_v60 = vpop.permute.xlu0 %581  ;;  %v2484_v48 = vld [vmem:[%s3023_s1 + $0x78] ss:$20 sps:$4 sm:$0xff]  }
 0x10e   : > { %v597_v62 = vrot.slane %v582_v60, 4 }
 0x10f   : > { %v948_v56 = vsel %vm946_vm5, %v925_v52, %v939_v54  ;;  %v2451_v58 = vld [vmem:[#allocation3 + $0x8] sm:$0xff]  }
 0x110   : > { %964 = vst [vmem:[#allocation3 + $0xc4] sm:$0xf] %v948_v56  ;;  %v584_v59 = vpop.permute.xlu1 %583  ;;  %2275 = vmatpush3.bf16.msra.mxu0 %v2451_v58  ;;  %v606_v0 = vsel %vm605_vm6, %v582_v60, %v597_v62 }
 0x111   : > { %v598_v61 = vrot.slane %v584_v59, 4  ;;  %622 = vst [vmem:[#allocation3] sm:$0xf] %v606_v0  ;;  %v1065_v3 = vpop.permute.xlu0 %1064 }
 0x112   : > { %v1074_v5 = vrot.slane %v1065_v3, 4 }
 0x113   : > { %v607_v63 = vsel %vm605_vm6, %v584_v59, %v598_v61  ;;  %v2452_v1 = vld [vmem:[#allocation3 + $0x40] sm:$0xff]  }
 0x114   : > { %623 = vst [vmem:[#allocation3 + $0x4] sm:$0xf] %v607_v63  ;;  %v1067_v2 = vpop.permute.xlu1 %1066  ;;  %2276 = vmatprep.subr.bf16.mxu0 %v2452_v1  ;;  %v1083_v8 = vsel %vm1076_vm7, %v1065_v3, %v1074_v5  ;;  %v1804_v5 = vlaneseq }
 0x115   : > { %v1075_v4 = vrot.slane %v1067_v2, 4  ;;  %1099 = vst [vmem:[#allocation3 + $0x118] sm:$0xf] %v1083_v8  ;;  %v1061_v11 = vpop.permute.xlu0 %1060 }
 0x116   : > { %v1072_v13 = vrot.slane %v1061_v11, 4 }
 0x117   : > { %v1084_v7 = vsel %vm1076_vm7, %v1067_v2, %v1075_v4  ;;  %v2454_v9 = vld [vmem:[#allocation3 + $0xc0] sm:$0xff]  }
 0x118   : > { %1100 = vst [vmem:[#allocation3 + $0x11c] sm:$0xf] %v1084_v7  ;;  %v1063_v10 = vpop.permute.xlu1 %1062  ;;  %2316 = vmatprep.subr.bf16.mxu1 %v2454_v9  ;;  %v1081_v17 = vsel %vm1076_vm7, %v1061_v11, %v1072_v13 }
 0x119   : > { %v1073_v12 = vrot.slane %v1063_v10, 4  ;;  %2317 = vmatpush3.bf16.msra.mxu1 %v2455_v6  ;;  %1097 = vst [vmem:[#allocation3 + $0x110] sm:$0xf] %v1081_v17  ;;  %v1057_v21 = vpop.permute.xlu0 %1056 }
 0x11a   : > { %v1070_v23 = vrot.slane %v1057_v21, 4 }
 0x11b   : > { %v1082_v16 = vsel %vm1076_vm7, %v1063_v10, %v1073_v12  ;;  %v2459_v18 = vld [vmem:[#allocation3] sm:$0xff]   ;;  %v1805_v12 = vshrl.u32 %v1804_v5, 7 }
 0x11c   : > { %1098 = vst [vmem:[#allocation3 + $0x114] sm:$0xf] %v1082_v16  ;;  %v1059_v20 = vpop.permute.xlu1 %1058  ;;  %2277 = vmatpush3.bf16.msra.mxu0 %v2459_v18  ;;  %1672 = vmatmul.mubr.bf16.vlgmr.msra.gmra.mxu1 %v2456_v14  ;;  %v1079_v26 = vsel %vm1076_vm7, %v1057_v21, %v1070_v23  ;;  %v1801_v10 = vld [vmem:[%s305_s26] sm:$0x1] }
 0x11d   : > { %v1071_v22 = vrot.slane %v1059_v20, 4  ;;  %1679 = vmatprep.mubr.bf16.mxu1 %v2464_v15  ;;  %1095 = vst [vmem:[#allocation3 + $0x108] sm:$0xf] %v1079_v26  ;;  %v1053_v29 = vpop.permute.xlu0 %1052  ;;  %vm1802_vm9 = vcmp.gt.f32.partialorder %v1801_v10, 0.0  ;;  %v2943_v26 = vld [vmem:[%s2653_s18 + $0x10] sm:$0xff]  }
 0x11e   : > { %v1068_v32 = vrot.slane %v1053_v29, 4  ;;  %v1803_v23 = vsel %vm1802_vm9, 1, %v2539_v39  ;;  %v2230_v39 = vunpack.c.l.bf16 %v2943_v26 }
 0x11f   : > { %v1080_v25 = vsel %vm1076_vm7, %v1059_v20, %v1071_v22  ;;  %v2463_v27 = vld [vmem:[#allocation3 + $0x118] sm:$0xff]   ;;  %1607 = vmatmul.mubr.bf16.vlgmr.msra.gmra.mxu0 %v2460_v19  ;;  %v1806_v19 = vsub.s32 0, %v1805_v12 }
 0x120   : > { %1096 = vst [vmem:[#allocation3 + $0x10c] sm:$0xf] %v1080_v25  ;;  %v1055_v28 = vpop.permute.xlu1 %1054  ;;  %2350 = vmatprep.subr.bf16.mxu0 %v2463_v27  ;;  %2366 = vmatprep.subr.bf16.mxu1 %v2463_v27  ;;  %v1077_v36 = vsel %vm1076_vm7, %v1053_v29, %v1068_v32  ;;  %v2946_v29 = vld [vmem:[%s2653_s18 + $0x18] sm:$0xff]   ;;  %v2952_v32 = vld [vmem:[%s2653_s18] sm:$0xff]  }
 0x121   : > { %v1069_v31 = vrot.slane %v1055_v28, 4  ;;  %2351 = vmatpush3.bf16.msra.mxu0 %v2463_v27  ;;  %2370 = vmatpush3.bf16.msra.mxu1 %v2463_v27  ;;  %1093 = vst [vmem:[#allocation3 + $0x100] sm:$0xf] %v1077_v36  ;;  %v2235_v12 = vunpack.c.h.bf16 %v2946_v29 }
 0x122   : > { %1614 = vmatprep.mubr.bf16.mxu0 %v2468_v24 }
 0x123   : > { %v2467_v34 = vld [vmem:[#allocation3 + $0x110] sm:$0xff]   ;;  %v1078_v35 = vsel %vm1076_vm7, %v1055_v28, %v1069_v31 }
 0x124   : > { %1094 = vst [vmem:[#allocation3 + $0x104] sm:$0xf] %v1078_v35  ;;  %1680 = vmatmul.mubr.bf16.gmra.mxu1 %v2466_v30  ;;  %2352 = vmatprep.subr.bf16.mxu0 %v2467_v34  ;;  %v2949_v30 = vld [vmem:[%s2653_s18 + $0x8] sm:$0xff]  }
 0x125   : > { %2367 = vmatprep.subr.bf16.mxu1 %v2467_v34  ;;  %2353 = vmatpush3.bf16.msra.mxu0 %v2467_v34 }
 0x126   : > { %2371 = vmatpush3.bf16.msra.mxu1 %v2467_v34  ;;  %1687 = vmatprep.mubr.bf16.mxu1 %v2471_v33  ;;  %v2954_v33 = vrot.slane %v1803_v23, %v1806_v19 }
 0x127   : > { %v2474_v40 = vld [vmem:[#allocation3 + $0x108] sm:$0xff]   ;;  %1615 = vmatmul.mubr.bf16.gmra.mxu0 %v2470_v37 }
 0x128   : > { %2354 = vmatprep.subr.bf16.mxu0 %v2474_v40  ;;  %2368 = vmatprep.subr.bf16.mxu1 %v2474_v40  ;;  %vm1808_vm10 = vcmp.eq.s32.totalorder %v2954_v33, 1 }
 0x129   : > { %1622 = vmatprep.mubr.bf16.mxu0 %v2475_v38  ;;  %2355 = vmatpush3.bf16.msra.mxu0 %v2474_v40 }
 0x12a   : > { %2372 = vmatpush3.bf16.msra.mxu1 %v2474_v40  ;;  %v1208_v8 = vpop.permute.xlu0 %1207 }
 0x12b   : > { %v2481_v43 = vld [vmem:[#allocation3 + $0x100] sm:$0xff]  }
 0x12c   : > { %1688 = vmatmul.mubr.bf16.gmra.mxu1 %v2473_v41  ;;  %2356 = vmatprep.subr.bf16.mxu0 %v2481_v43 }
 0x12d   : > { %1695 = vmatprep.mubr.bf16.mxu1 %v2478_v42  ;;  %2369 = vmatprep.subr.bf16.mxu1 %v2481_v43  ;;  %v2934_v2 = vpop.permute.xlu1 %1212  ;;  %v2234_v42 = vunpack.c.l.bf16 %v2946_v29 }
 0x12e   : > { %2357 = vmatpush3.bf16.msra.mxu0 %v2481_v43  ;;  %2373 = vmatpush3.bf16.msra.mxu1 %v2481_v43  ;;  %v1223_v16 = vpop.permute.xlu0 %1222  ;;  %v2226_v43 = vunpack.c.l.bf16 %v2949_v30 }
 0x12f   : > { %1623 = vmatmul.mubr.bf16.gmra.mxu0 %v2477_v44 }
 0x130   : > { %1630 = vmatprep.mubr.bf16.mxu0 %v2482_v45 }
 0x131   : > { %v1218_v13 = vpop.permute.xlu1 %1217 }
 0x132   : > { %v1233_v35 = vpop.permute.xlu0 %1232 }
 0x134   : > { %1696 = vmatmul.mubr.bf16.gmra.mxu1 %v2480_v46 }
 0x135   : > { %2362 = vmatprep.mubr.msk.bf16.mxu1 %vm1561_vm8, %v2485_v47  ;;  %v1228_v21 = vpop.permute.xlu1 %1227 }
 0x137   : > { %1631 = vmatmul.mubr.bf16.gmra.mxu0 %v2484_v48 }
 0x138   : > { %2358 = vmatprep.mubr.msk.bf16.mxu0 %vm1561_vm8, %v2487_v49  ;;  %v2222_v49 = vunpack.c.l.bf16 %v2952_v32 }
 0x139   : > { %v1238_v47 = vpop.permute.xlu1 %1237 }
 0x13c   : > { %2363 = vmatmul.mubr.msk.bf16.vlgmr.msra.gmra.mxu1 %vm1561_vm8, %v2486_v50 }
 0x13f   : > { %2359 = vmatmul.mubr.msk.bf16.vlgmr.msra.gmra.mxu0 %vm1561_vm8, %v2488_v51 }
 0x1dc   : > { %v2920_v52 = vpop.f32.mrf.mxu1 }
 0x1de   : > { %v2922_v53 = vpop.f32.mrf.mxu1 }
 0x1df   : > { %v2278_v54 = vpop.f32.mrf.mxu0 }
 0x1e0   : > { %v2924_v55 = vpop.f32.mrf.mxu1 }
 0x1e1   : > { %v2279_v56 = vpop.f32.mrf.mxu0 }
 0x1e2   : > { %v2926_v57 = vpop.f32.mrf.mxu1  ;;  %v2280_v27 = vadd.f32 %v2279_v56, %v2278_v54 }
 0x1e3   : > { %v2928_v58 = vpop.f32.mrf.mxu0 }
 0x1e4   : > { %v2324_v59 = vpop.f32.mrf.mxu1  ;;  %v1609_v44 = vadd.f32 %v2280_v27, %v1208_v8  ;;  %v2323_v27 = vadd.f32 %v2926_v57, %v2924_v55 }
 0x1e5   : > { %v2282_v60 = vpop.f32.mrf.mxu0 }
 0x1e6   : > { %v2325_v61 = vpop.f32.mrf.mxu1  ;;  %v2283_v5 = vadd.f32 %v2282_v60, %v2928_v58 }
 0x1e7   : > { %v2284_v62 = vpop.f32.mrf.mxu0  ;;  %v2326_v50 = vadd.f32 %v2325_v61, %v2324_v59 }
 0x1e8   : > { %v2930_v63 = vpop.f32.mrf.mxu1  ;;  %v1612_v60 = vadd.f32 %v2283_v5, %v2934_v2 }
 0x1e9   : > { %v2285_v0 = vpop.f32.mrf.mxu0 }
 0x1ea   : > { %v2932_v1 = vpop.f32.mrf.mxu1  ;;  %v2286_v24 = vadd.f32 %v2285_v0, %v2284_v62  ;;  %v2231_v62 = vunpack.c.h.bf16 %v2943_v26  ;;  %v2320_v0 = vadd.f32 %v2922_v53, %v2920_v52  ;;  %v2227_v26 = vunpack.c.h.bf16 %v2949_v30 }
 0x1eb   : > { %v2287_v3 = vpop.f32.mrf.mxu0 }
 0x1ec   : > { %v2330_v4 = vpop.f32.mrf.mxu1  ;;  %v1617_v38 = vadd.f32 %v2286_v24, %v1218_v13  ;;  %v1243_v13 = vpop.permute.xlu0 %1242 }
 0x1ed   : > { %v2288_v6 = vpop.f32.mrf.mxu0 }
 0x1ee   : > { %v2331_v7 = vpop.f32.mrf.mxu1  ;;  %v2289_v45 = vadd.f32 %v2288_v6, %v2287_v3 }
 0x1ef   : > { %v2290_v9 = vpop.f32.mrf.mxu0  ;;  %v2332_v46 = vadd.f32 %v2331_v7, %v2330_v4  ;;  %v1682_v7 = vadd.f32 %v2326_v50, %v1617_v38 }
 0x1f0   : > { %v2333_v11 = vpop.f32.mrf.mxu1  ;;  %v1620_v59 = vadd.f32 %v2289_v45, %v1223_v16 }
 0x1f1   : > { %v2291_v14 = vpop.f32.mrf.mxu0 }
 0x1f2   : > { %v2334_v15 = vpop.f32.mrf.mxu1  ;;  %v2292_v20 = vadd.f32 %v2291_v14, %v2290_v9 }
 0x1f3   : > { %v2293_v17 = vpop.f32.mrf.mxu0  ;;  %v2335_v61 = vadd.f32 %v2334_v15, %v2333_v11 }
 0x1f4   : > { %v2336_v18 = vpop.f32.mrf.mxu1  ;;  %v1625_v34 = vadd.f32 %v2292_v20, %v1228_v21  ;;  %v2329_v21 = vadd.f32 %v2932_v1, %v2930_v63  ;;  %v2223_v1 = vunpack.c.h.bf16 %v2952_v32 }
 0x1f5   : > { %v2294_v22 = vpop.f32.mrf.mxu0 }
 0x1f6   : > { %v2337_v25 = vpop.f32.mrf.mxu1  ;;  %v2295_v36 = vadd.f32 %v2294_v22, %v2293_v17  ;;  %v1690_v8 = vadd.f32 %v2332_v46, %v1625_v34 }
 0x1f7   : > { %v2296_v28 = vpop.f32.mrf.mxu0  ;;  %v2338_v51 = vadd.f32 %v2337_v25, %v2336_v18  ;;  %v1674_v18 = vadd.f32 %v2320_v0, %v1609_v44 }
 0x1f8   : > { %v2339_v31 = vpop.f32.mrf.mxu1  ;;  %v1628_v9 = vadd.f32 %v2295_v36, %v1233_v35 }
 0x1f9   : > { %v2297_v37 = vpop.f32.mrf.mxu0 }
 0x1fa   : > { %v2298_v40 = vadd.f32 %v2297_v37, %v2296_v28  ;;  %v2340_v41 = vpop.f32.mrf.mxu1  ;;  %v1693_v24 = vadd.f32 %v2335_v61, %v1628_v9 }
 0x1fb   : > { %v2299_v48 = vpop.f32.mrf.mxu0  ;;  %v2341_v19 = vadd.f32 %v2340_v41, %v2339_v31  ;;  %v1685_v31 = vadd.f32 %v2329_v21, %v1620_v59 }
 0x1fc   : > { %v1633_v54 = vadd.f32 %v2298_v40, %v1238_v47  ;;  %v2364_v56 = vpop.f32.mrf.mxu1 }
 0x1fd   : > { %v2300_v10 = vpop.f32.mrf.mxu0 }
 0x1fe   : > { %v1698_v3 = vadd.f32 %v2338_v51, %v1633_v54  ;;  %v2301_v4 = vadd.f32 %v2300_v10, %v2299_v48  ;;  %v1754_v6 = vpop.f32.mrf.mxu1 }
 0x1ff   : > { %v1755_v14 = vadd.f32 %v1754_v6, %v1690_v8  ;;  %v2360_v17 = vpop.f32.mrf.mxu0 }
 0x200   : > { %v1763_v20 = vadd.f32 %v2364_v56, %v1698_v3  ;;  %v1636_v52 = vadd.f32 %v2301_v4, %v1243_v13  ;;  %v1747_v53 = vadd.f32 %v2360_v17, %v1682_v7  ;;  %v2365_v58 = vpop.f32.mrf.mxu1 }
 0x201   : > { %v1789_v22 = vadd.f32 %v2230_v39, %v1755_v14  ;;  %v1738_v23 = vpop.f32.mrf.mxu0  ;;  %v1677_v39 = vadd.f32 %v2323_v27, %v1612_v60 }
 0x202   : > { %v1791_v25 = vadd.f32 %v2234_v42, %v1763_v20  ;;  %v1701_v16 = vadd.f32 %v2341_v19, %v1636_v52  ;;  %v1739_v11 = vadd.f32 %v1738_v23, %v1674_v18  ;;  %v1757_v15 = vpop.f32.mrf.mxu1  ;;  %v1787_v28 = vadd.f32 %v2226_v43, %v1747_v53 }
 0x203   : > { %v1758_v29 = vadd.f32 %v1757_v15, %v1693_v24  ;;  %v2361_v34 = vpop.f32.mrf.mxu0  ;;  %v1797_v2 = vmax.f32 %v1789_v22, 0.0 }
 0x204   : > { %v1766_v63 = vadd.f32 %v2365_v58, %v1701_v16  ;;  %v1785_v35 = vadd.f32 %v2222_v49, %v1739_v11  ;;  %v1750_v37 = vadd.f32 %v2361_v34, %v1685_v31  ;;  %v1799_v40 = vmax.f32 %v1791_v25, 0.0 }
 0x205   : > { %v1790_v36 = vadd.f32 %v2231_v62, %v1758_v29  ;;  %v1741_v38 = vpop.f32.mrf.mxu0  ;;  %v1795_v41 = vmax.f32 %v1787_v28, 0.0  ;;  %v1813_v43 = vsel %vm1808_vm10, %v1797_v2, 0.0 }
 0x206   : > { %v1792_v30 = vadd.f32 %v2235_v12, %v1766_v63  ;;  %v1788_v55 = vadd.f32 %v2227_v26, %v1750_v37  ;;  %v1742_v57 = vadd.f32 %v1741_v38, %v1677_v39  ;;  %v1793_v45 = vmax.f32 %v1785_v35, 0.0 }
 0x207   : > { %v1798_v42 = vmax.f32 %v1790_v36, 0.0  ;;  %v1815_v48 = vsel %vm1808_vm10, %v1799_v40, 0.0  ;;  %v1811_v51 = vsel %vm1808_vm10, %v1795_v41, 0.0 }
 0x208   : > { %v1800_v44 = vmax.f32 %v1792_v30, 0.0  ;;  %v1796_v46 = vmax.f32 %v1788_v55, 0.0  ;;  %v1786_v47 = vadd.f32 %v2223_v1, %v1742_v57  ;;  %v1809_v5 = vsel %vm1808_vm10, %v1793_v45, 0.0 }
 0x209   : > { %v1814_v32 = vsel %vm1808_vm10, %v1798_v42, 0.0 }
 0x20a   : > { %v1816_v49 = vsel %vm1808_vm10, %v1800_v44, 0.0  ;;  %v2249_v50 = vpack.c.bf16 %v1814_v32, %v1813_v43  ;;  %v1812_v56 = vsel %vm1808_vm10, %v1796_v46, 0.0  ;;  %v1794_v62 = vmax.f32 %v1786_v47, 0.0 }
 0x20b   : > { %v2254_v54 = vpack.c.bf16 %v1816_v49, %v1815_v48  ;;  %v2244_v0 = vpack.c.bf16 %v1812_v56, %v1811_v51  ;;  %1863 = sbr.rel (!%p2604_p5) target bundleno = 538 (0x21a), region = 163 }
 0x20c   : > { %2260 = vst [vmem:[%s2656_s8 + $0x10] sm:$0xff] %v2249_v50   ;;  %v1810_v9 = vsel %vm1808_vm10, %v1794_v62, 0.0 }
 0x20d   : > { %2261 = vst [vmem:[%s2656_s8 + $0x18] sm:$0xff] %v2254_v54   ;;  %2259 = vst [vmem:[%s2656_s8 + $0x8] sm:$0xff] %v2244_v0   ;;  %v2239_v10 = vpack.c.bf16 %v1810_v9, %v1809_v5 }
 0x20f   : > { %2240 = vst [vmem:[%s2656_s8] sm:$0xff] %v2239_v10  }
 0x213   : > { %v1892_v6 = vld [vmem:[%s2656_s8 + $0x10] sm:$0xf]  ;;  %v1894_v7 = vld [vmem:[%s2656_s8 + $0x14] sm:$0xf] }
 0x214   : > { %v1888_v33 = vld [vmem:[%s2656_s8 + $0x8] sm:$0xf]  ;;  %v1890_v4 = vld [vmem:[%s2656_s8 + $0xc] sm:$0xf]  ;;  %2202 = vst [vmem:[%s1995_s27 + $0x44] sm:$0xf] %v1892_v6 }
 0x215   : > { %2200 = vst [vmem:[%s1995_s27 + $0x24] sm:$0xf] %v1888_v33  ;;  %2201 = vst [vmem:[%s1995_s27 + $0x34] sm:$0xf] %v1890_v4  ;;  %v1896_v12 = vld [vmem:[%s2656_s8 + $0x18] sm:$0xf] }
 0x216   : > { %v1884_v8 = vld [vmem:[%s2656_s8] sm:$0xf]  ;;  %v1886_v3 = vld [vmem:[%s2656_s8 + $0x4] sm:$0xf]  ;;  %v1898_v59 = vld [vmem:[%s2656_s8 + $0x1c] sm:$0xf] }
 0x217   : > { %2198 = vst [vmem:[%s1995_s27 + $0x4] sm:$0xf] %v1884_v8  ;;  %2199 = vst [vmem:[%s1995_s27 + $0x14] sm:$0xf] %v1886_v3 }
 0x218   : > { %2203 = vst [vmem:[%s1995_s27 + $0x54] sm:$0xf] %v1894_v7  ;;  %2204 = vst [vmem:[%s1995_s27 + $0x64] sm:$0xf] %v1896_v12 }
 0x219   : > { %2205 = vst [vmem:[%s1995_s27 + $0x74] sm:$0xf] %v1898_v59 }
 0x21a PF: > { %s15_s22 = sadd.s32 1, %s2529_s22   ;;  %s3029_s18 = smov %s2517_s19 }
 0x21b   : > { %p12_p12 = scmp.ge.s32.totalorder %s15_s22, 4   ;;  %s3030_s19 = smov %s2609_s30 }
 0x21c   : > { %s3031_s20 = smov %s2525_s21  ;;  %s3032_s21 = smov %s2600_s25 }
 0x21d   :  { %14 = sbr.rel (!%p12_p12) target bundleno = 3 (0x3), region = 273 }
 0x222   :  { %1949 = vsyncmov [#allocation4] }
 0x225   :  { %s1950_s29 = vpop.sfrf %1949 }
 0x226   :  { %p2208_p13 = scmp.ne.s32.totalorder %s1950_s29, 0 }
 0x228   :  { %1954 = shalt.err (%p2208_p13)  }
 0x229   :  { %1956 = vsyncmov [#allocation4 + $0x1] }
 0x22c   :  { %s1957_s8 = vpop.sfrf %1956 }
 0x22d   :  { %p2209_p0 = scmp.ne.s32.totalorder %s1957_s8, 0 }
 0x22f   :  { %1961 = shalt.err (%p2209_p0)  }

</bundles_post_ra>
